<compile_context>
chip_gen: v6e
topology: v6e:2x2x1
jax: 0.10.0
libtpu: 0.0.40
codegen_flags: <defaults>
</compile_context>

<pallas_src>
import functools

import jax
import jax.numpy as jnp
from jax.experimental import pallas as pl
from jax.experimental.pallas import tpu as pltpu

# bf16 operands feed the MXU at native rate on v6e/v7x (fine on v5e too);
# accumulation, bias add and ReLU stay f32.  Set to jnp.float32 for a
# bit-tight correctness check.
COMPUTE_DTYPE = jnp.bfloat16


def _round_up(x, m):
    return (x + m - 1) // m * m


# ----------------------------------------------------------------------------
# Fused kernel: conv3x3+ReLU -> conv3x3+ReLU -> conv1x1, one batch image/step.
#
# Layout: activations are 2-D (flattened padded spatial rows, channels) with
# padded width Wp.  For a flattened zero-padded image, conv tap (dy, dx) is the
# contiguous row slice shifted by (dy-1)*Wp + (dx-1) relative to the interior
# offset OFF.  Positions whose column index falls in the pad region produce
# garbage; they are zeroed with the mask before being reused as the next
# layer's halo buffer and are discarded by the host for the final output.
# ----------------------------------------------------------------------------
def _fused_model_kernel(xcol_ref, w1_ref, b1_ref, w2_ref, b2_ref, w3_ref,
                        b3_ref, out_ref, pad_ref, col2_ref, *,
                        Wp, W, GM, OFF, cd):
    f32 = jnp.float32
    c1 = pad_ref.shape[1]
    flat = pad_ref.shape[0]

    # ---- backbone conv1: ONE (GM, 9*Cin) @ (9*Cin, C1) MXU matmul ----------
    acc1 = jnp.dot(xcol_ref[0], w1_ref[...], preferred_element_type=f32)
    # Valid-column mask (flat position % Wp < W), generated in-kernel.
    col = jax.lax.broadcasted_iota(jnp.int32, (GM, c1), 0) % Wp
    maskf = (col < W).astype(f32)
    h1 = jnp.maximum(acc1 + b1_ref[...], 0.0) * maskf          # zero pad cols

    # Zero ONLY the halo rows each step (interior is fully overwritten below;
    # pad columns inside the interior are already zeroed by the mask).
    pad_ref[0:OFF, :] = jnp.zeros((OFF, c1), pad_ref.dtype)
    pad_ref[OFF + GM:flat, :] = jnp.zeros((flat - OFF - GM, c1), pad_ref.dtype)
    pad_ref[OFF:OFF + GM, :] = h1.astype(pad_ref.dtype)

    # ---- backbone conv2: build (GM, 9*C1) im2col slab, ONE K=144 matmul ----
    for dy in range(3):
        for dx in range(3):
            t = dy * 3 + dx
            s = (dy - 1) * Wp + (dx - 1) + OFF
            col2_ref[:, t * c1:(t + 1) * c1] = pad_ref[s:s + GM, :]
    acc2 = jnp.dot(col2_ref[...], w2_ref[...], preferred_element_type=f32)
    h2 = jnp.maximum(acc2 + b2_ref[...], 0.0)

    # ---- decode head: 1x1 conv C2 -> num_classes ---------------------------
    logits = jnp.dot(h2.astype(cd), w3_ref[...],
                     preferred_element_type=f32) + b3_ref[...]
    out_ref[0] = logits.astype(out_ref.dtype)


# ----------------------------------------------------------------------------
# SimpleModel forward: backbone -> decode_head (single fused pallas_call).
# ----------------------------------------------------------------------------
def simple_model_forward(x_nchw, params, *, compute_dtype=COMPUTE_DTYPE):
    n, cin, h, w = x_nchw.shape
    wp = _round_up(w + 2, 8)                  # sublane-aligned padded width
    gm = h * wp                               # flat positions computed / image
    off = _round_up(wp + 1, 8)                # interior offset in pad scratch
    flat = _round_up(off + gm + wp + 1, 8)    # rows needed by the largest tap

    # --- cheap glue: NCHW -> flattened padded NHWC -> host im2col (K=9*Cin) -
    x = jnp.transpose(x_nchw, (0, 2, 3, 1)).astype(jnp.float32)      # NHWC
    xp = jnp.pad(x, ((0, 0), (1, 1), (1, wp - w - 1), (0, 0)))       # (h+2, wp)
    xflat = jnp.pad(xp.reshape(n, (h + 2) * wp, cin),
                    ((0, 0), (0, wp), (0, 0)))                       # slack
    taps = [xflat[:, dy * wp + dx: dy * wp + dx + gm, :]
            for dy in range(3) for dx in range(3)]
    xcol = jnp.concatenate(taps, axis=-1).astype(compute_dtype)      # (n,gm,36)

    # --- weights: OIHW -> (kh*kw*Cin, Cout); biases -> (1, C) f32 -----------
    def prep3x3(wt):
        co, ci, kh, kw = wt.shape
        return jnp.transpose(wt, (2, 3, 1, 0)).reshape(kh * kw * ci, co)

    w1 = prep3x3(params["bb_w1"]).astype(compute_dtype)              # (36, c1)
    w2 = prep3x3(params["bb_w2"]).astype(compute_dtype)              # (144,c2)
    w3 = params["dh_w"][:, :, 0, 0].T.astype(compute_dtype)          # (c2, nc)
    b1 = params["bb_b1"].reshape(1, -1).astype(jnp.float32)
    b2 = params["bb_b2"].reshape(1, -1).astype(jnp.float32)
    b3 = params["dh_b"].reshape(1, -1).astype(jnp.float32)
    c1, c2, nc = w1.shape[-1], w2.shape[-1], w3.shape[-1]

    kernel = functools.partial(_fused_model_kernel, Wp=wp, W=w, GM=gm, OFF=off,
                               cd=compute_dtype)

    out = pl.pallas_call(
        kernel,
        out_shape=jax.ShapeDtypeStruct((n, gm, nc), compute_dtype),
        grid_spec=pltpu.PrefetchScalarGridSpec(
            num_scalar_prefetch=0,
            grid=(n,),                                    # one image per step
            in_specs=[
                pl.BlockSpec((1, gm, 9 * cin), lambda i: (i, 0, 0)),  # im2col x
                pl.BlockSpec((9 * cin, c1), lambda i: (0, 0)),        # w1
                pl.BlockSpec((1, c1), lambda i: (0, 0)),              # b1
                pl.BlockSpec((9 * c1, c2), lambda i: (0, 0)),         # w2
                pl.BlockSpec((1, c2), lambda i: (0, 0)),              # b2
                pl.BlockSpec((c2, nc), lambda i: (0, 0)),             # w3
                pl.BlockSpec((1, nc), lambda i: (0, 0)),              # b3
            ],
            out_specs=pl.BlockSpec((1, gm, nc), lambda i: (i, 0, 0)),
            scratch_shapes=[
                pltpu.VMEM((flat, c1), compute_dtype),     # padded h1 buffer
                pltpu.VMEM((gm, 9 * c1), compute_dtype),   # conv2 im2col slab
            ],
        ),
        compiler_params=pltpu.CompilerParams(
            dimension_semantics=("parallel",)),            # megacore on v7x
    )(xcol, w1, b1, w2, b2, w3, b3)

    # (N, H*Wp, NC): drop pad columns, back to NCHW (matches PyTorch output).
    out = out.astype(jnp.float32).reshape(n, h, wp, nc)[:, :, :w, :]
    return jnp.transpose(out, (0, 3, 1, 2))


# ----------------------------------------------------------------------------
# Params + plain-JAX reference (correctness sanity check only).
# ----------------------------------------------------------------------------
def init_params(key, cin=4, c1=16, c2=32, num_classes=8):
    ks = jax.random.split(key, 6)

    def conv_init(k, cout, cin_, kh, kw):
        fan_in = cin_ * kh * kw
        return jax.random.normal(k, (cout, cin_, kh, kw), jnp.float32) / jnp.sqrt(fan_in)

    return {
        "bb_w1": conv_init(ks[0], c1, cin, 3, 3),
        "bb_b1": jax.random.normal(ks[1], (c1,), jnp.float32) * 0.01,
        "bb_w2": conv_init(ks[2], c2, c1, 3, 3),
        "bb_b2": jax.random.normal(ks[3], (c2,), jnp.float32) * 0.01,
        "dh_w":  conv_init(ks[4], num_classes, c2, 1, 1),
        "dh_b":  jax.random.normal(ks[5], (num_classes,), jnp.float32) * 0.01,
    }


def _ref_conv(x_nhwc, w_oihw, b, relu):
    out = jax.lax.conv_general_dilated(
        x_nhwc, jnp.transpose(w_oihw, (2, 3, 1, 0)),
        window_strides=(1, 1),
        padding="SAME" if w_oihw.shape[2] > 1 else "VALID",
        dimension_numbers=("NHWC", "HWIO", "NHWC"))
    out = out + b
    return jnp.maximum(out, 0.0) if relu else out


def _ref_forward(x_nchw, p):
    x = jnp.transpose(x_nchw, (0, 2, 3, 1))
    x = _ref_conv(x, p["bb_w1"], p["bb_b1"], True)
    x = _ref_conv(x, p["bb_w2"], p["bb_b2"], True)
    x = _ref_conv(x, p["dh_w"], p["dh_b"], False)
    return jnp.transpose(x, (0, 3, 1, 2))


if __name__ == "__main__":
    key = jax.random.PRNGKey(0)
    k_x, k_p = jax.random.split(key)

    # Small NCHW image batch implied by the forward.
    x = jax.random.normal(k_x, (2, 4, 16, 16), jnp.float32)
    params = init_params(k_p)

    out = jax.jit(simple_model_forward)(x, params)
    out = jax.block_until_ready(out)

    ref = _ref_forward(x, params)
    assert out.shape == (2, 8, 16, 16), out.shape
    tol = 1e-3 if COMPUTE_DTYPE == jnp.float32 else 5e-2   # bf16 MXU path
    err = float(jnp.max(jnp.abs(out - ref)))
    assert jnp.allclose(out, ref, atol=tol, rtol=tol), f"mismatch vs reference (max abs err {err})"

    print("KERNEL_OK")
</pallas_src>

<mosaic_0001>
module attributes {stable_mosaic.version = 11 : i64} {
  func.func @_fused_model_kernel(%arg0: i32, %arg1: memref<1x384x36xbf16, #tpu.memory_space<vmem>>, %arg2: memref<36x16xbf16, #tpu.memory_space<vmem>>, %arg3: memref<1x16xf32, #tpu.memory_space<vmem>>, %arg4: memref<144x32xbf16, #tpu.memory_space<vmem>>, %arg5: memref<1x32xf32, #tpu.memory_space<vmem>>, %arg6: memref<32x8xbf16, #tpu.memory_space<vmem>>, %arg7: memref<1x8xf32, #tpu.memory_space<vmem>>, %arg8: memref<1x384x8xbf16, #tpu.memory_space<vmem>>, %arg9: memref<448x16xbf16, #tpu.memory_space<vmem>>, %arg10: memref<384x144xbf16, #tpu.memory_space<vmem>>) attributes {dimension_semantics = [#tpu.dimension_semantics<parallel>], iteration_bounds = array<i64: 2>, scalar_prefetch = 0 : i64, scratch_operands = 2 : i64, tpu.core_type = #tpu.core_type<tc>, window_params = [{transform_indices = @transform_0, window_bounds = array<i64: 1, 384, 36>}, {pipeline_mode = #tpu.pipeline_mode<synchronous>, transform_indices = @transform_1, window_bounds = array<i64: 36, 16>}, {pipeline_mode = #tpu.pipeline_mode<synchronous>, transform_indices = @transform_2, window_bounds = array<i64: 1, 16>}, {pipeline_mode = #tpu.pipeline_mode<synchronous>, transform_indices = @transform_3, window_bounds = array<i64: 144, 32>}, {pipeline_mode = #tpu.pipeline_mode<synchronous>, transform_indices = @transform_4, window_bounds = array<i64: 1, 32>}, {pipeline_mode = #tpu.pipeline_mode<synchronous>, transform_indices = @transform_5, window_bounds = array<i64: 32, 8>}, {pipeline_mode = #tpu.pipeline_mode<synchronous>, transform_indices = @transform_6, window_bounds = array<i64: 1, 8>}, {transform_indices = @transform_7, window_bounds = array<i64: 1, 384, 8>}]} {
    %c0 = arith.constant 0 : index
    %c0_0 = arith.constant 0 : index
    %c0_1 = arith.constant 0 : index
    %0 = vector.load %arg1[%c0, %c0_0, %c0_1] : memref<1x384x36xbf16, #tpu.memory_space<vmem>>, vector<1x384x36xbf16>
    %1 = vector.shape_cast %0 : vector<1x384x36xbf16> to vector<384x36xbf16>
    %c0_2 = arith.constant 0 : index
    %c0_3 = arith.constant 0 : index
    %2 = vector.load %arg2[%c0_2, %c0_3] : memref<36x16xbf16, #tpu.memory_space<vmem>>, vector<36x16xbf16>
    %cst = arith.constant dense<0.000000e+00> : vector<384x16xf32>
    %3 = tpu.matmul %1, %2, %cst {dimension_numbers = #tpu.dot_dimension_numbers<[1], [0], [0], [1], [0, 0, 1, 1], [], []>} : vector<384x36xbf16>, vector<36x16xbf16>, vector<384x16xf32> -> vector<384x16xf32>
    %4 = tpu.iota {dimensions = array<i32: 0>} : vector<384x16xi32>
    %c24_i32 = arith.constant 24 : i32
    %c0_i32 = arith.constant 0 : i32
    %5 = arith.cmpi eq, %c24_i32, %c0_i32 : i32
    %c1_i32 = arith.constant 1 : i32
    %6 = arith.select %5, %c1_i32, %c24_i32 : i32
    %7 = vector.broadcast %6 : i32 to vector<384x16xi32>
    %8 = arith.remsi %4, %7 : vector<384x16xi32>
    %c0_i32_4 = arith.constant 0 : i32
    %9 = vector.broadcast %c0_i32_4 : i32 to vector<384x16xi32>
    %10 = arith.cmpi ne, %8, %9 : vector<384x16xi32>
    %c0_i32_5 = arith.constant 0 : i32
    %11 = vector.broadcast %c0_i32_5 : i32 to vector<384x16xi32>
    %12 = arith.cmpi slt, %8, %11 : vector<384x16xi32>
    %c0_i32_6 = arith.constant 0 : i32
    %13 = arith.cmpi slt, %6, %c0_i32_6 : i32
    %14 = vector.broadcast %13 : i1 to vector<384x16xi1>
    %15 = vector.broadcast %14 : vector<384x16xi1> to vector<384x16xi1>
    %16 = arith.xori %12, %15 : vector<384x16xi1>
    %17 = arith.andi %16, %10 : vector<384x16xi1>
    %18 = vector.broadcast %6 : i32 to vector<384x16xi32>
    %19 = arith.addi %8, %18 : vector<384x16xi32>
    %20 = arith.select %17, %19, %8 : vector<384x16xi1>, vector<384x16xi32>
    %c16_i32 = arith.constant 16 : i32
    %21 = vector.broadcast %c16_i32 : i32 to vector<384x16xi32>
    %22 = arith.cmpi slt, %20, %21 : vector<384x16xi32>
    %23 = arith.extui %22 : vector<384x16xi1> to vector<384x16xi32>
    %24 = arith.sitofp %23 : vector<384x16xi32> to vector<384x16xf32>
    %c0_7 = arith.constant 0 : index
    %c0_8 = arith.constant 0 : index
    %25 = vector.load %arg3[%c0_7, %c0_8] : memref<1x16xf32, #tpu.memory_space<vmem>>, vector<1x16xf32>
    %26 = vector.broadcast %25 : vector<1x16xf32> to vector<384x16xf32>
    %27 = arith.addf %3, %26 : vector<384x16xf32>
    %cst_9 = arith.constant 0.000000e+00 : f32
    %28 = vector.broadcast %cst_9 : f32 to vector<384x16xf32>
    %29 = arith.maximumf %27, %28 : vector<384x16xf32>
    %30 = arith.mulf %29, %24 : vector<384x16xf32>
    %cst_10 = arith.constant 0.000000e+00 : bf16
    %31 = vector.broadcast %cst_10 : bf16 to vector<32x16xbf16>
    %c0_11 = arith.constant 0 : index
    %c0_12 = arith.constant 0 : index
    %32 = vector.load %arg9[%c0_11, %c0_12] : memref<448x16xbf16, #tpu.memory_space<vmem>>, vector<32x16xbf16>
    tpu.vector_store %arg9[%c0_11, %c0_12], %31 {strides = array<i32>} : memref<448x16xbf16, #tpu.memory_space<vmem>>, vector<32x16xbf16>,
    %cst_13 = arith.constant 0.000000e+00 : bf16
    %33 = vector.broadcast %cst_13 : bf16 to vector<32x16xbf16>
    %c416 = arith.constant 416 : index
    %c0_14 = arith.constant 0 : index
    %34 = vector.load %arg9[%c416, %c0_14] : memref<448x16xbf16, #tpu.memory_space<vmem>>, vector<32x16xbf16>
    tpu.vector_store %arg9[%c416, %c0_14], %33 {strides = array<i32>} : memref<448x16xbf16, #tpu.memory_space<vmem>>, vector<32x16xbf16>,
    %35 = arith.truncf %30 : vector<384x16xf32> to vector<384x16xbf16>
    %c32 = arith.constant 32 : index
    %c0_15 = arith.constant 0 : index
    %36 = vector.load %arg9[%c32, %c0_15] : memref<448x16xbf16, #tpu.memory_space<vmem>>, vector<384x16xbf16>
    tpu.vector_store %arg9[%c32, %c0_15], %35 {strides = array<i32>} : memref<448x16xbf16, #tpu.memory_space<vmem>>, vector<384x16xbf16>,
    %c7 = arith.constant 7 : index
    %c0_16 = arith.constant 0 : index
    %37 = vector.load %arg9[%c7, %c0_16] : memref<448x16xbf16, #tpu.memory_space<vmem>>, vector<384x16xbf16>
    %c0_17 = arith.constant 0 : index
    %c0_18 = arith.constant 0 : index
    %38 = vector.load %arg10[%c0_17, %c0_18] : memref<384x144xbf16, #tpu.memory_space<vmem>>, vector<384x16xbf16>
    tpu.vector_store %arg10[%c0_17, %c0_18], %37 {strides = array<i32>} : memref<384x144xbf16, #tpu.memory_space<vmem>>, vector<384x16xbf16>,
    %c8 = arith.constant 8 : index
    %c0_19 = arith.constant 0 : index
    %39 = vector.load %arg9[%c8, %c0_19] : memref<448x16xbf16, #tpu.memory_space<vmem>>, vector<384x16xbf16>
    %c0_20 = arith.constant 0 : index
    %c16 = arith.constant 16 : index
    %40 = vector.load %arg10[%c0_20, %c16] : memref<384x144xbf16, #tpu.memory_space<vmem>>, vector<384x16xbf16>
    tpu.vector_store %arg10[%c0_20, %c16], %39 {strides = array<i32>} : memref<384x144xbf16, #tpu.memory_space<vmem>>, vector<384x16xbf16>,
    %c9 = arith.constant 9 : index
    %c0_21 = arith.constant 0 : index
    %41 = vector.load %arg9[%c9, %c0_21] : memref<448x16xbf16, #tpu.memory_space<vmem>>, vector<384x16xbf16>
    %c0_22 = arith.constant 0 : index
    %c32_23 = arith.constant 32 : index
    %42 = vector.load %arg10[%c0_22, %c32_23] : memref<384x144xbf16, #tpu.memory_space<vmem>>, vector<384x16xbf16>
    tpu.vector_store %arg10[%c0_22, %c32_23], %41 {strides = array<i32>} : memref<384x144xbf16, #tpu.memory_space<vmem>>, vector<384x16xbf16>,
    %c31 = arith.constant 31 : index
    %c0_24 = arith.constant 0 : index
    %43 = vector.load %arg9[%c31, %c0_24] : memref<448x16xbf16, #tpu.memory_space<vmem>>, vector<384x16xbf16>
    %c0_25 = arith.constant 0 : index
    %c48 = arith.constant 48 : index
    %44 = vector.load %arg10[%c0_25, %c48] : memref<384x144xbf16, #tpu.memory_space<vmem>>, vector<384x16xbf16>
    tpu.vector_store %arg10[%c0_25, %c48], %43 {strides = array<i32>} : memref<384x144xbf16, #tpu.memory_space<vmem>>, vector<384x16xbf16>,
    %c32_26 = arith.constant 32 : index
    %c0_27 = arith.constant 0 : index
    %45 = vector.load %arg9[%c32_26, %c0_27] : memref<448x16xbf16, #tpu.memory_space<vmem>>, vector<384x16xbf16>
    %c0_28 = arith.constant 0 : index
    %c64 = arith.constant 64 : index
    %46 = vector.load %arg10[%c0_28, %c64] : memref<384x144xbf16, #tpu.memory_space<vmem>>, vector<384x16xbf16>
    tpu.vector_store %arg10[%c0_28, %c64], %45 {strides = array<i32>} : memref<384x144xbf16, #tpu.memory_space<vmem>>, vector<384x16xbf16>,
    %c33 = arith.constant 33 : index
    %c0_29 = arith.constant 0 : index
    %47 = vector.load %arg9[%c33, %c0_29] : memref<448x16xbf16, #tpu.memory_space<vmem>>, vector<384x16xbf16>
    %c0_30 = arith.constant 0 : index
    %c80 = arith.constant 80 : index
    %48 = vector.load %arg10[%c0_30, %c80] : memref<384x144xbf16, #tpu.memory_space<vmem>>, vector<384x16xbf16>
    tpu.vector_store %arg10[%c0_30, %c80], %47 {strides = array<i32>} : memref<384x144xbf16, #tpu.memory_space<vmem>>, vector<384x16xbf16>,
    %c55 = arith.constant 55 : index
    %c0_31 = arith.constant 0 : index
    %49 = vector.load %arg9[%c55, %c0_31] : memref<448x16xbf16, #tpu.memory_space<vmem>>, vector<384x16xbf16>
    %c0_32 = arith.constant 0 : index
    %c96 = arith.constant 96 : index
    %50 = vector.load %arg10[%c0_32, %c96] : memref<384x144xbf16, #tpu.memory_space<vmem>>, vector<384x16xbf16>
    tpu.vector_store %arg10[%c0_32, %c96], %49 {strides = array<i32>} : memref<384x144xbf16, #tpu.memory_space<vmem>>, vector<384x16xbf16>,
    %c56 = arith.constant 56 : index
    %c0_33 = arith.constant 0 : index
    %51 = vector.load %arg9[%c56, %c0_33] : memref<448x16xbf16, #tpu.memory_space<vmem>>, vector<384x16xbf16>
    %c0_34 = arith.constant 0 : index
    %c112 = arith.constant 112 : index
    %52 = vector.load %arg10[%c0_34, %c112] : memref<384x144xbf16, #tpu.memory_space<vmem>>, vector<384x16xbf16>
    tpu.vector_store %arg10[%c0_34, %c112], %51 {strides = array<i32>} : memref<384x144xbf16, #tpu.memory_space<vmem>>, vector<384x16xbf16>,
    %c57 = arith.constant 57 : index
    %c0_35 = arith.constant 0 : index
    %53 = vector.load %arg9[%c57, %c0_35] : memref<448x16xbf16, #tpu.memory_space<vmem>>, vector<384x16xbf16>
    %c0_36 = arith.constant 0 : index
    %c128 = arith.constant 128 : index
    %54 = vector.load %arg10[%c0_36, %c128] : memref<384x144xbf16, #tpu.memory_space<vmem>>, vector<384x16xbf16>
    tpu.vector_store %arg10[%c0_36, %c128], %53 {strides = array<i32>} : memref<384x144xbf16, #tpu.memory_space<vmem>>, vector<384x16xbf16>,
    %c0_37 = arith.constant 0 : index
    %c0_38 = arith.constant 0 : index
    %55 = vector.load %arg10[%c0_37, %c0_38] : memref<384x144xbf16, #tpu.memory_space<vmem>>, vector<384x144xbf16>
    %c0_39 = arith.constant 0 : index
    %c0_40 = arith.constant 0 : index
    %56 = vector.load %arg4[%c0_39, %c0_40] : memref<144x32xbf16, #tpu.memory_space<vmem>>, vector<144x32xbf16>
    %cst_41 = arith.constant dense<0.000000e+00> : vector<384x32xf32>
    %57 = tpu.matmul %55, %56, %cst_41 {dimension_numbers = #tpu.dot_dimension_numbers<[1], [0], [0], [1], [0, 0, 1, 1], [], []>} : vector<384x144xbf16>, vector<144x32xbf16>, vector<384x32xf32> -> vector<384x32xf32>
    %c0_42 = arith.constant 0 : index
    %c0_43 = arith.constant 0 : index
    %58 = vector.load %arg5[%c0_42, %c0_43] : memref<1x32xf32, #tpu.memory_space<vmem>>, vector<1x32xf32>
    %59 = vector.broadcast %58 : vector<1x32xf32> to vector<384x32xf32>
    %60 = arith.addf %57, %59 : vector<384x32xf32>
    %cst_44 = arith.constant 0.000000e+00 : f32
    %61 = vector.broadcast %cst_44 : f32 to vector<384x32xf32>
    %62 = arith.maximumf %60, %61 : vector<384x32xf32>
    %63 = arith.truncf %62 : vector<384x32xf32> to vector<384x32xbf16>
    %c0_45 = arith.constant 0 : index
    %c0_46 = arith.constant 0 : index
    %64 = vector.load %arg6[%c0_45, %c0_46] : memref<32x8xbf16, #tpu.memory_space<vmem>>, vector<32x8xbf16>
    %cst_47 = arith.constant dense<0.000000e+00> : vector<384x8xf32>
    %65 = tpu.matmul %63, %64, %cst_47 {dimension_numbers = #tpu.dot_dimension_numbers<[1], [0], [0], [1], [0, 0, 1, 1], [], []>} : vector<384x32xbf16>, vector<32x8xbf16>, vector<384x8xf32> -> vector<384x8xf32>
    %c0_48 = arith.constant 0 : index
    %c0_49 = arith.constant 0 : index
    %66 = vector.load %arg7[%c0_48, %c0_49] : memref<1x8xf32, #tpu.memory_space<vmem>>, vector<1x8xf32>
    %67 = vector.broadcast %66 : vector<1x8xf32> to vector<384x8xf32>
    %68 = arith.addf %65, %67 : vector<384x8xf32>
    %69 = arith.truncf %68 : vector<384x8xf32> to vector<384x8xbf16>
    %c0_50 = arith.constant 0 : index
    %c0_51 = arith.constant 0 : index
    %c0_52 = arith.constant 0 : index
    %70 = vector.load %arg8[%c0_50, %c0_51, %c0_52] : memref<1x384x8xbf16, #tpu.memory_space<vmem>>, vector<1x384x8xbf16>
    %71 = vector.shape_cast %70 : vector<1x384x8xbf16> to vector<384x8xbf16>
    %72 = vector.shape_cast %69 : vector<384x8xbf16> to vector<1x384x8xbf16>
    tpu.vector_store %arg8[%c0_50, %c0_51, %c0_52], %72 {strides = array<i32>} : memref<1x384x8xbf16, #tpu.memory_space<vmem>>, vector<1x384x8xbf16>,
    return
  }
  func.func @transform_0(%arg0: i32) -> (i32, i32, i32) {
    %c0_i32 = arith.constant 0 : i32
    %c0_i32_0 = arith.constant 0 : i32
    %c0_i32_1 = arith.constant 0 : i32
    return %arg0, %c0_i32, %c0_i32_0 : i32, i32, i32
  }
  func.func @transform_1(%arg0: i32) -> (i32, i32) {
    %c0_i32 = arith.constant 0 : i32
    %c0_i32_0 = arith.constant 0 : i32
    %c0_i32_1 = arith.constant 0 : i32
    return %c0_i32, %c0_i32_0 : i32, i32
  }
  func.func @transform_2(%arg0: i32) -> (i32, i32) {
    %c0_i32 = arith.constant 0 : i32
    %c0_i32_0 = arith.constant 0 : i32
    %c0_i32_1 = arith.constant 0 : i32
    return %c0_i32, %c0_i32_0 : i32, i32
  }
  func.func @transform_3(%arg0: i32) -> (i32, i32) {
    %c0_i32 = arith.constant 0 : i32
    %c0_i32_0 = arith.constant 0 : i32
    %c0_i32_1 = arith.constant 0 : i32
    return %c0_i32, %c0_i32_0 : i32, i32
  }
  func.func @transform_4(%arg0: i32) -> (i32, i32) {
    %c0_i32 = arith.constant 0 : i32
    %c0_i32_0 = arith.constant 0 : i32
    %c0_i32_1 = arith.constant 0 : i32
    return %c0_i32, %c0_i32_0 : i32, i32
  }
  func.func @transform_5(%arg0: i32) -> (i32, i32) {
    %c0_i32 = arith.constant 0 : i32
    %c0_i32_0 = arith.constant 0 : i32
    %c0_i32_1 = arith.constant 0 : i32
    return %c0_i32, %c0_i32_0 : i32, i32
  }
  func.func @transform_6(%arg0: i32) -> (i32, i32) {
    %c0_i32 = arith.constant 0 : i32
    %c0_i32_0 = arith.constant 0 : i32
    %c0_i32_1 = arith.constant 0 : i32
    return %c0_i32, %c0_i32_0 : i32, i32
  }
  func.func @transform_7(%arg0: i32) -> (i32, i32, i32) {
    %c0_i32 = arith.constant 0 : i32
    %c0_i32_0 = arith.constant 0 : i32
    %c0_i32_1 = arith.constant 0 : i32
    return %arg0, %c0_i32, %c0_i32_0 : i32, i32, i32
  }
}

</mosaic_0001>

<bundles_post_ra>
// kernel: simple_model_forward.1
= control target key start
LH: loop header
LB: loop body
LE: loop exit
PB: predicated region body
PF: predicated region fallthrough
CT: control target
= control target key end

     0   :  { %s9173_s24 = smov 0   ;;  %s14359_s0 = inlined_call_operand.vmem [shape: bf16[2,384,36], index: 0, kind: input, shape index: {}]   ;;  %s14360_s1 = inlined_call_operand.vmem [shape: bf16[36,16], index: 1, kind: input, shape index: {}]   ;;  %s14361_s2 = inlined_call_operand.vmem [shape: f32[1,16], index: 2, kind: input, shape index: {}]   ;;  %s14362_s3 = inlined_call_operand.vmem [shape: bf16[144,32], index: 3, kind: input, shape index: {}]   ;;  %s14363_s4 = inlined_call_operand.vmem [shape: f32[1,32], index: 4, kind: input, shape index: {}]   ;;  %s14364_s5 = inlined_call_operand.vmem [shape: bf16[32,8], index: 5, kind: input, shape index: {}]   ;;  %s14365_s6 = inlined_call_operand.vmem [shape: f32[1,8], index: 6, kind: input, shape index: {}]   ;;  %s14366_s7 = inlined_call_operand.vmem [shape: bf16[2,384,8], index: 7, kind: output, shape index: {}]  }
   0x1 LB: > { %s8304_s25 = sadd.s32 4294967295, %s9122_s24   ;;  %p8308_p0 = scmp.ge.s32.totalorder %s9122_s24, 1  ;;  %s9122_s24 = sphi %s9173_s24, %s17_s24  }
   0x2   : > { %p237_p1 = scmp.lt.s32.totalorder %s9122_s24, 3 }
   0x4   : > { %p238_p2 = pnand %p8308_p0, %p237_p1 }
   0x6   : > { %241 = sbr.rel (%p238_p2) target bundleno = 1441 (0x5a1), region = 48 }
   0xb   : > { %v9009_v0 = vld [vmem:[%s14360_s1 + $0x10] ss:$0 sps:$4 sm:$0x33]   ;;  %vm1509_vm0 = vcmask 1041408   ;;  %v9010_v1 = vld [vmem:[%s14360_s1 + $0x8] sm:$0xff]   ;;  %p269_p3 = scmp.lt.s32.totalorder %s8304_s25, 1  ;;  %v333_v24 = vlaneseq }
   0xc   : > { %8894 = vmatprep.subr.msk.bf16.mxu0 %vm1509_vm0, %v9009_v0  ;;  %v1511_v2 = vsel %vm1509_vm0, %v9009_v0, 0  ;;  %v9011_v3 = vld [vmem:[%s14360_s1] sm:$0xff]   ;;  %vm1436_vm1 = vcmask 293888   ;;  %vm1834_vm2 = vcmask 125952   ;;  %v14370_v16 = vmov 0   ;;  %s9125_s13 = smov 16  }
   0xd   : > { %8771 = vmatpush3.bf16.msra.mxu0 %v1511_v2  ;;  %s14611_s25 = smov (!%p269_p3, %s8304_s25), 1  ;;  %1836 = vst.msk [vmem:[#allocation2 + $0x4] sm:$0xf] %vm1834_vm2, %v14370_v16  ;;  %1835 = vst.msk [vmem:[#allocation2] sm:$0xf] %vm1834_vm2, %v14370_v16  ;;  %8876 = vmatprep.subr.bf16.mxu1 %v14370_v16  ;;  %v9253_v25 = vshrl.u32 %v333_v24, 7 }
   0xe   : > { %8772 = vmatprep.subr.bf16.mxu0 %v9010_v1  ;;  %s8895_s9 = smul.u32 192, %s14611_s25  ;;  %1837 = vst.msk [vmem:[#allocation2 + $0x8] sm:$0xf] %vm1834_vm2, %v14370_v16  ;;  %1838 = vst.msk [vmem:[#allocation2 + $0xc] sm:$0xf] %vm1834_vm2, %v14370_v16  ;;  %s9127_s16 = smov 64  }
   0xf   : > { %1839 = vst.msk [vmem:[#allocation2 + $0xd0] sm:$0xf] %vm1834_vm2, %v14370_v16  ;;  %1840 = vst.msk [vmem:[#allocation2 + $0xd4] sm:$0xf] %vm1834_vm2, %v14370_v16  ;;  %v336_v26 = vadd.s32 16, %v9253_v25  ;;  %v337_v29 = vadd.s32 24, %v9253_v25 }
  0x10   : > { %s9198_s12 = scalar_lea.vmem %s14359_s0, %s8895_s9  ;;  %1841 = vst.msk [vmem:[#allocation2 + $0xd8] sm:$0xf] %vm1834_vm2, %v14370_v16  ;;  %1842 = vst.msk [vmem:[#allocation2 + $0xdc] sm:$0xf] %vm1834_vm2, %v14370_v16  ;;  %v335_v30 = vadd.s32 8, %v9253_v25  ;;  %v340_v33 = vadd.s32 48, %v9253_v25 }
  0x11   : > { %8773 = vmatpush3.bf16.msra.mxu0 %v9010_v1  ;;  %v9012_v4 = vld [vmem:[%s9198_s12] sm:$0xff]   ;;  %v9013_v5 = vld [vmem:[%s9198_s12 + $0x8] sm:$0xff]   ;;  %v9014_v6 = vld [vmem:[%s9198_s12 + $0x10] sm:$0xff]   ;;  %14395 = vst [vmem:[#allocation4_spill] sm:$0xff] %v9253_v25  ;;  %v9256_v27 = vmul.u32.u64.low 2863311531, %v336_v26  ;;  %v9257_v28 = vmul.u32.u64.high 2863311531, %v336_v26, %v9256_v27 }
  0x12   : > { %8774 = vmatprep.subr.bf16.mxu0 %v9011_v3  ;;  %8776 = vmatprep.mubr.msk.bf16.mxu0 %vm1436_vm1, %v9012_v4  ;;  %v9015_v7 = vld [vmem:[%s9198_s12 + $0x18] sm:$0xff]   ;;  %v9016_v8 = vld [vmem:[%s9198_s12 + $0x20] sm:$0xff]   ;;  %v9017_v9 = vld [vmem:[%s9198_s12 + $0x28] sm:$0xff]   ;;  %v9262_v31 = vmul.u32.u64.low 2863311531, %v9253_v25  ;;  %v9263_v32 = vmul.u32.u64.high 2863311531, %v9253_v25, %v9262_v31  ;;  %v338_v34 = vadd.s32 32, %v9253_v25 }
  0x13   : > { %v9018_v10 = vld [vmem:[%s9198_s12 + $0x30] sm:$0xff]   ;;  %v9019_v11 = vld [vmem:[%s9198_s12 + $0x38] sm:$0xff]   ;;  %v9020_v12 = vld [vmem:[%s9198_s12 + $0x40] sm:$0xff]   ;;  %v9267_v35 = vmul.u32.u64.low 2863311531, %v337_v29  ;;  %v9268_v36 = vmul.u32.u64.high 2863311531, %v337_v29, %v9267_v35  ;;  %v410_v41 = vshrl.u32 %v9257_v28, 4 }
  0x14   : > { %v9021_v13 = vld [vmem:[%s9198_s12 + $0x48] sm:$0xff]   ;;  %v9022_v14 = vld [vmem:[%s9198_s12 + $0x50] sm:$0xff]   ;;  %v9023_v15 = vld [vmem:[%s9198_s12 + $0x58] sm:$0xff]   ;;  %v9270_v37 = vmul.u32.u64.low 2863311531, %v335_v30  ;;  %v9271_v38 = vmul.u32.u64.high 2863311531, %v335_v30, %v9270_v37  ;;  %v388_v44 = vshrl.u32 %v9263_v32, 4 }
  0x15   : > { %8775 = vmatpush3.bf16.msra.mxu0 %v9011_v3  ;;  %v2667_v17 = vld [vmem:[#allocation2 + $0x4] sm:$0xf]  ;;  %v2669_v18 = vld [vmem:[#allocation2 + $0xc] sm:$0xf]  ;;  %v2668_v19 = vld [vmem:[#allocation2 + $0x8] sm:$0xf] }
  0x16   : > { %7390 = vmatprep.subr.bf16.mxu0 %v14370_v16  ;;  %2763 = vrot.lane.b32.xlu0 %v2667_v17, %s9125_s13  ;;  %v9024_v20 = vld [vmem:[%s9198_s12 + $0x60] sm:$0xff]   ;;  %v9025_v21 = vld [vmem:[%s9198_s12 + $0x68] sm:$0xff]   ;;  %v9026_v22 = vld [vmem:[%s9198_s12 + $0x70] sm:$0xff]   ;;  %v9273_v39 = vmul.u32.u64.low 2863311531, %v340_v33  ;;  %v9274_v40 = vmul.u32.u64.high 2863311531, %v340_v33, %v9273_v39  ;;  %v411_v45 = vmul.u32 24, %v410_v41 }
  0x17   : > { %2767 = vrot.lane.b32.xlu1 %v2669_v18, %s9125_s13  ;;  %v9027_v23 = vld [vmem:[%s9198_s12 + $0x78] sm:$0xff]   ;;  %v9277_v42 = vmul.u32.u64.low 2863311531, %v338_v34  ;;  %v9278_v43 = vmul.u32.u64.high 2863311531, %v338_v34, %v9277_v42  ;;  %v421_v46 = vshrl.u32 %v9268_v36, 4  ;;  %v399_v47 = vshrl.u32 %v9271_v38, 4  ;;  %s9128_s17 = smov 32  }
  0x18   : > { %8777 = vmatmul.mubr.msk.bf16.vlgmr.msra.gmra.mxu0 %vm1436_vm1, %v9013_v5  ;;  %v389_v48 = vmul.u32 24, %v388_v44  ;;  %v341_v49 = vadd.s32 56, %v9253_v25  ;;  %v454_v50 = vshrl.u32 %v9274_v40, 4  ;;  %v412_v51 = vsub.s32 %v336_v26, %v411_v45  ;;  %v2958_v36 = vld [vmem:[#allocation2 + $0xc] sm:$0xf]  ;;  %s9129_s18 = smov 112  }
  0x19   : > { %8780 = vmatprep.mubr.msk.bf16.mxu0 %vm1436_vm1, %v9014_v6  ;;  %v432_v52 = vshrl.u32 %v9278_v43, 4  ;;  %v422_v53 = vmul.u32 24, %v421_v46  ;;  %v400_v54 = vmul.u32 24, %v399_v47  ;;  %v9287_v55 = vadd.s32 40, %v9253_v25  ;;  %s9130_s19 = smov 80   ;;  %s9131_s20 = smov 48  }
  0x1a   : > { %2765 = vrot.lane.b32.xlu0 %v2668_v19, %s9125_s13  ;;  %v390_v56 = vsub.s32 %v9253_v25, %v389_v48  ;;  %v9290_v57 = vmul.u32.u64.low 2863311531, %v341_v49  ;;  %v9291_v58 = vmul.u32.u64.high 2863311531, %v341_v49, %v9290_v57  ;;  %v455_v59 = vmul.u32 24, %v454_v50  ;;  %s9132_s11 = smov 96  }
  0x1b   : > { %v9294_v60 = vadd.s32 64, %v9253_v25  ;;  %vm912_vm3 = vcmp.ne.s32.totalorder %v412_v51, 0  ;;  %vm960_vm4 = vcmp.lt.s32.totalorder %v412_v51, 0  ;;  %v433_v61 = vmul.u32 24, %v432_v52 }
  0x1c   : > { %v423_v62 = vsub.s32 %v337_v29, %v422_v53  ;;  %v401_v63 = vsub.s32 %v335_v30, %v400_v54  ;;  %v9297_v0 = vmul.u32.u64.low 2863311531, %v9287_v55  ;;  %v9298_v1 = vmul.u32.u64.high 2863311531, %v9287_v55, %v9297_v0  ;;  %vm9307_vm7 = vmand %vm960_vm4, %vm912_vm3 }
  0x1d   : > { %vm910_vm5 = vcmp.ne.s32.totalorder %v390_v56, 0  ;;  %vm958_vm6 = vcmp.lt.s32.totalorder %v390_v56, 0  ;;  %v9301_v2 = vadd.s32 80, %v9253_v25  ;;  %v456_v3 = vsub.s32 %v340_v33, %v455_v59 }
  0x1e   : > { %v9304_v4 = vmul.u32.u64.low 2863311531, %v9294_v60  ;;  %v9305_v5 = vmul.u32.u64.high 2863311531, %v9294_v60, %v9304_v4  ;;  %vm9311_vm8 = vmand %vm958_vm6, %vm910_vm5  ;;  %vm913_vm9 = vcmp.ne.s32.totalorder %v423_v62, 0  ;;  %vm961_vm10 = vcmp.lt.s32.totalorder %v423_v62, 0 }
  0x1f   : > { %vm911_vm11 = vcmp.ne.s32.totalorder %v401_v63, 0  ;;  %vm959_vm12 = vcmp.lt.s32.totalorder %v401_v63, 0  ;;  %vm916_vm13 = vcmp.ne.s32.totalorder %v456_v3, 0  ;;  %vm964_vm14 = vcmp.lt.s32.totalorder %v456_v3, 0  ;;  %vm9324_vm15 = vmand %vm961_vm10, %vm913_vm9  ;;  %v2083_v4 = vld [vmem:[#allocation2] sm:$0x8] }
  0x20   : > { %8781 = vmatmul.mubr.msk.bf16.gmra.mxu0 %vm1436_vm1, %v9015_v7  ;;  %v1056_v7 = vadd.s32 24, %v412_v51  ;;  %v1057_v18 = vadd.s32 24, %v423_v62  ;;  %vm9328_vm4 = vmand %vm959_vm12, %vm911_vm11  ;;  %v476_v28 = vshrl.u32 %v9305_v5, 4  ;;  %v14367_v37 = vmov 0.0   ;;  %v2084_v5 = vld [vmem:[#allocation2 + $0x4] sm:$0xf] }
  0x21   : > { %8784 = vmatprep.mubr.msk.bf16.mxu0 %vm1436_vm1, %v9016_v8  ;;  %v1054_v8 = vadd.s32 24, %v390_v56  ;;  %vm9333_vm5 = vmand %vm964_vm14, %vm916_vm13  ;;  %v9360_v41 = vadd.s32 88, %v9253_v25  ;;  %v3028_v43 = vshll.u32 %v2958_v36, 16  ;;  %v3032_v44 = vshrl.u32 %v2958_v36, 16 }
  0x22   : > { %v1105_v29 = vsel %vm9324_vm15, %v1057_v18, %v423_v62  ;;  %v477_v40 = vmul.u32 24, %v476_v28  ;;  %v9368_v46 = vadd.s32 72, %v9253_v25  ;;  %v9380_v50 = vadd.s32 96, %v9253_v25  ;;  %v2086_v62 = vld [vmem:[#allocation2 + $0xc] sm:$0xf] }
  0x23   : > { %vm1153_vm9 = vcmp.lt.s32.totalorder %v1105_v29, 16  ;;  %v9387_v53 = vmul.u32.u64.low 2863311531, %v9360_v41  ;;  %v9388_v54 = vmul.u32.u64.high 2863311531, %v9360_v41, %v9387_v53  ;;  %v9398_v57 = vrot.slane %v3028_v43, 5 }
  0x24   : > { %v9371_v47 = vsel %vm1153_vm9, 1.0, %v14367_v37  ;;  %v2136_v6 = vshrl.u32 %v2083_v4, 16 }
  0x25   : > { %14410 = vst [vmem:[#allocation5_spill] sm:$0xff] %v9398_v57  ;;  %v509_v17 = vshrl.u32 %v9388_v54, 4 }
  0x27   : > { %v510_v54 = vmul.u32 24, %v509_v17 }
  0x28   : > { %8785 = vmatmul.mubr.msk.bf16.gmra.mxu0 %vm1436_vm1, %v9017_v9  ;;  %v434_v9 = vsub.s32 %v338_v34, %v433_v61 }
  0x29   : > { %8788 = vmatprep.mubr.msk.bf16.mxu0 %vm1436_vm1, %v9018_v10 }
  0x2a   : > { %vm914_vm0 = vcmp.ne.s32.totalorder %v434_v9, 0  ;;  %vm962_vm3 = vcmp.lt.s32.totalorder %v434_v9, 0  ;;  %v1058_v24 = vadd.s32 24, %v434_v9 }
  0x2b   : > { %vm9337_vm6 = vmand %vm962_vm3, %vm914_vm0 }
  0x2c   : > { %v1106_v33 = vsel %vm9337_vm6, %v1058_v24, %v434_v9  ;;  %v2159_v9 = vshrl.u32 %v2086_v62, 16 }
  0x2d   : > { %vm1154_vm12 = vcmp.lt.s32.totalorder %v1106_v33, 16 }
  0x2e   : > { %v9461_v27 = vrot.slane %v2159_v9, 7 }
  0x30   : > { %8789 = vmatmul.mubr.msk.bf16.gmra.mxu0 %vm1436_vm1, %v9019_v11  ;;  %v465_v11 = vshrl.u32 %v9291_v58, 4  ;;  %v9400_v58 = vrot.slane %v3032_v44, 4 }
  0x31   : > { %8792 = vmatprep.mubr.msk.bf16.mxu0 %vm1436_vm1, %v9020_v12 }
  0x32   : > { %v466_v26 = vmul.u32 24, %v465_v11 }
  0x34   : > { %v9350_v34 = vsub.s32 %v341_v49, %v466_v26  ;;  %v9377_v49 = vsub.s32 %v9294_v60, %v477_v40  ;;  %v9407_v60 = vmul.u32.u64.low 2863311531, %v9368_v46  ;;  %v9408_v61 = vmul.u32.u64.high 2863311531, %v9368_v46, %v9407_v60 }
  0x36   : > { %vm917_vm13 = vcmp.ne.s32.totalorder %v9350_v34, 0  ;;  %vm965_vm14 = vcmp.lt.s32.totalorder %v9350_v34, 0  ;;  %v1061_v52 = vadd.s32 24, %v9350_v34  ;;  %v1062_v10 = vadd.s32 24, %v9377_v49 }
  0x37   : > { %vm9393_vm15 = vmand %vm965_vm14, %vm917_vm13 }
  0x38   : > { %8793 = vmatmul.mubr.msk.bf16.gmra.mxu0 %vm1436_vm1, %v9021_v13  ;;  %v9317_v12 = vmul.u32.u64.low 2863311531, %v9301_v2  ;;  %v9318_v13 = vmul.u32.u64.high 2863311531, %v9301_v2, %v9317_v12 }
  0x39   : > { %8796 = vmatprep.mubr.msk.bf16.mxu0 %vm1436_vm1, %v9022_v14  ;;  %v1104_v14 = vsel %vm9307_vm7, %v1056_v7, %v412_v51  ;;  %v2141_v7 = vshrl.u32 %v2084_v5, 16 }
  0x3a   : > { %vm1152_vm7 = vcmp.lt.s32.totalorder %v1104_v14, 16  ;;  %v498_v35 = vshrl.u32 %v9318_v13, 4  ;;  %v8459_v13 = vrot.slane %v2136_v6, 11 }
  0x3b   : > { %v9354_v38 = vsel %vm1152_vm7, 1.0, %v14367_v37  ;;  %v2143_v14 = vrot.slane %v2141_v7, 7 }
  0x3c   : > { %v499_v45 = vmul.u32 24, %v498_v35 }
  0x3d   : > { %v2148_v43 = vrot.slane %v2143_v14, 4 }
  0x3e   : > { %v9404_v59 = vsub.s32 %v9301_v2, %v499_v45  ;;  %v9421_v2 = vadd.s32 112, %v9253_v25 }
  0x40   : > { %8797 = vmatmul.mubr.msk.bf16.gmra.mxu0 %vm1436_vm1, %v9023_v15  ;;  %v1102_v15 = vsel %vm9311_vm8, %v1054_v8, %v390_v56  ;;  %v2144_v8 = vshll.u32 %v2084_v5, 16  ;;  %vm920_vm6 = vcmp.ne.s32.totalorder %v9404_v59, 0  ;;  %vm968_vm7 = vcmp.lt.s32.totalorder %v9404_v59, 0 }
  0x41   : > { %8800 = vmatprep.mubr.msk.bf16.mxu0 %vm1436_vm1, %v9024_v20  ;;  %v1055_v20 = vadd.s32 24, %v401_v63  ;;  %vm1150_vm8 = vcmp.lt.s32.totalorder %v1102_v15, 16  ;;  %v1064_v12 = vadd.s32 24, %v9404_v59 }
  0x42   : > { %v9357_v39 = vsel %vm1150_vm8, 1.0, %v14367_v37  ;;  %vm2132_vm8 = vsmask.f32 256  ;;  %v9445_v18 = vmul.u32.u64.low 2863311531, %v9421_v2  ;;  %v9446_v19 = vmul.u32.u64.high 2863311531, %v9421_v2, %v9445_v18 }
  0x43   : > { %v1103_v30 = vsel %vm9328_vm4, %v1055_v20, %v401_v63  ;;  %vm918_vm4 = vcmp.ne.s32.totalorder %v9377_v49, 0  ;;  %v2085_v20 = vld [vmem:[#allocation2 + $0x8] sm:$0xf]  ;;  %v2146_v24 = vor.u32 %v2144_v8, %v2143_v14 }
  0x44   : > { %vm1151_vm10 = vcmp.lt.s32.totalorder %v1103_v30, 16  ;;  %v2150_v26 = vshrl.u32 %v2085_v20, 16  ;;  %v2153_v28 = vshll.u32 %v2085_v20, 16 }
  0x45   : > { %v9374_v48 = vsel %vm1151_vm10, 1.0, %v14367_v37  ;;  %vm2133_vm10 = vsmask.f32 4368 }
  0x46   : > { %vm9473_vm14 = vmor %vm2132_vm8, %vm2133_vm10  ;;  %v2152_v36 = vrot.slane %v2150_v26, 7  ;;  %vm3006_vm10 = vsmask.f32 7440 }
  0x47   : > { %v2147_v35 = vsel %vm9473_vm14, %v8459_v13, %v2146_v24  ;;  %v9521_v13 = vsub.s32 %v9360_v41, %v510_v54 }
  0x48   : > { %8801 = vmatmul.mubr.msk.bf16.gmra.mxu0 %vm1436_vm1, %v9025_v21  ;;  %v1060_v21 = vadd.s32 24, %v456_v3  ;;  %2619 = vst.msk [vmem:[#allocation3] sm:$0xf] %vm1834_vm2, %v2147_v35  ;;  %v2157_v60 = vrot.slane %v2152_v36, 4 }
  0x49   : > { %8804 = vmatprep.mubr.msk.bf16.mxu0 %vm1436_vm1, %v9026_v22  ;;  %v443_v22 = vshrl.u32 %v9298_v1, 4  ;;  %v9413_v0 = vmul.u32.u64.low 2863311531, %v9380_v50  ;;  %v9414_v1 = vmul.u32.u64.high 2863311531, %v9380_v50, %v9413_v0 }
  0x4a   : > { %v1108_v31 = vsel %vm9333_vm5, %v1060_v21, %v456_v3  ;;  %v1109_v3 = vsel %vm9393_vm15, %v1061_v52, %v9350_v34  ;;  %vm966_vm5 = vcmp.lt.s32.totalorder %v9377_v49, 0  ;;  %v2162_v21 = vshll.u32 %v2086_v62, 16 }
  0x4b   : > { %v444_v32 = vmul.u32 24, %v443_v22  ;;  %vm1156_vm11 = vcmp.lt.s32.totalorder %v1108_v31, 16  ;;  %v9451_v22 = vld [vmem:[%s14361_s2] ss:$0 sm:$0xff]  ;;  %vm9463_vm13 = vcmp.lt.s32.totalorder %v1109_v3, 16  ;;  %v487_v31 = vshrl.u32 %v9408_v61, 4 }
  0x4c   : > { %v9383_v51 = vsel %vm1156_vm11, 1.0, %v14367_v37  ;;  %vm9439_vm11 = vmand %vm966_vm5, %vm918_vm4  ;;  %vm2907_vm15 = vcmask 257152   ;;  %v2164_v40 = vor.u32 %v2162_v21, %v9461_v27  ;;  %v3035_v52 = vor.u32 %v9400_v58, %v9398_v57 }
  0x4d   : > { %v9363_v42 = vsub.s32 %v9287_v55, %v444_v32  ;;  %v9391_v55 = vsel %vm1154_vm12, 1.0, %v14367_v37  ;;  %vm9457_vm12 = vmand %vm968_vm7, %vm920_vm6  ;;  %v1110_v45 = vsel %vm9439_vm11, %v1062_v10, %v9377_v49  ;;  %v520_v56 = vshrl.u32 %v9414_v1, 4 }
  0x4e   : > { %v1112_v44 = vsel %vm9457_vm12, %v1064_v12, %v9404_v59  ;;  %v2155_v61 = vor.u32 %v2153_v28, %v2152_v36  ;;  %v9496_v49 = vsel %vm9463_vm13, 1.0, %v14367_v37  ;;  %v488_v3 = vmul.u32 24, %v487_v31 }
  0x4f   : > { %vm915_vm0 = vcmp.ne.s32.totalorder %v9363_v42, 0  ;;  %vm963_vm3 = vcmp.lt.s32.totalorder %v9363_v42, 0  ;;  %v1059_v63 = vadd.s32 24, %v9363_v42  ;;  %v2165_v4 = vsel %vm9473_vm14, %v2157_v60, %v2164_v40 }
  0x50   : > { %8805 = vmatmul.mubr.msk.bf16.gmra.mxu0 %vm1436_vm1, %v9027_v23  ;;  %vm9430_vm9 = vmand %vm963_vm3, %vm915_vm0  ;;  %vm9502_vm3 = vcmp.lt.s32.totalorder %v1110_v45, 16  ;;  %v2156_v5 = vsel %vm9473_vm14, %v2148_v43, %v2155_v61  ;;  %vm9512_vm4 = vcmp.lt.s32.totalorder %v1112_v44, 16  ;;  %2621 = vst.msk [vmem:[#allocation3 + $0x10] sm:$0xf] %vm1834_vm2, %v2165_v4  ;;  %v9518_v12 = vrot.slane %v3035_v52, 4  ;;  %v9028_v4 = vld [vmem:[%s9198_s12 + $0x80] sm:$0xff]  }
  0x51   : > { %v1107_v30 = vsel %vm9430_vm9, %v1059_v63, %v9363_v42  ;;  %2620 = vst.msk [vmem:[#allocation3 + $0x8] sm:$0xf] %vm1834_vm2, %v2156_v5  ;;  %v521_v14 = vmul.u32 24, %v520_v56  ;;  %v9534_v41 = vsel %vm9512_vm4, 1.0, %v14367_v37  ;;  %vm921_vm5 = vcmp.ne.s32.totalorder %v9521_v13, 0  ;;  %8808 = vmatprep.mubr.msk.bf16.mxu0 %vm1436_vm1, %v9028_v4 }
  0x52   : > { %vm9498_vm0 = vcmp.lt.s32.totalorder %v1107_v30, 16  ;;  %vm969_vm6 = vcmp.lt.s32.totalorder %v9521_v13, 0  ;;  %v9556_v40 = vadd.s32 24, %v9521_v13  ;;  %vm3005_vm9 = vsmask.f32 3328 }
  0x53   : > { %v8316_v23 = vsel %vm9498_vm0, 1.0, %v14367_v37  ;;  %v9581_v58 = vadd.s32 104, %v9253_v25  ;;  %vm9607_vm0 = vmand %vm969_vm6, %vm921_vm5 }
  0x54   : > { %vm9662_vm6 = vmor %vm3005_vm9, %vm3006_vm10 }
  0x88   : > { %v2764_v33 = vpop.permute.xlu0 %2763 }
  0x89   : > { %2908 = vst.msk [vmem:[#allocation3] sm:$0xf] %vm2907_vm15, %v2764_v33  ;;  %v2768_v63 = vpop.permute.xlu1 %2767  ;;  %v9550_v33 = vsub.s32 %v9380_v50, %v521_v14  ;;  %v9029_v14 = vld [vmem:[%s9198_s12 + $0x88] sm:$0xff]  }
  0x8a   : > { %2910 = vst.msk [vmem:[#allocation3 + $0x10] sm:$0xf] %vm2907_vm15, %v2768_v63  ;;  %8809 = vmatmul.mubr.msk.bf16.gmra.mxu0 %vm1436_vm1, %v9029_v14 }
  0x8b   : > { %vm922_vm11 = vcmp.ne.s32.totalorder %v9550_v33, 0  ;;  %vm970_vm12 = vcmp.lt.s32.totalorder %v9550_v33, 0 }
  0x8c   : > { %v2766_v10 = vpop.permute.xlu0 %2765  ;;  %vm9653_vm5 = vmand %vm970_vm12, %vm922_vm11 }
  0x8d   : > { %2909 = vst.msk [vmem:[#allocation3 + $0x8] sm:$0xf] %vm2907_vm15, %v2766_v10 }
  0xd8   : > { %v8778_v34 = vpop.f32.mrf.mxu0 }
  0xd9   : > { %v1556_v42 = vadd.f32 %v8778_v34, %v9451_v22 }
  0xda   : > { %v1547_v53 = vpop.f32.mrf.mxu0 }
  0xdb   : > { %v1740_v62 = vmax.f32 %v1556_v42, 0.0  ;;  %v1548_v59 = vadd.f32 %v9451_v22, %v1547_v53  ;;  %v9572_v53 = vadd.s32 120, %v9253_v25 }
  0xdc   : > { %v8779_v0 = vpop.f32.mrf.mxu0 }
  0xdd   : > { %v1788_v6 = vmul.f32 %v9354_v38, %v1740_v62  ;;  %v1738_v7 = vmax.f32 %v1548_v59, 0.0  ;;  %v1559_v8 = vadd.f32 %v8779_v0, %v9451_v22  ;;  %v542_v38 = vshrl.u32 %v9446_v19, 4 }
  0xde   : > { %v1550_v11 = vpop.f32.mrf.mxu0  ;;  %v9539_v19 = vsel %vm9502_vm3, 1.0, %v14367_v37  ;;  %v9578_v59 = vadd.s32 24, %v9550_v33 }
  0xdf   : > { %v8623_v15 = vpack.c.bf16 %v1788_v6, %v1788_v6  ;;  %v1786_v17 = vmul.f32 %v9357_v39, %v1738_v7  ;;  %v1741_v18 = vmax.f32 %v1559_v8, 0.0  ;;  %v1551_v20 = vadd.f32 %v9451_v22, %v1550_v11 }
  0xe0   : > { %v8782_v21 = vpop.f32.mrf.mxu0  ;;  %v9542_v39 = vsub.s32 %v9368_v46, %v488_v3  ;;  %v543_v31 = vmul.u32 24, %v542_v38  ;;  %v9591_v6 = vmul.u32.u64.low 2863311531, %v9572_v53  ;;  %v9592_v7 = vmul.u32.u64.high 2863311531, %v9572_v53, %v9591_v6 }
  0xe1   : > { %2037 = vst.msk [vmem:[#allocation2 + $0x18] sm:$0xf] %vm1834_vm2, %v8623_v15  ;;  %v8621_v24 = vpack.c.bf16 %v1786_v17, %v1786_v17  ;;  %v1789_v26 = vmul.f32 %v9371_v47, %v1741_v18  ;;  %v1739_v28 = vmax.f32 %v1551_v20, 0.0  ;;  %v1572_v29 = vadd.f32 %v8782_v21, %v9451_v22 }
  0xe2   : > { %v1563_v30 = vpop.f32.mrf.mxu0  ;;  %vm919_vm7 = vcmp.ne.s32.totalorder %v9542_v39, 0  ;;  %vm967_vm8 = vcmp.lt.s32.totalorder %v9542_v39, 0  ;;  %v9561_v43 = vadd.s32 24, %v9542_v39  ;;  %v9567_v52 = vsub.s32 %v9421_v2, %v543_v31 }
  0xe3   : > { %2035 = vst.msk [vmem:[#allocation2 + $0x10] sm:$0xf] %vm1834_vm2, %v8621_v24  ;;  %v8624_v46 = vpack.c.bf16 %v1789_v26, %v1789_v26  ;;  %v1787_v34 = vmul.f32 %v9374_v48, %v1739_v28  ;;  %v1744_v35 = vmax.f32 %v1572_v29, 0.0  ;;  %v1564_v47 = vadd.f32 %v9451_v22, %v1563_v30  ;;  %vm9636_vm4 = vmand %vm967_vm8, %vm919_vm7 }
  0xe4   : > { %v8783_v36 = vpop.f32.mrf.mxu0  ;;  %vm924_vm13 = vcmp.ne.s32.totalorder %v9567_v52, 0  ;;  %v9616_v26 = vmul.u32.u64.low 2863311531, %v9581_v58  ;;  %v9617_v28 = vmul.u32.u64.high 2863311531, %v9581_v58, %v9616_v26  ;;  %vm972_vm3 = vcmp.lt.s32.totalorder %v9567_v52, 0 }
  0xe5   : > { %2038 = vst.msk [vmem:[#allocation2 + $0x1c] sm:$0xf] %vm1834_vm2, %v8624_v46  ;;  %v8622_v50 = vpack.c.bf16 %v1787_v34, %v1787_v34  ;;  %v1792_v42 = vmul.f32 %v9383_v51, %v1744_v35  ;;  %v1742_v48 = vmax.f32 %v1564_v47, 0.0  ;;  %v1575_v44 = vadd.f32 %v8783_v36, %v9451_v22  ;;  %vm9681_vm8 = vmand %vm972_vm3, %vm924_vm13 }
  0xe6   : > { %v1566_v45 = vpop.f32.mrf.mxu0  ;;  %v9622_v31 = vadd.s32 128, %v9253_v25  ;;  %v1113_v35 = vsel %vm9607_vm0, %v9556_v40, %v9521_v13 }
  0xe7   : > { %2036 = vst.msk [vmem:[#allocation2 + $0x14] sm:$0xf] %vm1834_vm2, %v8622_v50  ;;  %v8627_v54 = vpack.c.bf16 %v1792_v42, %v1792_v42  ;;  %v1790_v51 = vmul.f32 %v9391_v55, %v1742_v48  ;;  %v1745_v56 = vmax.f32 %v1575_v44, 0.0  ;;  %v1567_v60 = vadd.f32 %v9451_v22, %v1566_v45 }
  0xe8   : > { %v8786_v61 = vpop.f32.mrf.mxu0  ;;  %v4365_v62 = vld [vmem:[#allocation2 + $0x18] sm:$0xf]  ;;  %vm9669_vm7 = vcmp.lt.s32.totalorder %v1113_v35, 16 }
  0xe9   : > { %v2672_v2 = vld [vmem:[#allocation2 + $0x18] sm:$0xf]  ;;  %2041 = vst.msk [vmem:[#allocation2 + $0x28] sm:$0xf] %vm1834_vm2, %v8627_v54  ;;  %v8625_v63 = vpack.c.bf16 %v1790_v51, %v1790_v51  ;;  %v1793_v0 = vmul.f32 %v9496_v49, %v1745_v56  ;;  %v1743_v1 = vmax.f32 %v1567_v60, 0.0  ;;  %v1588_v55 = vadd.f32 %v8786_v61, %v9451_v22  ;;  %4463 = vrot.lane.b32.xlu0 %v4365_v62, %s9127_s16 }
  0xea   : > { %2773 = vrot.lane.b32.xlu1 %v2672_v2, %s9125_s13  ;;  %v4654_v3 = vld [vmem:[#allocation2 + $0x18] sm:$0xf]  ;;  %v1579_v5 = vpop.f32.mrf.mxu0  ;;  %v9595_v49 = vadd.s32 144, %v9253_v25  ;;  %v9599_v38 = vld [vmem:[#allocation2 + $0x10] sm:$0xf]  ;;  %v1068_v56 = vadd.s32 24, %v9567_v52 }
  0xeb   : > { %2039 = vst.msk [vmem:[#allocation2 + $0x20] sm:$0xf] %vm1834_vm2, %v8625_v63  ;;  %v8628_v8 = vpack.c.bf16 %v1793_v0, %v1793_v0  ;;  %v1791_v9 = vmul.f32 %v8316_v23, %v1743_v1  ;;  %v1748_v10 = vmax.f32 %v1588_v55, 0.0  ;;  %v1580_v11 = vadd.f32 %v9451_v22, %v1579_v5  ;;  %v2670_v17 = vld [vmem:[#allocation2 + $0x10] sm:$0xf] }
  0xec   : > { %v2673_v15 = vld [vmem:[#allocation2 + $0x1c] sm:$0xf]  ;;  %v4721_v18 = vshll.u32 %v4654_v3, 16  ;;  %v4725_v20 = vshrl.u32 %v4654_v3, 16  ;;  %v3038_v30 = vshll.u32 %v9599_v38, 16  ;;  %v8787_v51 = vpop.f32.mrf.mxu0  ;;  %v1111_v63 = vsel %vm9636_vm4, %v9561_v43, %v9542_v39 }
  0xed   : > { %2042 = vst.msk [vmem:[#allocation2 + $0x2c] sm:$0xf] %vm1834_vm2, %v8628_v8  ;;  %v8626_v23 = vpack.c.bf16 %v1791_v9, %v1791_v9  ;;  %v1796_v24 = vmul.f32 %v9534_v41, %v1748_v10  ;;  %2775 = vrot.lane.b32.xlu0 %v2673_v15, %s9125_s13  ;;  %v1746_v29 = vmax.f32 %v1580_v11, 0.0  ;;  %v4366_v46 = vld [vmem:[#allocation2 + $0x1c] sm:$0xf]  ;;  %v553_v1 = vshrl.u32 %v9592_v7, 4 }
  0xee   : > { %2769 = vrot.lane.b32.xlu1 %v2670_v17, %s9125_s13  ;;  %v9626_v34 = vld [vmem:[#allocation2 + $0x1c] sm:$0xf]  ;;  %v9641_v36 = vmul.u32.u64.low 2863311531, %v9595_v49  ;;  %v9642_v50 = vmul.u32.u64.high 2863311531, %v9595_v49, %v9641_v36  ;;  %v2671_v48 = vld [vmem:[#allocation2 + $0x14] sm:$0xf]  ;;  %v1114_v3 = vsel %vm9653_vm5, %v9578_v59, %v9550_v33  ;;  %v1582_v8 = vpop.f32.mrf.mxu0  ;;  %v1591_v14 = vadd.f32 %v8787_v51, %v9451_v22 }
  0xef   : > { %2040 = vst.msk [vmem:[#allocation2 + $0x24] sm:$0xf] %vm1834_vm2, %v8626_v23  ;;  %v8631_v41 = vpack.c.bf16 %v1796_v24, %v1796_v24  ;;  %v1794_v42 = vmul.f32 %v9539_v19, %v1746_v29  ;;  %v9645_v44 = vrot.slane %v3038_v30, 5  ;;  %v9647_v45 = vrot.slane %v4721_v18, 5  ;;  %v2961_v54 = vld [vmem:[#allocation2 + $0x18] sm:$0xf] }
  0xf0   : > { %v4727_v13 = vrot.slane %v4725_v20, 4  ;;  %v6059_v61 = vld [vmem:[#allocation2 + $0x28] sm:$0xf]  ;;  %v9667_v62 = vld [vmem:[#allocation2 + $0x1c] sm:$0xf]  ;;  %v4731_v55 = vshll.u32 %v9626_v34, 16  ;;  %v8790_v30 = vpop.f32.mrf.mxu0 }
  0xf1   : > { %14431 = vst [vmem:[#allocation6_spill] sm:$0xff] %v9647_v45  ;;  %2045 = vst.msk [vmem:[#allocation2 + $0x38] sm:$0xf] %vm1834_vm2, %v8631_v41  ;;  %2771 = vrot.lane.b32.xlu0 %v2671_v48, %s9125_s13  ;;  %v8629_v60 = vpack.c.bf16 %v1794_v42, %v1794_v42  ;;  %v9692_v4 = vmul.u32.u64.low 2863311531, %v9622_v31  ;;  %v9693_v39 = vmul.u32.u64.high 2863311531, %v9622_v31, %v9692_v4  ;;  %v3041_v43 = vsel %vm9662_vm6, %v9518_v12, %v9645_v44 }
  0xf2   : > { %4465 = vrot.lane.b32.xlu1 %v4366_v46, %s9127_s16  ;;  %v4728_v5 = vor.u32 %v4727_v13, %v9647_v45  ;;  %v3058_v6 = vshll.u32 %v2961_v54, 16  ;;  %v3062_v7 = vshrl.u32 %v2961_v54, 16  ;;  %v3068_v33 = vshll.u32 %v9667_v62, 16  ;;  %v4369_v18 = vld [vmem:[#allocation2 + $0x28] sm:$0xf] }
  0xf3   : > { %2043 = vst.msk [vmem:[#allocation2 + $0x30] sm:$0xf] %vm1834_vm2, %v8629_v60  ;;  %vm9704_vm9 = vcmp.lt.s32.totalorder %v1111_v63, 16  ;;  %v1116_v12 = vsel %vm9681_vm8, %v1068_v56, %v9567_v52  ;;  %v531_v9 = vshrl.u32 %v9617_v28, 4  ;;  %v554_v15 = vmul.u32 24, %v553_v1  ;;  %v1595_v63 = vpop.f32.mrf.mxu0 }
  0xf4   : > { %v9712_v10 = vrot.slane %v3058_v6, 5  ;;  %v3064_v11 = vrot.slane %v3062_v7, 4  ;;  %v3042_v17 = vshrl.u32 %v9599_v38, 16  ;;  %vm9716_vm10 = vcmp.lt.s32.totalorder %v1114_v3, 16  ;;  %v2676_v23 = vld [vmem:[#allocation2 + $0x28] sm:$0xf] }
  0xf5   : > { %3496 = vrot.lane.b32.xlu0 %v3041_v43, %s9128_s17  ;;  %v586_v21 = vshrl.u32 %v9642_v50, 4  ;;  %v4729_v24 = vrot.slane %v4728_v5, 4  ;;  %v9721_v52 = vrot.slane %v4731_v55, 5  ;;  %v9724_v28 = vrot.slane %v3068_v33, 5  ;;  %v9734_v35 = vld [vmem:[#allocation2 + $0x14] sm:$0xf] }
  0xf6   : > { %6158 = vrot.lane.b32.xlu1 %v6059_v61, %s9129_s18  ;;  %v3065_v26 = vor.u32 %v3064_v11, %v9712_v10  ;;  %v8322_v38 = vsel %vm9669_vm7, 1.0, %v14367_v37  ;;  %v8320_v29 = vsel %vm9704_vm9, 1.0, %v14367_v37  ;;  %vm1164_vm11 = vcmp.lt.s32.totalorder %v1116_v12, 16  ;;  %v9755_v0 = vld [vmem:[#allocation2 + $0x18] sm:$0xf] }
  0xf7   : > { %v1749_v46 = vmax.f32 %v1591_v14, 0.0  ;;  %v9737_v47 = vsub.s32 %v9572_v53, %v554_v15  ;;  %v532_v36 = vmul.u32 24, %v531_v9  ;;  %v1583_v50 = vadd.f32 %v9451_v22, %v1582_v8  ;;  %v3689_v1 = vld [vmem:[#allocation2 + $0x1c] sm:$0xf]  ;;  %v4367_v3 = vld [vmem:[#allocation2 + $0x20] sm:$0xf] }
  0xf8   : > { %v3066_v41 = vrot.slane %v3065_v26, 4  ;;  %v3044_v42 = vrot.slane %v3042_v17, 4  ;;  %v8323_v48 = vsel %vm9716_vm10, 1.0, %v14367_v37  ;;  %v564_v13 = vshrl.u32 %v9693_v39, 4  ;;  %v2674_v5 = vld [vmem:[#allocation2 + $0x20] sm:$0xf] }
  0xf9   : > { %4471 = vrot.lane.b32.xlu0 %v4369_v18, %s9127_s16  ;;  %v4734_v40 = vsel %vm9662_vm6, %v4729_v24, %v9721_v52  ;;  %v8325_v53 = vsel %vm1164_vm11, 1.0, %v14367_v37  ;;  %v587_v51 = vmul.u32 24, %v586_v21  ;;  %v1797_v56 = vmul.f32 %v8322_v38, %v1749_v46  ;;  %v3687_v8 = vld [vmem:[#allocation2 + $0x14] sm:$0xf] }
  0xfa   : > { %2781 = vrot.lane.b32.xlu1 %v2676_v23, %s9125_s13  ;;  %v3071_v54 = vsel %vm9662_vm6, %v3066_v41, %v9724_v28  ;;  %v1747_v60 = vmax.f32 %v1583_v50, 0.0  ;;  %v3045_v61 = vor.u32 %v3044_v42, %v9645_v44  ;;  %v3048_v2 = vshll.u32 %v9734_v35, 16  ;;  %v6060_v23 = vld [vmem:[#allocation2 + $0x2c] sm:$0xf] }
  0xfb   : > { %vm925_vm12 = vcmp.ne.s32.totalorder %v9737_v47, 0  ;;  %vm973_vm13 = vcmp.lt.s32.totalorder %v9737_v47, 0  ;;  %v9760_v55 = vsub.s32 %v9581_v58, %v532_v36  ;;  %v8632_v4 = vpack.c.bf16 %v1797_v56, %v1797_v56 }
  0xfc   : > { %v1795_v39 = vmul.f32 %v8320_v29, %v1747_v60  ;;  %v9763_v43 = vadd.s32 24, %v9737_v47  ;;  %v565_v44 = vmul.u32 24, %v564_v13  ;;  %v3046_v6 = vrot.slane %v3045_v61, 4  ;;  %vm9795_vm7 = vmand %vm973_vm13, %vm925_vm12 }
  0xfd   : > { %5189 = vrot.lane.b32.xlu0 %v4734_v40, %s9130_s19  ;;  %v9765_v7 = vrot.slane %v3048_v2, 5  ;;  %v1604_v33 = vadd.f32 %v8790_v30, %v9451_v22  ;;  %v1596_v59 = vadd.f32 %v9451_v22, %v1595_v63  ;;  %2046 = vst.msk [vmem:[#allocation2 + $0x3c] sm:$0xf] %vm1834_vm2, %v8632_v4  ;;  %v3758_v12 = vshrl.u32 %v9755_v0, 16  ;;  %v2677_v40 = vld [vmem:[#allocation2 + $0x2c] sm:$0xf] }
  0xfe   : > { %3502 = vrot.lane.b32.xlu1 %v3071_v54, %s9128_s17  ;;  %v8630_v58 = vpack.c.bf16 %v1795_v39, %v1795_v39  ;;  %v3767_v9 = vshrl.u32 %v3689_v1, 16  ;;  %v588_v11 = vsub.s32 %v9595_v49, %v587_v51  ;;  %vm923_vm0 = vcmp.ne.s32.totalorder %v9760_v55, 0  ;;  %v4370_v4 = vld [vmem:[#allocation2 + $0x2c] sm:$0xf] }
  0xff   : > { %v1752_v14 = vmax.f32 %v1604_v33, 0.0  ;;  %v1750_v15 = vmax.f32 %v1596_v59, 0.0  ;;  %vm971_vm3 = vcmp.lt.s32.totalorder %v9760_v55, 0  ;;  %v3760_v17 = vrot.slane %v3758_v12, 7  ;;  %v6345_v33 = vld [vmem:[#allocation2 + $0x1c] sm:$0xf] }
 0x100   : > { %2044 = vst.msk [vmem:[#allocation2 + $0x34] sm:$0xf] %vm1834_vm2, %v8630_v58  ;;  %v9777_v18 = vrot.slane %v3767_v9, 7  ;;  %v3770_v20 = vshll.u32 %v3689_v1, 16  ;;  %v3749_v21 = vshrl.u32 %v3687_v8, 16  ;;  %v3051_v24 = vsel %vm9662_vm6, %v3046_v6, %v9765_v7  ;;  %vm9803_vm8 = vmand %vm971_vm3, %vm923_vm0 }
 0x101   : > { %4467 = vrot.lane.b32.xlu0 %v4367_v3, %s9127_s16  ;;  %v1800_v26 = vmul.f32 %v8325_v53, %v1752_v14  ;;  %v1798_v49 = vmul.f32 %v8323_v48, %v1750_v15  ;;  %v9783_v38 = vsub.s32 %v9622_v31, %v565_v44  ;;  %vm928_vm4 = vcmp.ne.s32.totalorder %v588_v11, 0  ;;  %v6058_v12 = vld [vmem:[#allocation2 + $0x24] sm:$0xf]  ;;  %v9880_v31 = vld [vmem:[#allocation2 + $0x2c] sm:$0xf] }
 0x102   : > { %2777 = vrot.lane.b32.xlu1 %v2674_v5, %s9125_s13  ;;  %v3772_v29 = vor.u32 %v3770_v20, %v9777_v18  ;;  %v9788_v30 = vrot.slane %v3749_v21, 7  ;;  %vm976_vm5 = vcmp.lt.s32.totalorder %v588_v11, 0  ;;  %v4735_v41 = vshrl.u32 %v9626_v34, 16  ;;  %v2965_v5 = vld [vmem:[#allocation2 + $0x28] sm:$0xf] }
 0x103   : > { %v8635_v46 = vpack.c.bf16 %v1800_v26, %v1800_v26  ;;  %v8633_v36 = vpack.c.bf16 %v1798_v49, %v1798_v49  ;;  %v3765_v50 = vrot.slane %v3760_v17, 4  ;;  %v1067_v34 = vadd.s32 24, %v9760_v55  ;;  %vm9817_vm9 = vmand %vm976_vm5, %vm928_vm4  ;;  %v4368_v9 = vld [vmem:[#allocation2 + $0x24] sm:$0xf]  ;;  %v6348_v26 = vld [vmem:[#allocation2 + $0x28] sm:$0xf] }
 0x104   : > { %14444 = vst [vmem:[#allocation7_spill] sm:$0xff] %v9788_v30  ;;  %v1072_v48 = vadd.s32 24, %v588_v11  ;;  %v3052_v13 = vshrl.u32 %v9734_v35, 16  ;;  %v3756_v53 = vrot.slane %v9788_v30, 4  ;;  %v3761_v51 = vshll.u32 %v9755_v0, 16 }
 0x105   : > { %6160 = vrot.lane.b32.xlu0 %v6060_v23, %s9129_s18  ;;  %2049 = vst.msk [vmem:[#allocation2 + $0x48] sm:$0xf] %vm1834_vm2, %v8635_v46  ;;  %2047 = vst.msk [vmem:[#allocation2 + $0x40] sm:$0xf] %vm1834_vm2, %v8633_v36  ;;  %v3773_v54 = vsel %vm9473_vm14, %v3765_v50, %v3772_v29  ;;  %v9823_v35 = vld [vmem:[#allocation2 + $0x20] sm:$0xf]  ;;  %v1117_v2 = vsel %vm9795_vm7, %v9763_v43, %v9737_v47  ;;  %v1115_v63 = vsel %vm9803_vm8, %v1067_v34, %v9760_v55 }
 0x106   : > { %3498 = vrot.lane.b32.xlu1 %v3051_v24, %s9128_s17  ;;  %vm926_vm10 = vcmp.ne.s32.totalorder %v9783_v38, 0  ;;  %vm974_vm11 = vcmp.lt.s32.totalorder %v9783_v38, 0  ;;  %v3763_v60 = vor.u32 %v3761_v51, %v3760_v17  ;;  %v4737_v61 = vrot.slane %v4735_v41, 4  ;;  %v8791_v24 = vpop.f32.mrf.mxu0  ;;  %v3690_v29 = vld [vmem:[#allocation2 + $0x20] sm:$0xf] }
 0x107   : > { %v1120_v0 = vsel %vm9817_vm9, %v1072_v48, %v588_v11  ;;  %v1070_v1 = vadd.s32 24, %v9783_v38  ;;  %v4741_v39 = vshll.u32 %v9823_v35, 16  ;;  %v3054_v44 = vrot.slane %v3052_v13, 4  ;;  %vm9840_vm12 = vmand %vm974_vm11, %vm926_vm10  ;;  %v2675_v41 = vld [vmem:[#allocation2 + $0x24] sm:$0xf] }
 0x108   : > { %v3764_v3 = vsel %vm9473_vm14, %v3756_v53, %v3763_v60  ;;  %vm9846_vm13 = vcmp.lt.s32.totalorder %v1117_v2, 16  ;;  %v3072_v55 = vshrl.u32 %v9667_v62, 16  ;;  %v4738_v43 = vor.u32 %v4737_v61, %v9721_v52  ;;  %v9860_v62 = vld [vmem:[#allocation2 + $0x20] sm:$0xf]  ;;  %v4658_v48 = vld [vmem:[#allocation2 + $0x28] sm:$0xf]  ;;  %v1598_v60 = vpop.f32.mrf.mxu0 }
 0x109   : > { %2783 = vrot.lane.b32.xlu0 %v2677_v40, %s9125_s13  ;;  %vm1163_vm0 = vcmp.lt.s32.totalorder %v1115_v63, 16  ;;  %vm1168_vm3 = vcmp.lt.s32.totalorder %v1120_v0, 16  ;;  %v3098_v59 = vshll.u32 %v2965_v5, 16  ;;  %v3102_v8 = vshrl.u32 %v2965_v5, 16  ;;  %v6346_v34 = vld [vmem:[#allocation2 + $0x20] sm:$0xf] }
 0x10a   : > { %4176 = vrot.lane.b32.xlu1 %v3773_v54, %s9131_s20  ;;  %v1118_v58 = vsel %vm9840_vm12, %v1070_v1, %v9783_v38  ;;  %v9855_v11 = vrot.slane %v4741_v39, 5  ;;  %v3055_v14 = vor.u32 %v3054_v44, %v9765_v7  ;;  %v9865_v52 = vsel %vm9846_vm13, 1.0, %v14367_v37  ;;  %v6349_v54 = vld [vmem:[#allocation2 + $0x2c] sm:$0xf]  ;;  %v6063_v53 = vld [vmem:[#allocation2 + $0x38] sm:$0xf] }
 0x10b   : > { %v9868_v15 = vsel %vm1163_vm0, 1.0, %v14367_v37  ;;  %v9871_v17 = vsel %vm1168_vm3, 1.0, %v14367_v37  ;;  %v6395_v7 = vshrl.u32 %v6345_v33, 16  ;;  %v4739_v21 = vrot.slane %v4738_v43, 4 }
 0x10c   : > { %v3074_v23 = vrot.slane %v3072_v55, 4  ;;  %vm1166_vm4 = vcmp.lt.s32.totalorder %v1118_v58, 16  ;;  %v9874_v49 = vrot.slane %v3098_v59, 5  ;;  %v3104_v38 = vrot.slane %v3102_v8, 4  ;;  %v8794_v59 = vpop.f32.mrf.mxu0 }
 0x10d   : > { %4174 = vrot.lane.b32.xlu0 %v3764_v3, %s9131_s20  ;;  %v4744_v46 = vsel %vm9662_vm6, %v4739_v21, %v9855_v11  ;;  %v3056_v36 = vrot.slane %v3055_v14, 4  ;;  %v3078_v50 = vshll.u32 %v9860_v62, 16  ;;  %v6398_v42 = vshll.u32 %v6345_v33, 16  ;;  %v9903_v33 = vld [vmem:[#allocation2 + $0x2c] sm:$0xf] }
 0x10e   : > { %4473 = vrot.lane.b32.xlu1 %v4370_v4, %s9127_s16  ;;  %v9885_v13 = vsel %vm1166_vm4, 1.0, %v14367_v37  ;;  %v9887_v40 = vrot.slane %v6395_v7, 4  ;;  %v3075_v51 = vor.u32 %v3074_v23, %v9724_v28  ;;  %v3776_v56 = vshrl.u32 %v3690_v29, 16  ;;  %v2680_v21 = vld [vmem:[#allocation2 + $0x38] sm:$0xf] }
 0x10f   : > { %v6424_v61 = vshll.u32 %v6348_v26, 16  ;;  %v6428_v2 = vshrl.u32 %v6348_v26, 16  ;;  %v3105_v63 = vor.u32 %v3104_v38, %v9874_v49  ;;  %v3108_v0 = vshll.u32 %v9880_v31, 16 }
 0x110   : > { %14455 = vst [vmem:[#allocation8_spill] sm:$0xff] %v9887_v40  ;;  %v3061_v1 = vsel %vm9662_vm6, %v3056_v36, %v9712_v10  ;;  %v9895_v3 = vrot.slane %v3078_v50, 5  ;;  %v4761_v4 = vshll.u32 %v4658_v48, 16  ;;  %v4765_v39 = vshrl.u32 %v4658_v48, 16  ;;  %v9930_v36 = vld [vmem:[#allocation2 + $0x24] sm:$0xf]  ;;  %v1611_v48 = vpop.f32.mrf.mxu0 }
 0x111   : > { %6156 = vrot.lane.b32.xlu0 %v6058_v12, %s9129_s18  ;;  %v9897_v44 = vrot.slane %v6398_v42, 5  ;;  %v6404_v5 = vshll.u32 %v6346_v34, 16  ;;  %v6408_v28 = vshrl.u32 %v6346_v34, 16  ;;  %v6434_v6 = vshll.u32 %v6349_v54, 16 }
 0x112   : > { %4469 = vrot.lane.b32.xlu1 %v4368_v9, %s9127_s16  ;;  %v3076_v47 = vrot.slane %v3075_v51, 4  ;;  %v9901_v55 = vrot.slane %v3776_v56, 7  ;;  %v3779_v43 = vshll.u32 %v3690_v29, 16  ;;  %v1607_v10 = vadd.f32 %v8791_v24, %v9451_v22  ;;  %v9030_v24 = vld [vmem:[%s14362_s3 + $0x38] sm:$0xff]  }
 0x113   : > { %14456 = vst [vmem:[#allocation9_spill] sm:$0xff] %v9897_v44  ;;  %v9906_v8 = vrot.slane %v6424_v61, 5  ;;  %v3082_v58 = vshrl.u32 %v9860_v62, 16  ;;  %v3106_v12 = vrot.slane %v3105_v63, 4  ;;  %v9909_v9 = vrot.slane %v3108_v0, 5  ;;  %8885 = vmatpush1.bf16.msra.mxu1 %v9030_v24  ;;  %7391 = vmatpush1.bf16.msra.mxu0 %v9030_v24 }
 0x114   : > { %v9911_v14 = vrot.slane %v6428_v2, 4  ;;  %v3081_v7 = vsel %vm9662_vm6, %v3076_v47, %v9895_v3  ;;  %v9916_v23 = vrot.slane %v4761_v4, 5  ;;  %v4767_v26 = vrot.slane %v4765_v39, 4  ;;  %8877 = vmatprep.subr.bf16.mxu1 %v14370_v16  ;;  %7392 = vmatprep.subr.bf16.mxu0 %v14370_v16  ;;  %v4373_v61 = vld [vmem:[#allocation2 + $0x38] sm:$0xf] }
 0x115   : > { %2779 = vrot.lane.b32.xlu0 %v2675_v41, %s9125_s13  ;;  %14457 = vst [vmem:[#allocation10_spill] sm:$0xff] %v9906_v8  ;;  %v9921_v38 = vrot.slane %v6404_v5, 5  ;;  %v9923_v62 = vrot.slane %v6408_v28, 4  ;;  %v6438_v29 = vshrl.u32 %v6349_v54, 16  ;;  %v4771_v41 = vshll.u32 %v9903_v33, 16 }
 0x116   : > { %5191 = vrot.lane.b32.xlu1 %v4744_v46, %s9130_s19  ;;  %14458 = vst [vmem:[#allocation11_spill] sm:$0xff] %v9911_v14  ;;  %v9928_v46 = vrot.slane %v6434_v6, 5  ;;  %v3781_v50 = vor.u32 %v3779_v43, %v9901_v55  ;;  %v1753_v42 = vmax.f32 %v1607_v10, 0.0  ;;  %v1599_v34 = vadd.f32 %v9451_v22, %v1598_v60  ;;  %v9942_v60 = vld [vmem:[#allocation2 + $0x24] sm:$0xf] }
 0x117   : > { %14459 = vst [vmem:[#allocation12_spill] sm:$0xff] %v9921_v38  ;;  %14460 = vst [vmem:[#allocation13_spill] sm:$0xff] %v9923_v62  ;;  %v4745_v54 = vshrl.u32 %v9823_v35, 16  ;;  %v3774_v51 = vrot.slane %v9777_v18, 4  ;;  %v3084_v56 = vrot.slane %v3082_v58, 4  ;;  %v4768_v2 = vor.u32 %v4767_v26, %v9916_v23 }
 0x118   : > { %v1801_v63 = vmul.f32 %v9865_v52, %v1753_v42  ;;  %v1751_v0 = vmax.f32 %v1599_v34, 0.0  ;;  %v1620_v35 = vadd.f32 %v8794_v59, %v9451_v22  ;;  %v9949_v18 = vrot.slane %v6438_v29, 4  ;;  %v9956_v5 = vld [vmem:[#allocation2 + $0x2c] sm:$0xf]  ;;  %v6352_v28 = vld [vmem:[#allocation2 + $0x38] sm:$0xf] }
 0x119   : > { %3500 = vrot.lane.b32.xlu0 %v3061_v1, %s9128_s17  ;;  %v9031_v1 = vld [vmem:[%s14362_s3 + $0x30] sm:$0xff]   ;;  %v6414_v4 = vshll.u32 %v9930_v36, 16  ;;  %v9954_v39 = vrot.slane %v4771_v41, 5  ;;  %v1612_v52 = vadd.f32 %v9451_v22, %v1611_v48  ;;  %v3782_v6 = vsel %vm9473_vm14, %v3774_v51, %v3781_v50  ;;  %v9961_v47 = vld [vmem:[#allocation2 + $0x24] sm:$0xf] }
 0x11a   : > { %6166 = vrot.lane.b32.xlu1 %v6063_v53, %s9129_s18  ;;  %v3111_v53 = vsel %vm9662_vm6, %v3106_v12, %v9909_v9  ;;  %v8636_v43 = vpack.c.bf16 %v1801_v63, %v1801_v63  ;;  %v1799_v10 = vmul.f32 %v9868_v15, %v1751_v0  ;;  %v1756_v59 = vmax.f32 %v1620_v35, 0.0  ;;  %8886 = vmatpush1.bf16.msra.mxu1 %v9031_v1  ;;  %v6061_v26 = vld [vmem:[#allocation2 + $0x30] sm:$0xf]  ;;  %v9976_v34 = vld [vmem:[#allocation2 + $0x2c] sm:$0xf] }
 0x11b   : > { %7393 = vmatpush1.bf16.msra.mxu0 %v9031_v1  ;;  %v3085_v58 = vor.u32 %v3084_v56, %v9895_v3  ;;  %v3088_v12 = vshll.u32 %v9942_v60, 16  ;;  %v1754_v22 = vmax.f32 %v1612_v52, 0.0  ;;  %8878 = vmatprep.subr.bf16.mxu1 %v14370_v16  ;;  %v4769_v24 = vrot.slane %v4768_v2, 4  ;;  %v9989_v63 = vld [vmem:[#allocation2 + $0x24] sm:$0xf]  ;;  %v9032_v0 = vld [vmem:[%s9198_s12 + $0x90] sm:$0xff]  }
 0x11c   : > { %7394 = vmatprep.subr.bf16.mxu0 %v14370_v16  ;;  %v3803_v29 = vshrl.u32 %v9956_v5, 16  ;;  %2050 = vst.msk [vmem:[#allocation2 + $0x4c] sm:$0xf] %vm1834_vm2, %v8636_v43  ;;  %v8634_v15 = vpack.c.bf16 %v1799_v10, %v1799_v10  ;;  %v1804_v41 = vmul.f32 %v9871_v17, %v1756_v59  ;;  %v6418_v3 = vshrl.u32 %v9930_v36, 16  ;;  %v9983_v17 = vld [vmem:[#allocation2 + $0x28] sm:$0xf]  ;;  %8812 = vmatprep.mubr.msk.bf16.mxu0 %vm1436_vm1, %v9032_v0 }
 0x11d   : > { %3504 = vrot.lane.b32.xlu0 %v3081_v7, %s9128_s17  ;;  %v4747_v7 = vrot.slane %v4745_v54, 4  ;;  %v6464_v50 = vshll.u32 %v6352_v28, 16  ;;  %v6468_v42 = vshrl.u32 %v6352_v28, 16  ;;  %v1802_v48 = vmul.f32 %v9885_v13, %v1754_v22  ;;  %v9979_v54 = vld [vmem:[#allocation2 + $0x30] sm:$0xf]  ;;  %v9033_v43 = vld [vmem:[%s9198_s12 + $0x98] sm:$0xff]  }
 0x11e   : > { %2789 = vrot.lane.b32.xlu1 %v2680_v21, %s9125_s13  ;;  %v9966_v21 = vld [vmem:[#allocation2 + $0x28] sm:$0xf]  ;;  %2048 = vst.msk [vmem:[#allocation2 + $0x44] sm:$0xf] %vm1834_vm2, %v8634_v15  ;;  %v8639_v36 = vpack.c.bf16 %v1804_v41, %v1804_v41  ;;  %v3086_v56 = vrot.slane %v3085_v58, 4  ;;  %v4774_v1 = vsel %vm9662_vm6, %v4769_v24, %v9954_v39  ;;  %v9997_v28 = vrot.slane %v3803_v29, 7  ;;  %8813 = vmatmul.mubr.msk.bf16.gmra.mxu0 %vm1436_vm1, %v9033_v43 }
 0x11f   : > { %v3794_v51 = vshrl.u32 %v9966_v21, 16  ;;  %v4748_v2 = vor.u32 %v4747_v7, %v9855_v11  ;;  %v8637_v13 = vpack.c.bf16 %v1802_v48, %v1802_v48  ;;  %v2678_v52 = vld [vmem:[#allocation2 + $0x30] sm:$0xf]  ;;  %v10002_v11 = vrot.slane %v6414_v4, 5  ;;  %v6353_v7 = vld [vmem:[#allocation2 + $0x3c] sm:$0xf] }
 0x120   : > { %2053 = vst.msk [vmem:[#allocation2 + $0x58] sm:$0xf] %vm1834_vm2, %v8639_v36  ;;  %v10004_v10 = vrot.slane %v6464_v50, 5  ;;  %v10006_v59 = vrot.slane %v6468_v42, 4  ;;  %v6444_v58 = vshll.u32 %v9979_v54, 16  ;;  %v3806_v4 = vshll.u32 %v9956_v5, 16 }
 0x121   : > { %4479 = vrot.lane.b32.xlu0 %v4373_v61, %s9127_s16  ;;  %v9986_v61 = vrot.slane %v3088_v12, 5  ;;  %14461 = vst [vmem:[#allocation14_spill] sm:$0xff] %v10002_v11  ;;  %2051 = vst.msk [vmem:[#allocation2 + $0x50] sm:$0xf] %vm1834_vm2, %v8637_v13  ;;  %v10012_v12 = vld [vmem:[#allocation2 + $0x24] sm:$0xf] }
 0x122   : > { %3510 = vrot.lane.b32.xlu1 %v3111_v53, %s9128_s17  ;;  %v4751_v53 = vshll.u32 %v9961_v47, 16  ;;  %14462 = vst [vmem:[#allocation15_spill] sm:$0xff] %v10004_v10  ;;  %v10014_v22 = vrot.slane %v3794_v51, 7  ;;  %v5451_v24 = vshrl.u32 %v9989_v63, 16  ;;  %v10020_v29 = vrot.slane %v6418_v3, 4  ;;  %v9034_v5 = vld [vmem:[%s14362_s3 + $0x28] sm:$0xff]  }
 0x123   : > { %v4371_v15 = vld [vmem:[#allocation2 + $0x30] sm:$0xf]  ;;  %v3091_v41 = vsel %vm9662_vm6, %v3086_v56, %v9986_v61  ;;  %v4749_v50 = vrot.slane %v4748_v2, 4  ;;  %v10031_v48 = vld [vmem:[#allocation2 + $0x34] sm:$0xf]  ;;  %v3808_v3 = vor.u32 %v3806_v4, %v9997_v28  ;;  %v3785_v13 = vshrl.u32 %v10012_v12, 16  ;;  %8887 = vmatpush1.bf16.msra.mxu1 %v9034_v5  ;;  %7395 = vmatpush1.bf16.msra.mxu0 %v9034_v5 }
 0x124   : > { %14463 = vst [vmem:[#allocation16_spill] sm:$0xff] %v10020_v29  ;;  %v10025_v42 = vrot.slane %v4751_v53, 5  ;;  %v3801_v51 = vrot.slane %v10014_v22, 4  ;;  %v10038_v56 = vrot.slane %v6444_v58, 5  ;;  %v6448_v53 = vshrl.u32 %v9979_v54, 16  ;;  %v9035_v58 = vld [vmem:[%s14362_s3 + $0x20] sm:$0xff]   ;;  %8879 = vmatprep.subr.bf16.mxu1 %v14370_v16  ;;  %7396 = vmatprep.subr.bf16.mxu0 %v14370_v16 }
 0x125   : > { %4178 = vrot.lane.b32.xlu0 %v3782_v6, %s9131_s20  ;;  %v5469_v6 = vshrl.u32 %v9976_v34, 16  ;;  %v6474_v2 = vshll.u32 %v6353_v7, 16  ;;  %v6478_v0 = vshrl.u32 %v6353_v7, 16  ;;  %v5472_v43 = vshll.u32 %v9976_v34, 16  ;;  %v5380_v4 = vld [vmem:[#allocation2 + $0x20] sm:$0xf] }
 0x126   : > { %6162 = vrot.lane.b32.xlu1 %v6061_v26, %s9129_s18  ;;  %v5460_v26 = vshrl.u32 %v9983_v17, 16  ;;  %14464 = vst [vmem:[#allocation17_spill] sm:$0xff] %v10038_v56  ;;  %v6454_v54 = vshll.u32 %v10031_v48, 16  ;;  %v4754_v7 = vsel %vm9662_vm6, %v4749_v50, %v10025_v42  ;;  %v3809_v34 = vsel %vm9473_vm14, %v3801_v51, %v3808_v3 }
 0x127   : > { %v10035_v36 = vrot.slane %v5469_v6, 7  ;;  %v5453_v6 = vrot.slane %v5451_v24, 7  ;;  %v3787_v5 = vrot.slane %v3785_v13, 7  ;;  %v10062_v35 = vrot.slane %v6474_v2, 5  ;;  %8888 = vmatpush1.bf16.msra.mxu1 %v9035_v58  ;;  %v9036_v13 = vld [vmem:[%s14362_s3 + $0x18] sm:$0xff]   ;;  %7397 = vmatpush1.bf16.msra.mxu0 %v9035_v58 }
 0x128   : > { %v10064_v50 = vrot.slane %v6478_v0, 4  ;;  %v3788_v51 = vshll.u32 %v10012_v12, 16  ;;  %v3797_v3 = vshll.u32 %v9966_v21, 16  ;;  %v4775_v2 = vshrl.u32 %v9903_v33, 16  ;;  %8880 = vmatprep.subr.bf16.mxu1 %v14370_v16  ;;  %7398 = vmatprep.subr.bf16.mxu0 %v14370_v16  ;;  %v4374_v12 = vld [vmem:[#allocation2 + $0x3c] sm:$0xf] }
 0x129   : > { %5197 = vrot.lane.b32.xlu0 %v4774_v1, %s9130_s19  ;;  %v10060_v1 = vrot.slane %v6448_v53, 4  ;;  %14465 = vst [vmem:[#allocation18_spill] sm:$0xff] %v10062_v35  ;;  %v5458_v37 = vrot.slane %v5453_v6, 4  ;;  %v10074_v53 = vrot.slane %v6454_v54, 5  ;;  %v3792_v58 = vrot.slane %v3787_v5, 4 }
 0x12a   : > { %2785 = vrot.lane.b32.xlu1 %v2678_v52, %s9125_s13  ;;  %v5462_v52 = vrot.slane %v5460_v26, 7  ;;  %v5463_v26 = vshll.u32 %v9983_v17, 16  ;;  %v2089_v54 = vld [vmem:[#allocation2 + $0x18] sm:$0xf]  ;;  %v3092_v33 = vshrl.u32 %v9942_v60, 16 }
 0x12b   : > { %14466 = vst [vmem:[#allocation19_spill] sm:$0xff] %v10074_v53  ;;  %v2090_v60 = vld [vmem:[#allocation2 + $0x1c] sm:$0xf]  ;;  %8889 = vmatpush1.bf16.msra.mxu1 %v9036_v13  ;;  %7399 = vmatpush1.bf16.msra.mxu0 %v9036_v13 }
 0x12c   : > { %v5467_v24 = vrot.slane %v5462_v52, 4  ;;  %v5465_v0 = vor.u32 %v5463_v26, %v5462_v52  ;;  %v3783_v52 = vrot.slane %v9901_v55, 4  ;;  %v10091_v26 = vld [vmem:[#allocation2 + $0x30] sm:$0xf]  ;;  %8881 = vmatprep.subr.bf16.mxu1 %v14370_v16  ;;  %7400 = vmatprep.subr.bf16.mxu0 %v14370_v16  ;;  %v2195_v20 = vshrl.u32 %v2090_v60, 16 }
 0x12d   : > { %4475 = vrot.lane.b32.xlu0 %v4371_v15, %s9127_s16  ;;  %v4755_v15 = vshrl.u32 %v9961_v47, 16  ;;  %v5442_v47 = vshrl.u32 %v5380_v4, 16  ;;  %v10077_v4 = vld [vmem:[#allocation2 + $0x14] sm:$0xf]  ;;  %v4781_v13 = vshll.u32 %v10091_v26, 16 }
 0x12e   : > { %3506 = vrot.lane.b32.xlu1 %v3091_v41, %s9128_s17  ;;  %v5474_v41 = vor.u32 %v5472_v43, %v10035_v36  ;;  %v2681_v17 = vld [vmem:[#allocation2 + $0x3c] sm:$0xf] }
 0x12f   : > { %v4757_v43 = vrot.slane %v4755_v15, 4  ;;  %v10089_v15 = vrot.slane %v5442_v47, 7 }
 0x130   : > { %v5475_v21 = vsel %vm9473_vm14, %v5467_v24, %v5474_v41  ;;  %v3799_v41 = vor.u32 %v3797_v3, %v10014_v22  ;;  %v6064_v22 = vld [vmem:[#allocation2 + $0x3c] sm:$0xf] }
 0x131   : > { %5193 = vrot.lane.b32.xlu0 %v4754_v7, %s9130_s19  ;;  %v3790_v7 = vor.u32 %v3788_v51, %v3787_v5  ;;  %14467 = vst [vmem:[#allocation20_spill] sm:$0xff] %v10089_v15  ;;  %v2177_v5 = vshrl.u32 %v10077_v4, 16  ;;  %v9037_v51 = vld [vmem:[%s14362_s3 + $0x10] sm:$0xff]   ;;  %v5449_v55 = vrot.slane %v10089_v15, 4  ;;  %v4758_v47 = vor.u32 %v4757_v43, %v10025_v42 }
 0x132   : > { %4184 = vrot.lane.b32.xlu1 %v3809_v34, %s9131_s20  ;;  %v5454_v34 = vshll.u32 %v9989_v63, 16  ;;  %v5466_v63 = vsel %vm9473_vm14, %v5458_v37, %v5465_v0  ;;  %v2087_v37 = vld [vmem:[#allocation2 + $0x10] sm:$0xf]  ;;  %v10110_v3 = vsel %vm9473_vm14, %v3792_v58, %v3799_v41  ;;  %v3094_v58 = vrot.slane %v3092_v33, 4  ;;  %8890 = vmatpush1.bf16.msra.mxu1 %v9037_v51 }
 0x133   : > { %v10113_v0 = vrot.slane %v2177_v5, 7  ;;  %v2168_v41 = vshrl.u32 %v2087_v37, 16  ;;  %v9038_v5 = vld [vmem:[%s14362_s3 + $0x8] sm:$0xff]   ;;  %7401 = vmatpush1.bf16.msra.mxu0 %v9037_v51  ;;  %v2198_v42 = vshll.u32 %v2090_v60, 16  ;;  %8882 = vmatprep.subr.bf16.mxu1 %v14370_v16  ;;  %v10132_v33 = vld [vmem:[#allocation2 + $0x30] sm:$0xf] }
 0x134   : > { %v5456_v24 = vor.u32 %v5454_v34, %v5453_v6  ;;  %v3791_v6 = vsel %vm9473_vm14, %v3783_v52, %v3790_v7  ;;  %v2189_v34 = vshll.u32 %v2089_v54, 16  ;;  %7402 = vmatprep.subr.bf16.mxu0 %v14370_v16  ;;  %v2171_v38 = vshll.u32 %v2087_v37, 16  ;;  %v10140_v60 = vld [vmem:[#allocation2 + $0x30] sm:$0xf] }
 0x135   : > { %5871 = vrot.lane.b32.xlu0 %v5475_v21, %s9132_s11  ;;  %v10102_v21 = vrot.slane %v4775_v2, 4  ;;  %v2969_v2 = vld [vmem:[#allocation2 + $0x38] sm:$0xf]  ;;  %v2184_v52 = vrot.slane %v10113_v0, 4  ;;  %v2170_v62 = vrot.slane %v2168_v41, 7  ;;  %v10143_v16 = vrot.slane %v4781_v13, 5 }
 0x136   : > { %4481 = vrot.lane.b32.xlu1 %v4374_v12, %s9127_s16  ;;  %v2186_v12 = vshrl.u32 %v2089_v54, 16  ;;  %v5457_v7 = vsel %vm9473_vm14, %v5449_v55, %v5456_v24  ;;  %v3138_v24 = vshll.u32 %v2969_v2, 16  ;;  %v3142_v55 = vshrl.u32 %v2969_v2, 16  ;;  %v4662_v41 = vld [vmem:[#allocation2 + $0x38] sm:$0xf]  ;;  %8891 = vmatpush1.bf16.msra.mxu1 %v9038_v5 }
 0x137   : > { %v4778_v51 = vor.u32 %v10102_v21, %v9954_v39  ;;  %v3095_v2 = vor.u32 %v3094_v58, %v9986_v61  ;;  %v14468_v37 = vshrl.u32 %v9880_v31, 16  ;;  %v9039_v39 = vld [vmem:[%s14362_s3] sm:$0xff]   ;;  %7403 = vmatpush1.bf16.msra.mxu0 %v9038_v5  ;;  %v14469_v61 = vmov 0  }
 0x138   : > { %v2188_v43 = vrot.slane %v2186_v12, 7  ;;  %v10128_v12 = vrot.slane %v2195_v20, 7  ;;  %8883 = vmatprep.subr.bf16.mxu1 %v14469_v61  ;;  %7404 = vmatprep.subr.bf16.mxu0 %v14469_v61  ;;  %v3144_v58 = vrot.slane %v3142_v55, 4  ;;  %v3812_v55 = vshrl.u32 %v10140_v60, 16 }
 0x139   : > { %6168 = vrot.lane.b32.xlu0 %v6064_v22, %s9129_s18  ;;  %v10126_v22 = vld [vmem:[#allocation2 + $0x30] sm:$0xf] }
 0x13a   : > { %5869 = vrot.lane.b32.xlu1 %v5466_v63, %s9132_s11  ;;  %v10124_v63 = vrot.slane %v4758_v47, 4  ;;  %v2191_v54 = vor.u32 %v2189_v34, %v2188_v43  ;;  %v2193_v47 = vrot.slane %v2188_v43, 4  ;;  %v2200_v34 = vor.u32 %v2198_v42, %v10128_v12  ;;  %8892 = vmatpush1.bf16.msra.mxu1 %v9039_v39 }
 0x13b   : > { %v3118_v21 = vshll.u32 %v10126_v22, 16  ;;  %v3122_v13 = vshrl.u32 %v10126_v22, 16  ;;  %v5478_v42 = vshrl.u32 %v10132_v33, 16  ;;  %v10159_v43 = vrot.slane %v3138_v24, 5  ;;  %v10173_v24 = vld [vmem:[#allocation2 + $0x3c] sm:$0xf]  ;;  %7405 = vmatpush1.bf16.msra.mxu0 %v9039_v39  ;;  %8884 = vmatprep.subr.bf16.mxu1 %v14469_v61 }
 0x13c   : > { %v2192_v20 = vsel %vm9473_vm14, %v2184_v52, %v2191_v54  ;;  %v2201_v31 = vsel %vm9473_vm14, %v2193_v47, %v2200_v34  ;;  %v14470_v52 = vrot.slane %v9461_v27, 4  ;;  %v2180_v22 = vshll.u32 %v10077_v4, 16  ;;  %7420 = vmatprep.subr.bf16.mxu0 %v14469_v61 }
 0x13d   : > { %2791 = vrot.lane.b32.xlu0 %v2681_v17, %s9125_s13  ;;  %v3114_v17 = vrot.slane %v14468_v37, 4  ;;  %2624 = vst.msk [vmem:[#allocation3 + $0x28] sm:$0xf] %vm1834_vm2, %v2192_v20  ;;  %2625 = vst.msk [vmem:[#allocation3 + $0x30] sm:$0xf] %vm1834_vm2, %v2201_v31  ;;  %v4764_v54 = vsel %vm9662_vm6, %v10124_v63, %v9916_v23  ;;  %v4801_v27 = vshll.u32 %v4662_v41, 16 }
 0x13e   : > { %4180 = vrot.lane.b32.xlu1 %v3791_v6, %s9131_s20  ;;  %v2173_v6 = vor.u32 %v2171_v38, %v2170_v62  ;;  %v4372_v38 = vld [vmem:[#allocation2 + $0x34] sm:$0xf]  ;;  %v4805_v20 = vshrl.u32 %v4662_v41, 16  ;;  %v4779_v47 = vrot.slane %v4778_v51, 4  ;;  %v10177_v34 = vrot.slane %v3095_v2, 4  ;;  %v9040_v23 = vld [vmem:[%s14362_s3 + $0x40] sm:$0xff]  }
 0x13f   : > { %v2175_v4 = vrot.slane %v2170_v62, 4  ;;  %v10180_v37 = vld [vmem:[#allocation2 + $0x24] sm:$0xf]  ;;  %v3115_v63 = vor.u32 %v3114_v17, %v9909_v9  ;;  %v10188_v31 = vrot.slane %v5478_v42, 7  ;;  %v5481_v51 = vshll.u32 %v10132_v33, 16  ;;  %8893 = vmatpush2.bf16.msra.mxu1 %v9040_v23  ;;  %7421 = vmatpush2.bf16.msra.mxu0 %v9040_v23 }
 0x140   : > { %v2174_v5 = vsel %vm9473_vm14, %v14470_v52, %v2173_v6  ;;  %v10186_v6 = vrot.slane %v3118_v21, 5  ;;  %v2093_v2 = vld [vmem:[#allocation2 + $0x28] sm:$0xf]  ;;  %v5476_v62 = vrot.slane %v10035_v36, 4  ;;  %v3148_v41 = vshll.u32 %v10173_v24, 16 }
 0x141   : > { %5867 = vrot.lane.b32.xlu0 %v5457_v7, %s9132_s11  ;;  %2622 = vst.msk [vmem:[#allocation3 + $0x18] sm:$0xf] %vm1834_vm2, %v2174_v5  ;;  %v2182_v7 = vor.u32 %v2180_v22, %v10113_v0  ;;  %v3145_v0 = vor.u32 %v3144_v58, %v10159_v43  ;;  %v10201_v33 = vrot.slane %v3812_v55, 7  ;;  %v3815_v17 = vshll.u32 %v10140_v60, 16  ;;  %v10214_v42 = vld [vmem:[#allocation2 + $0x3c] sm:$0xf] }
 0x142   : > { %4477 = vrot.lane.b32.xlu1 %v4372_v38, %s9127_s16  ;;  %v10204_v39 = vrot.slane %v4801_v27, 5  ;;  %v4807_v21 = vrot.slane %v4805_v20, 4  ;;  %v4784_v36 = vsel %vm9662_vm6, %v4779_v47, %v10143_v16  ;;  %v2213_v61 = vshrl.u32 %v10180_v37, 16  ;;  %v6062_v22 = vld [vmem:[#allocation2 + $0x34] sm:$0xf] }
 0x143   : > { %v2183_v9 = vsel %vm9473_vm14, %v2175_v4, %v2182_v7  ;;  %v2222_v38 = vshrl.u32 %v2093_v2, 16  ;;  %v10217_v60 = vrot.slane %v3115_v63, 4  ;;  %v5483_v58 = vor.u32 %v5481_v51, %v10188_v31  ;;  %v2679_v4 = vld [vmem:[#allocation2 + $0x34] sm:$0xf]  ;;  %v6067_v7 = vld [vmem:[#allocation2 + $0x48] sm:$0xf] }
 0x144   : > { %2623 = vst.msk [vmem:[#allocation3 + $0x20] sm:$0xf] %vm1834_vm2, %v2183_v9  ;;  %v3124_v52 = vrot.slane %v3122_v13, 4  ;;  %v2225_v5 = vshll.u32 %v2093_v2, 16  ;;  %v10222_v55 = vrot.slane %v3148_v41, 5  ;;  %v10224_v27 = vrot.slane %v2213_v61, 7 }
 0x145   : > { %4182 = vrot.lane.b32.xlu0 %v10110_v3, %s9131_s20  ;;  %v3101_v3 = vsel %vm9662_vm6, %v10177_v34, %v9874_v49  ;;  %v10226_v49 = vrot.slane %v2222_v38, 7  ;;  %v3817_v20 = vor.u32 %v3815_v17, %v10201_v33  ;;  %v4808_v47 = vor.u32 %v4807_v21, %v10204_v39  ;;  %v10239_v51 = vld [vmem:[#allocation2 + $0x34] sm:$0xf]  ;;  %v10248_v21 = vld [vmem:[#allocation2 + $0x38] sm:$0xf]  ;;  %v8795_v38 = vpop.f32.mrf.mxu0 }
 0x146   : > { %5195 = vrot.lane.b32.xlu1 %v4764_v54, %s9130_s19  ;;  %v10220_v54 = vrot.slane %v3145_v0, 4  ;;  %v4811_v13 = vshll.u32 %v10214_v42, 16  ;;  %v353_v34 = vadd.s32 152, %v9253_v25  ;;  %v3121_v23 = vsel %vm9662_vm6, %v10217_v60, %v10186_v6 }
 0x147   : > { %v3810_v63 = vrot.slane %v9997_v28, 4  ;;  %v2220_v2 = vrot.slane %v10224_v27, 4  ;;  %v2227_v0 = vor.u32 %v2225_v5, %v10226_v49  ;;  %v3125_v41 = vor.u32 %v3124_v52, %v10186_v6  ;;  %v10259_v5 = vld [vmem:[#allocation2 + $0x34] sm:$0xf]  ;;  %v10261_v6 = vld [vmem:[#allocation2 + $0x3c] sm:$0xf] }
 0x148   : > { %v14471_v9 = vshrl.u32 %v10091_v26, 16  ;;  %v5484_v28 = vsel %vm9473_vm14, %v5476_v62, %v5483_v58  ;;  %v351_v52 = vadd.s32 136, %v9253_v25  ;;  %v10272_v58 = vrot.slane %v4808_v47, 4 }
 0x149   : > { %6164 = vrot.lane.b32.xlu0 %v6062_v22, %s9129_s18  ;;  %v2228_v26 = vsel %vm9473_vm14, %v2220_v2, %v2227_v0  ;;  %v10270_v62 = vsel %vm9473_vm14, %v3810_v63, %v3817_v20  ;;  %v10274_v22 = vrot.slane %v4811_v13, 5  ;;  %v2091_v2 = vld [vmem:[#allocation2 + $0x20] sm:$0xf]  ;;  %v10285_v60 = vrot.slane %v3125_v41, 4  ;;  %v1614_v63 = vpop.f32.mrf.mxu0 }
 0x14a   : > { %5199 = vrot.lane.b32.xlu1 %v4784_v36, %s9130_s19  ;;  %v10246_v17 = vrot.slane %v14471_v9, 4  ;;  %v10250_v36 = vmul.u32.u64.low 2863311531, %v353_v34  ;;  %v10251_v61 = vmul.u32.u64.high 2863311531, %v353_v34, %v10250_v36  ;;  %2628 = vst.msk [vmem:[#allocation3 + $0x48] sm:$0xf] %vm1834_vm2, %v2228_v26  ;;  %v10278_v9 = vadd.s32 176, %v9253_v25 }
 0x14b   : > { %v2684_v26 = vld [vmem:[#allocation2 + $0x48] sm:$0xf]  ;;  %v3839_v44 = vshrl.u32 %v10261_v6, 16  ;;  %v2204_v15 = vshrl.u32 %v2091_v2, 16  ;;  %v10303_v47 = vadd.s32 160, %v9253_v25  ;;  %v3842_v41 = vshll.u32 %v10261_v6, 16 }
 0x14c   : > { %v597_v13 = vshrl.u32 %v10251_v61, 4  ;;  %v10293_v0 = vmul.u32.u64.low 2863311531, %v10278_v9  ;;  %v10294_v40 = vmul.u32.u64.high 2863311531, %v10278_v9, %v10293_v0  ;;  %v2207_v61 = vshll.u32 %v2091_v2, 16  ;;  %v8798_v2 = vpop.f32.mrf.mxu0 }
 0x14d   : > { %2787 = vrot.lane.b32.xlu0 %v2679_v4, %s9125_s13  ;;  %v3830_v4 = vshrl.u32 %v10248_v21, 16  ;;  %v10310_v0 = vld [vmem:[%s14361_s2] ss:$0 sm:$0xff]  ;;  %v10314_v45 = vrot.slane %v2204_v15, 7  ;;  %v10318_v30 = vmul.u32.u64.low 2863311531, %v10303_v47  ;;  %v10319_v57 = vmul.u32.u64.high 2863311531, %v10303_v47, %v10318_v30 }
 0x14e   : > { %6174 = vrot.lane.b32.xlu1 %v6067_v7, %s9129_s18  ;;  %v10282_v36 = vmul.u32.u64.low 2863311531, %v351_v52  ;;  %v10283_v7 = vmul.u32.u64.high 2863311531, %v351_v52, %v10282_v36  ;;  %v630_v14 = vshrl.u32 %v10294_v40, 4  ;;  %v2202_v8 = vrot.slane %v10128_v12, 4  ;;  %v10331_v12 = vld [vmem:[#allocation2 + $0x38] sm:$0xf] }
 0x14f   : > { %v598_v36 = vmul.u32 24, %v597_v13  ;;  %v10305_v20 = vrot.slane %v3830_v4, 7  ;;  %v2209_v29 = vor.u32 %v2207_v61, %v10314_v45 }
 0x150   : > { %v631_v30 = vmul.u32 24, %v630_v14 }
 0x151   : > { %3508 = vrot.lane.b32.xlu0 %v3101_v3, %s9128_s17  ;;  %v1623_v3 = vadd.f32 %v10310_v0, %v8795_v38  ;;  %v599_v13 = vsub.s32 %v353_v34, %v598_v36  ;;  %v1615_v34 = vadd.f32 %v10310_v0, %v1614_v63  ;;  %v2210_v40 = vsel %vm9473_vm14, %v2202_v8, %v2209_v29  ;;  %v4377_v63 = vld [vmem:[#allocation2 + $0x48] sm:$0xf] }
 0x152   : > { %2797 = vrot.lane.b32.xlu1 %v2684_v26, %s9125_s13  ;;  %v575_v26 = vshrl.u32 %v10283_v7, 4  ;;  %v10329_v36 = vrot.slane %v3839_v44, 7  ;;  %2626 = vst.msk [vmem:[#allocation3 + $0x38] sm:$0xf] %vm1834_vm2, %v2210_v40  ;;  %v14472_v44 = vsel %vm9662_vm6, %v10220_v54, %v10222_v55  ;;  %v14473_v8 = vmov 0.0  }
 0x153   : > { %vm929_vm5 = vcmp.ne.s32.totalorder %v599_v13, 0  ;;  %vm977_vm7 = vcmp.lt.s32.totalorder %v599_v13, 0  ;;  %v1073_v15 = vadd.s32 24, %v599_v13  ;;  %v1757_v38 = vmax.f32 %v1623_v3, 0.0 }
 0x154   : > { %v576_v4 = vmul.u32 24, %v575_v26  ;;  %vm1025_vm8 = vmand %vm977_vm7, %vm929_vm5  ;;  %v1627_v26 = vpop.f32.mrf.mxu0  ;;  %vm3636_vm5 = vcmask 388352  }
 0x155   : > { %3512 = vrot.lane.b32.xlu0 %v3121_v23, %s9128_s17  ;;  %v1121_v61 = vsel %vm1025_vm8, %v1073_v15, %v599_v13  ;;  %v1636_v23 = vadd.f32 %v10310_v0, %v8798_v2  ;;  %v10345_v13 = vld [vmem:[#allocation2 + $0x3c] sm:$0xf]  ;;  %v5496_v2 = vshrl.u32 %v10331_v12, 16  ;;  %v1628_v40 = vadd.f32 %v10310_v0, %v1627_v26 }
 0x156   : > { %5873 = vrot.lane.b32.xlu1 %v5484_v28, %s9132_s11  ;;  %v577_v7 = vsub.s32 %v351_v52, %v576_v4  ;;  %v608_v28 = vshrl.u32 %v10319_v57, 4  ;;  %vm1169_vm9 = vcmp.lt.s32.totalorder %v1121_v61, 16  ;;  %v1755_v52 = vmax.f32 %v1615_v34, 0.0  ;;  %v2094_v61 = vld [vmem:[#allocation2 + $0x2c] sm:$0xf] }
 0x157   : > { %v8330_v29 = vsel %vm1169_vm9, 1.0, %v14473_v8  ;;  %v632_v57 = vsub.s32 %v10278_v9, %v631_v30  ;;  %v6065_v9 = vld [vmem:[#allocation2 + $0x40] sm:$0xf] }
 0x158   : > { %vm927_vm10 = vcmp.ne.s32.totalorder %v577_v7, 0  ;;  %vm975_vm11 = vcmp.lt.s32.totalorder %v577_v7, 0  ;;  %v1071_v14 = vadd.s32 24, %v577_v7  ;;  %v609_v3 = vmul.u32 24, %v608_v28 }
 0x159   : > { %4487 = vrot.lane.b32.xlu0 %v4377_v63, %s9127_s16  ;;  %vm1023_vm12 = vmand %vm975_vm11, %vm927_vm10  ;;  %v1805_v4 = vmul.f32 %v8330_v29, %v1757_v38  ;;  %vm932_vm0 = vcmp.ne.s32.totalorder %v632_v57, 0  ;;  %vm980_vm3 = vcmp.lt.s32.totalorder %v632_v57, 0  ;;  %v1760_v28 = vmax.f32 %v1636_v23, 0.0 }
 0x15a   : > { %3518 = vrot.lane.b32.xlu1 %v14472_v44, %s9128_s17  ;;  %v1119_v15 = vsel %vm1023_vm12, %v1071_v14, %v577_v7  ;;  %v1076_v44 = vadd.s32 24, %v632_v57  ;;  %vm1028_vm4 = vmand %vm980_vm3, %vm932_vm0  ;;  %v610_v38 = vsub.s32 %v10303_v47, %v609_v3  ;;  %v5505_v7 = vshrl.u32 %v10345_v13, 16 }
 0x15b   : > { %v10349_v63 = vpop.permute.xlu0 %4463  ;;  %vm1167_vm13 = vcmp.lt.s32.totalorder %v1119_v15, 16  ;;  %v8640_v34 = vpack.c.bf16 %v1805_v4, %v1805_v4  ;;  %v2231_v29 = vshrl.u32 %v2094_v61, 16  ;;  %vm14394_vm12 = vcmask 519552  }
 0x15c   : > { %v2774_v54 = vpop.permute.xlu1 %2773  ;;  %v8328_v30 = vsel %vm1167_vm13, 1.0, %v14473_v8  ;;  %v1124_v14 = vsel %vm1028_vm4, %v1076_v44, %v632_v57  ;;  %vm930_vm8 = vcmp.ne.s32.totalorder %v610_v38, 0  ;;  %vm978_vm9 = vcmp.lt.s32.totalorder %v610_v38, 0 }
 0x15d   : > { %2913 = vst.msk [vmem:[#allocation3 + $0x28] sm:$0xf] %vm2907_vm15, %v2774_v54  ;;  %4186 = vrot.lane.b32.xlu0 %v10270_v62, %s9131_s20  ;;  %v1803_v26 = vmul.f32 %v8328_v30, %v1755_v52  ;;  %vm1172_vm7 = vcmp.lt.s32.totalorder %v1124_v14, 16  ;;  %v1074_v4 = vadd.s32 24, %v610_v38  ;;  %vm10360_vm10 = vmand %vm978_vm9, %vm930_vm8  ;;  %v1758_v54 = vmax.f32 %v1628_v40, 0.0 }
 0x15e   : > { %6170 = vrot.lane.b32.xlu1 %v6065_v9, %s9129_s18  ;;  %2054 = vst.msk [vmem:[#allocation2 + $0x5c] sm:$0xf] %vm1834_vm2, %v8640_v34  ;;  %v8333_v3 = vsel %vm1172_vm7, 1.0, %v14473_v8  ;;  %v10364_v9 = vrot.slane %v2231_v29, 7  ;;  %v2682_v52 = vld [vmem:[#allocation2 + $0x40] sm:$0xf]  ;;  %v14476_v40 = vsel %vm9662_vm6, %v10272_v58, %v10274_v22  ;;  %v3844_v58 = vor.u32 %v3842_v41, %v10329_v36 }
 0x15f   : > { %v2776_v23 = vpop.permute.xlu0 %2775  ;;  %v8638_v47 = vpack.c.bf16 %v1803_v26, %v1803_v26  ;;  %v1808_v57 = vmul.f32 %v8333_v3, %v1760_v28  ;;  %v1122_v44 = vsel %vm10360_vm10, %v1074_v4, %v610_v38  ;;  %v2229_v34 = vrot.slane %v10226_v49, 4  ;;  %v6356_v29 = vld [vmem:[#allocation2 + $0x48] sm:$0xf]  ;;  %v6354_v3 = vld [vmem:[#allocation2 + $0x40] sm:$0xf] }
 0x160   : > { %v2770_v15 = vpop.permute.xlu1 %2769  ;;  %2914 = vst.msk [vmem:[#allocation3 + $0x30] sm:$0xf] %vm2907_vm15, %v2776_v23  ;;  %v2234_v30 = vshll.u32 %v2094_v61, 16  ;;  %v14477_v26 = vshll.u32 %v10239_v51, 16  ;;  %v14478_v28 = vor.u32 %v10246_v17, %v10143_v16  ;;  %v3837_v49 = vrot.slane %v10305_v20, 4 }
 0x161   : > { %2911 = vst.msk [vmem:[#allocation3 + $0x18] sm:$0xf] %vm2907_vm15, %v2770_v15  ;;  %5205 = vrot.lane.b32.xlu0 %v14476_v40, %s9130_s19  ;;  %v10387_v61 = vld [vmem:[#allocation2 + $0x34] sm:$0xf]  ;;  %vm1170_vm11 = vcmp.lt.s32.totalorder %v1122_v44, 16  ;;  %v8643_v4 = vpack.c.bf16 %v1808_v57, %v1808_v57  ;;  %v5498_v62 = vrot.slane %v5496_v2, 7 }
 0x162   : > { %2793 = vrot.lane.b32.xlu1 %v2682_v52, %s9125_s13  ;;  %v10380_v14 = vrot.slane %v14477_v26, 5  ;;  %v4789_v38 = vrot.slane %v14478_v28, 4  ;;  %2052 = vst.msk [vmem:[#allocation2 + $0x54] sm:$0xf] %vm1834_vm2, %v8638_v47  ;;  %v8331_v23 = vsel %vm1170_vm11, 1.0, %v14473_v8  ;;  %v2236_v15 = vor.u32 %v2234_v30, %v10364_v9 }
 0x163   : > { %v2772_v16 = vpop.permute.xlu0 %2771  ;;  %v10396_v52 = vrot.slane %v5505_v7, 7  ;;  %v5508_v47 = vshll.u32 %v10345_v13, 16  ;;  %v1806_v44 = vmul.f32 %v8331_v23, %v1758_v54  ;;  %v4375_v40 = vld [vmem:[#allocation2 + $0x40] sm:$0xf]  ;;  %v14479_v41 = vshll.u32 %v10259_v5, 16 }
 0x164   : > { %v10394_v17 = vpop.permute.xlu1 %4465  ;;  %2912 = vst.msk [vmem:[#allocation3 + $0x20] sm:$0xf] %vm2907_vm15, %v2772_v16  ;;  %v3131_v6 = vsel %vm9662_vm6, %v10285_v60, %v10380_v14  ;;  %v5487_v30 = vshrl.u32 %v10387_v61, 16  ;;  %v2237_v13 = vsel %vm9473_vm14, %v2229_v34, %v2236_v15  ;;  %v14480_v2 = vshrl.u32 %v10031_v48, 16  ;;  %v10416_v28 = vld [vmem:[#allocation2 + $0x34] sm:$0xf] }
 0x165   : > { %v10406_v57 = vrot.slane %v14479_v41, 5  ;;  %2057 = vst.msk [vmem:[#allocation2 + $0x68] sm:$0xf] %vm1834_vm2, %v8643_v4  ;;  %v6504_v54 = vshll.u32 %v6356_v29, 16  ;;  %v6508_v26 = vshrl.u32 %v6356_v29, 16  ;;  %4483 = vrot.lane.b32.xlu0 %v4375_v40, %s9127_s16  ;;  %v8641_v60 = vpack.c.bf16 %v1806_v44, %v1806_v44 }
 0x166   : > { %v6460_v7 = vrot.slane %v14480_v2, 4  ;;  %3514 = vrot.lane.b32.xlu1 %v3131_v6, %s9128_s17  ;;  %2629 = vst.msk [vmem:[#allocation3 + $0x50] sm:$0xf] %vm1834_vm2, %v2237_v13  ;;  %v6484_v23 = vshll.u32 %v6354_v3, 16  ;;  %v6488_v16 = vshrl.u32 %v6354_v3, 16  ;;  %v2216_v48 = vshll.u32 %v10180_v37, 16 }
 0x167   : > { %v4794_v34 = vsel %vm9662_vm6, %v4789_v38, %v10406_v57  ;;  %v3497_v4 = vpop.permute.xlu0 %3496  ;;  %v3845_v29 = vsel %vm9473_vm14, %v3837_v49, %v3844_v58  ;;  %v5503_v40 = vrot.slane %v5498_v62, 4  ;;  %v5510_v44 = vor.u32 %v5508_v47, %v10396_v52  ;;  %2055 = vst.msk [vmem:[#allocation2 + $0x60] sm:$0xf] %vm1834_vm2, %v8641_v60  ;;  %v6357_v2 = vld [vmem:[#allocation2 + $0x4c] sm:$0xf]  ;;  %v9046_v60 = vld [vmem:[%s9198_s12 + $0xa0] sm:$0xff]  }
 0x168   : > { %v10423_v15 = vpop.permute.xlu1 %6158  ;;  %v5499_v6 = vshll.u32 %v10331_v12, 16  ;;  %3639 = vst.msk [vmem:[#allocation3 + $0x10] sm:$0xf] %vm3636_vm5, %v3497_v4  ;;  %v10431_v3 = vrot.slane %v5487_v30, 7  ;;  %v3821_v37 = vshrl.u32 %v10416_v28, 16  ;;  %v2211_v38 = vrot.slane %v10314_v45, 4  ;;  %8816 = vmatprep.mubr.msk.bf16.mxu0 %vm1436_vm1, %v9046_v60 }
 0x169   : > { %v2218_v41 = vor.u32 %v2216_v48, %v10224_v27  ;;  %v14481_v49 = vor.u32 %v9949_v18, %v9928_v46  ;;  %v6451_v12 = vor.u32 %v10060_v1, %v10038_v56  ;;  %v10443_v47 = vrot.slane %v6504_v54, 5  ;;  %5201 = vrot.lane.b32.xlu0 %v4794_v34, %s9130_s19 }
 0x16a   : > { %v6510_v13 = vrot.slane %v6508_v26, 4  ;;  %4192 = vrot.lane.b32.xlu1 %v3845_v29, %s9131_s20  ;;  %v6481_v45 = vor.u32 %v10064_v50, %v10062_v35  ;;  %v6461_v27 = vor.u32 %v6460_v7, %v10074_v53  ;;  %v6490_v30 = vrot.slane %v6488_v16, 4  ;;  %v4378_v16 = vld [vmem:[#allocation2 + $0x4c] sm:$0xf] }
 0x16b   : > { %v10439_v58 = vrot.slane %v14481_v49, 4  ;;  %14483 = vst [vmem:[#allocation22_spill] sm:$0xff] %v10443_v47  ;;  %v2219_v18 = vsel %vm9473_vm14, %v2211_v38, %v2218_v41  ;;  %v14484_v1 = vor.u32 %v10006_v59, %v10004_v10  ;;  %v10458_v26 = vrot.slane %v6484_v23, 5  ;;  %v10461_v48 = vpop.permute.xlu0 %4471  ;;  %v2097_v41 = vld [vmem:[#allocation2 + $0x38] sm:$0xf] }
 0x16c   : > { %v4795_v34 = vshrl.u32 %v10259_v5, 16  ;;  %14487 = vst [vmem:[#allocation25_spill] sm:$0xff] %v10461_v48  ;;  %v2782_v50 = vpop.permute.xlu1 %2781  ;;  %v5511_v7 = vsel %vm9473_vm14, %v5503_v40, %v5510_v44  ;;  %2627 = vst.msk [vmem:[#allocation3 + $0x40] sm:$0xf] %vm1834_vm2, %v2219_v18  ;;  %v5494_v4 = vrot.slane %v10431_v3, 4  ;;  %v5501_v59 = vor.u32 %v5499_v6, %v5498_v62 }
 0x16d   : > { %14482 = vst [vmem:[#allocation21_spill] sm:$0xff] %v10439_v58  ;;  %v10456_v54 = vrot.slane %v14484_v1, 4  ;;  %14486 = vst [vmem:[#allocation24_spill] sm:$0xff] %v10458_v26  ;;  %v10468_v29 = vrot.slane %v3821_v37, 7  ;;  %v3824_v23 = vshll.u32 %v10416_v28, 16  ;;  %v10472_v5 = vrot.slane %v6451_v12, 4  ;;  %5879 = vrot.lane.b32.xlu0 %v5511_v7, %s9132_s11 }
 0x16e   : > { %2917 = vst.msk [vmem:[#allocation3 + $0x48] sm:$0xf] %vm2907_vm15, %v2782_v50  ;;  %v6511_v38 = vor.u32 %v6510_v13, %v10443_v47  ;;  %v6514_v40 = vshll.u32 %v6357_v2, 16  ;;  %4489 = vrot.lane.b32.xlu1 %v4378_v16, %s9127_s16  ;;  %v10477_v44 = vld [vmem:[#allocation2 + $0x34] sm:$0xf]  ;;  %v10479_v62 = vrot.slane %v6481_v45, 4  ;;  %v6491_v28 = vor.u32 %v6490_v30, %v10458_v26 }
 0x16f   : > { %14485 = vst [vmem:[#allocation23_spill] sm:$0xff] %v10456_v54  ;;  %14488 = vst [vmem:[#allocation26_spill] sm:$0xff] %v10472_v5  ;;  %v10481_v6 = vrot.slane %v6461_v27, 4  ;;  %v6518_v37 = vshrl.u32 %v6357_v2, 16  ;;  %v4815_v49 = vshrl.u32 %v10214_v42, 16  ;;  %v10485_v12 = vpop.permute.xlu0 %5189  ;;  %v3819_v18 = vrot.slane %v10201_v33, 4 }
 0x170   : > { %14489 = vst [vmem:[#allocation27_spill] sm:$0xff] %v10479_v62  ;;  %v3503_v13 = vpop.permute.xlu1 %3502  ;;  %v5490_v60 = vshll.u32 %v10387_v61, 16  ;;  %v4797_v1 = vrot.slane %v4795_v34, 4  ;;  %v9047_v50 = vld [vmem:[%s9198_s12 + $0xa8] sm:$0xff]   ;;  %v5502_v27 = vsel %vm9473_vm14, %v5494_v4, %v5501_v59  ;;  %v3826_v30 = vor.u32 %v3824_v23, %v10468_v29  ;;  %v2683_v62 = vld [vmem:[#allocation2 + $0x44] sm:$0xf] }
 0x171   : > { %14490 = vst [vmem:[#allocation28_spill] sm:$0xff] %v10481_v6  ;;  %3642 = vst.msk [vmem:[#allocation3 + $0x28] sm:$0xf] %vm3636_vm5, %v3503_v13  ;;  %v6068_v45 = vld [vmem:[#allocation2 + $0x4c] sm:$0xf]  ;;  %v2249_v2 = vshrl.u32 %v10477_v44, 16  ;;  %8817 = vmatmul.mubr.msk.bf16.gmra.mxu0 %vm1436_vm1, %v9047_v50 }
 0x172   : > { %v2258_v42 = vshrl.u32 %v2097_v41, 16  ;;  %v10495_v7 = vrot.slane %v6511_v38, 4  ;;  %v10497_v16 = vrot.slane %v6514_v40, 5  ;;  %6176 = vrot.lane.b32.xlu0 %v6068_v45, %s9129_s18  ;;  %5877 = vrot.lane.b32.xlu1 %v5502_v27, %s9132_s11  ;;  %v3833_v33 = vshll.u32 %v10248_v21, 16  ;;  %v10504_v13 = vld [vmem:[#allocation2 + $0x44] sm:$0xf] }
 0x173   : > { %v2261_v61 = vshll.u32 %v2097_v41, 16  ;;  %v10502_v34 = vrot.slane %v6518_v37, 4  ;;  %v3132_v4 = vshrl.u32 %v10239_v51, 16  ;;  %v10507_v59 = vrot.slane %v2249_v2, 7  ;;  %v10512_v38 = vpop.permute.xlu0 %4467  ;;  %v10517_v37 = vld [vmem:[#allocation2 + $0x40] sm:$0xf] }
 0x174   : > { %14491 = vst [vmem:[#allocation29_spill] sm:$0xff] %v10495_v7  ;;  %14492 = vst [vmem:[#allocation30_spill] sm:$0xff] %v10497_v16  ;;  %v10509_v23 = vrot.slane %v2258_v42, 7  ;;  %v2778_v40 = vpop.permute.xlu1 %2777  ;;  %v5485_v45 = vrot.slane %v10188_v31, 4  ;;  %v5492_v21 = vor.u32 %v5490_v60, %v10431_v3  ;;  %v4798_v41 = vor.u32 %v4797_v1, %v10406_v57  ;;  %v2685_v51 = vld [vmem:[#allocation2 + $0x4c] sm:$0xf] }
 0x175   : > { %14493 = vst [vmem:[#allocation31_spill] sm:$0xff] %v10502_v34  ;;  %v4817_v27 = vrot.slane %v4815_v49, 4  ;;  %v10519_v7 = vrot.slane %v6491_v28, 4  ;;  %2915 = vst.msk [vmem:[#allocation3 + $0x38] sm:$0xf] %vm2907_vm15, %v2778_v40  ;;  %v3827_v50 = vsel %vm9473_vm14, %v3819_v18, %v3826_v30  ;;  %v2256_v2 = vrot.slane %v10507_v59, 4 }
 0x176   : > { %v2263_v42 = vor.u32 %v2261_v61, %v10509_v23  ;;  %v3152_v3 = vshrl.u32 %v10173_v24, 16  ;;  %2799 = vrot.lane.b32.xlu0 %v2685_v51, %s9125_s13  ;;  %4188 = vrot.lane.b32.xlu1 %v3827_v50, %s9131_s20  ;;  %v3828_v57 = vrot.slane %v10468_v29, 4  ;;  %v3835_v28 = vor.u32 %v3833_v33, %v10305_v20  ;;  %v2973_v49 = vld [vmem:[#allocation2 + $0x48] sm:$0xf]  ;;  %v10543_v50 = vld [vmem:[#allocation2 + $0x40] sm:$0xf] }
 0x177   : > { %14494 = vst [vmem:[#allocation32_spill] sm:$0xff] %v10519_v7  ;;  %v4821_v18 = vshll.u32 %v10517_v37, 16  ;;  %v3134_v1 = vrot.slane %v3132_v4, 4  ;;  %v4666_v61 = vld [vmem:[#allocation2 + $0x48] sm:$0xf]  ;;  %v10538_v40 = vpop.permute.xlu0 %6160  ;;  %v5493_v29 = vsel %vm9473_vm14, %v5485_v45, %v5492_v21  ;;  %v4799_v20 = vrot.slane %v4798_v41, 4 }
 0x178   : > { %v2264_v30 = vsel %vm9473_vm14, %v2256_v2, %v2263_v42  ;;  %v3499_v51 = vpop.permute.xlu1 %3498  ;;  %v4818_v33 = vor.u32 %v4817_v27, %v10274_v22  ;;  %v2095_v4 = vld [vmem:[#allocation2 + $0x30] sm:$0xf]  ;;  %v4376_v2 = vld [vmem:[#allocation2 + $0x44] sm:$0xf]  ;;  %vm4603_vm13 = vcmask 650752   ;;  %v3178_v42 = vshll.u32 %v2973_v49, 16 }
 0x179   : > { %2632 = vst.msk [vmem:[#allocation3 + $0x68] sm:$0xf] %vm1834_vm2, %v2264_v30  ;;  %v3182_v24 = vshrl.u32 %v2973_v49, 16  ;;  %v3836_v45 = vsel %vm9473_vm14, %v3828_v57, %v3835_v28  ;;  %v3154_v22 = vrot.slane %v3152_v3, 4  ;;  %v10551_v21 = vld [vmem:[#allocation2 + $0x40] sm:$0xf] }
 0x17a   : > { %3640 = vst.msk [vmem:[#allocation3 + $0x18] sm:$0xf] %vm3636_vm5, %v3499_v51  ;;  %5875 = vrot.lane.b32.xlu0 %v5493_v29, %s9132_s11  ;;  %4485 = vrot.lane.b32.xlu1 %v4376_v2, %s9127_s16  ;;  %v4841_v41 = vshll.u32 %v4666_v61, 16  ;;  %v4845_v27 = vshrl.u32 %v4666_v61, 16  ;;  %v10553_v30 = vrot.slane %v4821_v18, 5  ;;  %v3135_v51 = vor.u32 %v3134_v1, %v10380_v14 }
 0x17b   : > { %v2971_v60 = vld [vmem:[#allocation2 + $0x40] sm:$0xf]  ;;  %v2240_v31 = vshrl.u32 %v2095_v4, 16  ;;  %v2243_v47 = vshll.u32 %v2095_v4, 16  ;;  %v2784_v49 = vpop.permute.xlu0 %2783  ;;  %v4804_v29 = vsel %vm9662_vm6, %v4799_v20, %v10204_v39  ;;  %v4819_v2 = vrot.slane %v4818_v33, 4 }
 0x17c   : > { %v4177_v7 = vpop.permute.xlu1 %4176  ;;  %vm5329_vm0 = vcmask 781952   ;;  %v5514_v3 = vshrl.u32 %v10543_v50, 16  ;;  %2918 = vst.msk [vmem:[#allocation3 + $0x50] sm:$0xf] %vm2907_vm15, %v2784_v49  ;;  %v10562_v57 = vld [vmem:[#allocation2 + $0x4c] sm:$0xf]  ;;  %v3155_v39 = vor.u32 %v3154_v22, %v10222_v55 }
 0x17d   : > { %4318 = vst.msk [vmem:[#allocation3 + $0x18] sm:$0xf] %vm14394_vm12, %v4177_v7  ;;  %v10564_v14 = vrot.slane %v3178_v42, 5  ;;  %v3184_v28 = vrot.slane %v3182_v24, 4  ;;  %v3848_v18 = vshrl.u32 %v10551_v21, 16  ;;  %v10567_v1 = vrot.slane %v2240_v31, 7 }
 0x17e   : > { %4190 = vrot.lane.b32.xlu0 %v3836_v45, %s9131_s20  ;;  %5203 = vrot.lane.b32.xlu1 %v4804_v29, %s9130_s19  ;;  %4607 = vst.msk [vmem:[#allocation3 + $0x18] sm:$0xf] %vm4603_vm13, %v10394_v17  ;;  %v3158_v61 = vshll.u32 %v2971_v60, 16  ;;  %v10574_v7 = vrot.slane %v4841_v41, 5  ;;  %v4847_v20 = vrot.slane %v4845_v27, 4  ;;  %v10576_v33 = vrot.slane %v3135_v51, 4 }
 0x17f   : > { %v3162_v24 = vshrl.u32 %v2971_v60, 16  ;;  %v10578_v4 = vld [vmem:[#allocation2 + $0x4c] sm:$0xf]  ;;  %v2238_v31 = vrot.slane %v10364_v9, 4  ;;  %v2245_v42 = vor.u32 %v2243_v47, %v10567_v1  ;;  %v4175_v45 = vpop.permute.xlu0 %4174  ;;  %v4824_v55 = vsel %vm9662_vm6, %v4819_v2, %v10553_v30  ;;  %v6066_v60 = vld [vmem:[#allocation2 + $0x44] sm:$0xf] }
 0x180   : > { %v10582_v49 = vpop.permute.xlu1 %4473  ;;  %v10587_v17 = vrot.slane %v5514_v3, 7  ;;  %v5517_v22 = vshll.u32 %v10543_v50, 16  ;;  %v3188_v41 = vshll.u32 %v10562_v57, 16  ;;  %4317 = vst.msk [vmem:[#allocation3 + $0x10] sm:$0xf] %vm14394_vm12, %v4175_v45  ;;  %v3185_v9 = vor.u32 %v3184_v28, %v10564_v14 }
 0x181   : > { %v10593_v27 = vrot.slane %v3848_v18, 7  ;;  %v3851_v47 = vshll.u32 %v10551_v21, 16  ;;  %v2246_v51 = vsel %vm9473_vm14, %v2238_v31, %v2245_v42  ;;  %v14495_v29 = vshll.u32 %v10504_v13, 16  ;;  %4606 = vst.msk [vmem:[#allocation3 + $0x10] sm:$0xf] %vm4603_vm13, %v10349_v63 }
 0x182   : > { %6172 = vrot.lane.b32.xlu0 %v6066_v60, %s9129_s18  ;;  %v4825_v50 = vshrl.u32 %v10517_v37, 16  ;;  %5207 = vrot.lane.b32.xlu1 %v4824_v55, %s9130_s19  ;;  %v4848_v3 = vor.u32 %v4847_v20, %v10574_v7  ;;  %v4851_v21 = vshll.u32 %v10578_v4, 16  ;;  %2630 = vst.msk [vmem:[#allocation3 + $0x58] sm:$0xf] %vm1834_vm2, %v2246_v51  ;;  %v10610_v28 = vld [vmem:[#allocation2 + $0x44] sm:$0xf]  ;;  %v3141_v63 = vsel %vm9662_vm6, %v10576_v33, %v10159_v43 }
 0x183   : > { %v10600_v2 = vrot.slane %v14495_v29, 5  ;;  %v6071_v18 = vld [vmem:[#allocation2 + $0x58] sm:$0xf]  ;;  %5332 = vst.msk [vmem:[#allocation3 + $0x10] sm:$0xf] %vm5329_vm0, %v10485_v12  ;;  %v10618_v37 = vrot.slane %v3155_v39, 4  ;;  %v10620_v20 = vpop.permute.xlu0 %6156  ;;  %v5519_v60 = vor.u32 %v5517_v22, %v10587_v17  ;;  %v3853_v39 = vor.u32 %v3851_v47, %v10593_v27 }
 0x184   : > { %v3160_v31 = vrot.slane %v3158_v61, 5  ;;  %v3164_v42 = vrot.slane %v3162_v24, 4  ;;  %v10622_v45 = vpop.permute.xlu1 %4469  ;;  %v5512_v55 = vrot.slane %v10396_v52, 4  ;;  %v10626_v51 = vrot.slane %v3188_v41, 5  ;;  %v10629_v29 = vld [vmem:[#allocation2 + $0x48] sm:$0xf]  ;;  %v8799_v41 = vpop.f32.mrf.mxu0 }
 0x185   : > { %14496 = vst [vmem:[#allocation33_spill] sm:$0xff] %v10600_v2  ;;  %v3846_v12 = vrot.slane %v10329_v36, 4  ;;  %v10631_v43 = vrot.slane %v3185_v9, 4  ;;  %v3168_v61 = vshll.u32 %v10610_v28, 16  ;;  %v357_v33 = vadd.s32 184, %v9253_v25 }
 0x186   : > { %2795 = vrot.lane.b32.xlu0 %v2683_v62, %s9125_s13  ;;  %6182 = vrot.lane.b32.xlu1 %v6071_v18, %s9129_s18  ;;  %v10638_v52 = vrot.slane %v4848_v3, 4  ;;  %v10640_v24 = vrot.slane %v4851_v21, 5  ;;  %v10642_v36 = vld [vmem:[#allocation2 + $0x44] sm:$0xf]  ;;  %v4827_v22 = vrot.slane %v4825_v50, 4  ;;  %v355_v9 = vadd.s32 168, %v9253_v25 }
 0x187   : > { %v3165_v26 = vor.u32 %v3164_v42, %v3160_v31  ;;  %v3866_v47 = vshrl.u32 %v10629_v29, 16  ;;  %v10646_v54 = vmul.u32.u64.low 2863311531, %v357_v33  ;;  %v10647_v35 = vmul.u32.u64.high 2863311531, %v357_v33, %v10646_v54  ;;  %v2780_v6 = vpop.permute.xlu0 %2779  ;;  %v10654_v18 = vld [vmem:[#allocation2 + $0x4c] sm:$0xf] }
 0x188   : > { %v5192_v62 = vpop.permute.xlu1 %5191  ;;  %v3161_v3 = vsel %vm9662_vm6, %v10618_v37, %v3160_v31  ;;  %v5520_v21 = vsel %vm9473_vm14, %v5512_v55, %v5519_v60  ;;  %v10656_v50 = vmul.u32.u64.low 2863311531, %v355_v9  ;;  %v10657_v10 = vmul.u32.u64.high 2863311531, %v355_v9, %v10656_v50  ;;  %2916 = vst.msk [vmem:[#allocation3 + $0x40] sm:$0xf] %vm2907_vm15, %v2780_v6  ;;  %v2688_v42 = vld [vmem:[#allocation2 + $0x58] sm:$0xf] }
 0x189   : > { %5333 = vst.msk [vmem:[#allocation3 + $0x18] sm:$0xf] %vm5329_vm0, %v5192_v62  ;;  %v3191_v54 = vsel %vm9662_vm6, %v10631_v43, %v10626_v51  ;;  %v10667_v37 = vsel %vm9473_vm14, %v3846_v12, %v3853_v39  ;;  %v10669_v31 = vrot.slane %v3168_v61, 5  ;;  %v4831_v55 = vshll.u32 %v10642_v36, 16  ;;  %v1630_v43 = vpop.f32.mrf.mxu0  ;;  %v10688_v50 = vld [vmem:[#allocation2 + $0x48] sm:$0xf] }
 0x18a   : > { %3516 = vrot.lane.b32.xlu0 %v3141_v63, %s9128_s17  ;;  %2805 = vrot.lane.b32.xlu1 %v2688_v42, %s9125_s13  ;;  %v4828_v60 = vor.u32 %v4827_v22, %v10553_v30  ;;  %v360_v62 = vadd.s32 208, %v9253_v25  ;;  %v10681_v12 = vadd.s32 192, %v9253_v25  ;;  %v10683_v39 = vrot.slane %v3165_v26, 4  ;;  %v10693_v30 = vld [vmem:[#allocation2 + $0x4c] sm:$0xf] }
 0x18b   : > { %v10685_v61 = vrot.slane %v3866_v47, 7  ;;  %v3875_v63 = vshrl.u32 %v10654_v18, 16  ;;  %v641_v42 = vshrl.u32 %v10647_v35, 4  ;;  %v3501_v2 = vpop.permute.xlu0 %3500  ;;  %v1639_v22 = vadd.f32 %v10310_v0, %v8799_v41  ;;  %v8802_v5 = vpop.f32.mrf.mxu0 }
 0x18c   : > { %v10691_v6 = vpop.permute.xlu1 %6166  ;;  %v619_v16 = vshrl.u32 %v10657_v10, 4  ;;  %v10697_v34 = vmul.u32.u64.low 2863311531, %v360_v62  ;;  %v10698_v26 = vmul.u32.u64.high 2863311531, %v360_v62, %v10697_v34  ;;  %3641 = vst.msk [vmem:[#allocation3 + $0x20] sm:$0xf] %vm3636_vm5, %v3501_v2  ;;  %v10701_v47 = vrot.slane %v4831_v55, 5 }
 0x18d   : > { %14497 = vst [vmem:[#allocation34_spill] sm:$0xff] %v10691_v6  ;;  %v642_v25 = vmul.u32 24, %v641_v42  ;;  %v10704_v48 = vmul.u32.u64.low 2863311531, %v10681_v12  ;;  %v10705_v35 = vmul.u32.u64.high 2863311531, %v10681_v12, %v10704_v48  ;;  %v10709_v6 = vrot.slane %v4828_v60, 4 }
 0x18e   : > { %3520 = vrot.lane.b32.xlu0 %v3161_v3, %s9128_s17  ;;  %5881 = vrot.lane.b32.xlu1 %v5520_v21, %s9132_s11  ;;  %v5532_v41 = vshrl.u32 %v10688_v50, 16  ;;  %v620_v34 = vmul.u32 24, %v619_v16  ;;  %v5541_v55 = vshrl.u32 %v10693_v30, 16  ;;  %v1631_v53 = vadd.f32 %v10310_v0, %v1630_v43  ;;  %v4381_v16 = vld [vmem:[#allocation2 + $0x58] sm:$0xf]  ;;  %v1643_v43 = vpop.f32.mrf.mxu0 }
 0x18f   : > { %v643_v42 = vsub.s32 %v357_v33, %v642_v25  ;;  %v3505_v48 = vpop.permute.xlu0 %3504  ;;  %v10716_v3 = vrot.slane %v3875_v63, 7  ;;  %v1761_v21 = vmax.f32 %v1639_v22, 0.0  ;;  %v674_v56 = vshrl.u32 %v10698_v26, 4 }
 0x190   : > { %v2790_v58 = vpop.permute.xlu1 %2789  ;;  %v621_v60 = vsub.s32 %v355_v9, %v620_v34  ;;  %3643 = vst.msk [vmem:[#allocation3 + $0x30] sm:$0xf] %vm3636_vm5, %v3505_v48  ;;  %v652_v25 = vshrl.u32 %v10705_v35, 4  ;;  %v5544_v63 = vshll.u32 %v10693_v30, 16 }
 0x191   : > { %2921 = vst.msk [vmem:[#allocation3 + $0x68] sm:$0xf] %vm2907_vm15, %v2790_v58  ;;  %vm933_vm3 = vcmp.ne.s32.totalorder %v643_v42, 0  ;;  %vm981_vm4 = vcmp.lt.s32.totalorder %v643_v42, 0  ;;  %v1077_v2 = vadd.s32 24, %v643_v42  ;;  %v675_v9 = vmul.u32 24, %v674_v56 }
 0x192   : > { %4495 = vrot.lane.b32.xlu0 %v4381_v16, %s9127_s16  ;;  %3526 = vrot.lane.b32.xlu1 %v3191_v54, %s9128_s17  ;;  %vm1029_vm7 = vmand %vm981_vm4, %vm933_vm3  ;;  %vm931_vm8 = vcmp.ne.s32.totalorder %v621_v60, 0  ;;  %vm979_vm9 = vcmp.lt.s32.totalorder %v621_v60, 0  ;;  %v1075_v33 = vadd.s32 24, %v621_v60  ;;  %v1759_v58 = vmax.f32 %v1631_v53, 0.0  ;;  %v6069_v56 = vld [vmem:[#allocation2 + $0x50] sm:$0xf] }
 0x193   : > { %v1125_v22 = vsel %vm1029_vm7, %v1077_v2, %v643_v42  ;;  %vm1027_vm10 = vmand %vm979_vm9, %vm931_vm8  ;;  %v653_v26 = vmul.u32 24, %v652_v25  ;;  %v10725_v34 = vpop.permute.xlu0 %4479  ;;  %v676_v16 = vsub.s32 %v360_v62, %v675_v9  ;;  %v1652_v54 = vadd.f32 %v10310_v0, %v8802_v5  ;;  %v2098_v42 = vld [vmem:[#allocation2 + $0x3c] sm:$0xf]  ;;  %v9054_v5 = vld [vmem:[%s9198_s12 + $0xb0] sm:$0xff]  }
 0x194   : > { %14498 = vst [vmem:[#allocation35_spill] sm:$0xff] %v10725_v34  ;;  %v3511_v48 = vpop.permute.xlu1 %3510  ;;  %vm1173_vm11 = vcmp.lt.s32.totalorder %v1125_v22, 16  ;;  %v1123_v35 = vsel %vm1027_vm10, %v1075_v33, %v621_v60  ;;  %v1644_v53 = vadd.f32 %v10310_v0, %v1643_v43  ;;  %v9055_v25 = vld [vmem:[%s9198_s12 + $0xb8] sm:$0xff]   ;;  %8820 = vmatprep.mubr.msk.bf16.mxu0 %vm1436_vm1, %v9054_v5 }
 0x195   : > { %3646 = vst.msk [vmem:[#allocation3 + $0x48] sm:$0xf] %vm3636_vm5, %v3511_v48  ;;  %v8334_v10 = vsel %vm1173_vm11, 1.0, %v14473_v8  ;;  %vm1171_vm3 = vcmp.lt.s32.totalorder %v1123_v35, 16  ;;  %v654_v2 = vsub.s32 %v10681_v12, %v653_v26  ;;  %vm936_vm4 = vcmp.ne.s32.totalorder %v676_v16, 0  ;;  %8821 = vmatmul.mubr.msk.bf16.gmra.mxu0 %vm1436_vm1, %v9055_v25 }
 0x196   : > { %4194 = vrot.lane.b32.xlu0 %v10667_v37, %s9131_s20  ;;  %6178 = vrot.lane.b32.xlu1 %v6069_v56, %s9129_s18  ;;  %v1809_v62 = vmul.f32 %v8334_v10, %v1761_v21  ;;  %v8332_v60 = vsel %vm1171_vm3, 1.0, %v14473_v8  ;;  %vm984_vm7 = vcmp.lt.s32.totalorder %v676_v16, 0  ;;  %v1080_v12 = vadd.s32 24, %v676_v16 }
 0x197   : > { %v1807_v33 = vmul.f32 %v8332_v60, %v1759_v58  ;;  %vm10738_vm8 = vmand %vm984_vm7, %vm936_vm4  ;;  %vm934_vm9 = vcmp.ne.s32.totalorder %v654_v2, 0  ;;  %vm982_vm10 = vcmp.lt.s32.totalorder %v654_v2, 0  ;;  %v4179_v0 = vpop.permute.xlu0 %4178  ;;  %v1764_v22 = vmax.f32 %v1652_v54, 0.0  ;;  %v2686_v58 = vld [vmem:[#allocation2 + $0x50] sm:$0xf] }
 0x198   : > { %v10742_v43 = vpop.permute.xlu1 %6162  ;;  %v8644_v37 = vpack.c.bf16 %v1809_v62, %v1809_v62  ;;  %vm10744_vm11 = vmand %vm982_vm10, %vm934_vm9  ;;  %v1078_v21 = vadd.s32 24, %v654_v2  ;;  %v2267_v26 = vshrl.u32 %v2098_v42, 16  ;;  %4319 = vst.msk [vmem:[#allocation3 + $0x20] sm:$0xf] %vm14394_vm12, %v4179_v0  ;;  %v1128_v35 = vsel %vm10738_vm8, %v1080_v12, %v676_v16  ;;  %v10763_v62 = vld [vmem:[#allocation2 + $0x44] sm:$0xf] }
 0x199   : > { %v8642_v48 = vpack.c.bf16 %v1807_v33, %v1807_v33  ;;  %v1762_v56 = vmax.f32 %v1644_v53, 0.0  ;;  %v2270_v60 = vshll.u32 %v2098_v42, 16  ;;  %4608 = vst.msk [vmem:[#allocation3 + $0x20] sm:$0xf] %vm4603_vm13, %v10512_v38  ;;  %v14503_v54 = vsel %vm9662_vm6, %v10638_v52, %v10640_v24  ;;  %v4379_v0 = vld [vmem:[#allocation2 + $0x50] sm:$0xf] }
 0x19a   : > { %5213 = vrot.lane.b32.xlu0 %v14503_v54, %s9130_s19  ;;  %2801 = vrot.lane.b32.xlu1 %v2686_v58, %s9125_s13  ;;  %2058 = vst.msk [vmem:[#allocation2 + $0x6c] sm:$0xf] %vm1834_vm2, %v8644_v37  ;;  %vm1176_vm3 = vcmp.lt.s32.totalorder %v1128_v35, 16  ;;  %v1126_v16 = vsel %vm10744_vm11, %v1078_v21, %v654_v2  ;;  %v2265_v53 = vrot.slane %v10509_v23, 4  ;;  %v10768_v38 = vrot.slane %v2267_v26, 7 }
 0x19b   : > { %v10772_v42 = vrot.slane %v5532_v41, 7  ;;  %v10776_v52 = vrot.slane %v5541_v55, 7  ;;  %2056 = vst.msk [vmem:[#allocation2 + $0x64] sm:$0xf] %vm1834_vm2, %v8642_v48  ;;  %v8337_v5 = vsel %vm1176_vm3, 1.0, %v14473_v8  ;;  %vm1174_vm1 = vcmp.lt.s32.totalorder %v1126_v16, 16  ;;  %v10780_v25 = vpop.permute.xlu0 %5197 }
 0x19c   : > { %v2786_v2 = vpop.permute.xlu1 %2785  ;;  %v14504_v23 = vshll.u32 %v10654_v18, 16  ;;  %v1812_v9 = vmul.f32 %v8337_v5, %v1764_v22  ;;  %v8335_v41 = vsel %vm1174_vm1, 1.0, %v14473_v8  ;;  %v2272_v12 = vor.u32 %v2270_v60, %v10768_v38  ;;  %v10801_v26 = vld [vmem:[#allocation2 + $0x44] sm:$0xf] }
 0x19d   : > { %v3192_v55 = vshrl.u32 %v10562_v57, 16  ;;  %2919 = vst.msk [vmem:[#allocation3 + $0x58] sm:$0xf] %vm2907_vm15, %v2786_v2  ;;  %v3171_v37 = vsel %vm9662_vm6, %v10683_v39, %v10669_v31  ;;  %v5523_v10 = vshrl.u32 %v10763_v62, 16  ;;  %v1810_v21 = vmul.f32 %v8335_v41, %v1762_v56  ;;  %v10809_v56 = vld [vmem:[#allocation2 + $0x58] sm:$0xf] }
 0x19e   : > { %v3880_v33 = vor.u32 %v14504_v23, %v10716_v3  ;;  %v4855_v18 = vshrl.u32 %v10578_v4, 16  ;;  %4491 = vrot.lane.b32.xlu0 %v4379_v0, %s9127_s16  ;;  %3522 = vrot.lane.b32.xlu1 %v3171_v37, %s9128_s17  ;;  %v4834_v57 = vsel %vm9662_vm6, %v10709_v6, %v10701_v47  ;;  %v8647_v22 = vpack.c.bf16 %v1812_v9, %v1812_v9  ;;  %v14508_v2 = vld [vmem:[#allocation11_spill] sm:$0xff] }
 0x19f   : > { %v2273_v39 = vsel %vm9473_vm14, %v2265_v53, %v2272_v12  ;;  %v5539_v58 = vrot.slane %v10772_v42, 4  ;;  %v8645_v48 = vpack.c.bf16 %v1810_v21, %v1810_v21  ;;  %v2247_v4 = vrot.slane %v10567_v1, 4  ;;  %v10811_v60 = vpop.permute.xlu0 %4475  ;;  %v14506_v1 = vld [vmem:[#allocation16_spill] sm:$0xff] }
 0x1a0   : > { %2633 = vst.msk [vmem:[#allocation3 + $0x70] sm:$0xf] %vm1834_vm2, %v2273_v39  ;;  %v2252_v35 = vshll.u32 %v10477_v44, 16  ;;  %v3507_v6 = vpop.permute.xlu1 %3506  ;;  %v14505_v54 = vrot.slane %v10685_v61, 4  ;;  %v5546_v53 = vor.u32 %v5544_v63, %v10776_v52  ;;  %2061 = vst.msk [vmem:[#allocation2 + $0x78] sm:$0xf] %vm1834_vm2, %v8647_v22  ;;  %v6421_v5 = vor.u32 %v14506_v1, %v10002_v11 }
 0x1a1   : > { %v14507_v44 = vld [vmem:[#allocation10_spill] sm:$0xff]  ;;  %3644 = vst.msk [vmem:[#allocation3 + $0x38] sm:$0xf] %vm3636_vm5, %v3507_v6  ;;  %v5525_v9 = vrot.slane %v5523_v10, 7  ;;  %v5535_v41 = vshll.u32 %v10688_v50, 16  ;;  %v3172_v63 = vshrl.u32 %v10610_v28, 16 }
 0x1a2   : > { %v3881_v16 = vsel %vm9473_vm14, %v14505_v54, %v3880_v33  ;;  %v6431_v23 = vor.u32 %v14508_v2, %v14507_v44  ;;  %2059 = vst.msk [vmem:[#allocation2 + $0x70] sm:$0xf] %vm1834_vm2, %v8645_v48  ;;  %v3857_v33 = vshrl.u32 %v10801_v26, 16  ;;  %v2254_v30 = vor.u32 %v2252_v35, %v10507_v59  ;;  %5209 = vrot.lane.b32.xlu0 %v4834_v57, %s9130_s19  ;;  %v10853_v48 = vld [vmem:[#allocation2 + $0x44] sm:$0xf]  ;;  %v14514_v50 = vld [vmem:[#allocation26_spill] sm:$0xff] }
 0x1a3   : > { %v4835_v12 = vshrl.u32 %v10642_v36, 16  ;;  %4200 = vrot.lane.b32.xlu1 %v3881_v16, %s9131_s20  ;;  %v6422_v0 = vrot.slane %v6421_v5, 4  ;;  %v14509_v10 = vshrl.u32 %v10504_v13, 16  ;;  %v10839_v22 = vrot.slane %v3192_v55, 4  ;;  %v5194_v28 = vpop.permute.xlu0 %5193 }
 0x1a4   : > { %v6432_v37 = vrot.slane %v6431_v23, 4  ;;  %v2255_v59 = vsel %vm9473_vm14, %v2247_v4, %v2254_v30  ;;  %v4185_v39 = vpop.permute.xlu1 %4184  ;;  %v5547_v36 = vsel %vm9473_vm14, %v5539_v58, %v5546_v53  ;;  %v5526_v57 = vshll.u32 %v10763_v62, 16  ;;  %v2101_v4 = vld [vmem:[#allocation2 + $0x48] sm:$0xf]  ;;  %5334 = vst.msk [vmem:[#allocation3 + $0x20] sm:$0xf] %vm5329_vm0, %v5194_v28 }
 0x1a5   : > { %v10836_v21 = vrot.slane %v14509_v10, 4  ;;  %2631 = vst.msk [vmem:[#allocation3 + $0x60] sm:$0xf] %vm1834_vm2, %v2255_v59  ;;  %v6427_v13 = vsel %vm9662_vm6, %v6422_v0, %v14507_v44  ;;  %v4382_v58 = vld [vmem:[#allocation2 + $0x5c] sm:$0xf]  ;;  %v5530_v35 = vrot.slane %v5525_v9, 4  ;;  %v5537_v62 = vor.u32 %v5535_v41, %v10772_v42 }
 0x1a6   : > { %v6437_v55 = vsel %vm9662_vm6, %v6432_v37, %v9928_v46  ;;  %4322 = vst.msk [vmem:[#allocation3 + $0x38] sm:$0xf] %vm14394_vm12, %v4185_v39  ;;  %v10858_v6 = vrot.slane %v3857_v33, 7  ;;  %v3860_v54 = vshll.u32 %v10801_v26, 16  ;;  %v4857_v46 = vrot.slane %v4855_v18, 4  ;;  %5887 = vrot.lane.b32.xlu0 %v5547_v36, %s9132_s11 }
 0x1a7   : > { %6928 = vst.msk [vmem:[#allocation3 + $0x14] sm:$0xf] %vm1834_vm2, %v6427_v13  ;;  %6929 = vst.msk [vmem:[#allocation3 + $0x1c] sm:$0xf] %vm1834_vm2, %v6437_v55  ;;  %v3174_v16 = vrot.slane %v3172_v63, 4  ;;  %v4837_v53 = vrot.slane %v4835_v12, 4  ;;  %4497 = vrot.lane.b32.xlu1 %v4382_v58, %s9127_s16  ;;  %v3195_v5 = vor.u32 %v10839_v22, %v10626_v51  ;;  %v5872_v18 = vpop.permute.xlu0 %5871 }
 0x1a8   : > { %4611 = vst.msk [vmem:[#allocation3 + $0x38] sm:$0xf] %vm4603_vm13, %v10582_v49  ;;  %vm6007_vm4 = vcmask 913152   ;;  %vm6296_vm7 = vcmask 1044352   ;;  %v3869_v42 = vshll.u32 %v10629_v29, 16  ;;  %v2285_v26 = vshrl.u32 %v10853_v48, 16  ;;  %v10871_v44 = vpop.permute.xlu1 %4481 }
 0x1a9   : > { %v2294_v1 = vshrl.u32 %v2101_v4, 16  ;;  %v5521_v2 = vrot.slane %v10587_v17, 4  ;;  %v5528_v49 = vor.u32 %v5526_v57, %v5525_v9  ;;  %v10874_v23 = vld [vmem:[#allocation2 + $0x50] sm:$0xf]  ;;  %v2297_v41 = vshll.u32 %v2101_v4, 16 }
 0x1aa   : > { %6012 = vst.msk [vmem:[#allocation3 + $0x20] sm:$0xf] %vm6007_vm4, %v5872_v18  ;;  %v6072_v33 = vld [vmem:[#allocation2 + $0x5c] sm:$0xf]  ;;  %v5538_v29 = vsel %vm9473_vm14, %v5530_v35, %v5537_v62  ;;  %v3855_v30 = vrot.slane %v10593_v27, 4  ;;  %v3862_v63 = vor.u32 %v3860_v54, %v10858_v6  ;;  %v10883_v12 = vrot.slane %v2285_v26, 7 }
 0x1ab   : > { %v10881_v51 = vld [vmem:[#allocation2 + $0x50] sm:$0xf]  ;;  %v4858_v17 = vor.u32 %v4857_v46, %v10640_v24  ;;  %v3175_v9 = vor.u32 %v3174_v16, %v10669_v31  ;;  %v4838_v0 = vor.u32 %v4837_v53, %v10701_v47  ;;  %6301 = vst.msk [vmem:[#allocation3 + $0x20] sm:$0xf] %vm6296_vm7, %v10538_v40  ;;  %6184 = vrot.lane.b32.xlu0 %v6072_v33, %s9129_s18  ;;  %v10894_v37 = vrot.slane %v2294_v1, 7  ;;  %v10903_v28 = vpop.permute.xlu0 %6168  ;;  %v14512_v40 = vld [vmem:[#allocation21_spill] sm:$0xff] }
 0x1ac   : > { %5885 = vrot.lane.b32.xlu1 %v5538_v29, %s9132_s11  ;;  %v10892_v27 = vld [vmem:[#allocation2 + $0x50] sm:$0xf]  ;;  %v2977_v10 = vld [vmem:[#allocation2 + $0x58] sm:$0xf]  ;;  %v3864_v22 = vrot.slane %v10858_v6, 4  ;;  %v3871_v24 = vor.u32 %v3869_v42, %v10685_v61  ;;  %v4861_v31 = vshll.u32 %v10874_v23, 16  ;;  %v5870_v39 = vpop.permute.xlu1 %5869  ;;  %v5529_v36 = vsel %vm9473_vm14, %v5521_v2, %v5528_v49 }
 0x1ad   : > { %v2292_v47 = vrot.slane %v10883_v12, 4  ;;  %v10900_v59 = vld [vmem:[#allocation2 + $0x50] sm:$0xf]  ;;  %v3198_v57 = vshll.u32 %v10881_v51, 16  ;;  %v2299_v13 = vor.u32 %v2297_v41, %v10894_v37  ;;  %6011 = vst.msk [vmem:[#allocation3 + $0x18] sm:$0xf] %vm6007_vm4, %v5870_v39  ;;  %v3863_v61 = vsel %vm9473_vm14, %v3855_v30, %v3862_v63 }
 0x1ae   : > { %v5550_v55 = vshrl.u32 %v10892_v27, 16  ;;  %v3218_v4 = vshll.u32 %v2977_v10, 16  ;;  %v3222_v58 = vshrl.u32 %v2977_v10, 16  ;;  %v10913_v35 = vld [vmem:[#allocation2 + $0x50] sm:$0xf]  ;;  %v4839_v62 = vrot.slane %v4838_v0, 4 }
 0x1af   : > { %6300 = vst.msk [vmem:[#allocation3 + $0x18] sm:$0xf] %vm6296_vm7, %v10423_v15  ;;  %5883 = vrot.lane.b32.xlu0 %v5529_v36, %s9132_s11  ;;  %v10919_v6 = vrot.slane %v4858_v17, 4  ;;  %v2300_v54 = vsel %vm9473_vm14, %v2292_v47, %v2299_v13  ;;  %v3884_v46 = vshrl.u32 %v10900_v59, 16  ;;  %v4670_v16 = vld [vmem:[#allocation2 + $0x58] sm:$0xf]  ;;  %v3872_v53 = vsel %vm9473_vm14, %v3864_v22, %v3871_v24  ;;  %v2792_v18 = vpop.permute.xlu0 %2791 }
 0x1b0   : > { %4196 = vrot.lane.b32.xlu1 %v3863_v61, %s9131_s20  ;;  %v10926_v42 = vrot.slane %v4861_v31, 5  ;;  %v10928_v26 = vrot.slane %v3175_v9, 4  ;;  %v10930_v15 = vrot.slane %v3195_v5, 4  ;;  %2636 = vst.msk [vmem:[#allocation3 + $0x88] sm:$0xf] %vm1834_vm2, %v2300_v54  ;;  %v4181_v2 = vpop.permute.xlu1 %4180  ;;  %v10935_v41 = vrot.slane %v3198_v57, 5 }
 0x1b1   : > { %v10933_v1 = vld [vmem:[#allocation2 + $0x5c] sm:$0xf]  ;;  %v4380_v49 = vld [vmem:[#allocation2 + $0x54] sm:$0xf]  ;;  %v3202_v33 = vshrl.u32 %v10881_v51, 16  ;;  %v10938_v29 = vrot.slane %v3218_v4, 5  ;;  %v4844_v31 = vsel %vm9662_vm6, %v4839_v62, %v10574_v7 }
 0x1b2   : > { %v3224_v30 = vrot.slane %v3222_v58, 4  ;;  %2922 = vst.msk [vmem:[#allocation3 + $0x70] sm:$0xf] %vm2907_vm15, %v2792_v18  ;;  %v10942_v5 = vrot.slane %v5550_v55, 7  ;;  %v5553_v63 = vshll.u32 %v10892_v27, 16  ;;  %v4881_v9 = vshll.u32 %v4670_v16, 16 }
 0x1b3   : > { %4320 = vst.msk [vmem:[#allocation3 + $0x28] sm:$0xf] %vm14394_vm12, %v4181_v2  ;;  %v10945_v17 = vld [vmem:[#allocation2 + $0x5c] sm:$0xf]  ;;  %v4885_v0 = vshrl.u32 %v4670_v16, 16  ;;  %4198 = vrot.lane.b32.xlu0 %v3872_v53, %s9131_s20  ;;  %v4865_v51 = vshrl.u32 %v10874_v23, 16  ;;  %v3181_v23 = vsel %vm9662_vm6, %v10928_v26, %v10564_v14  ;;  %v5868_v39 = vpop.permute.xlu0 %5867 }
 0x1b4   : > { %4609 = vst.msk [vmem:[#allocation3 + $0x28] sm:$0xf] %vm4603_vm13, %v10622_v45  ;;  %4493 = vrot.lane.b32.xlu1 %v4380_v49, %s9127_s16  ;;  %v10952_v10 = vrot.slane %v3884_v46, 7  ;;  %v3887_v22 = vshll.u32 %v10900_v59, 16  ;;  %v3228_v24 = vshll.u32 %v10933_v1, 16  ;;  %v4864_v45 = vsel %vm9662_vm6, %v10919_v6, %v10926_v42  ;;  %v10970_v36 = vpop.permute.xlu1 %4477  ;;  %v14511_v27 = vld [vmem:[#allocation17_spill] sm:$0xff] }
 0x1b5   : > { %v10968_v47 = vld [vmem:[#allocation2 + $0x58] sm:$0xf]  ;;  %v2099_v59 = vld [vmem:[#allocation2 + $0x40] sm:$0xf]  ;;  %vm7317_vm8 = vcmask 130048   ;;  %v3225_v57 = vor.u32 %v3224_v30, %v10938_v29  ;;  %v4891_v13 = vshll.u32 %v10945_v17, 16  ;;  %v5555_v6 = vor.u32 %v5553_v63, %v10942_v5 }
 0x1b6   : > { %v10978_v61 = vld [vmem:[#allocation2 + $0x54] sm:$0xf]  ;;  %v10980_v55 = vrot.slane %v3202_v33, 4  ;;  %v10982_v4 = vld [vmem:[#allocation2 + $0x5c] sm:$0xf]  ;;  %v5548_v62 = vrot.slane %v10776_v52, 4  ;;  %v3889_v53 = vor.u32 %v3887_v22, %v10952_v10 }
 0x1b7   : > { %6010 = vst.msk [vmem:[#allocation3 + $0x10] sm:$0xf] %vm6007_vm4, %v5868_v39  ;;  %v6070_v58 = vld [vmem:[#allocation2 + $0x54] sm:$0xf]  ;;  %v10987_v54 = vrot.slane %v4881_v9, 5  ;;  %v4887_v46 = vrot.slane %v4885_v0, 4  ;;  %v4183_v63 = vpop.permute.xlu0 %4182 }
 0x1b8   : > { %6299 = vst.msk [vmem:[#allocation3 + $0x10] sm:$0xf] %vm6296_vm7, %v10620_v20  ;;  %6180 = vrot.lane.b32.xlu0 %v6070_v58, %s9129_s18  ;;  %5211 = vrot.lane.b32.xlu1 %v4844_v31, %s9130_s19  ;;  %v3882_v16 = vrot.slane %v10716_v3, 4  ;;  %v10995_v18 = vrot.slane %v3228_v24, 5  ;;  %v4867_v2 = vrot.slane %v4865_v51, 4  ;;  %v3208_v49 = vshll.u32 %v10978_v61, 16  ;;  %v11001_v20 = vpop.f32.mrf.mxu0  ;;  %v5196_v9 = vpop.permute.xlu1 %5195 }
 0x1b9   : > { %v3902_v33 = vshrl.u32 %v10968_v47, 16  ;;  %v3911_v30 = vshrl.u32 %v10982_v4, 16  ;;  %v11003_v0 = vrot.slane %v3225_v57, 4  ;;  %v11005_v3 = vrot.slane %v4891_v13, 5  ;;  %4321 = vst.msk [vmem:[#allocation3 + $0x30] sm:$0xf] %vm14394_vm12, %v4183_v63 }
 0x1ba   : > { %14510 = vst [vmem:[#allocation16_spill] sm:$0xff] %v10995_v18  ;;  %v3205_v22 = vor.u32 %v10980_v55, %v10935_v41  ;;  %v2276_v51 = vshrl.u32 %v2099_v59, 16  ;;  %5335 = vst.msk [vmem:[#allocation3 + $0x28] sm:$0xf] %vm5329_vm0, %v5196_v9  ;;  %v2687_v24 = vld [vmem:[#allocation2 + $0x54] sm:$0xf]  ;;  %v4888_v31 = vor.u32 %v4887_v46, %v10987_v54  ;;  %v6447_v57 = vsel %vm9662_vm6, %v14512_v40, %v14511_v27 }
 0x1bb   : > { %v11012_v39 = vld [vmem:[#allocation2 + $0x54] sm:$0xf]  ;;  %v2279_v58 = vshll.u32 %v2099_v59, 16  ;;  %v14513_v13 = vld [vmem:[#allocation19_spill] sm:$0xff]  ;;  %v14515_v52 = vld [vmem:[#allocation25_spill] sm:$0xff]  ;;  %v4868_v46 = vor.u32 %v4867_v2, %v10926_v42  ;;  %v2274_v59 = vrot.slane %v10768_v38, 4  ;;  %v1646_v42 = vpop.f32.mrf.mxu0  ;;  %v11041_v2 = vpop.permute.xlu0 %6164 }
 0x1bc   : > { %v6457_v55 = vsel %vm9662_vm6, %v14514_v50, %v14513_v13  ;;  %4610 = vst.msk [vmem:[#allocation3 + $0x30] sm:$0xf] %vm4603_vm13, %v14515_v52  ;;  %2803 = vrot.lane.b32.xlu0 %v2687_v24, %s9125_s13  ;;  %5215 = vrot.lane.b32.xlu1 %v4864_v45, %s9130_s19  ;;  %v11028_v63 = vrot.slane %v2276_v51, 7  ;;  %v14516_v40 = vld [vmem:[#allocation4_spill] sm:$0xff]  ;;  %v6075_v50 = vld [vmem:[#allocation2 + $0x68] sm:$0xf]  ;;  %v5200_v51 = vpop.permute.xlu1 %5199  ;;  %v3890_v52 = vsel %vm9473_vm14, %v3882_v16, %v3889_v53 }
 0x1bd   : > { %6930 = vst.msk [vmem:[#allocation3 + $0x24] sm:$0xf] %vm1834_vm2, %v6447_v57  ;;  %6931 = vst.msk [vmem:[#allocation3 + $0x2c] sm:$0xf] %vm1834_vm2, %v6457_v55  ;;  %v361_v27 = vadd.s32 216, %v14516_v40  ;;  %v11036_v9 = vrot.slane %v3902_v33, 7 }
 0x1be   : > { %5336 = vst.msk [vmem:[#allocation3 + $0x30] sm:$0xf] %vm5329_vm0, %v10780_v25  ;;  %v11038_v45 = vrot.slane %v3911_v30, 7  ;;  %v3914_v38 = vshll.u32 %v10982_v4, 16  ;;  %v4871_v24 = vshll.u32 %v11012_v39, 16  ;;  %v2281_v57 = vor.u32 %v2279_v58, %v11028_v63 }
 0x1bf   : > { %v11045_v13 = vmul.u32.u64.low 2863311531, %v361_v27  ;;  %v11046_v55 = vmul.u32.u64.high 2863311531, %v361_v27, %v11045_v13  ;;  %v11048_v25 = vld [vmem:[#allocation2 + $0x58] sm:$0xf]  ;;  %5337 = vst.msk [vmem:[#allocation3 + $0x38] sm:$0xf] %vm5329_vm0, %v5200_v51  ;;  %v5556_v4 = vsel %vm9473_vm14, %v5548_v62, %v5555_v6  ;;  %v3231_v58 = vsel %vm9662_vm6, %v11003_v0, %v10995_v18 }
 0x1c0   : > { %v9041_v33 = vld [vmem:[#allocation3 + $0x10] ss:$8 sps:$4 sm:$0xff]   ;;  %v9043_v30 = vld [vmem:[#allocation3 + $0x14] ss:$8 sps:$4 sm:$0xff]   ;;  %v11059_v7 = vrot.slane %v3208_v49, 5  ;;  %3524 = vrot.lane.b32.xlu0 %v3181_v23, %s9128_s17  ;;  %6190 = vrot.lane.b32.xlu1 %v6075_v50, %s9129_s18  ;;  %v11068_v62 = vrot.slane %v4888_v31, 4  ;;  %v2282_v53 = vsel %vm9473_vm14, %v2274_v59, %v2281_v57  ;;  %v3916_v14 = vor.u32 %v3914_v38, %v11038_v45  ;;  %v2788_v31 = vpop.permute.xlu0 %2787 }
 0x1c1   : > { %v11070_v6 = vrot.slane %v3205_v22, 4  ;;  %v11072_v16 = vrot.slane %v4868_v46, 4  ;;  %v11076_v49 = vld [vmem:[#allocation2 + $0x5c] sm:$0xf]  ;;  %8521 = vmatprep.mubr.msk.bf16.mxu1 %vm7317_vm8, %v9043_v30  ;;  %v3909_v0 = vrot.slane %v11036_v9, 4  ;;  %v359_v26 = vadd.s32 200, %v14516_v40  ;;  %v8806_v22 = vpop.f32.mrf.mxu0  ;;  %v11086_v46 = vpop.permute.xlu1 %6174 }
 0x1c2   : > { %2634 = vst.msk [vmem:[#allocation3 + $0x78] sm:$0xf] %vm1834_vm2, %v2282_v53  ;;  %v11084_v23 = vadd.s32 240, %v14516_v40  ;;  %14517 = vst [vmem:[#allocation10_spill] sm:$0xff] %v11086_v46  ;;  %7431 = vmatmul.mubr.bf16.vlgmr.msra.gmra.mxu1 %v9041_v33  ;;  %v11088_v59 = vrot.slane %v4871_v24, 5  ;;  %v685_v50 = vshrl.u32 %v11046_v55, 4  ;;  %v14518_v55 = vsel %vm9662_vm6, %v10930_v15, %v10935_v41 }
 0x1c3   : > { %v11094_v38 = vld [vmem:[%s14361_s2] ss:$0 sm:$0xff]  ;;  %v5568_v57 = vshrl.u32 %v11048_v25, 16  ;;  %2920 = vst.msk [vmem:[#allocation3 + $0x60] sm:$0xf] %vm2907_vm15, %v2788_v31  ;;  %v5577_v24 = vshrl.u32 %v11076_v49, 16  ;;  %v11130_v41 = vsel %vm9473_vm14, %v3909_v0, %v3916_v14  ;;  %v1659_v13 = vpop.f32.mrf.mxu0 }
 0x1c4   : > { %v11098_v51 = vadd.f32 %v11094_v38, %v11001_v20  ;;  %v11104_v33 = vmul.u32.u64.low 2863311531, %v359_v26  ;;  %v11105_v30 = vmul.u32.u64.high 2863311531, %v359_v26, %v11104_v33  ;;  %3528 = vrot.lane.b32.xlu0 %v14518_v55, %s9128_s17  ;;  %5889 = vrot.lane.b32.xlu1 %v5556_v4, %s9132_s11  ;;  %v4894_v20 = vsel %vm9662_vm6, %v11068_v62, %v11005_v3  ;;  %v11126_v15 = vld [vmem:[#allocation2 + $0x54] sm:$0xf]  ;;  %v3509_v53 = vpop.permute.xlu0 %3508 }
 0x1c5   : > { %v686_v33 = vmul.u32 24, %v685_v50  ;;  %v5580_v4 = vshll.u32 %v11076_v49, 16  ;;  %v11134_v62 = vmul.u32.u64.low 2863311531, %v11084_v23  ;;  %v11135_v55 = vmul.u32.u64.high 2863311531, %v11084_v23, %v11134_v62  ;;  %v2798_v11 = vpop.permute.xlu1 %2797  ;;  %3645 = vst.msk [vmem:[#allocation3 + $0x40] sm:$0xf] %vm3636_vm5, %v3509_v53 }
 0x1c6   : > { %v1765_v18 = vmax.f32 %v11098_v51, 0.0  ;;  %v11138_v31 = vrot.slane %v5568_v57, 7  ;;  %v11141_v50 = vadd.f32 %v11094_v38, %v1646_v42  ;;  %2925 = vst.msk [vmem:[#allocation3 + $0x88] sm:$0xf] %vm2907_vm15, %v2798_v11  ;;  %v11145_v49 = vrot.slane %v5577_v24, 7 }
 0x1c7   : > { %v687_v46 = vsub.s32 %v361_v27, %v686_v33  ;;  %v5559_v0 = vshrl.u32 %v11126_v15, 16  ;;  %v663_v14 = vshrl.u32 %v11105_v30, 4  ;;  %v11150_v62 = vadd.s32 224, %v14516_v40 }
 0x1c8   : > { %4202 = vrot.lane.b32.xlu0 %v3890_v52, %s9131_s20  ;;  %3534 = vrot.lane.b32.xlu1 %v3231_v58, %s9128_s17  ;;  %v5571_v42 = vshll.u32 %v11048_v25, 16  ;;  %v718_v51 = vshrl.u32 %v11135_v55, 4  ;;  %v11157_v57 = vadd.f32 %v11094_v38, %v8806_v22  ;;  %v11160_v24 = vadd.f32 %v11094_v38, %v1659_v13  ;;  %v3513_v30 = vpop.permute.xlu0 %3512  ;;  %v6073_v52 = vld [vmem:[#allocation2 + $0x60] sm:$0xf]  ;;  %v11169_v13 = vld [vmem:[#allocation2 + $0x54] sm:$0xf] }
 0x1c9   : > { %vm937_vm9 = vcmp.ne.s32.totalorder %v687_v46, 0  ;;  %vm985_vm10 = vcmp.lt.s32.totalorder %v687_v46, 0  ;;  %v1081_v27 = vadd.s32 24, %v687_v46  ;;  %v664_v11 = vmul.u32 24, %v663_v14  ;;  %v5874_v53 = vpop.permute.xlu1 %5873  ;;  %3647 = vst.msk [vmem:[#allocation3 + $0x50] sm:$0xf] %vm3636_vm5, %v3513_v30 }
 0x1ca   : > { %vm1033_vm11 = vmand %vm985_vm10, %vm937_vm9  ;;  %v1763_v58 = vmax.f32 %v11141_v50, 0.0  ;;  %v11164_v40 = vmul.u32.u64.low 2863311531, %v11150_v62  ;;  %v11165_v34 = vmul.u32.u64.high 2863311531, %v11150_v62, %v11164_v40  ;;  %6013 = vst.msk [vmem:[#allocation3 + $0x28] sm:$0xf] %vm6007_vm4, %v5874_v53  ;;  %v5561_v25 = vrot.slane %v5559_v0, 7 }
 0x1cb   : > { %v1129_v33 = vsel %vm1033_vm11, %v1081_v27, %v687_v46  ;;  %v665_v22 = vsub.s32 %v359_v26, %v664_v11  ;;  %v719_v55 = vmul.u32 24, %v718_v51  ;;  %6302 = vst.msk [vmem:[#allocation3 + $0x28] sm:$0xf] %vm6296_vm7, %v10742_v43  ;;  %v5575_v40 = vrot.slane %v11138_v31, 4 }
 0x1cc   : > { %vm1177_vm3 = vcmp.lt.s32.totalorder %v1129_v33, 16  ;;  %5221 = vrot.lane.b32.xlu0 %v4894_v20, %s9130_s19  ;;  %6186 = vrot.lane.b32.xlu1 %v6073_v52, %s9129_s18  ;;  %v5582_v50 = vor.u32 %v5580_v4, %v11145_v49  ;;  %v5573_v14 = vor.u32 %v5571_v42, %v11138_v31  ;;  %v11179_v27 = vpop.permute.xlu0 %4487  ;;  %v1768_v20 = vmax.f32 %v11157_v57, 0.0  ;;  %v4383_v4 = vld [vmem:[#allocation2 + $0x60] sm:$0xf] }
 0x1cd   : > { %v8338_v46 = vsel %vm1177_vm3, 1.0, %v14473_v8  ;;  %vm935_vm1 = vcmp.ne.s32.totalorder %v665_v22, 0  ;;  %vm983_vm9 = vcmp.lt.s32.totalorder %v665_v22, 0  ;;  %v1079_v26 = vadd.s32 24, %v665_v22  ;;  %v3519_v11 = vpop.permute.xlu1 %3518 }
 0x1ce   : > { %v1813_v0 = vmul.f32 %v8338_v46, %v1765_v18  ;;  %vm1031_vm10 = vmand %vm983_vm9, %vm935_vm1  ;;  %v720_v43 = vsub.s32 %v11084_v23, %v719_v55  ;;  %v3893_v51 = vshrl.u32 %v11169_v13, 16  ;;  %v696_v30 = vshrl.u32 %v11165_v34, 4  ;;  %3650 = vst.msk [vmem:[#allocation3 + $0x68] sm:$0xf] %vm3636_vm5, %v3519_v11  ;;  %v6978_v11 = vld [vmem:[#allocation3 + $0x20] sm:$0xff] }
 0x1cf   : > { %v5566_v18 = vrot.slane %v5561_v25, 4  ;;  %v1127_v42 = vsel %vm1031_vm10, %v1079_v26, %v665_v22  ;;  %v5562_v53 = vshll.u32 %v11126_v15, 16  ;;  %v14519_v23 = vsel %vm9662_vm6, %v11070_v6, %v11059_v7 }
 0x1d0   : > { %v8648_v31 = vpack.c.bf16 %v1813_v0, %v1813_v0  ;;  %4499 = vrot.lane.b32.xlu0 %v4383_v4, %s9127_s16  ;;  %3530 = vrot.lane.b32.xlu1 %v14519_v23, %s9128_s17  ;;  %vm1175_vm11 = vcmp.lt.s32.totalorder %v1127_v42, 16  ;;  %vm940_vm3 = vcmp.ne.s32.totalorder %v720_v43, 0  ;;  %vm988_vm1 = vcmp.lt.s32.totalorder %v720_v43, 0  ;;  %v4187_v22 = vpop.permute.xlu0 %4186 }
 0x1d1   : > { %v1084_v34 = vadd.s32 24, %v720_v43  ;;  %v5583_v57 = vsel %vm9473_vm14, %v5575_v40, %v5582_v50  ;;  %v8336_v15 = vsel %vm1175_vm11, 1.0, %v14473_v8  ;;  %vm1036_vm9 = vmand %vm988_vm1, %vm940_vm3  ;;  %v5557_v52 = vrot.slane %v10942_v5, 4  ;;  %v11199_v55 = vpop.permute.xlu1 %6170  ;;  %4323 = vst.msk [vmem:[#allocation3 + $0x40] sm:$0xf] %vm14394_vm12, %v4187_v22  ;;  %v14523_v22 = vld [vmem:[#allocation30_spill] sm:$0xff] }
 0x1d2   : > { %2062 = vst.msk [vmem:[#allocation2 + $0x7c] sm:$0xf] %vm1834_vm2, %v8648_v31  ;;  %v697_v33 = vmul.u32 24, %v696_v30  ;;  %v1811_v6 = vmul.f32 %v8336_v15, %v1763_v58  ;;  %v11201_v0 = vrot.slane %v3893_v51, 7  ;;  %v3896_v26 = vshll.u32 %v11169_v13, 16  ;;  %v6979_v4 = vld [vmem:[#allocation3 + $0x28] sm:$0xff] }
 0x1d3   : > { %v1132_v46 = vsel %vm1036_vm9, %v1084_v34, %v720_v43  ;;  %v9044_v40 = vld [vmem:[#allocation3 + $0x24] ss:$8 sps:$4 sm:$0xff]   ;;  %v5574_v50 = vsel %vm9473_vm14, %v5566_v18, %v5573_v14  ;;  %v3891_v5 = vrot.slane %v10952_v10, 4  ;;  %4612 = vst.msk [vmem:[#allocation3 + $0x40] sm:$0xf] %vm4603_vm13, %v10811_v60  ;;  %v14520_v58 = vsel %vm9662_vm6, %v11072_v16, %v11088_v59 }
 0x1d4   : > { %vm1180_vm10 = vcmp.lt.s32.totalorder %v1132_v46, 16  ;;  %v698_v30 = vsub.s32 %v11150_v62, %v697_v33  ;;  %5217 = vrot.lane.b32.xlu0 %v14520_v58, %s9130_s19  ;;  %4208 = vrot.lane.b32.xlu1 %v11130_v41, %s9131_s20  ;;  %v8467_v13 = vcombine.low %v6978_v11, %v6979_v4  ;;  %v8646_v14 = vpack.c.bf16 %v1811_v6, %v1811_v6  ;;  %v2102_v51 = vld [vmem:[#allocation2 + $0x4c] sm:$0xf]  ;;  %v11221_v31 = vpop.permute.xlu0 %5205  ;;  %v14522_v33 = vld [vmem:[#allocation31_spill] sm:$0xff] }
 0x1d5   : > { %v8341_v43 = vsel %vm1180_vm10, 1.0, %v14473_v8  ;;  %v5564_v10 = vor.u32 %v5562_v53, %v5561_v25  ;;  %8522 = vmatprep.mubr.msk.bf16.mxu1 %vm7317_vm8, %v9044_v40  ;;  %v2794_v18 = vpop.permute.xlu1 %2793  ;;  %v3898_v16 = vor.u32 %v3896_v26, %v11201_v0  ;;  %v1766_v41 = vmax.f32 %v11160_v24, 0.0  ;;  %v14525_v26 = vld [vmem:[#allocation33_spill] sm:$0xff] }
 0x1d6   : > { %v1816_v62 = vmul.f32 %v8341_v43, %v1768_v20  ;;  %vm938_vm11 = vcmp.ne.s32.totalorder %v698_v30, 0  ;;  %vm986_vm3 = vcmp.lt.s32.totalorder %v698_v30, 0  ;;  %v1082_v60 = vadd.s32 24, %v698_v30  ;;  %7439 = vmatmul.mubr.bf16.gmra.mxu1 %v8467_v13  ;;  %2060 = vst.msk [vmem:[#allocation2 + $0x74] sm:$0xf] %vm1834_vm2, %v8646_v14 }
 0x1d7   : > { %vm1034_vm1 = vmand %vm986_vm3, %vm938_vm11  ;;  %v3905_v25 = vshll.u32 %v10968_v47, 16  ;;  %v14521_v42 = vshrl.u32 %v11012_v39, 16  ;;  %2923 = vst.msk [vmem:[#allocation3 + $0x78] sm:$0xf] %vm2907_vm15, %v2794_v18  ;;  %v2303_v34 = vshrl.u32 %v2102_v51, 16  ;;  %v2306_v15 = vshll.u32 %v2102_v51, 16 }
 0x1d8   : > { %v8651_v20 = vpack.c.bf16 %v1816_v62, %v1816_v62  ;;  %v1130_v23 = vsel %vm1034_vm1, %v1082_v60, %v698_v30  ;;  %v14524_v6 = vor.u32 %v14522_v33, %v14523_v22  ;;  %v6501_v11 = vor.u32 %v10836_v21, %v14525_v26  ;;  %5895 = vrot.lane.b32.xlu0 %v5583_v57, %s9132_s11  ;;  %v11247_v30 = vld [vmem:[#allocation2 + $0x60] sm:$0xf]  ;;  %v11249_v21 = vpop.permute.xlu0 %4483 }
 0x1d9   : > { %v4877_v53 = vrot.slane %v14521_v42, 4  ;;  %v6528_v24 = vshrl.u32 %v10913_v35, 16  ;;  %5893 = vrot.lane.b32.xlu1 %v5574_v50, %s9132_s11  ;;  %vm1178_vm9 = vcmp.lt.s32.totalorder %v1130_v23, 16  ;;  %v5565_v47 = vsel %vm9473_vm14, %v5557_v52, %v5564_v10  ;;  %v3515_v58 = vpop.permute.xlu1 %3514  ;;  %v4672_v10 = vld [vmem:[#allocation2 + $0x60] sm:$0xf] }
 0x1da   : > { %v11233_v46 = vrot.slane %v14524_v6, 4  ;;  %2065 = vst.msk [vmem:[#allocation2 + $0x88] sm:$0xf] %vm1834_vm2, %v8651_v20  ;;  %v8339_v39 = vsel %vm1178_vm9, 1.0, %v14473_v8  ;;  %v2301_v4 = vrot.slane %v10894_v37, 4  ;;  %v11245_v40 = vrot.slane %v2303_v34, 7 }
 0x1db   : > { %v3899_v57 = vsel %vm9473_vm14, %v3891_v5, %v3898_v16  ;;  %v1814_v50 = vmul.f32 %v8339_v39, %v1766_v41  ;;  %v3900_v13 = vrot.slane %v11201_v0, 4  ;;  %v3907_v14 = vor.u32 %v3905_v25, %v11036_v9  ;;  %3648 = vst.msk [vmem:[#allocation3 + $0x58] sm:$0xf] %vm3636_vm5, %v3515_v58  ;;  %v11262_v18 = vld [vmem:[#allocation2 + $0x60] sm:$0xf] }
 0x1dc   : > { %v4878_v52 = vor.u32 %v4877_v53, %v11088_v59  ;;  %v14526_v37 = vshrl.u32 %v10978_v61, 16  ;;  %v14527_v51 = vshrl.u32 %v10945_v17, 16  ;;  %v2308_v60 = vor.u32 %v2306_v15, %v11245_v40  ;;  %5891 = vrot.lane.b32.xlu0 %v5565_v47, %s9132_s11  ;;  %v11279_v20 = vld [vmem:[#allocation2 + $0x5c] sm:$0xf]  ;;  %v6359_v23 = vld [vmem:[#allocation2 + $0x54] sm:$0xf]  ;;  %v5202_v34 = vpop.permute.xlu0 %5201 }
 0x1dd   : > { %v14528_v5 = vshll.u32 %v10809_v56, 16  ;;  %4204 = vrot.lane.b32.xlu1 %v3899_v57, %s9131_s20  ;;  %v8649_v9 = vpack.c.bf16 %v1814_v50, %v1814_v50  ;;  %v4905_v59 = vshrl.u32 %v4672_v10, 16  ;;  %v3920_v61 = vshrl.u32 %v11247_v30, 16  ;;  %v4193_v15 = vpop.permute.xlu1 %4192  ;;  %5338 = vst.msk [vmem:[#allocation3 + $0x40] sm:$0xf] %vm5329_vm0, %v5202_v34 }
 0x1de   : > { %v3214_v43 = vrot.slane %v14526_v37, 4  ;;  %v4897_v62 = vrot.slane %v14527_v51, 4  ;;  %v14529_v16 = vshrl.u32 %v10809_v56, 16  ;;  %v14530_v41 = vshll.u32 %v10913_v35, 16  ;;  %4326 = vst.msk [vmem:[#allocation3 + $0x58] sm:$0xf] %vm14394_vm12, %v4193_v15 }
 0x1df   : > { %v11266_v0 = vrot.slane %v14528_v5, 5  ;;  %v6530_v42 = vrot.slane %v6528_v24, 4  ;;  %v2309_v53 = vsel %vm9473_vm14, %v2301_v4, %v2308_v60  ;;  %2063 = vst.msk [vmem:[#allocation2 + $0x80] sm:$0xf] %vm1834_vm2, %v8649_v9  ;;  %v4901_v33 = vshll.u32 %v4672_v10, 16 }
 0x1e0   : > { %v6550_v17 = vrot.slane %v14529_v16, 4  ;;  %v11275_v25 = vrot.slane %v14530_v41, 5  ;;  %2637 = vst.msk [vmem:[#allocation3 + $0x90] sm:$0xf] %vm1834_vm2, %v2309_v53  ;;  %v5586_v56 = vshrl.u32 %v11262_v18, 16  ;;  %v3908_v35 = vsel %vm9473_vm14, %v3900_v13, %v3907_v14  ;;  %v5880_v37 = vpop.permute.xlu0 %5879 }
 0x1e1   : > { %v4384_v6 = vld [vmem:[#allocation2 + $0x64] sm:$0xf]  ;;  %v4879_v24 = vrot.slane %v4878_v52, 4  ;;  %v3215_v47 = vor.u32 %v3214_v43, %v11059_v7  ;;  %v4898_v39 = vor.u32 %v4897_v62, %v11005_v3  ;;  %v11290_v4 = vrot.slane %v6501_v11, 4  ;;  %4615 = vst.msk [vmem:[#allocation3 + $0x58] sm:$0xf] %vm4603_vm13, %v10871_v44  ;;  %4206 = vrot.lane.b32.xlu0 %v3908_v35, %s9131_s20  ;;  %v11306_v43 = vpop.permute.xlu1 %4489 }
 0x1e2   : > { %4501 = vrot.lane.b32.xlu1 %v4384_v6, %s9127_s16  ;;  %v11296_v58 = vrot.slane %v3920_v61, 7  ;;  %v3923_v57 = vshll.u32 %v11247_v30, 16  ;;  %v4907_v50 = vrot.slane %v4905_v59, 4  ;;  %v6551_v13 = vor.u32 %v6550_v17, %v11266_v0  ;;  %v11302_v14 = vld [vmem:[#allocation2 + $0x64] sm:$0xf] }
 0x1e3   : > { %v6531_v7 = vor.u32 %v6530_v42, %v11275_v25  ;;  %v6554_v3 = vshll.u32 %v11279_v20, 16  ;;  %v6534_v11 = vshll.u32 %v6359_v23, 16  ;;  %v11304_v52 = vld [vmem:[#allocation2 + $0x68] sm:$0xf]  ;;  %v6538_v44 = vshrl.u32 %v6359_v23, 16 }
 0x1e4   : > { %v4903_v10 = vrot.slane %v4901_v33, 5  ;;  %v11308_v51 = vrot.slane %v5586_v56, 7  ;;  %v5589_v30 = vshll.u32 %v11262_v18, 16  ;;  %v11311_v62 = vld [vmem:[#allocation2 + $0x6c] sm:$0xf]  ;;  %v4884_v5 = vsel %vm9662_vm6, %v4879_v24, %v10987_v54  ;;  %v11337_v15 = vpop.permute.xlu0 %6176 }
 0x1e5   : > { %6016 = vst.msk [vmem:[#allocation3 + $0x40] sm:$0xf] %vm6007_vm4, %v5880_v37  ;;  %v6074_v60 = vld [vmem:[#allocation2 + $0x64] sm:$0xf]  ;;  %v3216_v9 = vrot.slane %v3215_v47, 4  ;;  %v4899_v59 = vrot.slane %v4898_v39, 4  ;;  %v3925_v18 = vor.u32 %v3923_v57, %v11296_v58  ;;  %v5878_v33 = vpop.permute.xlu1 %5877 }
 0x1e6   : > { %v3918_v61 = vrot.slane %v11038_v45, 4  ;;  %6305 = vst.msk [vmem:[#allocation3 + $0x40] sm:$0xf] %vm6296_vm7, %v10903_v28  ;;  %6188 = vrot.lane.b32.xlu0 %v6074_v60, %s9129_s18  ;;  %5219 = vrot.lane.b32.xlu1 %v4884_v5, %s9130_s19  ;;  %v4908_v16 = vor.u32 %v4907_v50, %v4903_v10  ;;  %v4911_v17 = vshll.u32 %v11302_v14, 16  ;;  %v5604_v41 = vshrl.u32 %v11304_v52, 16 }
 0x1e7   : > { %v11325_v42 = vld [vmem:[#allocation2 + $0x64] sm:$0xf]  ;;  %v11327_v54 = vrot.slane %v6551_v13, 4  ;;  %v11329_v53 = vrot.slane %v6531_v7, 4  ;;  %v6558_v45 = vshrl.u32 %v11279_v20, 16  ;;  %v5613_v28 = vshrl.u32 %v11311_v62, 16 }
 0x1e8   : > { %v11333_v23 = vrot.slane %v6554_v3, 5  ;;  %v11335_v34 = vrot.slane %v6534_v11, 5  ;;  %v5584_v56 = vrot.slane %v11145_v49, 4  ;;  %v5591_v35 = vor.u32 %v5589_v30, %v11308_v51  ;;  %v11343_v24 = vld [vmem:[#allocation2 + $0x68] sm:$0xf]  ;;  %v14531_v49 = vld [vmem:[#allocation34_spill] sm:$0xff]  ;;  %v2800_v5 = vpop.permute.xlu0 %2799 }
 0x1e9   : > { %v11341_v6 = vrot.slane %v6538_v44, 4  ;;  %6015 = vst.msk [vmem:[#allocation3 + $0x38] sm:$0xf] %vm6007_vm4, %v5878_v33  ;;  %v3221_v47 = vsel %vm9662_vm6, %v3216_v9, %v10938_v29  ;;  %v4904_v39 = vsel %vm9662_vm6, %v4899_v59, %v4903_v10  ;;  %v5595_v57 = vshrl.u32 %v11325_v42, 16  ;;  %v11352_v50 = vld [vmem:[#allocation2 + $0x54] sm:$0xf]  ;;  %v4189_v9 = vpop.permute.xlu1 %4188 }
 0x1ea   : > { %6304 = vst.msk [vmem:[#allocation3 + $0x38] sm:$0xf] %vm6296_vm7, %v14531_v49  ;;  %3532 = vrot.lane.b32.xlu0 %v3221_v47, %s9128_s17  ;;  %5223 = vrot.lane.b32.xlu1 %v4904_v39, %s9130_s19  ;;  %v3926_v13 = vsel %vm9473_vm14, %v3918_v61, %v3925_v18  ;;  %v4909_v7 = vrot.slane %v4908_v16, 4  ;;  %v11360_v3 = vrot.slane %v4911_v17, 5  ;;  %v11362_v29 = vrot.slane %v5604_v41, 7  ;;  %v14532_v18 = vld [vmem:[#allocation15_spill] sm:$0xff] }
 0x1eb   : > { %v11364_v11 = vld [vmem:[#allocation2 + $0x64] sm:$0xf]  ;;  %v11366_v44 = vrot.slane %v5613_v28, 7  ;;  %v5616_v37 = vshll.u32 %v11311_v62, 16  ;;  %v2283_v10 = vrot.slane %v11028_v63, 4  ;;  %v2288_v30 = vshll.u32 %v10853_v48, 16 }
 0x1ec   : > { %v2105_v60 = vld [vmem:[#allocation2 + $0x58] sm:$0xf]  ;;  %v5592_v59 = vsel %vm9473_vm14, %v5584_v56, %v5591_v35  ;;  %v4915_v61 = vshrl.u32 %v11302_v14, 16  ;;  %v14533_v16 = vld [vmem:[#allocation28_spill] sm:$0xff]  ;;  %v14534_v41 = vld [vmem:[#allocation18_spill] sm:$0xff]  ;;  %v5597_v48 = vrot.slane %v5595_v57, 7 }
 0x1ed   : > { %v6467_v17 = vsel %vm9662_vm6, %v14533_v16, %v14532_v18  ;;  %v14535_v28 = vld [vmem:[#allocation23_spill] sm:$0xff]  ;;  %2926 = vst.msk [vmem:[#allocation3 + $0x90] sm:$0xf] %vm2907_vm15, %v2800_v5  ;;  %v5607_v62 = vshll.u32 %v11304_v52, 16  ;;  %v3929_v33 = vshrl.u32 %v11364_v11, 16  ;;  %v2290_v14 = vor.u32 %v2288_v30, %v10883_v12  ;;  %v11402_v30 = vpop.permute.xlu1 %4485 }
 0x1ee   : > { %v6477_v63 = vsel %vm9662_vm6, %v14535_v28, %v14534_v41  ;;  %4324 = vst.msk [vmem:[#allocation3 + $0x48] sm:$0xf] %vm14394_vm12, %v4189_v9  ;;  %v6584_v56 = vshll.u32 %v11343_v24, 16  ;;  %4210 = vrot.lane.b32.xlu0 %v3926_v13, %s9131_s20  ;;  %5897 = vrot.lane.b32.xlu1 %v5592_v59, %s9132_s11  ;;  %v4914_v52 = vsel %vm9662_vm6, %v4909_v7, %v11360_v3  ;;  %v2321_v35 = vshrl.u32 %v11352_v50, 16  ;;  %v6077_v59 = vld [vmem:[#allocation2 + $0x70] sm:$0xf] }
 0x1ef   : > { %6932 = vst.msk [vmem:[#allocation3 + $0x34] sm:$0xf] %vm1834_vm2, %v6467_v17  ;;  %6933 = vst.msk [vmem:[#allocation3 + $0x3c] sm:$0xf] %vm1834_vm2, %v6477_v63  ;;  %v2330_v12 = vshrl.u32 %v2105_v60, 16  ;;  %v5611_v47 = vrot.slane %v11362_v29, 4  ;;  %v5618_v39 = vor.u32 %v5616_v37, %v11366_v44  ;;  %v2291_v57 = vsel %vm9473_vm14, %v2283_v10, %v2290_v14 }
 0x1f0   : > { %4613 = vst.msk [vmem:[#allocation3 + $0x48] sm:$0xf] %vm4603_vm13, %v10970_v36  ;;  %v2333_v49 = vshll.u32 %v2105_v60, 16  ;;  %v5876_v36 = vpop.permute.xlu0 %5875  ;;  %v5598_v13 = vshll.u32 %v11325_v42, 16  ;;  %v4917_v5 = vrot.slane %v4915_v61, 4  ;;  %v11406_v7 = vrot.slane %v2321_v35, 7 }
 0x1f1   : > { %2635 = vst.msk [vmem:[#allocation3 + $0x80] sm:$0xf] %vm1834_vm2, %v2291_v57  ;;  %v11408_v9 = vrot.slane %v2330_v12, 7  ;;  %v5602_v37 = vrot.slane %v5597_v48, 4  ;;  %v5609_v18 = vor.u32 %v5607_v62, %v11362_v29  ;;  %v11412_v10 = vrot.slane %v3929_v33, 7  ;;  %v5204_v63 = vpop.permute.xlu1 %5203  ;;  %v14537_v12 = vld [vmem:[#allocation35_spill] sm:$0xff] }
 0x1f2   : > { %6014 = vst.msk [vmem:[#allocation3 + $0x30] sm:$0xf] %vm6007_vm4, %v5876_v36  ;;  %v3932_v60 = vshll.u32 %v11364_v11, 16  ;;  %v6541_v42 = vor.u32 %v11341_v6, %v11335_v34  ;;  %v6588_v16 = vshrl.u32 %v11343_v24, 16  ;;  %5225 = vrot.lane.b32.xlu0 %v4914_v52, %s9130_s19  ;;  %6194 = vrot.lane.b32.xlu1 %v6077_v59, %s9129_s18  ;;  %v2328_v61 = vrot.slane %v11406_v7, 4 }
 0x1f3   : > { %14536 = vst [vmem:[#allocation11_spill] sm:$0xff] %v11408_v9  ;;  %6303 = vst.msk [vmem:[#allocation3 + $0x30] sm:$0xf] %vm6296_vm7, %v11041_v2  ;;  %v2335_v29 = vor.u32 %v2333_v49, %v11408_v9  ;;  %v11424_v17 = vld [vmem:[#allocation2 + $0x70] sm:$0xf]  ;;  %v11428_v11 = vrot.slane %v6558_v45, 4  ;;  %v5600_v62 = vor.u32 %v5598_v13, %v5597_v48  ;;  %v4918_v52 = vor.u32 %v4917_v5, %v11360_v3 }
 0x1f4   : > { %v11430_v6 = vrot.slane %v6584_v56, 5  ;;  %v6362_v24 = vld [vmem:[#allocation2 + $0x60] sm:$0xf]  ;;  %v3232_v41 = vshrl.u32 %v10933_v1, 16  ;;  %v5593_v2 = vrot.slane %v11308_v51, 4  ;;  %v4191_v28 = vpop.permute.xlu0 %4190  ;;  %v3927_v33 = vrot.slane %v11296_v58, 4 }
 0x1f5   : > { %v11435_v14 = vld [vmem:[#allocation2 + $0x68] sm:$0xf]  ;;  %v2336_v20 = vsel %vm9473_vm14, %v2328_v61, %v2335_v29  ;;  %4325 = vst.msk [vmem:[#allocation3 + $0x50] sm:$0xf] %vm14394_vm12, %v4191_v28  ;;  %v5619_v1 = vsel %vm9473_vm14, %v5611_v47, %v5618_v39  ;;  %v5610_v51 = vsel %vm9473_vm14, %v5602_v37, %v5609_v18  ;;  %v3934_v45 = vor.u32 %v3932_v60, %v11412_v10  ;;  %v2979_v47 = vld [vmem:[#allocation2 + $0x60] sm:$0xf]  ;;  %v5208_v59 = vpop.permute.xlu1 %5207 }
 0x1f6   : > { %5339 = vst.msk [vmem:[#allocation3 + $0x48] sm:$0xf] %vm5329_vm0, %v5204_v63  ;;  %v5622_v58 = vshrl.u32 %v11424_v17, 16  ;;  %v11449_v3 = vrot.slane %v6541_v42, 4  ;;  %v11451_v48 = vrot.slane %v6588_v16, 4  ;;  %v6564_v56 = vshll.u32 %v6362_v24, 16  ;;  %5903 = vrot.lane.b32.xlu0 %v5619_v1, %s9132_s11  ;;  %5901 = vrot.lane.b32.xlu1 %v5610_v51, %s9132_s11 }
 0x1f7   : > { %2640 = vst.msk [vmem:[#allocation3 + $0xa8] sm:$0xf] %vm1834_vm2, %v2336_v20  ;;  %v6568_v35 = vshrl.u32 %v6362_v24, 16  ;;  %v4921_v39 = vshll.u32 %v11435_v14, 16  ;;  %v3234_v57 = vrot.slane %v3232_v41, 4  ;;  %v5601_v37 = vsel %vm9473_vm14, %v5593_v2, %v5600_v62  ;;  %v14538_v24 = vld [vmem:[#allocation24_spill] sm:$0xff] }
 0x1f8   : > { %4614 = vst.msk [vmem:[#allocation3 + $0x50] sm:$0xf] %vm4603_vm13, %v14537_v12  ;;  %v11460_v49 = vld [vmem:[#allocation2 + $0x68] sm:$0xf]  ;;  %v2103_v36 = vld [vmem:[#allocation2 + $0x50] sm:$0xf]  ;;  %v11464_v5 = vpop.permute.xlu0 %6172 }
 0x1f9   : > { %5340 = vst.msk [vmem:[#allocation3 + $0x50] sm:$0xf] %vm5329_vm0, %v11221_v31  ;;  %v11462_v13 = vld [vmem:[#allocation2 + $0x6c] sm:$0xf]  ;;  %v4919_v18 = vrot.slane %v4918_v52, 4  ;;  %v5625_v60 = vshll.u32 %v11424_v17, 16  ;;  %v3935_v31 = vsel %vm9473_vm14, %v3927_v33, %v3934_v45  ;;  %v11495_v12 = vpop.permute.xlu1 %6182 }
 0x1fa   : > { %v3242_v42 = vshrl.u32 %v2979_v47, 16  ;;  %5341 = vst.msk [vmem:[#allocation3 + $0x58] sm:$0xf] %vm5329_vm0, %v5208_v59  ;;  %v9048_v16 = vld [vmem:[#allocation3 + $0x34] ss:$8 sps:$4 sm:$0xff]   ;;  %v11472_v29 = vrot.slane %v5622_v58, 7  ;;  %5899 = vrot.lane.b32.xlu0 %v5601_v37, %s9132_s11  ;;  %4212 = vrot.lane.b32.xlu1 %v3935_v31, %s9131_s20 }
 0x1fb   : > { %v9050_v61 = vld [vmem:[#allocation3 + $0x30] ss:$8 sps:$4 sm:$0xff]   ;;  %v14540_v2 = vld [vmem:[#allocation32_spill] sm:$0xff]  ;;  %v11482_v63 = vrot.slane %v6564_v56, 5  ;;  %v3238_v62 = vshll.u32 %v2979_v47, 16  ;;  %v2312_v33 = vshrl.u32 %v2103_v36, 16  ;;  %8523 = vmatprep.mubr.msk.bf16.mxu1 %vm7317_vm8, %v9048_v16 }
 0x1fc   : > { %v14539_v41 = vld [vmem:[#allocation27_spill] sm:$0xff]  ;;  %v6497_v17 = vsel %vm9662_vm6, %v14540_v2, %v14525_v26  ;;  %v2315_v52 = vshll.u32 %v2103_v36, 16  ;;  %v11488_v20 = vrot.slane %v6568_v35, 4  ;;  %v11492_v26 = vrot.slane %v4921_v39, 5  ;;  %v14542_v51 = vld [vmem:[#allocation16_spill] sm:$0xff]  ;;  %v2796_v56 = vpop.permute.xlu0 %2795  ;;  %14543 = vst [vmem:[#allocation21_spill] sm:$0xff] %v11495_v12  ;;  %7447 = vmatmul.mubr.bf16.gmra.mxu1 %v9050_v61 }
 0x1fd   : > { %v6487_v28 = vsel %vm9662_vm6, %v14539_v41, %v14538_v24  ;;  %6935 = vst.msk [vmem:[#allocation3 + $0x4c] sm:$0xf] %vm1834_vm2, %v6497_v17  ;;  %v3235_v45 = vor.u32 %v3234_v57, %v14542_v51  ;;  %v4675_v58 = vld [vmem:[#allocation2 + $0x6c] sm:$0xf]  ;;  %v3938_v47 = vshrl.u32 %v11460_v49, 16  ;;  %v3244_v36 = vrot.slane %v3242_v42, 4  ;;  %v2806_v17 = vpop.permute.xlu1 %2805 }
 0x1fe   : > { %6934 = vst.msk [vmem:[#allocation3 + $0x44] sm:$0xf] %vm1834_vm2, %v6487_v28  ;;  %14541 = vst [vmem:[#allocation17_spill] sm:$0xff] %v11488_v20  ;;  %v11498_v59 = vld [vmem:[#allocation2 + $0x6c] sm:$0xf]  ;;  %v2310_v35 = vrot.slane %v11245_v40, 4  ;;  %v4924_v57 = vsel %vm9662_vm6, %v4919_v18, %v11492_v26  ;;  %v5627_v61 = vor.u32 %v5625_v60, %v11472_v29 }
 0x1ff   : > { %v11501_v37 = vrot.slane %v2312_v33, 7  ;;  %2924 = vst.msk [vmem:[#allocation3 + $0x80] sm:$0xf] %vm2907_vm15, %v2796_v56  ;;  %v6076_v39 = vld [vmem:[#allocation2 + $0x6c] sm:$0xf]  ;;  %v4925_v31 = vshrl.u32 %v11435_v14, 16  ;;  %5227 = vrot.lane.b32.xlu1 %v4924_v57, %s9130_s19 }
 0x200   : > { %v5620_v16 = vrot.slane %v11366_v44, 4  ;;  %6192 = vrot.lane.b32.xlu0 %v6076_v39, %s9129_s18  ;;  %v3240_v40 = vrot.slane %v3238_v62, 5  ;;  %v4931_v24 = vshll.u32 %v4675_v58, 16  ;;  %v4935_v41 = vshrl.u32 %v4675_v58, 16  ;;  %v11513_v28 = vld [vmem:[#allocation2 + $0x74] sm:$0xf]  ;;  %v3517_v60 = vpop.permute.xlu0 %3516 }
 0x201   : > { %v2317_v42 = vor.u32 %v2315_v52, %v11501_v37  ;;  %v11515_v2 = vld [vmem:[#allocation2 + $0x64] sm:$0xf]  ;;  %v3941_v18 = vshll.u32 %v11460_v49, 16  ;;  %v3947_v44 = vshrl.u32 %v11498_v59, 16  ;;  %v3236_v33 = vrot.slane %v3235_v45, 4 }
 0x202   : > { %v11518_v14 = vld [vmem:[#allocation2 + $0x64] sm:$0xf]  ;;  %v11521_v51 = vrot.slane %v3938_v47, 7  ;;  %v3245_v62 = vor.u32 %v3244_v36, %v3240_v40  ;;  %3649 = vst.msk [vmem:[#allocation3 + $0x60] sm:$0xf] %vm3636_vm5, %v3517_v60  ;;  %v5628_v56 = vsel %vm9473_vm14, %v5620_v16, %v5627_v61  ;;  %v4927_v39 = vrot.slane %v4925_v31, 4 }
 0x203   : > { %v2318_v52 = vsel %vm9473_vm14, %v2310_v35, %v2317_v42  ;;  %2929 = vst.msk [vmem:[#allocation3 + $0xa8] sm:$0xf] %vm2907_vm15, %v2806_v17  ;;  %v2689_v49 = vld [vmem:[#allocation2 + $0x5c] sm:$0xf]  ;;  %v5631_v45 = vshrl.u32 %v11513_v28, 16  ;;  %5905 = vrot.lane.b32.xlu1 %v5628_v56, %s9132_s11  ;;  %v3248_v36 = vshll.u32 %v11518_v14, 16 }
 0x204   : > { %2638 = vst.msk [vmem:[#allocation3 + $0x98] sm:$0xf] %vm1834_vm2, %v2318_v52  ;;  %2807 = vrot.lane.b32.xlu0 %v2689_v49, %s9125_s13  ;;  %v11536_v35 = vrot.slane %v4931_v24, 5  ;;  %v4937_v57 = vrot.slane %v4935_v41, 4  ;;  %v11540_v16 = vrot.slane %v3947_v44, 7  ;;  %v3950_v31 = vshll.u32 %v11498_v59, 16  ;;  %v3521_v17 = vpop.permute.xlu0 %3520  ;;  %v5882_v52 = vpop.permute.xlu1 %5881 }
 0x205   : > { %v11543_v61 = vld [vmem:[#allocation2 + $0x70] sm:$0xf]  ;;  %v11545_v60 = vld [vmem:[#allocation2 + $0x78] sm:$0xf]  ;;  %v3241_v49 = vsel %vm9662_vm6, %v3236_v33, %v3240_v40  ;;  %v3936_v24 = vrot.slane %v11412_v10, 4  ;;  %v3943_v41 = vor.u32 %v3941_v18, %v11521_v51  ;;  %v3246_v56 = vrot.slane %v3245_v62, 4 }
 0x206   : > { %3651 = vst.msk [vmem:[#allocation3 + $0x70] sm:$0xf] %vm3636_vm5, %v3521_v17  ;;  %v2690_v44 = vld [vmem:[#allocation2 + $0x60] sm:$0xf]  ;;  %v4928_v59 = vor.u32 %v4927_v39, %v11492_v26  ;;  %v11554_v42 = vrot.slane %v5631_v45, 7  ;;  %v5634_v47 = vshll.u32 %v11513_v28, 16  ;;  %v4938_v40 = vor.u32 %v4937_v57, %v11536_v35 }
 0x207   : > { %6017 = vst.msk [vmem:[#allocation3 + $0x48] sm:$0xf] %vm6007_vm4, %v5882_v52  ;;  %v14544_v58 = vld [vmem:[#allocation4_spill] sm:$0xff]  ;;  %2809 = vrot.lane.b32.xlu1 %v2690_v44, %s9125_s13  ;;  %v11564_v10 = vrot.slane %v3248_v36, 5  ;;  %v4941_v26 = vshll.u32 %v11543_v61, 16  ;;  %v5640_v18 = vshrl.u32 %v11545_v60, 16  ;;  %v3952_v33 = vor.u32 %v3950_v31, %v11540_v16 }
 0x208   : > { %v11558_v1 = vadd.s32 248, %v14544_v58  ;;  %6306 = vst.msk [vmem:[#allocation3 + $0x48] sm:$0xf] %vm6296_vm7, %v11199_v55  ;;  %3536 = vrot.lane.b32.xlu0 %v3241_v49, %s9128_s17  ;;  %v3945_v28 = vrot.slane %v11521_v51, 4  ;;  %v8807_v55 = vpop.f32.mrf.mxu0  ;;  %v11575_v45 = vpop.permute.xlu0 %4495  ;;  %v3944_v36 = vsel %vm9473_vm14, %v3936_v24, %v3943_v41  ;;  %v3252_v52 = vshrl.u32 %v11518_v14, 16 }
 0x209   : > { %14545 = vst [vmem:[#allocation19_spill] sm:$0xff] %v11575_v45  ;;  %v3527_v17 = vpop.permute.xlu1 %3526  ;;  %v3251_v57 = vsel %vm9662_vm6, %v3246_v56, %v11564_v10  ;;  %v2956_v51 = vld [vmem:[#allocation2 + $0x4] sm:$0xf]  ;;  %v11584_v31 = vadd.f32 %v11094_v38, %v8807_v55  ;;  %v4929_v49 = vrot.slane %v4928_v59, 4  ;;  %v5629_v44 = vrot.slane %v11472_v29, 4 }
 0x20a   : > { %v11572_v62 = vmul.u32.u64.low 2863311531, %v11558_v1  ;;  %v11573_v39 = vmul.u32.u64.high 2863311531, %v11558_v1, %v11572_v62  ;;  %3654 = vst.msk [vmem:[#allocation3 + $0x88] sm:$0xf] %vm3636_vm5, %v3527_v17  ;;  %v5643_v45 = vshll.u32 %v11545_v60, 16  ;;  %v11594_v14 = vrot.slane %v4938_v40, 4 }
 0x20b   : > { %v5636_v62 = vor.u32 %v5634_v47, %v11554_v42  ;;  %v11590_v24 = vld [vmem:[#allocation2 + $0x8] sm:$0xf]  ;;  %3538 = vrot.lane.b32.xlu1 %v3251_v57, %s9128_s17  ;;  %v11596_v41 = vrot.slane %v4941_v26, 5  ;;  %v11598_v56 = vrot.slane %v5640_v18, 7  ;;  %v363_v59 = vadd.s32 232, %v14544_v58 }
 0x20c   : > { %4214 = vrot.lane.b32.xlu0 %v3944_v36, %s9131_s20  ;;  %v3953_v29 = vsel %vm9473_vm14, %v3945_v28, %v3952_v33  ;;  %v3009_v47 = vshrl.u32 %v2956_v51, 16  ;;  %v3012_v55 = vshll.u32 %v2956_v51, 16  ;;  %v729_v60 = vshrl.u32 %v11573_v39, 4  ;;  %v4195_v17 = vpop.permute.xlu0 %4194  ;;  %v4385_v36 = vld [vmem:[#allocation2 + $0x68] sm:$0xf]  ;;  %v14547_v51 = vld [vmem:[#allocation22_spill] sm:$0xff] }
 0x20d   : > { %14546 = vst [vmem:[#allocation26_spill] sm:$0xff] %v11598_v56  ;;  %v11604_v9 = vpop.permute.xlu1 %6178  ;;  %v5638_v40 = vrot.slane %v11554_v42, 4  ;;  %v3018_v26 = vshll.u32 %v11590_v24, 16  ;;  %v11608_v57 = vmul.u32.u64.low 2863311531, %v363_v59  ;;  %v11609_v18 = vmul.u32.u64.high 2863311531, %v363_v59, %v11608_v57 }
 0x20e   : > { %4327 = vst.msk [vmem:[#allocation3 + $0x60] sm:$0xf] %vm14394_vm12, %v4195_v17  ;;  %v9051_v12 = vld [vmem:[#allocation3 + $0x44] ss:$8 sps:$4 sm:$0xff]   ;;  %v4934_v28 = vsel %vm9662_vm6, %v4929_v49, %v11536_v35  ;;  %v5637_v33 = vsel %vm9473_vm14, %v5629_v44, %v5636_v62  ;;  %v730_v39 = vmul.u32 24, %v729_v60  ;;  %v6507_v42 = vsel %vm9662_vm6, %v11290_v4, %v14547_v51 }
 0x20f   : > { %v9053_v20 = vld [vmem:[#allocation3 + $0x40] ss:$8 sps:$4 sm:$0xff]   ;;  %4616 = vst.msk [vmem:[#allocation3 + $0x60] sm:$0xf] %vm4603_vm13, %v11249_v21  ;;  %4216 = vrot.lane.b32.xlu1 %v3953_v29, %s9131_s20  ;;  %v4944_v35 = vsel %vm9662_vm6, %v11594_v14, %v11596_v41  ;;  %v5645_v49 = vor.u32 %v5643_v45, %v11598_v56  ;;  %v3022_v44 = vshrl.u32 %v11590_v24, 16  ;;  %v11634_v4 = vadd.s32 272, %v14544_v58  ;;  %8524 = vmatprep.mubr.msk.bf16.mxu1 %vm7317_vm8, %v9051_v12  ;;  %v1662_v45 = vpop.f32.mrf.mxu0 }
 0x210   : > { %4503 = vrot.lane.b32.xlu0 %v4385_v36, %s9127_s16  ;;  %v11631_v62 = vld [vmem:[#allocation2 + $0x68] sm:$0xf]  ;;  %6936 = vst.msk [vmem:[#allocation3 + $0x54] sm:$0xf] %vm1834_vm2, %v6507_v42  ;;  %v11638_v21 = vrot.slane %v3009_v47, 4  ;;  %v11640_v29 = vrot.slane %v3012_v55, 5  ;;  %v731_v14 = vsub.s32 %v11558_v1, %v730_v39  ;;  %v11645_v17 = vpop.permute.xlu0 %5213  ;;  %7455 = vmatmul.mubr.bf16.gmra.mxu1 %v9053_v20 }
 0x211   : > { %v11642_v60 = vrot.slane %v3252_v52, 4  ;;  %v2802_v24 = vpop.permute.xlu1 %2801  ;;  %v11647_v36 = vrot.slane %v3018_v26, 5  ;;  %v707_v57 = vshrl.u32 %v11609_v18, 4  ;;  %v4386_v47 = vld [vmem:[#allocation2 + $0x6c] sm:$0xf]  ;;  %v3258_v52 = vshll.u32 %v11631_v62, 16 }
 0x212   : > { %v11651_v51 = vmul.u32.u64.low 2863311531, %v11634_v4  ;;  %v11652_v12 = vmul.u32.u64.high 2863311531, %v11634_v4, %v11651_v51  ;;  %2927 = vst.msk [vmem:[#allocation3 + $0x98] sm:$0xf] %vm2907_vm15, %v2802_v24  ;;  %vm941_vm10 = vcmp.ne.s32.totalorder %v731_v14, 0  ;;  %vm989_vm11 = vcmp.lt.s32.totalorder %v731_v14, 0 }
 0x213   : > { %v1085_v1 = vadd.s32 24, %v731_v14  ;;  %4505 = vrot.lane.b32.xlu1 %v4386_v47, %s9127_s16  ;;  %v5646_v20 = vsel %vm9473_vm14, %v5638_v40, %v5645_v49  ;;  %v3262_v55 = vshrl.u32 %v11631_v62, 16  ;;  %vm1037_vm3 = vmand %vm989_vm11, %vm941_vm10  ;;  %v1769_v26 = vmax.f32 %v11584_v31, 0.0 }
 0x214   : > { %5229 = vrot.lane.b32.xlu0 %v4934_v28, %s9130_s19  ;;  %v708_v18 = vmul.u32 24, %v707_v57  ;;  %v3255_v39 = vor.u32 %v11642_v60, %v11564_v10  ;;  %v1663_v24 = vadd.f32 %v11094_v38, %v1662_v45  ;;  %v11666_v51 = vadd.s32 256, %v14544_v58  ;;  %v11668_v28 = vpop.permute.xlu0 %4491  ;;  %v8810_v57 = vpop.f32.mrf.mxu0 }
 0x215   : > { %v1133_v42 = vsel %vm1037_vm3, %v1085_v1, %v731_v14  ;;  %v3523_v47 = vpop.permute.xlu1 %3522  ;;  %v11670_v56 = vrot.slane %v3022_v44, 4  ;;  %v762_v49 = vshrl.u32 %v11652_v12, 4  ;;  %v3015_v31 = vor.u32 %v11640_v29, %v11638_v21  ;;  %v11690_v1 = vld [vmem:[%s14361_s2] ss:$0 sm:$0xff] }
 0x216   : > { %vm1181_vm1 = vcmp.lt.s32.totalorder %v1133_v42, 16  ;;  %v709_v40 = vsub.s32 %v363_v59, %v708_v18  ;;  %3652 = vst.msk [vmem:[#allocation3 + $0x78] sm:$0xf] %vm3636_vm5, %v3523_v47  ;;  %v11678_v38 = vmul.u32.u64.low 2863311531, %v11666_v51  ;;  %v11679_v45 = vmul.u32.u64.high 2863311531, %v11666_v51, %v11678_v38 }
 0x217   : > { %v8342_v14 = vsel %vm1181_vm1, 1.0, %v14473_v8  ;;  %5231 = vrot.lane.b32.xlu1 %v4944_v35, %s9130_s19  ;;  %v1767_v21 = vmax.f32 %v1663_v24, 0.0  ;;  %v763_v29 = vmul.u32 24, %v762_v49  ;;  %v2324_v35 = vshll.u32 %v11352_v50, 16  ;;  %v14550_v24 = vld [vmem:[#allocation29_spill] sm:$0xff] }
 0x218   : > { %5907 = vrot.lane.b32.xlu0 %v5637_v33, %s9132_s11  ;;  %v1817_v44 = vmul.f32 %v8342_v14, %v1769_v26  ;;  %vm939_vm9 = vcmp.ne.s32.totalorder %v709_v40, 0  ;;  %vm987_vm10 = vcmp.lt.s32.totalorder %v709_v40, 0  ;;  %v1083_v59 = vadd.s32 24, %v709_v40  ;;  %v5210_v26 = vpop.permute.xlu0 %5209  ;;  %v6078_v38 = vld [vmem:[#allocation2 + $0x74] sm:$0xf] }
 0x219   : > { %vm11683_vm11 = vmand %vm987_vm10, %vm939_vm9  ;;  %v11693_v33 = vadd.f32 %v11690_v1, %v8810_v57  ;;  %v4201_v18 = vpop.permute.xlu1 %4200  ;;  %v2319_v14 = vrot.slane %v11501_v37, 4  ;;  %v6517_v49 = vsel %vm9662_vm6, %v14550_v24, %v14523_v22  ;;  %5342 = vst.msk [vmem:[#allocation3 + $0x60] sm:$0xf] %vm5329_vm0, %v5210_v26  ;;  %v11705_v57 = vld [vmem:[#allocation2 + $0x10] sm:$0xf]  ;;  %v764_v50 = vsub.s32 %v11634_v4, %v763_v29 }
 0x21a   : > { %v8652_v42 = vpack.c.bf16 %v1817_v44, %v1817_v44  ;;  %v1131_v47 = vsel %vm11683_vm11, %v1083_v59, %v709_v40  ;;  %4330 = vst.msk [vmem:[#allocation3 + $0x78] sm:$0xf] %vm14394_vm12, %v4201_v18  ;;  %v740_v44 = vshrl.u32 %v11679_v45, 4  ;;  %v2326_v40 = vor.u32 %v2324_v35, %v11406_v7  ;;  %v1675_v7 = vpop.f32.mrf.mxu0  ;;  %v11721_v45 = vld [vmem:[#allocation2 + $0xc] sm:$0x8] }
 0x21b   : > { %vm1179_vm3 = vcmp.lt.s32.totalorder %v1131_v47, 16  ;;  %6937 = vst.msk [vmem:[#allocation3 + $0x5c] sm:$0xf] %vm1834_vm2, %v6517_v49  ;;  %5909 = vrot.lane.b32.xlu1 %v5646_v20, %s9132_s11  ;;  %v3016_v22 = vrot.slane %v3015_v31, 4  ;;  %v11715_v37 = vrot.slane %v3258_v52, 5  ;;  %v3025_v59 = vor.u32 %v11670_v56, %v11647_v36 }
 0x21c   : > { %4619 = vst.msk [vmem:[#allocation3 + $0x78] sm:$0xf] %vm4603_vm13, %v11306_v43  ;;  %6196 = vrot.lane.b32.xlu0 %v6078_v38, %s9129_s18  ;;  %v8340_v4 = vsel %vm1179_vm3, 1.0, %v14473_v8  ;;  %vm944_vm1 = vcmp.ne.s32.totalorder %v764_v50, 0  ;;  %vm992_vm9 = vcmp.lt.s32.totalorder %v764_v50, 0  ;;  %v1088_v43 = vadd.s32 24, %v764_v50  ;;  %v5888_v29 = vpop.permute.xlu0 %5887 }
 0x21d   : > { %2066 = vst.msk [vmem:[#allocation2 + $0x8c] sm:$0xf] %vm1834_vm2, %v8652_v42  ;;  %v1815_v12 = vmul.f32 %v8340_v4, %v1767_v21  ;;  %v11723_v35 = vpop.permute.xlu1 %4497  ;;  %v3740_v52 = vshrl.u32 %v11705_v57, 16  ;;  %vm11726_vm10 = vmand %vm992_vm9, %vm944_vm1  ;;  %v1772_v56 = vmax.f32 %v11693_v33, 0.0  ;;  %v11731_v31 = vld [vmem:[#allocation2 + $0x70] sm:$0xf]  ;;  %v2327_v21 = vsel %vm9473_vm14, %v2319_v14, %v2326_v40 }
 0x21e   : > { %v741_v26 = vmul.u32 24, %v740_v44  ;;  %6020 = vst.msk [vmem:[#allocation3 + $0x60] sm:$0xf] %vm6007_vm4, %v5888_v29  ;;  %v2691_v18 = vld [vmem:[#allocation2 + $0x64] sm:$0xf]  ;;  %v3264_v47 = vrot.slane %v3262_v55, 4  ;;  %v1136_v49 = vsel %vm11726_vm10, %v1088_v43, %v764_v50  ;;  %v1676_v38 = vadd.f32 %v11690_v1, %v1675_v7 }
 0x21f   : > { %v6079_v42 = vld [vmem:[#allocation2 + $0x78] sm:$0xf]  ;;  %v8650_v24 = vpack.c.bf16 %v1815_v12, %v1815_v12  ;;  %2639 = vst.msk [vmem:[#allocation3 + $0xa0] sm:$0xf] %vm1834_vm2, %v2327_v21  ;;  %v3256_v62 = vrot.slane %v3255_v39, 4  ;;  %v3735_v55 = vshrl.u32 %v11721_v45, 16  ;;  %v3021_v50 = vsel %vm9662_vm6, %v3016_v22, %v11647_v36 }
 0x220   : > { %6309 = vst.msk [vmem:[#allocation3 + $0x60] sm:$0xf] %vm6296_vm7, %v11337_v15  ;;  %2811 = vrot.lane.b32.xlu0 %v2691_v18, %s9125_s13  ;;  %6198 = vrot.lane.b32.xlu1 %v6079_v42, %s9129_s18  ;;  %v11750_v33 = vld [vmem:[#allocation2 + $0x6c] sm:$0xf]  ;;  %vm1184_vm11 = vcmp.lt.s32.totalorder %v1136_v49, 16  ;;  %v742_v14 = vsub.s32 %v11666_v51, %v741_v26  ;;  %v3026_v15 = vrot.slane %v3025_v59, 4  ;;  %v11759_v10 = vpop.permute.xlu0 %6184  ;;  %v3265_v36 = vor.u32 %v3264_v47, %v11715_v37 }
 0x221   : > { %2064 = vst.msk [vmem:[#allocation2 + $0x84] sm:$0xf] %vm1834_vm2, %v8650_v24  ;;  %v8345_v44 = vsel %vm1184_vm11, 1.0, %v14473_v8  ;;  %v3956_v40 = vshrl.u32 %v11731_v31, 16  ;;  %v5886_v60 = vpop.permute.xlu1 %5885  ;;  %v2692_v39 = vld [vmem:[#allocation2 + $0x68] sm:$0xf]  ;;  %v3261_v24 = vsel %vm9662_vm6, %v3256_v62, %v11715_v37 }
 0x222   : > { %v1820_v4 = vmul.f32 %v8345_v44, %v1772_v56  ;;  %vm942_vm3 = vcmp.ne.s32.totalorder %v742_v14, 0  ;;  %vm990_vm1 = vcmp.lt.s32.totalorder %v742_v14, 0  ;;  %v1086_v7 = vadd.s32 24, %v742_v14  ;;  %6019 = vst.msk [vmem:[#allocation3 + $0x58] sm:$0xf] %vm6007_vm4, %v5886_v60  ;;  %v14553_v43 = vld [vmem:[#allocation10_spill] sm:$0xff] }
 0x223   : > { %v11762_v51 = vrot.slane %v3740_v52, 7  ;;  %v3268_v22 = vshll.u32 %v11750_v33, 16  ;;  %vm1038_vm9 = vmand %vm990_vm1, %vm942_vm3  ;;  %v1770_v59 = vmax.f32 %v1676_v38, 0.0  ;;  %v11766_v45 = vld [vmem:[#allocation2 + $0x74] sm:$0xf]  ;;  %v6578_v12 = vshrl.u32 %v11515_v2, 16 }
 0x224   : > { %6308 = vst.msk [vmem:[#allocation3 + $0x58] sm:$0xf] %vm6296_vm7, %v14553_v43  ;;  %3492 = vrot.lane.b32.xlu0 %v3021_v50, %s9128_s17  ;;  %2813 = vrot.lane.b32.xlu1 %v2692_v39, %s9125_s13  ;;  %v3743_v29 = vshll.u32 %v11705_v57, 16  ;;  %v8655_v52 = vpack.c.bf16 %v1820_v4, %v1820_v4  ;;  %v1134_v20 = vsel %vm1038_vm9, %v1086_v7, %v742_v14  ;;  %v14554_v56 = vld [vmem:[#allocation5_spill] sm:$0xff]  ;;  %v11777_v21 = vrot.slane %v3956_v40, 7  ;;  %v5884_v42 = vpop.permute.xlu0 %5883 }
 0x225   : > { %v3031_v26 = vsel %vm9662_vm6, %v3026_v15, %v14554_v56  ;;  %v3959_v18 = vshll.u32 %v11731_v31, 16  ;;  %vm1182_vm10 = vcmp.lt.s32.totalorder %v1134_v20, 16  ;;  %v4197_v47 = vpop.permute.xlu1 %4196  ;;  %v8460_v49 = vrot.slane %v3735_v55, 11  ;;  %v4652_v14 = vld [vmem:[#allocation2 + $0x10] sm:$0xf] }
 0x226   : > { %2069 = vst.msk [vmem:[#allocation2 + $0x98] sm:$0xf] %vm1834_vm2, %v8655_v52  ;;  %v8343_v57 = vsel %vm1182_vm10, 1.0, %v14473_v8  ;;  %v3965_v38 = vshrl.u32 %v11766_v45, 16  ;;  %v3745_v31 = vor.u32 %v3743_v29, %v11762_v51  ;;  %v3266_v50 = vrot.slane %v3265_v36, 4 }
 0x227   : > { %6018 = vst.msk [vmem:[#allocation3 + $0x50] sm:$0xf] %vm6007_vm4, %v5884_v42  ;;  %v11789_v15 = vrot.slane %v3268_v22, 5  ;;  %v1818_v44 = vmul.f32 %v8343_v57, %v1770_v59  ;;  %v14555_v37 = vshll.u32 %v11462_v13, 16  ;;  %v14556_v55 = vshrl.u32 %v11462_v13, 16 }
 0x228   : > { %4328 = vst.msk [vmem:[#allocation3 + $0x68] sm:$0xf] %vm14394_vm12, %v4197_v47  ;;  %v14557_v60 = vshll.u32 %v11515_v2, 16  ;;  %3540 = vrot.lane.b32.xlu0 %v3261_v24, %s9128_s17  ;;  %3494 = vrot.lane.b32.xlu1 %v3031_v26, %s9128_s17  ;;  %v3954_v4 = vrot.slane %v11540_v16, 4  ;;  %v6366_v7 = vld [vmem:[#allocation2 + $0x70] sm:$0xf]  ;;  %v3961_v13 = vor.u32 %v3959_v18, %v11777_v21  ;;  %v4199_v29 = vpop.permute.xlu0 %4198  ;;  %v3746_v16 = vsel %vm9473_vm14, %v8460_v49, %v3745_v31 }
 0x229   : > { %v11793_v62 = vrot.slane %v14555_v37, 5  ;;  %v11797_v40 = vrot.slane %v14556_v55, 4  ;;  %6307 = vst.msk [vmem:[#allocation3 + $0x50] sm:$0xf] %vm6296_vm7, %v11464_v5  ;;  %v9109_v36 = vld [vmem:[#allocation2 + $0x14] sm:$0xf]  ;;  %v8653_v2 = vpack.c.bf16 %v1818_v44, %v1818_v44  ;;  %v11813_v5 = vpop.permute.xlu1 %4493  ;;  %v6547_v37 = vsel %vm9662_vm6, %v11449_v3, %v11266_v0 }
 0x22a   : > { %v11801_v39 = vrot.slane %v14557_v60, 5  ;;  %4617 = vst.msk [vmem:[#allocation3 + $0x68] sm:$0xf] %vm4603_vm13, %v11402_v30  ;;  %v3752_v22 = vshll.u32 %v9109_v36, 16  ;;  %v4702_v59 = vshrl.u32 %v4652_v14, 16  ;;  %v11811_v43 = vrot.slane %v6578_v12, 4 }
 0x22b   : > { %v11815_v52 = vrot.slane %v3965_v38, 7  ;;  %v3968_v30 = vshll.u32 %v11766_v45, 16  ;;  %v4705_v20 = vshll.u32 %v4652_v14, 16  ;;  %v4945_v56 = vshrl.u32 %v11543_v61, 16  ;;  %4329 = vst.msk [vmem:[#allocation3 + $0x70] sm:$0xf] %vm14394_vm12, %v4199_v29 }
 0x22c   : > { %v3271_v12 = vsel %vm9662_vm6, %v3266_v50, %v11789_v15  ;;  %v14558_v26 = vld [vmem:[#allocation7_spill] sm:$0xff]  ;;  %2067 = vst.msk [vmem:[#allocation2 + $0x90] sm:$0xf] %vm1834_vm2, %v8653_v2  ;;  %v4653_v42 = vld [vmem:[#allocation2 + $0x14] sm:$0xf]  ;;  %v6604_v47 = vshll.u32 %v6366_v7, 16  ;;  %4170 = vrot.lane.b32.xlu0 %v3746_v16, %s9131_s20  ;;  %v6527_v45 = vsel %vm9662_vm6, %v11233_v46, %v11275_v25  ;;  %v3962_v49 = vsel %vm9473_vm14, %v3954_v4, %v3961_v13  ;;  %v11848_v14 = vpop.permute.xlu0 %6180 }
 0x22d   : > { %v3754_v18 = vor.u32 %v3752_v22, %v14558_v26  ;;  %v6608_v24 = vshrl.u32 %v6366_v7, 16  ;;  %4618 = vst.msk [vmem:[#allocation3 + $0x70] sm:$0xf] %vm4603_vm13, %v11179_v27  ;;  %3542 = vrot.lane.b32.xlu1 %v3271_v12, %s9128_s17  ;;  %v3747_v61 = vrot.slane %v11762_v51, 4  ;;  %v3963_v57 = vrot.slane %v11777_v21, 4  ;;  %v5212_v46 = vpop.permute.xlu1 %5211  ;;  %v14560_v13 = vld [vmem:[#allocation17_spill] sm:$0xff] }
 0x22e   : > { %5344 = vst.msk [vmem:[#allocation3 + $0x70] sm:$0xf] %vm5329_vm0, %v11645_v17  ;;  %v11841_v27 = vrot.slane %v4702_v59, 4  ;;  %v6537_v51 = vsel %vm9662_vm6, %v11329_v53, %v11335_v34  ;;  %v6368_v38 = vld [vmem:[#allocation2 + $0x78] sm:$0xf]  ;;  %v3970_v25 = vor.u32 %v3968_v30, %v11815_v52  ;;  %v11851_v17 = vrot.slane %v4705_v20, 5 }
 0x22f   : > { %6938 = vst.msk [vmem:[#allocation3 + $0x64] sm:$0xf] %vm1834_vm2, %v6527_v45  ;;  %v4711_v31 = vshll.u32 %v4653_v42, 16  ;;  %v4715_v50 = vshrl.u32 %v4653_v42, 16  ;;  %6939 = vst.msk [vmem:[#allocation3 + $0x6c] sm:$0xf] %vm1834_vm2, %v6537_v51  ;;  %v3755_v21 = vsel %vm9473_vm14, %v3747_v61, %v3754_v18  ;;  %v6557_v55 = vsel %vm9662_vm6, %v11327_v54, %v11333_v23 }
 0x230   : > { %5343 = vst.msk [vmem:[#allocation3 + $0x68] sm:$0xf] %vm5329_vm0, %v5212_v46  ;;  %v9056_v53 = vld [vmem:[#allocation3 + $0x54] ss:$8 sps:$4 sm:$0xff]   ;;  %v9058_v34 = vld [vmem:[#allocation3 + $0x50] ss:$8 sps:$4 sm:$0xff]   ;;  %v14559_v60 = vor.u32 %v11428_v11, %v11333_v23  ;;  %v6591_v7 = vor.u32 %v11451_v48, %v11430_v6  ;;  %v6571_v36 = vor.u32 %v14560_v13, %v11482_v63  ;;  %4218 = vrot.lane.b32.xlu0 %v3962_v49, %s9131_s20  ;;  %v2804_v29 = vpop.permute.xlu0 %2803 }
 0x231   : > { %v4947_v44 = vrot.slane %v4945_v56, 4  ;;  %v6610_v22 = vrot.slane %v6608_v24, 4  ;;  %4172 = vrot.lane.b32.xlu1 %v3755_v21, %s9131_s20  ;;  %v4677_v0 = vld [vmem:[#allocation2 + $0x74] sm:$0xf]  ;;  %6940 = vst.msk [vmem:[#allocation3 + $0x74] sm:$0xf] %vm1834_vm2, %v6547_v37  ;;  %v6601_v54 = vor.u32 %v11797_v40, %v11793_v62  ;;  %v6581_v23 = vor.u32 %v11811_v43, %v11801_v39  ;;  %8525 = vmatprep.mubr.msk.bf16.mxu1 %vm7317_vm8, %v9056_v53  ;;  %v5216_v30 = vpop.permute.xlu1 %5215 }
 0x232   : > { %v11868_v4 = vrot.slane %v14559_v60, 4  ;;  %6941 = vst.msk [vmem:[#allocation3 + $0x7c] sm:$0xf] %vm1834_vm2, %v6557_v55  ;;  %v6624_v11 = vshll.u32 %v6368_v38, 16  ;;  %v6628_v3 = vshrl.u32 %v6368_v38, 16  ;;  %v11885_v2 = vrot.slane %v6604_v47, 5  ;;  %7463 = vmatmul.mubr.bf16.gmra.mxu1 %v9058_v34 }
 0x233   : > { %v11883_v48 = vld [vmem:[#allocation2 + $0x1c] sm:$0xf]  ;;  %v3971_v20 = vsel %vm9473_vm14, %v3963_v57, %v3970_v25  ;;  %v4713_v40 = vrot.slane %v4711_v31, 5  ;;  %v4717_v56 = vrot.slane %v4715_v50, 4  ;;  %2928 = vst.msk [vmem:[#allocation3 + $0xa0] sm:$0xf] %vm2907_vm15, %v2804_v29  ;;  %v4708_v16 = vor.u32 %v11851_v17, %v11841_v27 }
 0x234   : > { %v11887_v59 = vld [vmem:[#allocation2 + $0x7c] sm:$0xf]  ;;  %5345 = vst.msk [vmem:[#allocation3 + $0x78] sm:$0xf] %vm5329_vm0, %v5216_v30  ;;  %v4363_v43 = vld [vmem:[#allocation2 + $0x10] sm:$0xf]  ;;  %v4948_v12 = vor.u32 %v4947_v44, %v11596_v41  ;;  %v6611_v24 = vor.u32 %v6610_v22, %v11885_v2  ;;  %v3525_v31 = vpop.permute.xlu0 %3524 }
 0x235   : > { %v4951_v26 = vshll.u32 %v4677_v0, 16  ;;  %v4955_v18 = vshrl.u32 %v4677_v0, 16  ;;  %v11896_v42 = vrot.slane %v6591_v7, 4  ;;  %v11898_v47 = vrot.slane %v6571_v36, 4  ;;  %4459 = vrot.lane.b32.xlu0 %v4363_v43, %s9127_s16  ;;  %4220 = vrot.lane.b32.xlu1 %v3971_v20, %s9131_s20  ;;  %v5378_v61 = vld [vmem:[#allocation2 + $0x18] sm:$0x8]  ;;  %v11918_v50 = vpop.permute.xlu1 %6190 }
 0x236   : > { %v5433_v45 = vshrl.u32 %v11883_v48, 16  ;;  %v11904_v49 = vrot.slane %v6601_v54, 4  ;;  %v11906_v57 = vrot.slane %v6581_v23, 4  ;;  %v11908_v41 = vrot.slane %v6624_v11, 5  ;;  %v4364_v51 = vld [vmem:[#allocation2 + $0x14] sm:$0xf] }
 0x237   : > { %v6634_v27 = vshll.u32 %v11887_v59, 16  ;;  %v11911_v38 = vld [vmem:[#allocation2 + $0x7c] sm:$0xf]  ;;  %v11913_v46 = vrot.slane %v6628_v3, 4  ;;  %v11915_v25 = vld [vmem:[#allocation2 + $0x74] sm:$0xf]  ;;  %v4718_v21 = vor.u32 %v4717_v56, %v4713_v40 }
 0x238   : > { %v3272_v17 = vshrl.u32 %v11750_v33, 16  ;;  %v11920_v53 = vld [vmem:[#allocation2 + $0x80] sm:$0xf]  ;;  %3653 = vst.msk [vmem:[#allocation3 + $0x80] sm:$0xf] %vm3636_vm5, %v3525_v31  ;;  %v4709_v44 = vrot.slane %v4708_v16, 4  ;;  %v3529_v29 = vpop.permute.xlu0 %3528 }
 0x239   : > { %v4387_v34 = vld [vmem:[#allocation2 + $0x70] sm:$0xf]  ;;  %v4949_v37 = vrot.slane %v4948_v12, 4  ;;  %v4953_v55 = vrot.slane %v4951_v26, 5  ;;  %v4957_v60 = vrot.slane %v4955_v18, 4  ;;  %v11923_v7 = vrot.slane %v6611_v24, 4  ;;  %4461 = vrot.lane.b32.xlu1 %v4364_v51, %s9127_s16  ;;  %v5890_v30 = vpop.permute.xlu1 %5889 }
 0x23a   : > { %4507 = vrot.lane.b32.xlu0 %v4387_v34, %s9127_s16  ;;  %v5428_v33 = vshrl.u32 %v5378_v61, 16  ;;  %v11928_v36 = vrot.slane %v5433_v45, 7  ;;  %v11930_v22 = vld [vmem:[#allocation2 + $0x78] sm:$0xf]  ;;  %v11932_v0 = vrot.slane %v6634_v27, 5  ;;  %v5649_v23 = vshrl.u32 %v11911_v38, 16 }
 0x23b   : > { %v5658_v11 = vshrl.u32 %v11920_v53, 16  ;;  %v4719_v20 = vrot.slane %v4718_v21, 4  ;;  %v5436_v56 = vshll.u32 %v11883_v48, 16  ;;  %v3274_v43 = vrot.slane %v3272_v17, 4  ;;  %3655 = vst.msk [vmem:[#allocation3 + $0x90] sm:$0xf] %vm3636_vm5, %v3529_v29 }
 0x23c   : > { %6021 = vst.msk [vmem:[#allocation3 + $0x68] sm:$0xf] %vm6007_vm4, %v5890_v30  ;;  %v4714_v16 = vsel %vm9662_vm6, %v4709_v44, %v4713_v40  ;;  %v4388_v12 = vld [vmem:[#allocation2 + $0x74] sm:$0xf]  ;;  %v4954_v26 = vsel %vm9662_vm6, %v4949_v37, %v4953_v55  ;;  %v4958_v18 = vor.u32 %v4957_v60, %v4953_v55  ;;  %v4961_v24 = vshll.u32 %v11930_v22, 16  ;;  %v4203_v44 = vpop.permute.xlu0 %4202 }
 0x23d   : > { %v11946_v61 = vld [vmem:[#allocation2 + $0x70] sm:$0xf]  ;;  %6310 = vst.msk [vmem:[#allocation3 + $0x68] sm:$0xf] %vm6296_vm7, %v11604_v9  ;;  %4509 = vrot.lane.b32.xlu1 %v4388_v12, %s9127_s16  ;;  %v8461_v48 = vrot.slane %v5428_v33, 11  ;;  %v5438_v45 = vor.u32 %v5436_v56, %v11928_v36  ;;  %v5652_v40 = vshll.u32 %v11911_v38, 16  ;;  %v3535_v9 = vpop.permute.xlu1 %3534  ;;  %v3275_v33 = vor.u32 %v3274_v43, %v11789_v15 }
 0x23e   : > { %5185 = vrot.lane.b32.xlu0 %v4714_v16, %s9130_s19  ;;  %v9110_v27 = vld [vmem:[#allocation2 + $0x20] sm:$0xf]  ;;  %v5651_v17 = vrot.slane %v5649_v23, 7  ;;  %v11954_v31 = vrot.slane %v5658_v11, 7  ;;  %v5661_v21 = vshll.u32 %v11920_v53, 16  ;;  %v369_v34 = vadd.s32 280, %v14544_v58 }
 0x23f   : > { %v5445_v51 = vshll.u32 %v9110_v27, 16  ;;  %v14561_v37 = vld [vmem:[#allocation6_spill] sm:$0xff]  ;;  %v4965_v60 = vshrl.u32 %v11930_v22, 16  ;;  %v3278_v38 = vshll.u32 %v11946_v61, 16  ;;  %4331 = vst.msk [vmem:[#allocation3 + $0x80] sm:$0xf] %vm14394_vm12, %v4203_v44  ;;  %v5439_v15 = vsel %vm9473_vm14, %v8461_v48, %v5438_v45 }
 0x240   : > { %v4724_v55 = vsel %vm9662_vm6, %v4719_v20, %v14561_v37  ;;  %3658 = vst.msk [vmem:[#allocation3 + $0xa8] sm:$0xf] %vm3636_vm5, %v3535_v9  ;;  %v4959_v23 = vrot.slane %v4958_v18, 4  ;;  %v11966_v53 = vrot.slane %v4961_v24, 5  ;;  %v14562_v30 = vld [vmem:[#allocation26_spill] sm:$0xff]  ;;  %v5440_v56 = vrot.slane %v11928_v36, 4  ;;  %v11986_v44 = vpop.permute.xlu0 %5221 }
 0x241   : > { %v11968_v11 = vmul.u32.u64.low 2863311531, %v369_v34  ;;  %v11969_v29 = vmul.u32.u64.high 2863311531, %v369_v34, %v11968_v11  ;;  %4620 = vst.msk [vmem:[#allocation3 + $0x80] sm:$0xf] %vm4603_vm13, %v11668_v28  ;;  %5187 = vrot.lane.b32.xlu1 %v4724_v55, %s9130_s19  ;;  %v5647_v20 = vrot.slane %v14562_v30, 4  ;;  %v14563_v43 = vld [vmem:[#allocation20_spill] sm:$0xff]  ;;  %v5654_v12 = vor.u32 %v5652_v40, %v5651_v17  ;;  %v8811_v28 = vpop.f32.mrf.mxu0  ;;  %v11988_v9 = vpop.permute.xlu1 %6186 }
 0x242   : > { %5233 = vrot.lane.b32.xlu0 %v4954_v26, %s9130_s19  ;;  %v5447_v16 = vor.u32 %v5445_v51, %v14563_v43  ;;  %v5656_v18 = vrot.slane %v5651_v17, 4  ;;  %v5663_v24 = vor.u32 %v5661_v21, %v11954_v31  ;;  %v11981_v27 = vld [vmem:[#allocation2 + $0x78] sm:$0xf]  ;;  %v11984_v26 = vadd.s32 264, %v14544_v58  ;;  %v9059_v17 = vld [vmem:[#allocation3 + $0x64] ss:$8 sps:$4 sm:$0xff]  }
 0x243   : > { %v11990_v48 = vrot.slane %v3275_v33, 4  ;;  %v11992_v45 = vrot.slane %v3278_v38, 5  ;;  %v3282_v36 = vshrl.u32 %v11946_v61, 16  ;;  %v11996_v40 = vadd.s32 304, %v14544_v58  ;;  %8526 = vmatprep.mubr.msk.bf16.mxu1 %vm7317_vm8, %v9059_v17  ;;  %v12027_v30 = vld [vmem:[#allocation2 + $0x7c] sm:$0xf] }
 0x244   : > { %v4964_v51 = vsel %vm9662_vm6, %v4959_v23, %v11966_v53  ;;  %v9061_v21 = vld [vmem:[#allocation3 + $0x60] ss:$8 sps:$4 sm:$0xff]   ;;  %v773_v37 = vshrl.u32 %v11969_v29, 4  ;;  %v12003_v55 = vadd.f32 %v11690_v1, %v8811_v28  ;;  %v6567_v33 = vsel %vm9662_vm6, %v11868_v4, %v11482_v63  ;;  %v12014_v23 = vld [vmem:[#allocation2 + $0x74] sm:$0xf]  ;;  %v12029_v43 = vpop.permute.xlu0 %4499 }
 0x245   : > { %5235 = vrot.lane.b32.xlu1 %v4964_v51, %s9130_s19  ;;  %v5448_v61 = vsel %vm9473_vm14, %v5440_v56, %v5447_v16  ;;  %v3974_v38 = vshrl.u32 %v11981_v27, 16  ;;  %v12017_v11 = vmul.u32.u64.low 2863311531, %v11984_v26  ;;  %v12018_v29 = vmul.u32.u64.high 2863311531, %v11984_v26, %v12017_v11  ;;  %6942 = vst.msk [vmem:[#allocation3 + $0x84] sm:$0xf] %vm1834_vm2, %v6567_v33  ;;  %v3531_v16 = vpop.permute.xlu1 %3530  ;;  %7471 = vmatmul.mubr.bf16.gmra.mxu1 %v9061_v21 }
 0x246   : > { %5863 = vrot.lane.b32.xlu0 %v5439_v15, %s9132_s11  ;;  %v5655_v63 = vsel %vm9473_vm14, %v5647_v20, %v5654_v12  ;;  %v5664_v4 = vsel %vm9473_vm14, %v5656_v18, %v5663_v24  ;;  %v3972_v15 = vrot.slane %v11815_v52, 4  ;;  %v774_v56 = vmul.u32 24, %v773_v37  ;;  %3656 = vst.msk [vmem:[#allocation3 + $0x98] sm:$0xf] %vm3636_vm5, %v3531_v16 }
 0x247   : > { %v3281_v28 = vsel %vm9662_vm6, %v11990_v48, %v11992_v45  ;;  %v3977_v51 = vshll.u32 %v11981_v27, 16  ;;  %v12037_v20 = vmul.u32.u64.low 2863311531, %v11996_v40  ;;  %v12038_v12 = vmul.u32.u64.high 2863311531, %v11996_v40, %v12037_v20  ;;  %v12133_v27 = vld [vmem:[#allocation2 + $0x84] sm:$0xf] }
 0x248   : > { %v12041_v18 = vrot.slane %v3282_v36, 4  ;;  %v3288_v24 = vshll.u32 %v12014_v23, 16  ;;  %v775_v17 = vsub.s32 %v369_v34, %v774_v56  ;;  %v12045_v21 = vadd.s32 288, %v14544_v58  ;;  %v1678_v20 = vpop.f32.mrf.mxu0 }
 0x249   : > { %5865 = vrot.lane.b32.xlu1 %v5448_v61, %s9132_s11  ;;  %v12049_v37 = vrot.slane %v3974_v38, 7  ;;  %v3983_v33 = vshrl.u32 %v12027_v30, 16  ;;  %v751_v11 = vshrl.u32 %v12018_v29, 4  ;;  %v6577_v36 = vsel %vm9662_vm6, %v11898_v47, %v11801_v39  ;;  %v5218_v61 = vpop.permute.xlu0 %5217  ;;  %v4209_v38 = vpop.permute.xlu1 %4208  ;;  %v6056_v39 = vld [vmem:[#allocation2 + $0x1c] sm:$0xf] }
 0x24a   : > { %5911 = vrot.lane.b32.xlu0 %v5655_v63, %s9132_s11  ;;  %vm945_vm11 = vcmp.ne.s32.totalorder %v775_v17, 0  ;;  %vm993_vm3 = vcmp.lt.s32.totalorder %v775_v17, 0  ;;  %v1089_v34 = vadd.s32 24, %v775_v17  ;;  %v1773_v56 = vmax.f32 %v12003_v55, 0.0  ;;  %6943 = vst.msk [vmem:[#allocation3 + $0x8c] sm:$0xf] %vm1834_vm2, %v6577_v36  ;;  %v8814_v22 = vpop.f32.mrf.mxu0 }
 0x24b   : > { %v12059_v63 = vld [vmem:[#allocation2 + $0x7c] sm:$0xf]  ;;  %vm1041_vm1 = vmand %vm993_vm3, %vm945_vm11  ;;  %v752_v16 = vmul.u32 24, %v751_v11  ;;  %v806_v29 = vshrl.u32 %v12038_v12, 4  ;;  %v12063_v3 = vmul.u32.u64.low 2863311531, %v12045_v21  ;;  %v12064_v54 = vmul.u32.u64.high 2863311531, %v12045_v21, %v12063_v3 }
 0x24c   : > { %5346 = vst.msk [vmem:[#allocation3 + $0x80] sm:$0xf] %vm5329_vm0, %v5218_v61  ;;  %v12071_v55 = vrot.slane %v4965_v60, 4  ;;  %v1137_v36 = vsel %vm1041_vm1, %v1089_v34, %v775_v17  ;;  %v1679_v11 = vadd.f32 %v11690_v1, %v1678_v20  ;;  %v3285_v3 = vor.u32 %v12041_v18, %v11992_v45  ;;  %v2106_v34 = vld [vmem:[#allocation2 + $0x5c] sm:$0xf] }
 0x24d   : > { %4334 = vst.msk [vmem:[#allocation3 + $0x98] sm:$0xf] %vm14394_vm12, %v4209_v38  ;;  %5913 = vrot.lane.b32.xlu1 %v5664_v4, %s9132_s11  ;;  %vm1185_vm9 = vcmp.lt.s32.totalorder %v1137_v36, 16  ;;  %v753_v12 = vsub.s32 %v11984_v26, %v752_v16  ;;  %v807_v61 = vmul.u32 24, %v806_v29  ;;  %v12081_v60 = vrot.slane %v3288_v24, 5  ;;  %v5896_v38 = vpop.permute.xlu0 %5895  ;;  %v5894_v4 = vpop.permute.xlu1 %5893 }
 0x24e   : > { %4623 = vst.msk [vmem:[#allocation3 + $0x98] sm:$0xf] %vm4603_vm13, %v11723_v35  ;;  %6152 = vrot.lane.b32.xlu0 %v6056_v39, %s9129_s18  ;;  %v8346_v20 = vsel %vm1185_vm9, 1.0, %v14473_v8  ;;  %v12086_v35 = vadd.f32 %v11690_v1, %v8814_v22  ;;  %v6057_v39 = vld [vmem:[#allocation2 + $0x20] sm:$0xf]  ;;  %v1771_v16 = vmax.f32 %v1679_v11, 0.0 }
 0x24f   : > { %v1821_v13 = vmul.f32 %v8346_v20, %v1773_v56  ;;  %vm943_vm10 = vcmp.ne.s32.totalorder %v753_v12, 0  ;;  %vm991_vm11 = vcmp.lt.s32.totalorder %v753_v12, 0  ;;  %v1087_v36 = vadd.s32 24, %v753_v12  ;;  %6024 = vst.msk [vmem:[#allocation3 + $0x80] sm:$0xf] %vm6007_vm4, %v5896_v38  ;;  %v14564_v56 = vld [vmem:[#allocation21_spill] sm:$0xff] }
 0x250   : > { %6023 = vst.msk [vmem:[#allocation3 + $0x78] sm:$0xf] %vm6007_vm4, %v5894_v4  ;;  %v6080_v26 = vld [vmem:[#allocation2 + $0x7c] sm:$0xf]  ;;  %vm1039_vm3 = vmand %vm991_vm11, %vm943_vm10  ;;  %v808_v29 = vsub.s32 %v11996_v40, %v807_v61  ;;  %v784_v22 = vshrl.u32 %v12064_v54, 4  ;;  %v1691_v4 = vpop.f32.mrf.mxu0  ;;  %v2339_v24 = vshrl.u32 %v2106_v34, 16 }
 0x251   : > { %6313 = vst.msk [vmem:[#allocation3 + $0x80] sm:$0xf] %vm6296_vm7, %v11759_v10  ;;  %6312 = vst.msk [vmem:[#allocation3 + $0x78] sm:$0xf] %vm6296_vm7, %v14564_v56  ;;  %6154 = vrot.lane.b32.xlu1 %v6057_v39, %s9129_s18  ;;  %v8656_v20 = vpack.c.bf16 %v1821_v13, %v1821_v13  ;;  %v1135_v38 = vsel %vm1039_vm3, %v1087_v36, %v753_v12  ;;  %v2342_v47 = vshll.u32 %v2106_v34, 16  ;;  %v5892_v54 = vpop.permute.xlu0 %5891  ;;  %v4205_v11 = vpop.permute.xlu1 %4204  ;;  %v1776_v13 = vmax.f32 %v12086_v35, 0.0 }
 0x252   : > { %6200 = vrot.lane.b32.xlu0 %v6080_v26, %s9129_s18  ;;  %vm1183_vm1 = vcmp.lt.s32.totalorder %v1135_v38, 16  ;;  %vm948_vm9 = vcmp.ne.s32.totalorder %v808_v29, 0  ;;  %vm996_vm10 = vcmp.lt.s32.totalorder %v808_v29, 0  ;;  %v1092_v40 = vadd.s32 24, %v808_v29  ;;  %6022 = vst.msk [vmem:[#allocation3 + $0x70] sm:$0xf] %vm6007_vm4, %v5892_v54 }
 0x253   : > { %2070 = vst.msk [vmem:[#allocation2 + $0x9c] sm:$0xf] %vm1834_vm2, %v8656_v20  ;;  %v8344_v10 = vsel %vm1183_vm1, 1.0, %v14473_v8  ;;  %vm12101_vm11 = vmand %vm996_vm10, %vm948_vm9  ;;  %v785_v12 = vmul.u32 24, %v784_v22  ;;  %v12106_v39 = vrot.slane %v2339_v24, 7  ;;  %v1692_v20 = vadd.f32 %v11690_v1, %v1691_v4  ;;  %v14567_v38 = vld [vmem:[#allocation11_spill] sm:$0xff] }
 0x254   : > { %4332 = vst.msk [vmem:[#allocation3 + $0x88] sm:$0xf] %vm14394_vm12, %v4205_v11  ;;  %v2693_v34 = vld [vmem:[#allocation2 + $0x6c] sm:$0xf]  ;;  %v6081_v36 = vld [vmem:[#allocation2 + $0x80] sm:$0xf]  ;;  %v1819_v26 = vmul.f32 %v8344_v10, %v1771_v16  ;;  %v1140_v56 = vsel %vm12101_vm11, %v1092_v40, %v808_v29  ;;  %v3979_v35 = vor.u32 %v3977_v51, %v12049_v37 }
 0x255   : > { %v2337_v17 = vrot.slane %v14567_v38, 4  ;;  %6311 = vst.msk [vmem:[#allocation3 + $0x70] sm:$0xf] %vm6296_vm7, %v11848_v14  ;;  %6202 = vrot.lane.b32.xlu1 %v6081_v36, %s9129_s18  ;;  %vm1188_vm3 = vcmp.lt.s32.totalorder %v1140_v56, 16  ;;  %v786_v24 = vsub.s32 %v12045_v21, %v785_v12  ;;  %v2344_v1 = vor.u32 %v2342_v47, %v12106_v39  ;;  %v2694_v16 = vld [vmem:[#allocation2 + $0x70] sm:$0xf]  ;;  %v4207_v40 = vpop.permute.xlu0 %4206  ;;  %v12131_v54 = vpop.permute.xlu1 %4501 }
 0x256   : > { %4621 = vst.msk [vmem:[#allocation3 + $0x88] sm:$0xf] %vm4603_vm13, %v11813_v5  ;;  %2815 = vrot.lane.b32.xlu0 %v2693_v34, %s9125_s13  ;;  %v3981_v29 = vrot.slane %v12049_v37, 4  ;;  %v12128_v14 = vrot.slane %v3983_v33, 7  ;;  %v8654_v5 = vpack.c.bf16 %v1819_v26, %v1819_v26  ;;  %v8349_v22 = vsel %vm1188_vm3, 1.0, %v14473_v8  ;;  %v14568_v61 = vld [vmem:[#allocation19_spill] sm:$0xff] }
 0x257   : > { %v2107_v4 = vld [vmem:[#allocation2 + $0x60] sm:$0xf]  ;;  %v1824_v51 = vmul.f32 %v8349_v22, %v1776_v13  ;;  %vm946_vm1 = vcmp.ne.s32.totalorder %v786_v24, 0  ;;  %vm994_vm9 = vcmp.lt.s32.totalorder %v786_v24, 0  ;;  %v1090_v21 = vadd.s32 24, %v786_v24 }
 0x258   : > { %4333 = vst.msk [vmem:[#allocation3 + $0x90] sm:$0xf] %vm14394_vm12, %v4207_v40  ;;  %v3286_v33 = vrot.slane %v3285_v3, 4  ;;  %v4968_v47 = vor.u32 %v12071_v55, %v11966_v53  ;;  %vm1042_vm10 = vmand %vm994_vm9, %vm946_vm1  ;;  %v1774_v11 = vmax.f32 %v1692_v20, 0.0  ;;  %v2345_v10 = vsel %vm9473_vm14, %v2337_v17, %v2344_v1  ;;  %v9062_v56 = vld [vmem:[#allocation3 + $0x74] ss:$8 sps:$4 sm:$0xff]  }
 0x259   : > { %2068 = vst.msk [vmem:[#allocation2 + $0x94] sm:$0xf] %vm1834_vm2, %v8654_v5  ;;  %2817 = vrot.lane.b32.xlu1 %v2694_v16, %s9125_s13  ;;  %v3980_v53 = vsel %vm9473_vm14, %v3972_v15, %v3979_v35  ;;  %v14569_v18 = vshll.u32 %v12059_v63, 16  ;;  %v8659_v3 = vpack.c.bf16 %v1824_v51, %v1824_v51  ;;  %v1138_v17 = vsel %vm1042_vm10, %v1090_v21, %v786_v24  ;;  %v12168_v15 = vpop.permute.xlu0 %6188  ;;  %v5220_v13 = vpop.permute.xlu1 %5219  ;;  %v12194_v16 = vld [vmem:[#allocation2 + $0x80] sm:$0xf] }
 0x25a   : > { %4622 = vst.msk [vmem:[#allocation3 + $0x90] sm:$0xf] %vm4603_vm13, %v14568_v61  ;;  %3544 = vrot.lane.b32.xlu0 %v3281_v28, %s9128_s17  ;;  %v14570_v48 = vshll.u32 %v12027_v30, 16  ;;  %v5667_v52 = vshrl.u32 %v12133_v27, 16  ;;  %vm1186_vm11 = vcmp.lt.s32.totalorder %v1138_v17, 16  ;;  %v2348_v28 = vshrl.u32 %v2107_v4, 16  ;;  %8527 = vmatprep.mubr.msk.bf16.mxu1 %vm7317_vm8, %v9062_v56 }
 0x25b   : > { %v12159_v55 = vrot.slane %v14569_v18, 5  ;;  %2641 = vst.msk [vmem:[#allocation3 + $0xb0] sm:$0xf] %vm1834_vm2, %v2345_v10  ;;  %v14571_v12 = vshrl.u32 %v12059_v63, 16  ;;  %2073 = vst.msk [vmem:[#allocation2 + $0xa8] sm:$0xf] %vm1834_vm2, %v8659_v3  ;;  %v3291_v30 = vsel %vm9662_vm6, %v3286_v33, %v12081_v60  ;;  %v6587_v63 = vsel %vm9662_vm6, %v11906_v57, %v11430_v6 }
 0x25c   : > { %5348 = vst.msk [vmem:[#allocation3 + $0x90] sm:$0xf] %vm5329_vm0, %v11986_v44  ;;  %v3988_v45 = vor.u32 %v14570_v48, %v12128_v14  ;;  %v8347_v36 = vsel %vm1186_vm11, 1.0, %v14473_v8  ;;  %v2346_v44 = vrot.slane %v12106_v39, 4  ;;  %v2351_v26 = vshll.u32 %v2107_v4, 16  ;;  %v14577_v17 = vld [vmem:[#allocation12_spill] sm:$0xff] }
 0x25d   : > { %v12172_v34 = vrot.slane %v14571_v12, 4  ;;  %5347 = vst.msk [vmem:[#allocation3 + $0x88] sm:$0xf] %vm5329_vm0, %v5220_v13  ;;  %v9064_v20 = vld [vmem:[#allocation3 + $0x70] ss:$8 sps:$4 sm:$0xff]   ;;  %v1822_v38 = vmul.f32 %v8347_v36, %v1774_v11  ;;  %v12181_v35 = vrot.slane %v2348_v28, 7  ;;  %3546 = vrot.lane.b32.xlu1 %v3291_v30, %s9128_s17  ;;  %v6597_v22 = vsel %vm9662_vm6, %v11896_v42, %v11793_v62  ;;  %v3533_v51 = vpop.permute.xlu0 %3532  ;;  %v5224_v21 = vpop.permute.xlu1 %5223 }
 0x25e   : > { %v14572_v24 = vshrl.u32 %v11887_v59, 16  ;;  %4222 = vrot.lane.b32.xlu0 %v3980_v53, %s9131_s20  ;;  %v3292_v1 = vshrl.u32 %v12014_v23, 16  ;;  %v12196_v5 = vld [vmem:[#allocation2 + $0x88] sm:$0xf]  ;;  %6944 = vst.msk [vmem:[#allocation3 + $0x94] sm:$0xf] %vm1834_vm2, %v6587_v63  ;;  %7479 = vmatmul.mubr.bf16.gmra.mxu1 %v9064_v20  ;;  %v3989_v62 = vsel %vm9473_vm14, %v3981_v29, %v3988_v45  ;;  %v6607_v3 = vsel %vm9662_vm6, %v11904_v49, %v11885_v2 }
 0x25f   : > { %v14573_v6 = vshll.u32 %v11915_v25, 16  ;;  %v14574_v57 = vshrl.u32 %v11915_v25, 16  ;;  %v8657_v4 = vpack.c.bf16 %v1822_v38, %v1822_v38  ;;  %v2353_v40 = vor.u32 %v2351_v26, %v12181_v35  ;;  %6945 = vst.msk [vmem:[#allocation3 + $0x9c] sm:$0xf] %vm1834_vm2, %v6597_v22  ;;  %v4389_v11 = vld [vmem:[#allocation2 + $0x78] sm:$0xf] }
 0x260   : > { %v12189_v39 = vrot.slane %v14572_v24, 4  ;;  %v4969_v42 = vrot.slane %v4968_v47, 4  ;;  %v12218_v33 = vrot.slane %v5667_v52, 7  ;;  %v5670_v25 = vshll.u32 %v12133_v27, 16  ;;  %3657 = vst.msk [vmem:[#allocation3 + $0xa0] sm:$0xf] %vm3636_vm5, %v3533_v51 }
 0x261   : > { %v12205_v59 = vrot.slane %v14573_v6, 5  ;;  %v12209_v23 = vrot.slane %v14574_v57, 4  ;;  %5349 = vst.msk [vmem:[#allocation3 + $0x98] sm:$0xf] %vm5329_vm0, %v5224_v21  ;;  %v4978_v10 = vor.u32 %v12172_v34, %v12159_v55  ;;  %v4981_v61 = vshll.u32 %v12194_v16, 16  ;;  %v14575_v47 = vld [vmem:[#allocation8_spill] sm:$0xff]  ;;  %4224 = vrot.lane.b32.xlu1 %v3989_v62, %s9131_s20  ;;  %v4211_v49 = vpop.permute.xlu0 %4210  ;;  %v5898_v34 = vpop.permute.xlu1 %5897 }
 0x262   : > { %v5676_v37 = vshrl.u32 %v12196_v5, 16  ;;  %2071 = vst.msk [vmem:[#allocation2 + $0xa0] sm:$0xf] %vm1834_vm2, %v8657_v4  ;;  %v2354_v29 = vsel %vm9473_vm14, %v2346_v44, %v2353_v40  ;;  %v14576_v53 = vld [vmem:[#allocation9_spill] sm:$0xff]  ;;  %4511 = vrot.lane.b32.xlu0 %v4389_v11, %s9127_s16  ;;  %v3294_v18 = vrot.slane %v3292_v1, 4  ;;  %v6631_v52 = vor.u32 %v11913_v46, %v11908_v41 }
 0x263   : > { %v6401_v27 = vor.u32 %v14576_v53, %v14575_v47  ;;  %2642 = vst.msk [vmem:[#allocation3 + $0xb8] sm:$0xf] %vm1834_vm2, %v2354_v29  ;;  %v14578_v48 = vld [vmem:[#allocation13_spill] sm:$0xff]  ;;  %v6641_v28 = vor.u32 %v12189_v39, %v11932_v0  ;;  %v6617_v12 = vsel %vm9662_vm6, %v11923_v7, %v12205_v59  ;;  %6946 = vst.msk [vmem:[#allocation3 + $0xa4] sm:$0xf] %vm1834_vm2, %v6607_v3  ;;  %v5665_v36 = vrot.slane %v11954_v31, 4 }
 0x264   : > { %v6411_v45 = vor.u32 %v14578_v48, %v14577_v17  ;;  %v6372_v13 = vld [vmem:[#allocation2 + $0x88] sm:$0xf]  ;;  %v6621_v2 = vor.u32 %v12209_v23, %v12205_v59  ;;  %v4974_v46 = vsel %vm9662_vm6, %v4969_v42, %v12159_v55  ;;  %v5672_v44 = vor.u32 %v5670_v25, %v12218_v33  ;;  %v2985_v26 = vld [vmem:[#allocation2 + $0x78] sm:$0xf]  ;;  %v12257_v30 = vld [vmem:[#allocation2 + $0x80] sm:$0xf] }
 0x265   : > { %6947 = vst.msk [vmem:[#allocation3 + $0xac] sm:$0xf] %vm1834_vm2, %v6617_v12  ;;  %v4390_v7 = vld [vmem:[#allocation2 + $0x7c] sm:$0xf]  ;;  %v4979_v56 = vrot.slane %v4978_v10, 4  ;;  %v12262_v20 = vrot.slane %v4981_v61, 5  ;;  %v3295_v24 = vor.u32 %v3294_v18, %v12081_v60  ;;  %v5226_v23 = vpop.permute.xlu0 %5225  ;;  %v12285_v4 = vpop.permute.xlu1 %6194 }
 0x266   : > { %4335 = vst.msk [vmem:[#allocation3 + $0xa0] sm:$0xf] %vm14394_vm12, %v4211_v49  ;;  %v12264_v38 = vrot.slane %v5676_v37, 7  ;;  %v5679_v55 = vshll.u32 %v12196_v5, 16  ;;  %v6664_v31 = vshll.u32 %v6372_v13, 16  ;;  %v6668_v63 = vshrl.u32 %v6372_v13, 16  ;;  %5237 = vrot.lane.b32.xlu0 %v4974_v46, %s9130_s19  ;;  %4513 = vrot.lane.b32.xlu1 %v4390_v7, %s9127_s16 }
 0x267   : > { %6025 = vst.msk [vmem:[#allocation3 + $0x88] sm:$0xf] %vm6007_vm4, %v5898_v34  ;;  %v12274_v39 = vrot.slane %v6401_v27, 4  ;;  %v12276_v1 = vld [vmem:[#allocation2 + $0x80] sm:$0xf]  ;;  %v3298_v22 = vshll.u32 %v2985_v26, 16  ;;  %v5673_v60 = vsel %vm9473_vm14, %v5665_v36, %v5672_v44  ;;  %v4984_v40 = vsel %vm9662_vm6, %v4979_v56, %v12262_v20 }
 0x268   : > { %4624 = vst.msk [vmem:[#allocation3 + $0xa0] sm:$0xf] %vm4603_vm13, %v12029_v43  ;;  %v3302_v5 = vshrl.u32 %v2985_v26, 16  ;;  %v3992_v6 = vshrl.u32 %v12257_v30, 16  ;;  %v12279_v59 = vrot.slane %v6411_v45, 4  ;;  %v12281_v43 = vrot.slane %v6631_v52, 4 }
 0x269   : > { %6314 = vst.msk [vmem:[#allocation3 + $0x88] sm:$0xf] %vm6296_vm7, %v11988_v9  ;;  %v12283_v57 = vrot.slane %v6641_v28, 4  ;;  %v6622_v9 = vrot.slane %v6621_v2, 4  ;;  %v5674_v51 = vrot.slane %v12218_v33, 4  ;;  %v5681_v21 = vor.u32 %v5679_v55, %v12264_v38  ;;  %v5904_v18 = vpop.permute.xlu0 %5903  ;;  %v5902_v3 = vpop.permute.xlu1 %5901 }
 0x26a   : > { %5350 = vst.msk [vmem:[#allocation3 + $0xa0] sm:$0xf] %vm5329_vm0, %v5226_v23  ;;  %v4681_v62 = vld [vmem:[#allocation2 + $0x84] sm:$0xf]  ;;  %v12295_v42 = vrot.slane %v6664_v31, 5  ;;  %v12297_v25 = vrot.slane %v6668_v63, 4  ;;  %5915 = vrot.lane.b32.xlu0 %v5673_v60, %s9132_s11  ;;  %5239 = vrot.lane.b32.xlu1 %v4984_v40, %s9130_s19 }
 0x26b   : > { %v6644_v11 = vshll.u32 %v12276_v1, 16  ;;  %v12302_v10 = vrot.slane %v3295_v24, 4  ;;  %v12304_v61 = vld [vmem:[#allocation2 + $0x7c] sm:$0xf]  ;;  %v12306_v37 = vrot.slane %v3298_v22, 5  ;;  %v12308_v33 = vrot.slane %v3992_v6, 7 }
 0x26c   : > { %v3995_v29 = vshll.u32 %v12257_v30, 16  ;;  %v3304_v47 = vrot.slane %v3302_v5, 4  ;;  %v2108_v53 = vld [vmem:[#allocation2 + $0x64] sm:$0xf]  ;;  %v4985_v27 = vshrl.u32 %v12194_v16, 16  ;;  %v4991_v52 = vshll.u32 %v4681_v62, 16 }
 0x26d   : > { %v6082_v48 = vld [vmem:[#allocation2 + $0x84] sm:$0xf]  ;;  %v12314_v28 = vld [vmem:[#allocation2 + $0x68] sm:$0xf]  ;;  %6028 = vst.msk [vmem:[#allocation3 + $0xa0] sm:$0xf] %vm6007_vm4, %v5904_v18  ;;  %v5682_v13 = vsel %vm9473_vm14, %v5674_v51, %v5681_v21  ;;  %v6627_v16 = vsel %vm9662_vm6, %v6622_v9, %v11908_v41  ;;  %v3301_v41 = vsel %vm9662_vm6, %v12302_v10, %v12306_v37  ;;  %v5900_v55 = vpop.permute.xlu0 %5899  ;;  %v4213_v31 = vpop.permute.xlu1 %4212 }
 0x26e   : > { %v12312_v45 = vld [vmem:[#allocation2 + $0x84] sm:$0xf]  ;;  %6027 = vst.msk [vmem:[#allocation3 + $0x98] sm:$0xf] %vm6007_vm4, %v5902_v3  ;;  %v4995_v49 = vshrl.u32 %v4681_v62, 16  ;;  %v6648_v34 = vshrl.u32 %v12276_v1, 16  ;;  %6204 = vrot.lane.b32.xlu0 %v6082_v48, %s9129_s18  ;;  %5917 = vrot.lane.b32.xlu1 %v5682_v13, %s9132_s11  ;;  %v12339_v30 = vor.u32 %v3995_v29, %v12308_v33  ;;  %v3305_v7 = vor.u32 %v3304_v47, %v12306_v37 }
 0x26f   : > { %v9065_v12 = vld [vmem:[#allocation3 + $0x84] ss:$8 sps:$4 sm:$0xff]   ;;  %6316 = vst.msk [vmem:[#allocation3 + $0x98] sm:$0xf] %vm6296_vm7, %v11918_v50  ;;  %v3308_v46 = vshll.u32 %v12304_v61, 16  ;;  %v2357_v44 = vshrl.u32 %v2108_v53, 16 }
 0x270   : > { %v9067_v2 = vld [vmem:[#allocation3 + $0x80] ss:$8 sps:$4 sm:$0xff]   ;;  %v12329_v36 = vld [vmem:[#allocation2 + $0x8c] sm:$0xf]  ;;  %v2360_v26 = vshll.u32 %v2108_v53, 16  ;;  %8528 = vmatprep.mubr.msk.bf16.mxu1 %vm7317_vm8, %v9065_v12  ;;  %v3990_v50 = vrot.slane %v12128_v14, 4 }
 0x271   : > { %6948 = vst.msk [vmem:[#allocation3 + $0xb4] sm:$0xf] %vm1834_vm2, %v6627_v16  ;;  %v12342_v56 = vld [vmem:[#allocation2 + $0x90] sm:$0xf]  ;;  %7487 = vmatmul.mubr.bf16.gmra.mxu1 %v9067_v2  ;;  %v2695_v63 = vld [vmem:[#allocation2 + $0x74] sm:$0xf]  ;;  %v6637_v16 = vsel %vm9662_vm6, %v12281_v43, %v11932_v0 }
 0x272   : > { %v4001_v24 = vshrl.u32 %v12312_v45, 16  ;;  %v4987_v22 = vrot.slane %v4985_v27, 4  ;;  %v2355_v5 = vrot.slane %v12181_v35, 4  ;;  %v2359_v6 = vrot.slane %v2357_v44, 7  ;;  %6026 = vst.msk [vmem:[#allocation3 + $0x90] sm:$0xf] %vm6007_vm4, %v5900_v55  ;;  %2819 = vrot.lane.b32.xlu0 %v2695_v63, %s9125_s13  ;;  %v6193_v53 = vpop.permute.xlu0 %6192  ;;  %v5228_v27 = vpop.permute.xlu1 %5227 }
 0x273   : > { %4336 = vst.msk [vmem:[#allocation3 + $0xa8] sm:$0xf] %vm14394_vm12, %v4213_v31  ;;  %v6083_v9 = vld [vmem:[#allocation2 + $0x88] sm:$0xf]  ;;  %v12348_v23 = vrot.slane %v4991_v52, 5  ;;  %v5685_v60 = vshrl.u32 %v12329_v36, 16  ;;  %v3998_v63 = vsel %vm9473_vm14, %v3990_v50, %v12339_v30 }
 0x274   : > { %v4997_v40 = vrot.slane %v4995_v49, 4  ;;  %v2366_v51 = vshrl.u32 %v12314_v28, 16  ;;  %6315 = vst.msk [vmem:[#allocation3 + $0x90] sm:$0xf] %vm6296_vm7, %v12168_v15  ;;  %6206 = vrot.lane.b32.xlu1 %v6083_v9, %s9129_s18  ;;  %v12358_v35 = vrot.slane %v3308_v46, 5  ;;  %v3312_v21 = vshrl.u32 %v12304_v61, 16 }
 0x275   : > { %4625 = vst.msk [vmem:[#allocation3 + $0xa8] sm:$0xf] %vm4603_vm13, %v12131_v54  ;;  %v5694_v62 = vshrl.u32 %v12342_v56, 16  ;;  %v2362_v10 = vor.u32 %v2360_v26, %v2359_v6  ;;  %v3306_v37 = vrot.slane %v3305_v7, 4  ;;  %v2364_v29 = vrot.slane %v2359_v6, 4 }
 0x276   : > { %v12362_v47 = vrot.slane %v2366_v51, 7  ;;  %v2369_v15 = vshll.u32 %v12314_v28, 16  ;;  %v12365_v54 = vrot.slane %v4001_v24, 7  ;;  %v4004_v18 = vshll.u32 %v12312_v45, 16  ;;  %v12369_v48 = vld [vmem:[#allocation2 + $0x88] sm:$0xf]  ;;  %3548 = vrot.lane.b32.xlu0 %v3301_v41, %s9128_s17  ;;  %v2808_v7 = vpop.permute.xlu0 %2807  ;;  %v8815_v51 = vpop.f32.mrf.mxu0 }
 0x277   : > { %v4988_v3 = vor.u32 %v4987_v22, %v12262_v20  ;;  %v2363_v61 = vsel %vm9473_vm14, %v2355_v5, %v2362_v10  ;;  %6317 = vst.msk [vmem:[#allocation3 + $0xa0] sm:$0xf] %vm6296_vm7, %v6193_v53  ;;  %v2696_v52 = vld [vmem:[#allocation2 + $0x78] sm:$0xf]  ;;  %v12375_v13 = vrot.slane %v5685_v60, 7  ;;  %v5688_v28 = vshll.u32 %v12329_v36, 16 }
 0x278   : > { %5351 = vst.msk [vmem:[#allocation3 + $0xa8] sm:$0xf] %vm5329_vm0, %v5228_v27  ;;  %v4998_v12 = vor.u32 %v4997_v40, %v12348_v23  ;;  %v2371_v20 = vor.u32 %v2369_v15, %v12362_v47  ;;  %v12383_v45 = vrot.slane %v6644_v11, 5  ;;  %2821 = vrot.lane.b32.xlu1 %v2696_v52, %s9125_s13  ;;  %v12387_v2 = vrot.slane %v5694_v62, 7  ;;  %v12395_v36 = vld [vmem:[#allocation2 + $0x80] sm:$0xf] }
 0x279   : > { %2643 = vst.msk [vmem:[#allocation3 + $0xc0] sm:$0xf] %vm1834_vm2, %v2363_v61  ;;  %v5697_v49 = vshll.u32 %v12342_v56, 16  ;;  %v5001_v46 = vshll.u32 %v12369_v48, 16  ;;  %v3314_v44 = vrot.slane %v3312_v21, 4  ;;  %v12401_v26 = vadd.s32 312, %v14544_v58  ;;  %v5906_v56 = vpop.permute.xlu1 %5905 }
 0x27a   : > { %v2372_v11 = vsel %vm9473_vm14, %v2364_v29, %v2371_v20  ;;  %6949 = vst.msk [vmem:[#allocation3 + $0xbc] sm:$0xf] %vm1834_vm2, %v6637_v16  ;;  %v12403_v41 = vld [vmem:[#allocation2 + $0x84] sm:$0xf]  ;;  %v3999_v55 = vrot.slane %v12308_v33, 4  ;;  %v4006_v0 = vor.u32 %v4004_v18, %v12365_v54  ;;  %v12407_v43 = vrot.slane %v4988_v3, 4  ;;  %4226 = vrot.lane.b32.xlu0 %v3998_v63, %s9131_s20  ;;  %v3537_v21 = vpop.permute.xlu0 %3536  ;;  %v1694_v16 = vpop.f32.mrf.mxu0 }
 0x27b   : > { %v5683_v31 = vrot.slane %v12264_v38, 4  ;;  %2644 = vst.msk [vmem:[#allocation3 + $0xc8] sm:$0xf] %vm1834_vm2, %v2372_v11  ;;  %v3311_v33 = vsel %vm9662_vm6, %v3306_v37, %v12358_v35  ;;  %v9068_v24 = vld [vmem:[#allocation3 + $0x94] ss:$8 sps:$4 sm:$0xff]   ;;  %v5690_v38 = vor.u32 %v5688_v28, %v12375_v13  ;;  %v12422_v5 = vrot.slane %v4998_v12, 4 }
 0x27c   : > { %2930 = vst.msk [vmem:[#allocation3 + $0xb0] sm:$0xf] %vm2907_vm15, %v2808_v7  ;;  %v9070_v22 = vld [vmem:[#allocation3 + $0x90] ss:$8 sps:$4 sm:$0xff]   ;;  %3550 = vrot.lane.b32.xlu1 %v3311_v33, %s9128_s17  ;;  %v5692_v14 = vrot.slane %v12375_v13, 4  ;;  %v5699_v50 = vor.u32 %v5697_v49, %v12387_v2  ;;  %v6654_v9 = vshll.u32 %v12403_v41, 16  ;;  %8529 = vmatprep.mubr.msk.bf16.mxu1 %vm7317_vm8, %v9068_v24  ;;  %v4007_v10 = vsel %vm9473_vm14, %v3999_v55, %v4006_v0 }
 0x27d   : > { %6029 = vst.msk [vmem:[#allocation3 + $0xa8] sm:$0xf] %vm6007_vm4, %v5906_v56  ;;  %v12431_v30 = vmul.u32.u64.low 2863311531, %v12401_v26  ;;  %v12432_v6 = vmul.u32.u64.high 2863311531, %v12401_v26, %v12431_v30  ;;  %v12436_v60 = vrot.slane %v5001_v46, 5  ;;  %v3318_v40 = vshll.u32 %v12395_v36, 16  ;;  %v2810_v62 = vpop.permute.xlu1 %2809  ;;  %7495 = vmatmul.mubr.bf16.gmra.mxu1 %v9070_v22 }
 0x27e   : > { %6318 = vst.msk [vmem:[#allocation3 + $0xa8] sm:$0xf] %vm6296_vm7, %v12285_v4  ;;  %v3315_v4 = vor.u32 %v3314_v44, %v12358_v35  ;;  %v4994_v37 = vsel %vm9662_vm6, %v12407_v43, %v12348_v23  ;;  %v3322_v29 = vshrl.u32 %v12395_v36, 16  ;;  %v12448_v15 = vadd.s32 296, %v14544_v58  ;;  %v4391_v35 = vld [vmem:[#allocation2 + $0x80] sm:$0xf]  ;;  %v4215_v44 = vpop.permute.xlu0 %4214 }
 0x27f   : > { %3659 = vst.msk [vmem:[#allocation3 + $0xb0] sm:$0xf] %vm3636_vm5, %v3537_v21  ;;  %v5691_v53 = vsel %vm9473_vm14, %v5683_v31, %v5690_v38  ;;  %v5004_v27 = vsel %vm9662_vm6, %v12422_v5, %v12436_v60  ;;  %v5005_v23 = vshrl.u32 %v12369_v48, 16  ;;  %v12459_v18 = vld [vmem:[#allocation2 + $0x88] sm:$0xf]  ;;  %v12462_v3 = vadd.s32 336, %v14544_v58  ;;  %4515 = vrot.lane.b32.xlu0 %v4391_v35, %s9127_s16 }
 0x280   : > { %2931 = vst.msk [vmem:[#allocation3 + $0xb8] sm:$0xf] %vm2907_vm15, %v2810_v62  ;;  %4228 = vrot.lane.b32.xlu1 %v4007_v10, %s9131_s20  ;;  %v12468_v61 = vsel %vm9473_vm14, %v5692_v14, %v5699_v50  ;;  %v817_v52 = vshrl.u32 %v12432_v6, 4  ;;  %v12472_v13 = vmul.u32.u64.low 2863311531, %v12448_v15  ;;  %v12473_v28 = vmul.u32.u64.high 2863311531, %v12448_v15, %v12472_v13  ;;  %v14579_v5 = vld [vmem:[#allocation14_spill] sm:$0xff] }
 0x281   : > { %v12475_v12 = vrot.slane %v3315_v4, 4  ;;  %v12477_v20 = vrot.slane %v3318_v40, 5  ;;  %v12479_v49 = vld [vmem:[#allocation2 + $0x84] sm:$0xf]  ;;  %v12482_v46 = vmul.u32.u64.low 2863311531, %v12462_v3  ;;  %v12483_v36 = vmul.u32.u64.high 2863311531, %v12462_v3, %v12482_v46  ;;  %v3539_v11 = vpop.permute.xlu1 %3538 }
 0x282   : > { %v4392_v7 = vld [vmem:[#allocation2 + $0x84] sm:$0xf]  ;;  %v4008_v56 = vrot.slane %v12365_v54, 4  ;;  %v4010_v55 = vshrl.u32 %v12459_v18, 16  ;;  %v12487_v0 = vrot.slane %v3322_v29, 4  ;;  %v818_v43 = vmul.u32 24, %v817_v52  ;;  %v4504_v21 = vpop.permute.xlu0 %4503 }
 0x283   : > { %4337 = vst.msk [vmem:[#allocation3 + $0xb0] sm:$0xf] %vm14394_vm12, %v4215_v44  ;;  %v9071_v31 = vld [vmem:[#allocation3 + $0xa4] ss:$8 sps:$4 sm:$0xff]   ;;  %v12494_v33 = vld [vmem:[%s14361_s2] ss:$0 sm:$0xff]  ;;  %v6407_v38 = vsel %vm9662_vm6, %v12274_v39, %v14577_v17  ;;  %v6417_v14 = vsel %vm9662_vm6, %v12279_v59, %v14579_v5  ;;  %5241 = vrot.lane.b32.xlu0 %v4994_v37, %s9130_s19  ;;  %v8818_v59 = vpop.f32.mrf.mxu0  ;;  %v3321_v37 = vsel %vm9662_vm6, %v12475_v12, %v12477_v20 }
 0x284   : > { %3660 = vst.msk [vmem:[#allocation3 + $0xb8] sm:$0xf] %vm3636_vm5, %v3539_v11  ;;  %v1703_v24 = vadd.f32 %v12494_v33, %v8815_v51  ;;  %v12498_v22 = vadd.s32 320, %v14544_v58  ;;  %4517 = vrot.lane.b32.xlu1 %v4392_v7, %s9127_s16  ;;  %v4013_v50 = vshll.u32 %v12459_v18, 16  ;;  %v3328_v30 = vshll.u32 %v12479_v49, 16  ;;  %8530 = vmatprep.mubr.msk.bf16.mxu1 %vm7317_vm8, %v9071_v31 }
 0x285   : > { %v9073_v63 = vld [vmem:[#allocation3 + $0xa0] ss:$8 sps:$4 sm:$0xff]   ;;  %v819_v6 = vsub.s32 %v12401_v26, %v818_v43  ;;  %v795_v4 = vshrl.u32 %v12473_v28, 4  ;;  %6926 = vst.msk [vmem:[#allocation3 + $0x4] sm:$0xf] %vm1834_vm2, %v6407_v38  ;;  %v12518_v17 = vadd.f32 %v12494_v33, %v1694_v16  ;;  %v850_v39 = vshrl.u32 %v12483_v36, 4  ;;  %v4217_v26 = vpop.permute.xlu1 %4216  ;;  %v1707_v11 = vpop.f32.mrf.mxu0 }
 0x286   : > { %6927 = vst.msk [vmem:[#allocation3 + $0xc] sm:$0xf] %vm1834_vm2, %v6417_v14  ;;  %v12522_v40 = vmul.u32.u64.low 2863311531, %v12498_v22  ;;  %v12523_v51 = vmul.u32.u64.high 2863311531, %v12498_v22, %v12522_v40  ;;  %7503 = vmatmul.mubr.bf16.gmra.mxu1 %v9073_v63  ;;  %v3325_v29 = vor.u32 %v12487_v0, %v12477_v20  ;;  %v1777_v35 = vmax.f32 %v1703_v24, 0.0  ;;  %v5230_v7 = vpop.permute.xlu0 %5229 }
 0x287   : > { %vm949_vm3 = vcmp.ne.s32.totalorder %v819_v6, 0  ;;  %vm997_vm1 = vcmp.lt.s32.totalorder %v819_v6, 0  ;;  %v1093_v62 = vadd.s32 24, %v819_v6  ;;  %v796_v10 = vmul.u32 24, %v795_v4  ;;  %4626 = vst.msk [vmem:[#allocation3 + $0xb0] sm:$0xf] %vm4603_vm13, %v4504_v21  ;;  %5919 = vrot.lane.b32.xlu0 %v5691_v53, %s9132_s11 }
 0x288   : > { %4338 = vst.msk [vmem:[#allocation3 + $0xb8] sm:$0xf] %vm14394_vm12, %v4217_v26  ;;  %vm1045_vm9 = vmand %vm997_vm1, %vm949_vm3  ;;  %v851_v18 = vmul.u32 24, %v850_v39  ;;  %5243 = vrot.lane.b32.xlu1 %v5004_v27, %s9130_s19  ;;  %v12535_v52 = vrot.slane %v4010_v55, 7  ;;  %v1716_v16 = vadd.f32 %v12494_v33, %v8818_v59  ;;  %v1775_v46 = vmax.f32 %v12518_v17, 0.0 }
 0x289   : > { %v1141_v13 = vsel %vm1045_vm9, %v1093_v62, %v819_v6  ;;  %v797_v28 = vsub.s32 %v12448_v15, %v796_v10  ;;  %v828_v44 = vshrl.u32 %v12523_v51, 4  ;;  %v4506_v43 = vpop.permute.xlu1 %4505  ;;  %v12545_v53 = vld [vmem:[%s14363_s4] ss:$0 sm:$0xff]  ;;  %5352 = vst.msk [vmem:[#allocation3 + $0xb0] sm:$0xf] %vm5329_vm0, %v5230_v7  ;;  %v12559_v59 = vadd.f32 %v12494_v33, %v1707_v11 }
 0x28a   : > { %vm1189_vm10 = vcmp.lt.s32.totalorder %v1141_v13, 16  ;;  %v852_v36 = vsub.s32 %v12462_v3, %v851_v18  ;;  %4627 = vst.msk [vmem:[#allocation3 + $0xb8] sm:$0xf] %vm4603_vm13, %v4506_v43  ;;  %v7432_v3 = vpop.f32.mrf.mxu1  ;;  %v6084_v55 = vld [vmem:[#allocation2 + $0x8c] sm:$0xf]  ;;  %v12554_v24 = vor.u32 %v4013_v50, %v12535_v52  ;;  %v1780_v14 = vmax.f32 %v1716_v16, 0.0  ;;  %v5908_v51 = vpop.permute.xlu0 %5907 }
 0x28b   : > { %v8350_v27 = vsel %vm1189_vm10, 1.0, %v14473_v8  ;;  %vm947_vm11 = vcmp.ne.s32.totalorder %v797_v28, 0  ;;  %vm995_vm3 = vcmp.lt.s32.totalorder %v797_v28, 0  ;;  %v1091_v15 = vadd.s32 24, %v797_v28  ;;  %6208 = vrot.lane.b32.xlu0 %v6084_v55, %s9129_s18  ;;  %v12556_v38 = vld [vmem:[#allocation2 + $0x8c] sm:$0xf] }
 0x28c   : > { %v1825_v31 = vmul.f32 %v8350_v27, %v1777_v35  ;;  %vm1043_vm1 = vmand %vm995_vm3, %vm947_vm11  ;;  %vm952_vm9 = vcmp.ne.s32.totalorder %v852_v36, 0  ;;  %vm1000_vm12 = vcmp.lt.s32.totalorder %v852_v36, 0  ;;  %v1096_v63 = vadd.s32 24, %v852_v36  ;;  %5921 = vrot.lane.b32.xlu1 %v12468_v61, %s9132_s11  ;;  %v7434_v4 = vpop.f32.mrf.mxu1  ;;  %v2697_v21 = vld [vmem:[#allocation2 + $0x7c] sm:$0xf] }
 0x28d   : > { %v1139_v5 = vsel %vm1043_vm1, %v1091_v15, %v797_v28  ;;  %vm1048_vm10 = vmand %vm1000_vm12, %vm952_vm9  ;;  %v829_v6 = vmul.u32 24, %v828_v44  ;;  %v7433_v40 = vadd.f32 %v12545_v53, %v7432_v3  ;;  %v5232_v61 = vpop.permute.xlu1 %5231  ;;  %v4683_v50 = vld [vmem:[#allocation2 + $0x8c] sm:$0xf]  ;;  %6030 = vst.msk [vmem:[#allocation3 + $0xb0] sm:$0xf] %vm6007_vm4, %v5908_v51  ;;  %v4019_v18 = vshrl.u32 %v12556_v38, 16 }
 0x28e   : > { %v8660_v17 = vpack.c.bf16 %v1825_v31, %v1825_v31  ;;  %vm1187_vm11 = vcmp.lt.s32.totalorder %v1139_v5, 16  ;;  %v1144_v39 = vsel %vm1048_vm10, %v1096_v63, %v852_v36  ;;  %5353 = vst.msk [vmem:[#allocation3 + $0xb8] sm:$0xf] %vm5329_vm0, %v5232_v61  ;;  %v7435_v10 = vpop.f32.mrf.mxu1  ;;  %v6085_v35 = vld [vmem:[#allocation2 + $0x90] sm:$0xf]  ;;  %v12569_v13 = vrot.slane %v5005_v23, 4  ;;  %v6197_v3 = vpop.permute.xlu0 %6196 }
 0x28f   : > { %v8348_v26 = vsel %vm1187_vm11, 1.0, %v14473_v8  ;;  %vm1192_vm3 = vcmp.lt.s32.totalorder %v1144_v39, 16  ;;  %v830_v62 = vsub.s32 %v12498_v22, %v829_v6  ;;  %v7436_v36 = vadd.f32 %v12545_v53, %v7435_v10  ;;  %2823 = vrot.lane.b32.xlu0 %v2697_v21, %s9125_s13  ;;  %v2698_v11 = vld [vmem:[#allocation2 + $0x80] sm:$0xf]  ;;  %v12580_v31 = vld [vmem:[#allocation2 + $0x94] sm:$0xf] }
 0x290   : > { %2074 = vst.msk [vmem:[#allocation2 + $0xac] sm:$0xf] %vm1834_vm2, %v8660_v17  ;;  %v1823_v28 = vmul.f32 %v8348_v26, %v1775_v46  ;;  %v8353_v16 = vsel %vm1192_vm3, 1.0, %v14473_v8  ;;  %6210 = vrot.lane.b32.xlu1 %v6085_v35, %s9129_s18  ;;  %v7437_v44 = vpop.f32.mrf.mxu1  ;;  %v5011_v7 = vshll.u32 %v4683_v50, 16  ;;  %v5015_v48 = vshrl.u32 %v4683_v50, 16 }
 0x291   : > { %v1828_v22 = vmul.f32 %v8353_v16, %v1780_v14  ;;  %vm950_vm12 = vcmp.ne.s32.totalorder %v830_v62, 0  ;;  %vm998_vm1 = vcmp.lt.s32.totalorder %v830_v62, 0  ;;  %v1094_v46 = vadd.s32 24, %v830_v62  ;;  %v5910_v55 = vpop.permute.xlu1 %5909  ;;  %6319 = vst.msk [vmem:[#allocation3 + $0xb0] sm:$0xf] %vm6296_vm7, %v6197_v3 }
 0x292   : > { %v8658_v23 = vpack.c.bf16 %v1823_v28, %v1823_v28  ;;  %vm12576_vm9 = vmand %vm998_vm1, %vm950_vm12  ;;  %v7617_v27 = vmax.f32 %v7433_v40, 0.0  ;;  %v7618_v15 = vmax.f32 %v7436_v36, 0.0  ;;  %v1778_v5 = vmax.f32 %v12559_v59, 0.0  ;;  %6031 = vst.msk [vmem:[#allocation3 + $0xb8] sm:$0xf] %vm6007_vm4, %v5910_v55  ;;  %v2812_v12 = vpop.permute.xlu0 %2811 }
 0x293   : > { %v8663_v63 = vpack.c.bf16 %v1828_v22, %v1828_v22  ;;  %v3326_v14 = vrot.slane %v3325_v29, 4  ;;  %v12588_v6 = vrot.slane %v4019_v18, 7  ;;  %v4022_v4 = vshll.u32 %v12556_v38, 16  ;;  %v12592_v17 = vld [vmem:[#allocation2 + $0x98] sm:$0xf]  ;;  %3552 = vrot.lane.b32.xlu0 %v3321_v37, %s9128_s17 }
 0x294   : > { %2072 = vst.msk [vmem:[#allocation2 + $0xa4] sm:$0xf] %vm1834_vm2, %v8658_v23  ;;  %v1142_v39 = vsel %vm12576_vm9, %v1094_v46, %v830_v62  ;;  %v6658_v59 = vshrl.u32 %v12403_v41, 16  ;;  %v12597_v40 = vpack.c.bf16 %v7618_v15, %v7617_v27  ;;  %2825 = vrot.lane.b32.xlu1 %v2698_v11, %s9125_s13  ;;  %v3332_v0 = vshrl.u32 %v12479_v49, 16  ;;  %v12618_v21 = vld [vmem:[#allocation2 + $0x90] sm:$0xf] }
 0x295   : > { %2077 = vst.msk [vmem:[#allocation2 + $0xb8] sm:$0xf] %vm1834_vm2, %v8663_v63  ;;  %vm1190_vm10 = vcmp.lt.s32.totalorder %v1142_v39, 16  ;;  %v12610_v29 = vrot.slane %v3328_v30, 5  ;;  %v5008_v38 = vor.u32 %v12569_v13, %v12436_v60  ;;  %v5703_v51 = vshrl.u32 %v12580_v31, 16  ;;  %v6199_v20 = vpop.permute.xlu1 %6198 }
 0x296   : > { %v8351_v61 = vsel %vm1190_vm10, 1.0, %v14473_v8  ;;  %v12616_v37 = vrot.slane %v5011_v7, 5  ;;  %v5017_v50 = vrot.slane %v5015_v48, 4  ;;  %v5712_v26 = vshrl.u32 %v12592_v17, 16  ;;  %2932 = vst.msk [vmem:[#allocation3 + $0xc0] sm:$0xf] %vm2907_vm15, %v2812_v12  ;;  %v3493_v1 = vpop.permute.xlu0 %3492 }
 0x297   : > { %v1826_v62 = vmul.f32 %v8351_v61, %v1778_v5  ;;  %6320 = vst.msk [vmem:[#allocation3 + $0xb8] sm:$0xf] %vm6296_vm7, %v6199_v20  ;;  %v4016_v60 = vsel %vm9473_vm14, %v4008_v56, %v12554_v24  ;;  %v3331_v49 = vsel %vm9662_vm6, %v3326_v14, %v12610_v29  ;;  %v4017_v30 = vrot.slane %v12535_v52, 4  ;;  %v6373_v56 = vld [vmem:[#allocation2 + $0x8c] sm:$0xf] }
 0x298   : > { %v4024_v10 = vor.u32 %v4022_v4, %v12588_v6  ;;  %v6650_v35 = vrot.slane %v6648_v34, 4  ;;  %v12637_v18 = vrot.slane %v6654_v9, 5  ;;  %v6660_v13 = vrot.slane %v6658_v59, 4  ;;  %4230 = vrot.lane.b32.xlu0 %v4016_v60, %s9131_s20  ;;  %3554 = vrot.lane.b32.xlu1 %v3331_v49, %s9128_s17  ;;  %3637 = vst.msk [vmem:[#allocation3] sm:$0xf] %vm3636_vm5, %v3493_v1  ;;  %v6996_v5 = vld [vmem:[#allocation3 + $0xb0] sm:$0xff] }
 0x299   : > { %v8661_v54 = vpack.c.bf16 %v1826_v62, %v1826_v62  ;;  %v5009_v24 = vrot.slane %v5008_v38, 4  ;;  %v12641_v28 = vrot.slane %v5703_v51, 7  ;;  %v5706_v52 = vshll.u32 %v12580_v31, 16  ;;  %v2814_v34 = vpop.permute.xlu1 %2813  ;;  %v4393_v44 = vld [vmem:[#allocation2 + $0x88] sm:$0xf]  ;;  %v7440_v38 = vpop.f32.mrf.mxu1 }
 0x29a   : > { %v5021_v16 = vshll.u32 %v12618_v21, 16  ;;  %v5018_v41 = vor.u32 %v5017_v50, %v12616_v37  ;;  %v12646_v9 = vrot.slane %v5712_v26, 7  ;;  %v5715_v36 = vshll.u32 %v12592_v17, 16  ;;  %2933 = vst.msk [vmem:[#allocation3 + $0xc8] sm:$0xf] %vm2907_vm15, %v2814_v34  ;;  %v3541_v31 = vpop.permute.xlu0 %3540 }
 0x29b   : > { %2075 = vst.msk [vmem:[#allocation2 + $0xb0] sm:$0xf] %vm1834_vm2, %v8661_v54  ;;  %v6647_v22 = vsel %vm9662_vm6, %v12283_v57, %v12383_v45  ;;  %v4025_v11 = vsel %vm9473_vm14, %v4017_v30, %v4024_v10  ;;  %v3334_v7 = vrot.slane %v3332_v0, 4  ;;  %v6671_v48 = vor.u32 %v12297_v25, %v12295_v42  ;;  %v2989_v57 = vld [vmem:[#allocation2 + $0x88] sm:$0xf]  ;;  %v7442_v10 = vpop.f32.mrf.mxu1 }
 0x29c   : > { %6950 = vst.msk [vmem:[#allocation3 + $0xc4] sm:$0xf] %vm1834_vm2, %v6647_v22  ;;  %v6651_v23 = vor.u32 %v6650_v35, %v12383_v45  ;;  %v6674_v43 = vshll.u32 %v6373_v56, 16  ;;  %v6678_v46 = vshrl.u32 %v6373_v56, 16  ;;  %4519 = vrot.lane.b32.xlu0 %v4393_v44, %s9127_s16  ;;  %4232 = vrot.lane.b32.xlu1 %v4025_v11, %s9131_s20  ;;  %v12664_v27 = vld [vmem:[#allocation2 + $0x90] sm:$0xf]  ;;  %v6661_v15 = vor.u32 %v6660_v13, %v12637_v18 }
 0x29d   : > { %v12667_v3 = vld [vmem:[#allocation2 + $0x98] sm:$0xf]  ;;  %v5014_v55 = vsel %vm9662_vm6, %v5009_v24, %v12616_v37  ;;  %v5701_v25 = vrot.slane %v12387_v2, 4  ;;  %v12673_v45 = vrot.slane %v5021_v16, 5  ;;  %v3495_v63 = vpop.permute.xlu1 %3494  ;;  %v9074_v4 = vld [vmem:[#allocation3 + $0xb4] ss:$8 sps:$4 sm:$0xff]   ;;  %v5708_v17 = vor.u32 %v5706_v52, %v12641_v28  ;;  %v7443_v34 = vpop.f32.mrf.mxu1 }
 0x29e   : > { %v6997_v14 = vld [vmem:[#allocation3 + $0xb8] sm:$0xff]  ;;  %v5019_v39 = vrot.slane %v5018_v41, 4  ;;  %v5710_v59 = vrot.slane %v12641_v28, 4  ;;  %v5717_v0 = vor.u32 %v5715_v36, %v12646_v9  ;;  %3661 = vst.msk [vmem:[#allocation3 + $0xc0] sm:$0xf] %vm3636_vm5, %v3541_v31  ;;  %v3335_v61 = vor.u32 %v3334_v7, %v12610_v29  ;;  %8531 = vmatprep.mubr.msk.bf16.mxu1 %vm7317_vm8, %v9074_v4  ;;  %v4171_v54 = vpop.permute.xlu0 %4170 }
 0x29f   : > { %3638 = vst.msk [vmem:[#allocation3 + $0x8] sm:$0xf] %vm3636_vm5, %v3495_v63  ;;  %v4394_v2 = vld [vmem:[#allocation2 + $0x8c] sm:$0xf]  ;;  %v8485_v51 = vcombine.low %v6996_v5, %v6997_v14  ;;  %v3338_v12 = vshll.u32 %v2989_v57, 16  ;;  %v4028_v20 = vshrl.u32 %v12664_v27, 16  ;;  %v7441_v13 = vadd.f32 %v12545_v53, %v7440_v38 }
 0x2a0   : > { %v12682_v37 = vrot.slane %v6671_v48, 4  ;;  %v12684_v50 = vrot.slane %v6651_v23, 4  ;;  %v12686_v26 = vrot.slane %v6674_v43, 5  ;;  %5245 = vrot.lane.b32.xlu0 %v5014_v55, %s9130_s19  ;;  %4521 = vrot.lane.b32.xlu1 %v4394_v2, %s9127_s16  ;;  %v3342_v62 = vshrl.u32 %v2989_v57, 16  ;;  %v2110_v35 = vld [vmem:[#allocation2 + $0x6c] sm:$0xf] }
 0x2a1   : > { %v12690_v60 = vrot.slane %v6678_v46, 4  ;;  %v12692_v49 = vrot.slane %v6661_v15, 4  ;;  %v6704_v29 = vshll.u32 %v12667_v3, 16  ;;  %v6708_v30 = vshrl.u32 %v12667_v3, 16  ;;  %v3543_v56 = vpop.permute.xlu1 %3542  ;;  %7511 = vmatmul.mubr.bf16.gmra.mxu1 %v8485_v51  ;;  %v12704_v16 = vld [vmem:[#allocation2 + $0x94] sm:$0xf]  ;;  %v7445_v46 = vpop.f32.mrf.mxu1 }
 0x2a2   : > { %v5709_v24 = vsel %vm9473_vm14, %v5701_v25, %v5708_v17  ;;  %v5024_v28 = vsel %vm9662_vm6, %v5019_v39, %v12673_v45  ;;  %v5025_v52 = vshrl.u32 %v12618_v21, 16  ;;  %v4685_v1 = vld [vmem:[#allocation2 + $0x94] sm:$0xf]  ;;  %vm14582_vm11 = vcmask 519552   ;;  %3662 = vst.msk [vmem:[#allocation3 + $0xc8] sm:$0xf] %vm3636_vm5, %v3543_v56  ;;  %v4219_v5 = vpop.permute.xlu0 %4218 }
 0x2a3   : > { %4315 = vst.msk [vmem:[#allocation3] sm:$0xf] %vm14582_vm11, %v4171_v54  ;;  %v5718_v41 = vsel %vm9473_vm14, %v5710_v59, %v5717_v0  ;;  %v12710_v36 = vrot.slane %v3335_v61, 4  ;;  %v12712_v22 = vrot.slane %v3338_v12, 5  ;;  %v12714_v44 = vrot.slane %v4028_v20, 7  ;;  %vm14583_vm3 = vmmov %vm14582_vm11 }
 0x2a4   : > { %v2990_v11 = vld [vmem:[#allocation2 + $0x8c] sm:$0xf]  ;;  %v7444_v21 = vadd.f32 %v12545_v53, %v7443_v34  ;;  %5923 = vrot.lane.b32.xlu0 %v5709_v24, %s9132_s11  ;;  %5247 = vrot.lane.b32.xlu1 %v5024_v28, %s9130_s19  ;;  %v4031_v7 = vshll.u32 %v12664_v27, 16  ;;  %v3344_v48 = vrot.slane %v3342_v62, 4  ;;  %v2375_v23 = vshrl.u32 %v2110_v35, 16  ;;  %vm14584_vm12 = vmmov %vm14583_vm3 }
 0x2a5   : > { %v2111_v43 = vld [vmem:[#allocation2 + $0x70] sm:$0xf]  ;;  %v4037_v57 = vshrl.u32 %v12704_v16, 16  ;;  %v5031_v15 = vshll.u32 %v4685_v1, 16  ;;  %v5035_v55 = vshrl.u32 %v4685_v1, 16  ;;  %v2378_v25 = vshll.u32 %v2110_v35, 16  ;;  %v4173_v14 = vpop.permute.xlu1 %4172  ;;  %vm14585_vm1 = vmmov %vm14583_vm3 }
 0x2a6   : > { %v7619_v31 = vmax.f32 %v7441_v13, 0.0  ;;  %v7620_v63 = vmax.f32 %v7444_v21, 0.0  ;;  %v12721_v4 = vld [vmem:[#allocation2 + $0x9c] sm:$0xf]  ;;  %v2373_v17 = vrot.slane %v12362_v47, 4  ;;  %v2377_v39 = vrot.slane %v2375_v23, 7 }
 0x2a7   : > { %4339 = vst.msk [vmem:[#allocation3 + $0xc0] sm:$0xf] %vm14583_vm3, %v4219_v5  ;;  %v6086_v27 = vld [vmem:[#allocation2 + $0x94] sm:$0xf]  ;;  %v3348_v59 = vshll.u32 %v2990_v11, 16  ;;  %v3352_v0 = vshrl.u32 %v2990_v11, 16  ;;  %v3345_v61 = vor.u32 %v3344_v48, %v12712_v22  ;;  %v4460_v54 = vpop.permute.xlu0 %4459  ;;  %v3341_v23 = vsel %vm9662_vm6, %v12710_v36, %v12712_v22 }
 0x2a8   : > { %4316 = vst.msk [vmem:[#allocation3 + $0x8] sm:$0xf] %vm14584_vm12, %v4173_v14  ;;  %v5027_v38 = vrot.slane %v5025_v52, 4  ;;  %v2384_v2 = vshrl.u32 %v2111_v43, 16  ;;  %v12726_v51 = vpack.c.bf16 %v7620_v63, %v7619_v31  ;;  %6212 = vrot.lane.b32.xlu0 %v6086_v27, %s9129_s18  ;;  %5925 = vrot.lane.b32.xlu1 %v5718_v41, %s9132_s11  ;;  %v4040_v47 = vshll.u32 %v12704_v16, 16 }
 0x2a9   : > { %v12732_v12 = vld [vmem:[#allocation2 + $0xa0] sm:$0xf]  ;;  %v2380_v20 = vor.u32 %v2378_v25, %v2377_v39  ;;  %v5721_v62 = vshrl.u32 %v12721_v4, 16  ;;  %v2382_v10 = vrot.slane %v2377_v39, 4  ;;  %v2387_v13 = vshll.u32 %v2111_v43, 16  ;;  %v4221_v56 = vpop.permute.xlu1 %4220 }
 0x2aa   : > { %v12735_v35 = vrot.slane %v2384_v2, 7  ;;  %v12737_v24 = vrot.slane %v4037_v57, 7  ;;  %v12739_v28 = vrot.slane %v5031_v15, 5  ;;  %v5037_v52 = vrot.slane %v5035_v55, 4  ;;  %4604 = vst.msk [vmem:[#allocation3] sm:$0xf] %vm4603_vm13, %v4460_v54 }
 0x2ab   : > { %v2381_v1 = vsel %vm9473_vm14, %v2373_v17, %v2380_v20  ;;  %4340 = vst.msk [vmem:[#allocation3 + $0xc8] sm:$0xf] %vm14585_vm1, %v4221_v56  ;;  %v2699_v16 = vld [vmem:[#allocation2 + $0x84] sm:$0xf]  ;;  %v6087_v34 = vld [vmem:[#allocation2 + $0x98] sm:$0xf]  ;;  %v5028_v11 = vor.u32 %v5027_v38, %v12673_v45  ;;  %v4033_v43 = vor.u32 %v4031_v7, %v12714_v44  ;;  %v6657_v31 = vsel %vm9662_vm6, %v12684_v50, %v12637_v18 }
 0x2ac   : > { %v4026_v41 = vrot.slane %v12588_v6, 4  ;;  %v5730_v21 = vshrl.u32 %v12732_v12, 16  ;;  %2645 = vst.msk [vmem:[#allocation3 + $0xd0] sm:$0xf] %vm1834_vm2, %v2381_v1  ;;  %v2389_v48 = vor.u32 %v2387_v13, %v12735_v35  ;;  %2827 = vrot.lane.b32.xlu0 %v2699_v16, %s9125_s13  ;;  %6214 = vrot.lane.b32.xlu1 %v6087_v34, %s9129_s18  ;;  %v3350_v6 = vrot.slane %v3348_v59, 5  ;;  %v4508_v36 = vpop.permute.xlu0 %4507 }
 0x2ad   : > { %v3354_v46 = vrot.slane %v3352_v0, 4  ;;  %v12757_v45 = vrot.slane %v5721_v62, 7  ;;  %v5724_v57 = vshll.u32 %v12721_v4, 16  ;;  %v12760_v15 = vld [vmem:[#allocation2 + $0x98] sm:$0xf]  ;;  %v4462_v22 = vpop.permute.xlu1 %4461  ;;  %v3346_v7 = vrot.slane %v3345_v61, 4 }
 0x2ae   : > { %v2991_v55 = vld [vmem:[#allocation2 + $0x90] sm:$0xf]  ;;  %v2390_v25 = vsel %vm9473_vm14, %v2382_v10, %v2389_v48  ;;  %v4035_v63 = vrot.slane %v12714_v44, 4  ;;  %v4042_v5 = vor.u32 %v4040_v47, %v12737_v24  ;;  %v5038_v14 = vor.u32 %v5037_v52, %v12739_v28  ;;  %6951 = vst.msk [vmem:[#allocation3 + $0xcc] sm:$0xf] %vm1834_vm2, %v6657_v31 }
 0x2af   : > { %2646 = vst.msk [vmem:[#allocation3 + $0xd8] sm:$0xf] %vm1834_vm2, %v2390_v25  ;;  %v2700_v4 = vld [vmem:[#allocation2 + $0x88] sm:$0xf]  ;;  %v12775_v17 = vrot.slane %v5028_v11, 4  ;;  %v12777_v18 = vrot.slane %v5730_v21, 7  ;;  %v4034_v39 = vsel %vm9473_vm14, %v4026_v41, %v4033_v43  ;;  %v3355_v59 = vor.u32 %v3354_v46, %v3350_v6 }
 0x2b0   : > { %4628 = vst.msk [vmem:[#allocation3 + $0xc0] sm:$0xf] %vm4603_vm13, %v4508_v36  ;;  %4605 = vst.msk [vmem:[#allocation3 + $0x8] sm:$0xf] %vm4603_vm13, %v4462_v22  ;;  %v5733_v50 = vshll.u32 %v12732_v12, 16  ;;  %v377_v44 = vadd.s32 344, %v14544_v58  ;;  %3556 = vrot.lane.b32.xlu0 %v3341_v23, %s9128_s17  ;;  %2829 = vrot.lane.b32.xlu1 %v2700_v4, %s9125_s13  ;;  %v5726_v2 = vor.u32 %v5724_v57, %v12757_v45  ;;  %v8819_v12 = vpop.f32.mrf.mxu0  ;;  %v5186_v20 = vpop.permute.xlu0 %5185 }
 0x2b1   : > { %v5041_v27 = vshll.u32 %v12760_v15, 16  ;;  %v3358_v0 = vshll.u32 %v2991_v55, 16  ;;  %v5719_v38 = vrot.slane %v12646_v9, 4  ;;  %v4510_v62 = vpop.permute.xlu1 %4509  ;;  %v3351_v10 = vsel %vm9662_vm6, %v3346_v7, %v3350_v6  ;;  %v12797_v52 = vld [vmem:[#allocation2 + $0x98] sm:$0xf] }
 0x2b2   : > { %v12788_v61 = vmul.u32.u64.low 2863311531, %v377_v44  ;;  %v12789_v47 = vmul.u32.u64.high 2863311531, %v377_v44, %v12788_v61  ;;  %v4043_v13 = vsel %vm9473_vm14, %v4035_v63, %v4042_v5  ;;  %v12795_v54 = vrot.slane %v5038_v14, 4  ;;  %5330 = vst.msk [vmem:[#allocation3] sm:$0xf] %vm5329_vm0, %v5186_v20  ;;  %v1710_v6 = vpop.f32.mrf.mxu0 }
 0x2b3   : > { %v3362_v56 = vshrl.u32 %v2991_v55, 16  ;;  %4629 = vst.msk [vmem:[#allocation3 + $0xc8] sm:$0xf] %vm4603_vm13, %v4510_v62  ;;  %v5034_v9 = vsel %vm9662_vm6, %v12775_v17, %v12739_v28  ;;  %v5045_v1 = vshrl.u32 %v12760_v15, 16  ;;  %v5728_v16 = vrot.slane %v12757_v45, 4 }
 0x2b4   : > { %v5735_v34 = vor.u32 %v5733_v50, %v12777_v18  ;;  %4234 = vrot.lane.b32.xlu0 %v4034_v39, %s9131_s20  ;;  %3558 = vrot.lane.b32.xlu1 %v3351_v10, %s9128_s17  ;;  %v12810_v41 = vrot.slane %v5041_v27, 5  ;;  %v12812_v11 = vrot.slane %v3355_v59, 4  ;;  %v12814_v21 = vrot.slane %v3358_v0, 5  ;;  %v5234_v45 = vpop.permute.xlu0 %5233  ;;  %v12828_v25 = vld [vmem:[#allocation2 + $0x94] sm:$0xf] }
 0x2b5   : > { %v375_v48 = vadd.s32 328, %v14544_v58  ;;  %v12819_v28 = vsel %vm9473_vm14, %v5719_v38, %v5726_v2  ;;  %v4046_v23 = vshrl.u32 %v12797_v52, 16  ;;  %v861_v43 = vshrl.u32 %v12789_v47, 4  ;;  %v5188_v57 = vpop.permute.xlu1 %5187  ;;  %5354 = vst.msk [vmem:[#allocation3 + $0xc0] sm:$0xf] %vm5329_vm0, %v5234_v45  ;;  %v8822_v2 = vpop.f32.mrf.mxu0 }
 0x2b6   : > { %v380_v46 = vadd.s32 368, %v14544_v58  ;;  %v5044_v55 = vsel %vm9662_vm6, %v12795_v54, %v12810_v41  ;;  %v12830_v31 = vrot.slane %v3362_v56, 4  ;;  %5331 = vst.msk [vmem:[#allocation3 + $0x8] sm:$0xf] %vm5329_vm0, %v5188_v57  ;;  %v4395_v7 = vld [vmem:[#allocation2 + $0x90] sm:$0xf]  ;;  %v12839_v63 = vsel %vm9473_vm14, %v5728_v16, %v5735_v34 }
 0x2b7   : > { %v12832_v36 = vmul.u32.u64.low 2863311531, %v375_v48  ;;  %v12833_v22 = vmul.u32.u64.high 2863311531, %v375_v48, %v12832_v36  ;;  %v862_v5 = vmul.u32 24, %v861_v43  ;;  %v3361_v17 = vsel %vm9662_vm6, %v12812_v11, %v12814_v21  ;;  %v4396_v62 = vld [vmem:[#allocation2 + $0x94] sm:$0xf] }
 0x2b8   : > { %v12841_v14 = vmul.u32.u64.low 2863311531, %v380_v46  ;;  %v12842_v4 = vmul.u32.u64.high 2863311531, %v380_v46, %v12841_v14  ;;  %4523 = vrot.lane.b32.xlu0 %v4395_v7, %s9127_s16  ;;  %4236 = vrot.lane.b32.xlu1 %v4043_v13, %s9131_s20  ;;  %v4044_v50 = vrot.slane %v12737_v24, 4  ;;  %v4049_v39 = vshll.u32 %v12797_v52, 16  ;;  %v5864_v47 = vpop.permute.xlu0 %5863  ;;  %v12861_v13 = vld [vmem:[#allocation2 + $0x9c] sm:$0xf] }
 0x2b9   : > { %v1719_v27 = vadd.f32 %v12494_v33, %v8819_v12  ;;  %v12853_v59 = vrot.slane %v4046_v23, 7  ;;  %v3368_v0 = vshll.u32 %v12828_v25, 16  ;;  %v863_v38 = vsub.s32 %v377_v44, %v862_v5  ;;  %v5236_v20 = vpop.permute.xlu1 %5235  ;;  %6008 = vst.msk [vmem:[#allocation3] sm:$0xf] %vm6007_vm4, %v5864_v47  ;;  %v2112_v34 = vld [vmem:[#allocation2 + $0x74] sm:$0xf] }
 0x2ba   : > { %v12857_v61 = vadd.s32 352, %v14544_v58  ;;  %v3365_v10 = vor.u32 %v12830_v31, %v12814_v21  ;;  %v839_v54 = vshrl.u32 %v12833_v22, 4  ;;  %v12865_v12 = vadd.f32 %v12494_v33, %v1710_v6  ;;  %5355 = vst.msk [vmem:[#allocation3 + $0xc8] sm:$0xf] %vm5329_vm0, %v5236_v20  ;;  %v6380_v3 = vld [vmem:[#allocation2 + $0xa8] sm:$0xf] }
 0x2bb   : > { %v12868_v56 = vadd.f32 %v12494_v33, %v8822_v2  ;;  %vm953_vm9 = vcmp.ne.s32.totalorder %v863_v38, 0  ;;  %vm1001_vm10 = vcmp.lt.s32.totalorder %v863_v38, 0  ;;  %v1097_v44 = vadd.s32 24, %v863_v38 }
 0x2bc   : > { %v894_v16 = vshrl.u32 %v12842_v4, 4  ;;  %5249 = vrot.lane.b32.xlu0 %v5034_v9, %s9130_s19  ;;  %4525 = vrot.lane.b32.xlu1 %v4396_v62, %s9127_s16  ;;  %vm1049_vm11 = vmand %vm1001_vm10, %vm953_vm9  ;;  %v1781_v23 = vmax.f32 %v1719_v27, 0.0  ;;  %v840_v43 = vmul.u32 24, %v839_v54  ;;  %v4055_v57 = vshrl.u32 %v12861_v13, 16  ;;  %v5912_v5 = vpop.permute.xlu0 %5911  ;;  %v2701_v54 = vld [vmem:[#allocation2 + $0x8c] sm:$0xf] }
 0x2bd   : > { %v12876_v6 = vmul.u32.u64.low 2863311531, %v12857_v61  ;;  %v12877_v45 = vmul.u32.u64.high 2863311531, %v12857_v61, %v12876_v6  ;;  %v4058_v36 = vshll.u32 %v12861_v13, 16  ;;  %v1145_v22 = vsel %vm1049_vm11, %v1097_v44, %v863_v38  ;;  %v5866_v14 = vpop.permute.xlu1 %5865  ;;  %6032 = vst.msk [vmem:[#allocation3 + $0xc0] sm:$0xf] %vm6007_vm4, %v5912_v5 }
 0x2be   : > { %v895_v7 = vmul.u32 24, %v894_v16  ;;  %vm1193_vm3 = vcmp.lt.s32.totalorder %v1145_v22, 16  ;;  %v841_v4 = vsub.s32 %v375_v48, %v840_v43  ;;  %v1779_v9 = vmax.f32 %v12865_v12, 0.0  ;;  %6009 = vst.msk [vmem:[#allocation3 + $0x8] sm:$0xf] %vm6007_vm4, %v5866_v14  ;;  %v7448_v43 = vpop.f32.mrf.mxu1 }
 0x2bf   : > { %v2393_v2 = vshrl.u32 %v2112_v34, 16  ;;  %v8354_v27 = vsel %vm1193_vm3, 1.0, %v14473_v8  ;;  %v1784_v20 = vmax.f32 %v12868_v56, 0.0  ;;  %v2396_v62 = vshll.u32 %v2112_v34, 16  ;;  %v1723_v56 = vpop.f32.mrf.mxu0  ;;  %v6088_v6 = vld [vmem:[#allocation2 + $0x9c] sm:$0xf] }
 0x2c0   : > { %v896_v47 = vsub.s32 %v380_v46, %v895_v7  ;;  %5927 = vrot.lane.b32.xlu0 %v12819_v28, %s9132_s11  ;;  %5251 = vrot.lane.b32.xlu1 %v5044_v55, %s9130_s19  ;;  %v1829_v38 = vmul.f32 %v8354_v27, %v1781_v23  ;;  %vm951_vm12 = vcmp.ne.s32.totalorder %v841_v4, 0  ;;  %vm999_vm1 = vcmp.lt.s32.totalorder %v841_v4, 0  ;;  %v6153_v44 = vpop.permute.xlu0 %6152  ;;  %v12999_v13 = vld [vmem:[#allocation2 + $0xa0] sm:$0xf] }
 0x2c1   : > { %v1095_v48 = vadd.s32 24, %v841_v4  ;;  %vm12889_vm9 = vmand %vm999_vm1, %vm951_vm12  ;;  %v872_v46 = vshrl.u32 %v12877_v45, 4  ;;  %v5914_v16 = vpop.permute.xlu1 %5913  ;;  %v2391_v55 = vrot.slane %v12735_v35, 4  ;;  %v12897_v23 = vrot.slane %v2393_v2, 7  ;;  %6297 = vst.msk [vmem:[#allocation3] sm:$0xf] %vm6296_vm7, %v6153_v44 }
 0x2c2   : > { %vm956_vm10 = vcmp.ne.s32.totalorder %v896_v47, 0  ;;  %vm1004_vm11 = vcmp.lt.s32.totalorder %v896_v47, 0  ;;  %v1100_v12 = vadd.s32 24, %v896_v47  ;;  %v8664_v34 = vpack.c.bf16 %v1829_v38, %v1829_v38  ;;  %6033 = vst.msk [vmem:[#allocation3 + $0xc8] sm:$0xf] %vm6007_vm4, %v5914_v16 }
 0x2c3   : > { %v1143_v28 = vsel %vm12889_vm9, %v1095_v48, %v841_v4  ;;  %vm1052_vm3 = vmand %vm1004_vm11, %vm956_vm10  ;;  %v12903_v45 = vrot.slane %v3368_v0, 5  ;;  %v873_v7 = vmul.u32 24, %v872_v46  ;;  %v1724_v5 = vadd.f32 %v12494_v33, %v1723_v56  ;;  %v7450_v4 = vpop.f32.mrf.mxu1 }
 0x2c4   : > { %vm1191_vm12 = vcmp.lt.s32.totalorder %v1143_v28, 16  ;;  %v1148_v22 = vsel %vm1052_vm3, %v1100_v12, %v896_v47  ;;  %6216 = vrot.lane.b32.xlu0 %v6088_v6, %s9129_s18  ;;  %5929 = vrot.lane.b32.xlu1 %v12839_v63, %s9132_s11  ;;  %2078 = vst.msk [vmem:[#allocation2 + $0xbc] sm:$0xf] %vm1834_vm2, %v8664_v34  ;;  %v2398_v14 = vor.u32 %v2396_v62, %v12897_v23  ;;  %v12914_v0 = vrot.slane %v5045_v1, 4  ;;  %v6201_v38 = vpop.permute.xlu0 %6200  ;;  %v12922_v62 = vld [vmem:[#allocation2 + $0x9c] sm:$0xf] }
 0x2c5   : > { %v8352_v35 = vsel %vm1191_vm12, 1.0, %v14473_v8  ;;  %vm1196_vm1 = vcmp.lt.s32.totalorder %v1148_v22, 16  ;;  %v874_v47 = vsub.s32 %v12857_v61, %v873_v7  ;;  %v7449_v63 = vadd.f32 %v12545_v53, %v7448_v43  ;;  %v6155_v48 = vpop.permute.xlu1 %6154  ;;  %v2113_v1 = vld [vmem:[#allocation2 + $0x78] sm:$0xf]  ;;  %6321 = vst.msk [vmem:[#allocation3 + $0xc0] sm:$0xf] %vm6296_vm7, %v6201_v38  ;;  %v7451_v61 = vpop.f32.mrf.mxu1 }
 0x2c6   : > { %v1827_v2 = vmul.f32 %v8352_v35, %v1779_v9  ;;  %v8357_v27 = vsel %vm1196_vm1, 1.0, %v14473_v8  ;;  %v4051_v33 = vor.u32 %v4049_v39, %v12853_v59  ;;  %v2399_v15 = vsel %vm9473_vm14, %v2391_v55, %v2398_v14  ;;  %6298 = vst.msk [vmem:[#allocation3 + $0x8] sm:$0xf] %vm6296_vm7, %v6155_v48  ;;  %v6089_v9 = vld [vmem:[#allocation2 + $0xa0] sm:$0xf] }
 0x2c7   : > { %v1832_v12 = vmul.f32 %v8357_v27, %v1784_v20  ;;  %vm954_vm9 = vcmp.ne.s32.totalorder %v874_v47, 0  ;;  %vm1002_vm10 = vcmp.lt.s32.totalorder %v874_v47, 0  ;;  %v1098_v56 = vadd.s32 24, %v874_v47  ;;  %2647 = vst.msk [vmem:[#allocation3 + $0xe0] sm:$0xf] %vm1834_vm2, %v2399_v15  ;;  %v7453_v16 = vpop.f32.mrf.mxu1 }
 0x2c8   : > { %v8662_v46 = vpack.c.bf16 %v1827_v2, %v1827_v2  ;;  %v7452_v52 = vadd.f32 %v12545_v53, %v7451_v61  ;;  %2831 = vrot.lane.b32.xlu0 %v2701_v54, %s9125_s13  ;;  %6218 = vrot.lane.b32.xlu1 %v6089_v9, %s9129_s18  ;;  %v3366_v39 = vrot.slane %v3365_v10, 4  ;;  %vm1050_vm11 = vmand %vm1002_vm10, %vm954_vm9  ;;  %v1782_v44 = vmax.f32 %v1724_v5, 0.0  ;;  %v2702_v34 = vld [vmem:[#allocation2 + $0x90] sm:$0xf]  ;;  %v2816_v7 = vpop.permute.xlu0 %2815  ;;  %v6377_v38 = vld [vmem:[#allocation2 + $0x9c] sm:$0xf] }
 0x2c9   : > { %v8667_v20 = vpack.c.bf16 %v1832_v12, %v1832_v12  ;;  %v12937_v28 = vrot.slane %v4055_v57, 7  ;;  %v1146_v53 = vsel %vm1050_vm11, %v1098_v56, %v874_v47  ;;  %v2402_v55 = vshrl.u32 %v2113_v1, 16  ;;  %v6203_v35 = vpop.permute.xlu1 %6202  ;;  %2934 = vst.msk [vmem:[#allocation3 + $0xd0] sm:$0xf] %vm2907_vm15, %v2816_v7  ;;  %v12945_v57 = vld [vmem:[#allocation2 + $0xa4] sm:$0xf] }
 0x2ca   : > { %2076 = vst.msk [vmem:[#allocation2 + $0xb4] sm:$0xf] %vm1834_vm2, %v8662_v46  ;;  %v2405_v43 = vshll.u32 %v2113_v1, 16  ;;  %v7621_v6 = vmax.f32 %v7449_v63, 0.0  ;;  %v7622_v22 = vmax.f32 %v7452_v52, 0.0  ;;  %v5051_v31 = vshll.u32 %v12922_v62, 16 }
 0x2cb   : > { %2081 = vst.msk [vmem:[#allocation2 + $0xc8] sm:$0xf] %vm1834_vm2, %v8667_v20  ;;  %vm1194_vm3 = vcmp.lt.s32.totalorder %v1146_v53, 16  ;;  %v5055_v10 = vshrl.u32 %v12922_v62, 16  ;;  %v2400_v14 = vrot.slane %v12897_v23, 4  ;;  %v12949_v4 = vrot.slane %v2402_v55, 7 }
 0x2cc   : > { %6322 = vst.msk [vmem:[#allocation3 + $0xc8] sm:$0xf] %vm6296_vm7, %v6203_v35  ;;  %v8355_v5 = vsel %vm1194_vm3, 1.0, %v14473_v8  ;;  %v12953_v2 = vrot.slane %v6704_v29, 5  ;;  %v12955_v27 = vpack.c.bf16 %v7622_v22, %v7621_v6  ;;  %3560 = vrot.lane.b32.xlu0 %v3361_v17, %s9128_s17  ;;  %2833 = vrot.lane.b32.xlu1 %v2702_v34, %s9125_s13  ;;  %v4053_v47 = vrot.slane %v12853_v59, 4  ;;  %v3545_v17 = vpop.permute.xlu0 %3544  ;;  %v6998_v16 = vld [vmem:[#allocation3 + $0xc0] sm:$0xff] }
 0x2cd   : > { %v1830_v23 = vmul.f32 %v8355_v5, %v1782_v44  ;;  %v6374_v63 = vld [vmem:[#allocation2 + $0x90] sm:$0xf]  ;;  %v6375_v48 = vld [vmem:[#allocation2 + $0x94] sm:$0xf]  ;;  %v4052_v29 = vsel %vm9473_vm14, %v4044_v50, %v4051_v33  ;;  %v3371_v54 = vsel %vm9662_vm6, %v3366_v39, %v12903_v45  ;;  %v5048_v11 = vor.u32 %v12914_v0, %v12810_v41  ;;  %v2818_v59 = vpop.permute.xlu1 %2817  ;;  %v9076_v62 = vld [vmem:[#allocation3] ss:$8 sps:$4 sm:$0xff]  }
 0x2ce   : > { %v2407_v21 = vor.u32 %v2405_v43, %v12949_v4  ;;  %v9078_v12 = vld [vmem:[#allocation3 + $0x4] ss:$8 sps:$4 sm:$0xff]   ;;  %v5739_v15 = vshrl.u32 %v12945_v57, 16  ;;  %v6667_v24 = vsel %vm9662_vm6, %v12692_v49, %v12295_v42  ;;  %v6677_v50 = vsel %vm9662_vm6, %v12682_v37, %v12686_v26  ;;  %3663 = vst.msk [vmem:[#allocation3 + $0xd0] sm:$0xf] %vm3636_vm5, %v3545_v17 }
 0x2cf   : > { %v8665_v1 = vpack.c.bf16 %v1830_v23, %v1830_v23  ;;  %2935 = vst.msk [vmem:[#allocation3 + $0xd8] sm:$0xf] %vm2907_vm15, %v2818_v59  ;;  %v4060_v41 = vor.u32 %v4058_v36, %v12937_v28  ;;  %v12989_v0 = vrot.slane %v5051_v31, 5  ;;  %v5057_v33 = vrot.slane %v5055_v10, 4  ;;  %v12991_v61 = vld [vmem:[#allocation2 + $0xa8] sm:$0xf]  ;;  %8520 = vmatprep.mubr.msk.bf16.mxu0 %vm7317_vm8, %v9078_v12 }
 0x2d0   : > { %v2408_v42 = vsel %vm9473_vm14, %v2400_v14, %v2407_v21  ;;  %6952 = vst.msk [vmem:[#allocation3 + $0xd4] sm:$0xf] %vm1834_vm2, %v6667_v24  ;;  %6953 = vst.msk [vmem:[#allocation3 + $0xdc] sm:$0xf] %vm1834_vm2, %v6677_v50  ;;  %v6684_v37 = vshll.u32 %v6374_v63, 16  ;;  %v6688_v49 = vshrl.u32 %v6374_v63, 16  ;;  %4238 = vrot.lane.b32.xlu0 %v4052_v29, %s9131_s20  ;;  %3562 = vrot.lane.b32.xlu1 %v3371_v54, %s9128_s17  ;;  %v4223_v20 = vpop.permute.xlu0 %4222 }
 0x2d1   : > { %v6714_v9 = vshll.u32 %v6377_v38, 16  ;;  %v6718_v46 = vshrl.u32 %v6377_v38, 16  ;;  %2079 = vst.msk [vmem:[#allocation2 + $0xc0] sm:$0xf] %vm1834_vm2, %v8665_v1  ;;  %2648 = vst.msk [vmem:[#allocation3 + $0xe8] sm:$0xf] %vm1834_vm2, %v2408_v42  ;;  %7423 = vmatmul.mubr.bf16.vlgmr.msra.gmra.mxu0 %v9076_v62  ;;  %v3547_v44 = vpop.permute.xlu1 %3546  ;;  %v4061_v22 = vsel %vm9473_vm14, %v4053_v47, %v4060_v41  ;;  %v5058_v35 = vor.u32 %v5057_v33, %v12989_v0 }
 0x2d2   : > { %v6694_v36 = vshll.u32 %v6375_v48, 16  ;;  %v6698_v56 = vshrl.u32 %v6375_v48, 16  ;;  %v5049_v52 = vrot.slane %v5048_v11, 4  ;;  %v5742_v39 = vshll.u32 %v12945_v57, 16  ;;  %v9079_v53 = vld [vmem:[#allocation3 + $0xc4] ss:$8 sps:$4 sm:$0xff]  }
 0x2d3   : > { %v6999_v34 = vld [vmem:[#allocation3 + $0xc8] sm:$0xff]  ;;  %v13005_v55 = vrot.slane %v5739_v15, 7  ;;  %v5748_v43 = vshrl.u32 %v12991_v61, 16  ;;  %vm14588_vm12 = vcmask 519552   ;;  %3664 = vst.msk [vmem:[#allocation3 + $0xd8] sm:$0xf] %vm3636_vm5, %v3547_v44  ;;  %v6681_v23 = vor.u32 %v12690_v60, %v12686_v26  ;;  %8532 = vmatprep.mubr.msk.bf16.mxu1 %vm7317_vm8, %v9079_v53  ;;  %v7456_v60 = vpop.f32.mrf.mxu1 }
 0x2d4   : > { %4341 = vst.msk [vmem:[#allocation3 + $0xd0] sm:$0xf] %vm14588_vm12, %v4223_v20  ;;  %v4397_v6 = vld [vmem:[#allocation2 + $0x98] sm:$0xf]  ;;  %v8487_v7 = vcombine.low %v6998_v16, %v6999_v34  ;;  %v5061_v31 = vshll.u32 %v12999_v13, 16  ;;  %v6710_v10 = vrot.slane %v6708_v30, 4  ;;  %4240 = vrot.lane.b32.xlu1 %v4061_v22, %s9131_s20  ;;  %v4512_v30 = vpop.permute.xlu0 %4511  ;;  %vm14589_vm1 = vmmov %vm14588_vm12  ;;  %v5054_v17 = vsel %vm9662_vm6, %v5049_v52, %v12989_v0 }
 0x2d5   : > { %v6690_v57 = vrot.slane %v6688_v49, 4  ;;  %v13016_v5 = vrot.slane %v6714_v9, 5  ;;  %v6720_v14 = vrot.slane %v6718_v46, 4  ;;  %4527 = vrot.lane.b32.xlu0 %v4397_v6, %s9127_s16  ;;  %v13022_v47 = vrot.slane %v6684_v37, 5  ;;  %v4225_v48 = vpop.permute.xlu1 %4224  ;;  %4630 = vst.msk [vmem:[#allocation3 + $0xd0] sm:$0xf] %vm4603_vm13, %v4512_v30  ;;  %v7458_v33 = vpop.f32.mrf.mxu1  ;;  %vm14590_vm9 = vmmov %vm14589_vm1 }
 0x2d6   : > { %v13024_v63 = vrot.slane %v6694_v36, 5  ;;  %v6700_v38 = vrot.slane %v6698_v56, 4  ;;  %7519 = vmatmul.mubr.bf16.gmra.mxu1 %v8487_v7  ;;  %v5737_v29 = vrot.slane %v12777_v18, 4  ;;  %v5744_v54 = vor.u32 %v5742_v39, %v13005_v55  ;;  %4342 = vst.msk [vmem:[#allocation3 + $0xd8] sm:$0xf] %vm14589_vm1, %v4225_v48  ;;  %vm14591_vm10 = vmmov %vm14589_vm1 }
 0x2d7   : > { %v13029_v11 = vrot.slane %v5748_v43, 7  ;;  %v5751_v21 = vshll.u32 %v12991_v61, 16  ;;  %v3372_v26 = vshrl.u32 %v12828_v25, 16  ;;  %v4398_v59 = vld [vmem:[#allocation2 + $0x9c] sm:$0xf]  ;;  %v5059_v62 = vrot.slane %v5058_v35, 4  ;;  %v7459_v52 = vpop.f32.mrf.mxu1 }
 0x2d8   : > { %v13038_v18 = vrot.slane %v5061_v31, 5  ;;  %v6711_v12 = vor.u32 %v6710_v10, %v12953_v2  ;;  %v6691_v15 = vor.u32 %v6690_v57, %v13022_v47  ;;  %v6721_v1 = vor.u32 %v6720_v14, %v13016_v5  ;;  %4529 = vrot.lane.b32.xlu1 %v4398_v59, %s9127_s16  ;;  %v2993_v25 = vld [vmem:[#allocation2 + $0x98] sm:$0xf]  ;;  %v13051_v61 = vld [vmem:[%s14363_s4] ss:$0 sm:$0xff]  ;;  %v5238_v37 = vpop.permute.xlu0 %5237 }
 0x2d9   : > { %5253 = vrot.lane.b32.xlu0 %v5054_v17, %s9130_s19  ;;  %v13045_v24 = vrot.slane %v6681_v23, 4  ;;  %v6701_v50 = vor.u32 %v6700_v38, %v13024_v63  ;;  %v6744_v41 = vshll.u32 %v6380_v3, 16  ;;  %v6748_v0 = vshrl.u32 %v6380_v3, 16  ;;  %v4514_v49 = vpop.permute.xlu1 %4513  ;;  %v13058_v56 = vld [vmem:[#allocation2 + $0xa0] sm:$0xf]  ;;  %v7461_v31 = vpop.f32.mrf.mxu1 }
 0x2da   : > { %v7457_v42 = vadd.f32 %v13051_v61, %v7456_v60  ;;  %v5745_v9 = vsel %vm9473_vm14, %v5737_v29, %v5744_v54  ;;  %v5746_v46 = vrot.slane %v13005_v55, 4  ;;  %v5753_v36 = vor.u32 %v5751_v21, %v13029_v11  ;;  %5356 = vst.msk [vmem:[#allocation3 + $0xd0] sm:$0xf] %vm5329_vm0, %v5238_v37  ;;  %v2114_v34 = vld [vmem:[#allocation2 + $0x7c] sm:$0xf] }
 0x2db   : > { %4631 = vst.msk [vmem:[#allocation3 + $0xd8] sm:$0xf] %vm4603_vm13, %v4514_v49  ;;  %v5064_v39 = vsel %vm9662_vm6, %v5059_v62, %v13038_v18  ;;  %v3374_v20 = vrot.slane %v3372_v26, 4  ;;  %v3378_v44 = vshll.u32 %v2993_v25, 16  ;;  %v3382_v16 = vshrl.u32 %v2993_v25, 16 }
 0x2dc   : > { %v13065_v53 = vrot.slane %v6711_v12, 4  ;;  %v13067_v55 = vrot.slane %v6691_v15, 4  ;;  %v13069_v43 = vrot.slane %v6721_v1, 4  ;;  %v7460_v6 = vadd.f32 %v13051_v61, %v7459_v52  ;;  %5255 = vrot.lane.b32.xlu1 %v5064_v39, %s9130_s19  ;;  %v2115_v57 = vld [vmem:[#allocation2 + $0x80] sm:$0xf]  ;;  %v5916_v38 = vpop.permute.xlu0 %5915 }
 0x2dd   : > { %5931 = vrot.lane.b32.xlu0 %v5745_v9, %s9132_s11  ;;  %v13074_v22 = vrot.slane %v6701_v50, 4  ;;  %v13076_v7 = vrot.slane %v6744_v41, 5  ;;  %v13078_v35 = vrot.slane %v6748_v0, 4  ;;  %v4064_v10 = vshrl.u32 %v13058_v56, 16  ;;  %v5240_v3 = vpop.permute.xlu1 %5239  ;;  %v6090_v30 = vld [vmem:[#allocation2 + $0xa4] sm:$0xf] }
 0x2de   : > { %v7623_v14 = vmax.f32 %v7457_v42, 0.0  ;;  %v7624_v23 = vmax.f32 %v7460_v6, 0.0  ;;  %v5754_v48 = vsel %vm9473_vm14, %v5746_v46, %v5753_v36  ;;  %v2411_v29 = vshrl.u32 %v2114_v34, 16  ;;  %6034 = vst.msk [vmem:[#allocation3 + $0xd0] sm:$0xf] %vm6007_vm4, %v5916_v38 }
 0x2df   : > { %5357 = vst.msk [vmem:[#allocation3 + $0xd8] sm:$0xf] %vm5329_vm0, %v5240_v3  ;;  %v3375_v54 = vor.u32 %v3374_v20, %v12903_v45  ;;  %v3380_v21 = vrot.slane %v3378_v44, 5  ;;  %v3384_v26 = vrot.slane %v3382_v16, 4  ;;  %v13086_v60 = vld [vmem:[#allocation2 + $0xa4] sm:$0xf]  ;;  %v6751_v20 = vor.u32 %v13078_v35, %v13076_v7 }
 0x2e0   : > { %v2414_v17 = vshll.u32 %v2114_v34, 16  ;;  %v13088_v59 = vpack.c.bf16 %v7624_v23, %v7623_v14  ;;  %5933 = vrot.lane.b32.xlu1 %v5754_v48, %s9132_s11  ;;  %v13092_v62 = vld [vmem:[#allocation2 + $0x9c] sm:$0xf]  ;;  %v2409_v12 = vrot.slane %v12949_v4, 4  ;;  %v2413_v15 = vrot.slane %v2411_v29, 7  ;;  %v6205_v33 = vpop.permute.xlu0 %6204 }
 0x2e1   : > { %6220 = vrot.lane.b32.xlu0 %v6090_v30, %s9129_s18  ;;  %v2420_v1 = vshrl.u32 %v2115_v57, 16  ;;  %v5065_v25 = vshrl.u32 %v12999_v13, 16  ;;  %v2703_v45 = vld [vmem:[#allocation2 + $0x94] sm:$0xf]  ;;  %v13096_v50 = vrot.slane %v4064_v10, 7  ;;  %v4067_v41 = vshll.u32 %v13058_v56, 16  ;;  %v5918_v42 = vpop.permute.xlu1 %5917 }
 0x2e2   : > { %v2423_v0 = vshll.u32 %v2115_v57, 16  ;;  %v4073_v37 = vshrl.u32 %v13086_v60, 16  ;;  %v4689_v49 = vld [vmem:[#allocation2 + $0xa4] sm:$0xf]  ;;  %v2416_v9 = vor.u32 %v2414_v17, %v2413_v15  ;;  %v2418_v46 = vrot.slane %v2413_v15, 4 }
 0x2e3   : > { %v13100_v36 = vrot.slane %v2420_v1, 7  ;;  %v6378_v4 = vld [vmem:[#allocation2 + $0xa0] sm:$0xf]  ;;  %6323 = vst.msk [vmem:[#allocation3 + $0xd0] sm:$0xf] %vm6296_vm7, %v6205_v33  ;;  %v3376_v52 = vrot.slane %v3375_v54, 4  ;;  %v3385_v39 = vor.u32 %v3384_v26, %v3380_v21  ;;  %v4069_v30 = vor.u32 %v4067_v41, %v13096_v50 }
 0x2e4   : > { %6035 = vst.msk [vmem:[#allocation3 + $0xd8] sm:$0xf] %vm6007_vm4, %v5918_v42  ;;  %v6091_v13 = vld [vmem:[#allocation2 + $0xa8] sm:$0xf]  ;;  %v3388_v56 = vshll.u32 %v13092_v62, 16  ;;  %v6728_v44 = vshrl.u32 %v6378_v4, 16  ;;  %v2417_v34 = vsel %vm9473_vm14, %v2409_v12, %v2416_v9  ;;  %v2820_v38 = vpop.permute.xlu0 %2819 }
 0x2e5   : > { %v13107_v16 = vld [vmem:[#allocation2 + $0xac] sm:$0xf]  ;;  %2835 = vrot.lane.b32.xlu0 %v2703_v45, %s9125_s13  ;;  %6222 = vrot.lane.b32.xlu1 %v6091_v13, %s9129_s18  ;;  %v2425_v6 = vor.u32 %v2423_v0, %v13100_v36  ;;  %v4062_v31 = vrot.slane %v12937_v28, 4  ;;  %v5067_v10 = vrot.slane %v5065_v25, 4  ;;  %v5071_v57 = vshll.u32 %v4689_v49, 16 }
 0x2e6   : > { %v5075_v14 = vshrl.u32 %v4689_v49, 16  ;;  %v13115_v23 = vld [vmem:[#allocation2 + $0xac] sm:$0xf]  ;;  %2649 = vst.msk [vmem:[#allocation3 + $0xf0] sm:$0xf] %vm1834_vm2, %v2417_v34  ;;  %v6207_v3 = vpop.permute.xlu1 %6206  ;;  %v13119_v48 = vrot.slane %v4073_v37, 7  ;;  %v3381_v28 = vsel %vm9662_vm6, %v3376_v52, %v3380_v21  ;;  %v6697_v45 = vsel %vm9662_vm6, %v13067_v55, %v13024_v63 }
 0x2e7   : > { %v4076_v29 = vshll.u32 %v13086_v60, 16  ;;  %v2426_v54 = vsel %vm9473_vm14, %v2418_v46, %v2425_v6  ;;  %2936 = vst.msk [vmem:[#allocation3 + $0xe0] sm:$0xf] %vm2907_vm15, %v2820_v38  ;;  %v2704_v26 = vld [vmem:[#allocation2 + $0x98] sm:$0xf]  ;;  %v3386_v17 = vrot.slane %v3385_v39, 4  ;;  %v6687_v60 = vsel %vm9662_vm6, %v13045_v24, %v13022_v47 }
 0x2e8   : > { %6324 = vst.msk [vmem:[#allocation3 + $0xd8] sm:$0xf] %vm6296_vm7, %v6207_v3  ;;  %v13128_v12 = vrot.slane %v3388_v56, 5  ;;  %v6724_v15 = vshll.u32 %v6378_v4, 16  ;;  %v6754_v1 = vshll.u32 %v13107_v16, 16  ;;  %v5757_v21 = vshrl.u32 %v13115_v23, 16  ;;  %v3549_v42 = vpop.permute.xlu0 %3548 }
 0x2e9   : > { %2650 = vst.msk [vmem:[#allocation3 + $0xf8] sm:$0xf] %vm1834_vm2, %v2426_v54  ;;  %3564 = vrot.lane.b32.xlu0 %v3381_v28, %s9128_s17  ;;  %2837 = vrot.lane.b32.xlu1 %v2704_v26, %s9125_s13  ;;  %v13139_v25 = vld [vmem:[#allocation2 + $0xb0] sm:$0xf]  ;;  %6954 = vst.msk [vmem:[#allocation3 + $0xe4] sm:$0xf] %vm1834_vm2, %v6687_v60  ;;  %v5068_v47 = vor.u32 %v5067_v10, %v13038_v18  ;;  %v4070_v49 = vsel %vm9473_vm14, %v4062_v31, %v4069_v30 }
 0x2ea   : > { %v13147_v24 = vrot.slane %v5071_v57, 5  ;;  %v5077_v41 = vrot.slane %v5075_v14, 4  ;;  %6955 = vst.msk [vmem:[#allocation3 + $0xec] sm:$0xf] %vm1834_vm2, %v6697_v45  ;;  %v13151_v0 = vadd.s32 376, %v14544_v58  ;;  %v13153_v33 = vrot.slane %v6728_v44, 4  ;;  %v2822_v37 = vpop.permute.xlu1 %2821 }
 0x2eb   : > { %v4071_v63 = vrot.slane %v13096_v50, 4  ;;  %v4078_v55 = vor.u32 %v4076_v29, %v13119_v48  ;;  %3665 = vst.msk [vmem:[#allocation3 + $0xe0] sm:$0xf] %vm3636_vm5, %v3549_v42  ;;  %v3391_v18 = vsel %vm9662_vm6, %v3386_v17, %v13128_v12  ;;  %v13164_v9 = vld [vmem:[#allocation2 + $0xa8] sm:$0xf]  ;;  %v5766_v46 = vshrl.u32 %v13139_v25, 16 }
 0x2ec   : > { %2937 = vst.msk [vmem:[#allocation3 + $0xe8] sm:$0xf] %vm2907_vm15, %v2822_v37  ;;  %v13168_v4 = vmul.u32.u64.low 2863311531, %v13151_v0  ;;  %v13169_v13 = vmul.u32.u64.high 2863311531, %v13151_v0, %v13168_v4  ;;  %v13171_v52 = vrot.slane %v6724_v15, 5  ;;  %v6758_v50 = vshrl.u32 %v13107_v16, 16  ;;  %v4227_v38 = vpop.permute.xlu0 %4226  ;;  %v8823_v37 = vpop.f32.mrf.mxu0 }
 0x2ed   : > { %4242 = vrot.lane.b32.xlu0 %v4070_v49, %s9131_s20  ;;  %3566 = vrot.lane.b32.xlu1 %v3391_v18, %s9128_s17  ;;  %v13176_v39 = vrot.slane %v5757_v21, 7  ;;  %v5760_v56 = vshll.u32 %v13115_v23, 16  ;;  %v13179_v44 = vrot.slane %v6754_v1, 5  ;;  %v4399_v34 = vld [vmem:[#allocation2 + $0xa0] sm:$0xf]  ;;  %v5069_v6 = vrot.slane %v5068_v47, 4 }
 0x2ee   : > { %v5078_v31 = vor.u32 %v5077_v41, %v13147_v24  ;;  %v13183_v10 = vadd.s32 360, %v14544_v58  ;;  %v6731_v57 = vor.u32 %v13153_v33, %v13171_v52  ;;  %v3392_v14 = vshrl.u32 %v13092_v62, 16  ;;  %v3551_v3 = vpop.permute.xlu1 %3550  ;;  %v7000_v23 = vld [vmem:[#allocation3 + $0xd0] sm:$0xff]  ;;  %4343 = vst.msk [vmem:[#allocation3 + $0xe0] sm:$0xf] %vm14590_vm9, %v4227_v38 }
 0x2ef   : > { %v4079_v30 = vsel %vm9473_vm14, %v4071_v63, %v4078_v55  ;;  %v7001_v29 = vld [vmem:[#allocation3 + $0xd8] sm:$0xff]  ;;  %v5081_v28 = vshll.u32 %v13164_v9, 16  ;;  %3666 = vst.msk [vmem:[#allocation3 + $0xe8] sm:$0xf] %vm3636_vm5, %v3551_v3  ;;  %v13193_v26 = vrot.slane %v5766_v46, 7  ;;  %v5769_v17 = vshll.u32 %v13139_v25, 16 }
 0x2f0   : > { %v9081_v54 = vld [vmem:[#allocation3 + $0xd4] ss:$8 sps:$4 sm:$0xff]   ;;  %v8489_v58 = vcombine.low %v7000_v23, %v7001_v29  ;;  %v905_v62 = vshrl.u32 %v13169_v13, 4  ;;  %v2116_v60 = vld [vmem:[#allocation2 + $0x84] sm:$0xf]  ;;  %v5755_v15 = vrot.slane %v13029_v11, 4  ;;  %v5762_v1 = vor.u32 %v5760_v56, %v13176_v39  ;;  %v1726_v29 = vpop.f32.mrf.mxu0 }
 0x2f1   : > { %4531 = vrot.lane.b32.xlu0 %v4399_v34, %s9127_s16  ;;  %4244 = vrot.lane.b32.xlu1 %v4079_v30, %s9131_s20  ;;  %v13202_v21 = vmul.u32.u64.low 2863311531, %v13183_v10  ;;  %v13203_v45 = vmul.u32.u64.high 2863311531, %v13183_v10, %v13202_v21  ;;  %v5074_v25 = vsel %vm9662_vm6, %v5069_v6, %v13147_v24  ;;  %v5079_v47 = vrot.slane %v5078_v31, 4  ;;  %v4516_v49 = vpop.permute.xlu0 %4515  ;;  %v9113_v18 = vld [vmem:[%s14361_s2] ss:$0 sm:$0xff] }
 0x2f2   : > { %8533 = vmatprep.mubr.msk.bf16.mxu1 %vm7317_vm8, %v9081_v54  ;;  %v5085_v41 = vshrl.u32 %v13164_v9, 16  ;;  %v906_v42 = vmul.u32 24, %v905_v62  ;;  %v4229_v63 = vpop.permute.xlu1 %4228  ;;  %v13210_v11 = vrot.slane %v5081_v28, 5  ;;  %v5764_v55 = vrot.slane %v13176_v39, 4  ;;  %4632 = vst.msk [vmem:[#allocation3 + $0xe0] sm:$0xf] %vm4603_vm13, %v4516_v49 }
 0x2f3   : > { %7527 = vmatmul.mubr.bf16.gmra.mxu1 %v8489_v58  ;;  %v1735_v46 = vadd.f32 %v9113_v18, %v8823_v37  ;;  %v2429_v4 = vshrl.u32 %v2116_v60, 16  ;;  %4344 = vst.msk [vmem:[#allocation3 + $0xe8] sm:$0xf] %vm14591_vm10, %v4229_v63  ;;  %v4400_v24 = vld [vmem:[#allocation2 + $0xa4] sm:$0xf]  ;;  %v5771_v13 = vor.u32 %v5769_v17, %v13193_v26  ;;  %v13219_v34 = vrot.slane %v3392_v14, 4 }
 0x2f4   : > { %v2995_v56 = vld [vmem:[#allocation2 + $0xa0] sm:$0xf]  ;;  %v907_v6 = vsub.s32 %v13151_v0, %v906_v42  ;;  %v2432_v31 = vshll.u32 %v2116_v60, 16  ;;  %v5763_v39 = vsel %vm9473_vm14, %v5755_v15, %v5762_v1  ;;  %v883_v38 = vshrl.u32 %v13203_v45, 4  ;;  %v13233_v23 = vld [vmem:[#allocation2 + $0xa8] sm:$0xf]  ;;  %v7464_v15 = vpop.f32.mrf.mxu1 }
 0x2f5   : > { %5257 = vrot.lane.b32.xlu0 %v5074_v25, %s9130_s19  ;;  %4533 = vrot.lane.b32.xlu1 %v4400_v24, %s9127_s16  ;;  %v2427_v3 = vrot.slane %v13100_v36, 4  ;;  %v13228_v30 = vrot.slane %v2429_v4, 7  ;;  %v5084_v14 = vsel %vm9662_vm6, %v5079_v47, %v13210_v11  ;;  %v5242_v54 = vpop.permute.xlu0 %5241  ;;  %v3398_v58 = vshll.u32 %v2995_v56, 16  ;;  %v2117_v60 = vld [vmem:[#allocation2 + $0x88] sm:$0xf] }
 0x2f6   : > { %vm957_vm11 = vcmp.ne.s32.totalorder %v907_v6, 0  ;;  %vm1005_vm3 = vcmp.lt.s32.totalorder %v907_v6, 0  ;;  %v1101_v0 = vadd.s32 24, %v907_v6  ;;  %v4518_v28 = vpop.permute.xlu1 %4517  ;;  %v1785_v17 = vmax.f32 %v1735_v46, 0.0  ;;  %5358 = vst.msk [vmem:[#allocation3 + $0xe0] sm:$0xf] %vm5329_vm0, %v5242_v54  ;;  %v7466_v49 = vpop.f32.mrf.mxu1 }
 0x2f7   : > { %vm1053_vm12 = vmand %vm1005_vm3, %vm957_vm11  ;;  %v884_v62 = vmul.u32 24, %v883_v38  ;;  %v2434_v36 = vor.u32 %v2432_v31, %v13228_v30  ;;  %4633 = vst.msk [vmem:[#allocation3 + $0xe8] sm:$0xf] %vm4603_vm13, %v4518_v28  ;;  %v5772_v1 = vsel %vm9473_vm14, %v5764_v55, %v5771_v13  ;;  %v3395_v21 = vor.u32 %v13219_v34, %v13128_v12  ;;  %v13337_v33 = vld [vmem:[#allocation2 + $0xb0] sm:$0xf] }
 0x2f8   : > { %v3402_v45 = vshrl.u32 %v2995_v56, 16  ;;  %v1149_v25 = vsel %vm1053_vm12, %v1101_v0, %v907_v6  ;;  %v1727_v42 = vadd.f32 %v9113_v18, %v1726_v29  ;;  %v4082_v63 = vshrl.u32 %v13233_v23, 16  ;;  %v6092_v56 = vld [vmem:[#allocation2 + $0xac] sm:$0xf] }
 0x2f9   : > { %5935 = vrot.lane.b32.xlu0 %v5763_v39, %s9132_s11  ;;  %5259 = vrot.lane.b32.xlu1 %v5084_v14, %s9130_s19  ;;  %vm1197_vm1 = vcmp.lt.s32.totalorder %v1149_v25, 16  ;;  %v885_v47 = vsub.s32 %v13183_v10, %v884_v62  ;;  %v2435_v37 = vsel %vm9473_vm14, %v2427_v3, %v2434_v36  ;;  %v2438_v12 = vshrl.u32 %v2117_v60, 16  ;;  %v5920_v24 = vpop.permute.xlu0 %5919  ;;  %v7467_v10 = vpop.f32.mrf.mxu1  ;;  %v13253_v6 = vld [vmem:[#allocation2 + $0xac] sm:$0xf] }
 0x2fa   : > { %v8358_v55 = vsel %vm1197_vm1, 1.0, %v14473_v8  ;;  %2651 = vst.msk [vmem:[#allocation3 + $0x100] sm:$0xf] %vm1834_vm2, %v2435_v37  ;;  %v2441_v46 = vshll.u32 %v2117_v60, 16  ;;  %v7465_v4 = vadd.f32 %v13051_v61, %v7464_v15  ;;  %v5244_v13 = vpop.permute.xlu1 %5243  ;;  %v3404_v18 = vrot.slane %v3402_v45, 4 }
 0x2fb   : > { %v1833_v34 = vmul.f32 %v8358_v55, %v1785_v17  ;;  %vm955_vm9 = vcmp.ne.s32.totalorder %v885_v47, 0  ;;  %vm1003_vm10 = vcmp.lt.s32.totalorder %v885_v47, 0  ;;  %6036 = vst.msk [vmem:[#allocation3 + $0xe0] sm:$0xf] %vm6007_vm4, %v5920_v24  ;;  %v1099_v39 = vadd.s32 24, %v885_v47  ;;  %v7469_v28 = vpop.f32.mrf.mxu1 }
 0x2fc   : > { %5359 = vst.msk [vmem:[#allocation3 + $0xe8] sm:$0xf] %vm5329_vm0, %v5244_v13  ;;  %vm13255_vm11 = vmand %vm1003_vm10, %vm955_vm9  ;;  %v2436_v38 = vrot.slane %v13228_v30, 4  ;;  %v13260_v3 = vrot.slane %v2438_v12, 7  ;;  %v7468_v14 = vadd.f32 %v13051_v61, %v7467_v10  ;;  %v3400_v0 = vrot.slane %v3398_v58, 5 }
 0x2fd   : > { %6224 = vrot.lane.b32.xlu0 %v6092_v56, %s9129_s18  ;;  %5937 = vrot.lane.b32.xlu1 %v5772_v1, %s9132_s11  ;;  %v8668_v29 = vpack.c.bf16 %v1833_v34, %v1833_v34  ;;  %v1783_v54 = vmax.f32 %v1727_v42, 0.0  ;;  %v3396_v17 = vrot.slane %v3395_v21, 4  ;;  %v4085_v62 = vshll.u32 %v13233_v23, 16  ;;  %v6209_v45 = vpop.permute.xlu0 %6208  ;;  %v13269_v37 = vld [vmem:[#allocation2 + $0xa4] sm:$0xf] }
 0x2fe   : > { %v1147_v36 = vsel %vm13255_vm11, %v1099_v39, %v885_v47  ;;  %v2443_v30 = vor.u32 %v2441_v46, %v13260_v3  ;;  %v7625_v60 = vmax.f32 %v7465_v4, 0.0  ;;  %v7626_v15 = vmax.f32 %v7468_v14, 0.0  ;;  %v5922_v25 = vpop.permute.xlu1 %5921  ;;  %6325 = vst.msk [vmem:[#allocation3 + $0xe0] sm:$0xf] %vm6296_vm7, %v6209_v45  ;;  %v2705_v23 = vld [vmem:[#allocation2 + $0x9c] sm:$0xf] }
 0x2ff   : > { %v4091_v1 = vshrl.u32 %v13253_v6, 16  ;;  %2082 = vst.msk [vmem:[#allocation2 + $0xcc] sm:$0xf] %vm1834_vm2, %v8668_v29  ;;  %vm1195_vm3 = vcmp.lt.s32.totalorder %v1147_v36, 16  ;;  %v6093_v58 = vld [vmem:[#allocation2 + $0xb0] sm:$0xf]  ;;  %v3405_v47 = vor.u32 %v3404_v18, %v3400_v0  ;;  %v6717_v9 = vsel %vm9662_vm6, %v13065_v53, %v13016_v5 }
 0x300   : > { %6037 = vst.msk [vmem:[#allocation3 + $0xe8] sm:$0xf] %vm6007_vm4, %v5922_v25  ;;  %v13275_v21 = vrot.slane %v4082_v63, 7  ;;  %v8356_v42 = vsel %vm1195_vm3, 1.0, %v14473_v8  ;;  %v2444_v49 = vsel %vm9473_vm14, %v2436_v38, %v2443_v30  ;;  %v6760_v55 = vrot.slane %v6758_v50, 4 }
 0x301   : > { %v13282_v12 = vpack.c.bf16 %v7626_v15, %v7625_v60  ;;  %2839 = vrot.lane.b32.xlu0 %v2705_v23, %s9125_s13  ;;  %6226 = vrot.lane.b32.xlu1 %v6093_v58, %s9129_s18  ;;  %v4080_v46 = vrot.slane %v13119_v48, 4  ;;  %v4691_v4 = vld [vmem:[#allocation2 + $0xac] sm:$0xf]  ;;  %v1831_v63 = vmul.f32 %v8356_v42, %v1783_v54  ;;  %2652 = vst.msk [vmem:[#allocation3 + $0x108] sm:$0xf] %vm1834_vm2, %v2444_v49  ;;  %v3408_v13 = vshll.u32 %v13269_v37, 16  ;;  %v2824_v48 = vpop.permute.xlu0 %2823 }
 0x302   : > { %v6379_v24 = vld [vmem:[#allocation2 + $0xa4] sm:$0xf]  ;;  %v3401_v8 = vsel %vm9662_vm6, %v3396_v17, %v3400_v0  ;;  %v5087_v16 = vrot.slane %v5085_v41, 4  ;;  %v6707_v50 = vsel %vm9662_vm6, %v13074_v22, %v12953_v2  ;;  %v13297_v56 = vld [vmem:[#allocation2 + $0xb8] sm:$0xf]  ;;  %v6211_v34 = vpop.permute.xlu1 %6210  ;;  %v13299_v18 = vrot.slane %v4091_v1, 7 }
 0x303   : > { %v2706_v10 = vld [vmem:[#allocation2 + $0xa0] sm:$0xf]  ;;  %v4094_v31 = vshll.u32 %v13253_v6, 16  ;;  %v8666_v39 = vpack.c.bf16 %v1831_v63, %v1831_v63  ;;  %6956 = vst.msk [vmem:[#allocation3 + $0xf4] sm:$0xf] %vm1834_vm2, %v6707_v50  ;;  %v4087_v2 = vor.u32 %v4085_v62, %v13275_v21  ;;  %v3406_v22 = vrot.slane %v3405_v47, 4 }
 0x304   : > { %2938 = vst.msk [vmem:[#allocation3 + $0xf0] sm:$0xf] %vm2907_vm15, %v2824_v48  ;;  %v5091_v41 = vshll.u32 %v4691_v4, 16  ;;  %v5095_v38 = vshrl.u32 %v4691_v4, 16  ;;  %v13310_v14 = vld [vmem:[#allocation2 + $0xb4] sm:$0xf]  ;;  %v6761_v5 = vor.u32 %v6760_v55, %v13179_v44 }
 0x305   : > { %6326 = vst.msk [vmem:[#allocation3 + $0xe8] sm:$0xf] %vm6296_vm7, %v6211_v34  ;;  %v13316_v6 = vrot.slane %v6751_v20, 4  ;;  %v6734_v53 = vshll.u32 %v6379_v24, 16  ;;  %v6738_v0 = vshrl.u32 %v6379_v24, 16  ;;  %3568 = vrot.lane.b32.xlu0 %v3401_v8, %s9128_s17  ;;  %2841 = vrot.lane.b32.xlu1 %v2706_v10, %s9125_s13  ;;  %v13325_v29 = vrot.slane %v6731_v57, 4  ;;  %v3553_v17 = vpop.permute.xlu0 %3552  ;;  %v7472_v10 = vpop.f32.mrf.mxu1 }
 0x306   : > { %6957 = vst.msk [vmem:[#allocation3 + $0xfc] sm:$0xf] %vm1834_vm2, %v6717_v9  ;;  %2080 = vst.msk [vmem:[#allocation2 + $0xc4] sm:$0xf] %vm1834_vm2, %v8666_v39  ;;  %v6784_v54 = vshll.u32 %v13297_v56, 16  ;;  %v13328_v35 = vrot.slane %v3408_v13, 5  ;;  %v5088_v20 = vor.u32 %v5087_v16, %v13210_v11  ;;  %v2826_v62 = vpop.permute.xlu1 %2825  ;;  %v4096_v30 = vor.u32 %v4094_v31, %v13299_v18 }
 0x307   : > { %v6788_v28 = vshrl.u32 %v13297_v56, 16  ;;  %v4089_v36 = vrot.slane %v13275_v21, 4  ;;  %v5775_v60 = vshrl.u32 %v13310_v14, 16  ;;  %v13335_v15 = vld [vmem:[#allocation2 + $0xb0] sm:$0xf]  ;;  %v4088_v57 = vsel %vm9473_vm14, %v4080_v46, %v4087_v2  ;;  %v7002_v16 = vld [vmem:[#allocation3 + $0xe0] sm:$0xff] }
 0x308   : > { %3667 = vst.msk [vmem:[#allocation3 + $0xf0] sm:$0xf] %vm3636_vm5, %v3553_v17  ;;  %v3411_v11 = vsel %vm9662_vm6, %v3406_v22, %v13328_v35  ;;  %v5093_v45 = vrot.slane %v5091_v41, 5  ;;  %v5097_v25 = vrot.slane %v5095_v38, 4  ;;  %v2118_v1 = vld [vmem:[#allocation2 + $0x8c] sm:$0xf] }
 0x309   : > { %2939 = vst.msk [vmem:[#allocation3 + $0xf8] sm:$0xf] %vm2907_vm15, %v2826_v62  ;;  %v13346_v23 = vrot.slane %v6761_v5, 4  ;;  %v13348_v58 = vrot.slane %v6734_v53, 5  ;;  %v13350_v21 = vrot.slane %v6738_v0, 4  ;;  %v6768_v47 = vshrl.u32 %v13337_v33, 16  ;;  %4246 = vrot.lane.b32.xlu0 %v4088_v57, %s9131_s20  ;;  %3570 = vrot.lane.b32.xlu1 %v3411_v11, %s9128_s17  ;;  %v7474_v0 = vpop.f32.mrf.mxu1 }
 0x30a   : > { %v13355_v42 = vld [vmem:[#allocation2 + $0xb8] sm:$0xf]  ;;  %v13357_v49 = vrot.slane %v6784_v54, 5  ;;  %v13359_v55 = vld [vmem:[#allocation2 + $0xbc] sm:$0xf]  ;;  %v5089_v46 = vrot.slane %v5088_v20, 4  ;;  %v4231_v24 = vpop.permute.xlu0 %4230  ;;  %v3555_v8 = vpop.permute.xlu1 %3554  ;;  %v4097_v13 = vsel %vm9473_vm14, %v4089_v36, %v4096_v30  ;;  %v5098_v9 = vor.u32 %v5097_v25, %v5093_v45 }
 0x30b   : > { %v5778_v4 = vshll.u32 %v13310_v14, 16  ;;  %v5101_v63 = vshll.u32 %v13335_v15, 16  ;;  %v9083_v56 = vld [vmem:[#allocation3 + $0xe4] ss:$8 sps:$4 sm:$0xff]   ;;  %v13365_v48 = vrot.slane %v5775_v60, 7  ;;  %v2447_v34 = vshrl.u32 %v2118_v1, 16 }
 0x30c   : > { %v7003_v50 = vld [vmem:[#allocation3 + $0xe8] sm:$0xff]  ;;  %vm14594_vm12 = vcmask 519552   ;;  %3668 = vst.msk [vmem:[#allocation3 + $0xf8] sm:$0xf] %vm3636_vm5, %v3555_v8  ;;  %v5784_v2 = vshrl.u32 %v13355_v42, 16  ;;  %v2450_v22 = vshll.u32 %v2118_v1, 16  ;;  %8534 = vmatprep.mubr.msk.bf16.mxu1 %vm7317_vm8, %v9083_v56  ;;  %v7473_v62 = vadd.f32 %v13051_v61, %v7472_v10 }
 0x30d   : > { %4345 = vst.msk [vmem:[#allocation3 + $0xf0] sm:$0xf] %vm14594_vm12, %v4231_v24  ;;  %v4401_v31 = vld [vmem:[#allocation2 + $0xa8] sm:$0xf]  ;;  %v8491_v39 = vcombine.low %v7002_v16, %v7003_v50  ;;  %v13370_v41 = vrot.slane %v6788_v28, 4  ;;  %v6764_v38 = vshll.u32 %v13337_v33, 16  ;;  %4248 = vrot.lane.b32.xlu1 %v4097_v13, %s9131_s20  ;;  %v5094_v60 = vsel %vm9662_vm6, %v5089_v46, %v5093_v45  ;;  %vm14595_vm1 = vmmov %vm14594_vm12 }
 0x30e   : > { %v13373_v14 = vrot.slane %v6768_v47, 4  ;;  %v6794_v5 = vshll.u32 %v13359_v55, 16  ;;  %4535 = vrot.lane.b32.xlu0 %v4401_v31, %s9127_s16  ;;  %v3412_v53 = vshrl.u32 %v13269_v37, 16  ;;  %v5773_v54 = vrot.slane %v13193_v26, 4  ;;  %v2119_v17 = vld [vmem:[#allocation2 + $0x90] sm:$0xf]  ;;  %v4520_v36 = vpop.permute.xlu0 %4519  ;;  %v4233_v30 = vpop.permute.xlu1 %4232  ;;  %vm14596_vm9 = vmmov %vm14595_vm1 }
 0x30f   : > { %v2445_v20 = vrot.slane %v13260_v3, 4  ;;  %v13382_v28 = vrot.slane %v2447_v34, 7  ;;  %7535 = vmatmul.mubr.bf16.gmra.mxu1 %v8491_v39  ;;  %v5780_v37 = vor.u32 %v5778_v4, %v13365_v48  ;;  %v13388_v33 = vrot.slane %v5101_v63, 5  ;;  %v2997_v57 = vld [vmem:[#allocation2 + $0xa8] sm:$0xf]  ;;  %v7475_v26 = vpop.f32.mrf.mxu1  ;;  %vm14597_vm10 = vmmov %vm14595_vm1 }
 0x310   : > { %4634 = vst.msk [vmem:[#allocation3 + $0xf0] sm:$0xf] %vm4603_vm13, %v4520_v36  ;;  %v4402_v3 = vld [vmem:[#allocation2 + $0xac] sm:$0xf]  ;;  %v5099_v11 = vrot.slane %v5098_v9, 4  ;;  %v13392_v25 = vrot.slane %v5784_v2, 7  ;;  %v7476_v46 = vadd.f32 %v13051_v61, %v7475_v26  ;;  %v6741_v0 = vor.u32 %v13350_v21, %v13348_v58  ;;  %vm14598_vm11 = vmmov %vm14595_vm1 }
 0x311   : > { %4346 = vst.msk [vmem:[#allocation3 + $0xf8] sm:$0xf] %vm14595_vm1, %v4233_v30  ;;  %v5787_v1 = vshll.u32 %v13355_v42, 16  ;;  %v2452_v47 = vor.u32 %v2450_v22, %v13382_v28  ;;  %v6798_v45 = vshrl.u32 %v13359_v55, 16  ;;  %4537 = vrot.lane.b32.xlu1 %v4402_v3, %s9127_s16  ;;  %v2456_v4 = vshrl.u32 %v2119_v17, 16  ;;  %v7477_v24 = vpop.f32.mrf.mxu1  ;;  %v9093_v30 = vld [vmem:[%s14364_s5 + $0x8] sm:$0xff]   ;;  %vm14599_vm3 = vmmov %vm14595_vm1 }
 0x312   : > { %5261 = vrot.lane.b32.xlu0 %v5094_v60, %s9130_s19  ;;  %v2459_v63 = vshll.u32 %v2119_v17, 16  ;;  %v13400_v8 = vrot.slane %v3412_v53, 4  ;;  %v3418_v13 = vshll.u32 %v2997_v57, 16  ;;  %v3422_v16 = vshrl.u32 %v2997_v57, 16  ;;  %v5246_v34 = vpop.permute.xlu0 %5245  ;;  %v4522_v10 = vpop.permute.xlu1 %4521  ;;  %v13404_v31 = vld [vmem:[#allocation2 + $0xb0] sm:$0xf]  ;;  %8824 = vmatprep.subr.bf16.mxu0 %v9093_v30  ;;  %vm14600_vm12 = vmmov %vm14595_vm1 }
 0x313   : > { %v2453_v42 = vsel %vm9473_vm14, %v2445_v20, %v2452_v47  ;;  %v7627_v50 = vmax.f32 %v7473_v62, 0.0  ;;  %v7628_v56 = vmax.f32 %v7476_v46, 0.0  ;;  %v2454_v61 = vrot.slane %v13382_v28, 4  ;;  %5360 = vst.msk [vmem:[#allocation3 + $0xf0] sm:$0xf] %vm5329_vm0, %v5246_v34  ;;  %8825 = vmatpush3.bf16.msra.mxu0 %v9093_v30 }
 0x314   : > { %2653 = vst.msk [vmem:[#allocation3 + $0x110] sm:$0xf] %vm1834_vm2, %v2453_v42  ;;  %v13408_v39 = vrot.slane %v2456_v4, 7  ;;  %v5781_v9 = vsel %vm9473_vm14, %v5773_v54, %v5780_v37  ;;  %v5104_v2 = vsel %vm9662_vm6, %v5099_v11, %v13388_v33  ;;  %v5782_v22 = vrot.slane %v13365_v48, 4  ;;  %v6383_v28 = vld [vmem:[#allocation2 + $0xb4] sm:$0xf] }
 0x315   : > { %4635 = vst.msk [vmem:[#allocation3 + $0xf8] sm:$0xf] %vm4603_vm13, %v4522_v10  ;;  %v5789_v53 = vor.u32 %v5787_v1, %v13392_v25  ;;  %v13421_v20 = vrot.slane %v6764_v38, 5  ;;  %v13423_v17 = vpack.c.bf16 %v7628_v56, %v7627_v50  ;;  %5263 = vrot.lane.b32.xlu1 %v5104_v2, %s9130_s19  ;;  %v6791_v62 = vor.u32 %v13370_v41, %v13357_v49  ;;  %v13430_v48 = vld [vmem:[#allocation2 + $0xc8] sm:$0xf] }
 0x316   : > { %5939 = vrot.lane.b32.xlu0 %v5781_v9, %s9132_s11  ;;  %v2461_v54 = vor.u32 %v2459_v63, %v13408_v39  ;;  %v13432_v36 = vrot.slane %v3418_v13, 5  ;;  %v4100_v21 = vshrl.u32 %v13404_v31, 16  ;;  %v3424_v38 = vrot.slane %v3422_v16, 4  ;;  %v5924_v37 = vpop.permute.xlu0 %5923  ;;  %v5248_v57 = vpop.permute.xlu1 %5247  ;;  %v13442_v41 = vld [vmem:[#allocation2 + $0xac] sm:$0xf] }
 0x317   : > { %v6771_v60 = vor.u32 %v13373_v14, %v13421_v20  ;;  %v3415_v26 = vor.u32 %v13400_v8, %v13328_v35  ;;  %v6727_v11 = vsel %vm9662_vm6, %v13069_v43, %v13171_v52  ;;  %v13452_v1 = vrot.slane %v6794_v5, 5  ;;  %6038 = vst.msk [vmem:[#allocation3 + $0xf0] sm:$0xf] %vm6007_vm4, %v5924_v37  ;;  %v6094_v35 = vld [vmem:[#allocation2 + $0xb4] sm:$0xf] }
 0x318   : > { %v2462_v3 = vsel %vm9473_vm14, %v2454_v61, %v2461_v54  ;;  %v13454_v14 = vrot.slane %v6798_v45, 4  ;;  %5361 = vst.msk [vmem:[#allocation3 + $0xf8] sm:$0xf] %vm5329_vm0, %v5248_v57  ;;  %v5790_v47 = vsel %vm9473_vm14, %v5782_v22, %v5789_v53  ;;  %v6737_v43 = vsel %vm9662_vm6, %v13325_v29, %v13348_v58  ;;  %v13471_v46 = vld [vmem:[#allocation2 + $0xb4] sm:$0xf] }
 0x319   : > { %2654 = vst.msk [vmem:[#allocation3 + $0x118] sm:$0xf] %vm1834_vm2, %v2462_v3  ;;  %6958 = vst.msk [vmem:[#allocation3 + $0x104] sm:$0xf] %vm1834_vm2, %v6727_v11  ;;  %v13466_v52 = vrot.slane %v6741_v0, 4  ;;  %v6774_v55 = vshll.u32 %v6383_v28, 16  ;;  %5941 = vrot.lane.b32.xlu1 %v5790_v47, %s9132_s11  ;;  %v3425_v58 = vor.u32 %v3424_v38, %v13432_v36 }
 0x31a   : > { %v6778_v5 = vshrl.u32 %v6383_v28, 16  ;;  %v6824_v45 = vshll.u32 %v13430_v48, 16  ;;  %6228 = vrot.lane.b32.xlu0 %v6094_v35, %s9129_s18  ;;  %6959 = vst.msk [vmem:[#allocation3 + $0x10c] sm:$0xf] %vm1834_vm2, %v6737_v43  ;;  %v13474_v4 = vrot.slane %v4100_v21, 7  ;;  %v4103_v29 = vshll.u32 %v13404_v31, 16  ;;  %v6213_v8 = vpop.permute.xlu0 %6212  ;;  %v5926_v13 = vpop.permute.xlu1 %5925 }
 0x31b   : > { %v3428_v63 = vshll.u32 %v13442_v41, 16  ;;  %v5105_v24 = vshrl.u32 %v13335_v15, 16  ;;  %v2707_v16 = vld [vmem:[#allocation2 + $0xa4] sm:$0xf]  ;;  %v6095_v42 = vld [vmem:[#allocation2 + $0xb8] sm:$0xf]  ;;  %v6801_v10 = vor.u32 %v13454_v14, %v13452_v1 }
 0x31c   : > { %v3416_v50 = vrot.slane %v3415_v26, 4  ;;  %v13480_v56 = vrot.slane %v6791_v62, 4  ;;  %v13482_v34 = vrot.slane %v6771_v60, 4  ;;  %6327 = vst.msk [vmem:[#allocation3 + $0xf0] sm:$0xf] %vm6296_vm7, %v6213_v8  ;;  %v4109_v31 = vshrl.u32 %v13471_v46, 16 }
 0x31d   : > { %6039 = vst.msk [vmem:[#allocation3 + $0xf8] sm:$0xf] %vm6007_vm4, %v5926_v13  ;;  %v2120_v61 = vld [vmem:[#allocation2 + $0x94] sm:$0xf]  ;;  %v9096_v15 = vld [vmem:[%s14364_s5] sm:$0xff]   ;;  %v13492_v9 = vrot.slane %v6774_v55, 5  ;;  %6230 = vrot.lane.b32.xlu1 %v6095_v42, %s9129_s18  ;;  %v4105_v54 = vor.u32 %v4103_v29, %v13474_v4 }
 0x31e   : > { %v13494_v2 = vrot.slane %v6778_v5, 4  ;;  %v13496_v22 = vrot.slane %v6824_v45, 5  ;;  %v6828_v53 = vshrl.u32 %v13430_v48, 16  ;;  %2843 = vrot.lane.b32.xlu0 %v2707_v16, %s9125_s13  ;;  %v4693_v0 = vld [vmem:[#allocation2 + $0xb4] sm:$0xf]  ;;  %v4098_v28 = vrot.slane %v13299_v18, 4  ;;  %8826 = vmatprep.subr.bf16.mxu0 %v9096_v15  ;;  %v2828_v30 = vpop.permute.xlu0 %2827  ;;  %v6215_v60 = vpop.permute.xlu1 %6214 }
 0x31f   : > { %v3426_v62 = vrot.slane %v3425_v58, 4  ;;  %v13503_v21 = vrot.slane %v3428_v63, 5  ;;  %v2121_v38 = vld [vmem:[#allocation2 + $0x98] sm:$0xf]  ;;  %v3421_v48 = vsel %vm9662_vm6, %v3416_v50, %v13432_v36  ;;  %v2708_v37 = vld [vmem:[#allocation2 + $0xa8] sm:$0xf]  ;;  %8827 = vmatpush3.bf16.msra.mxu0 %v9096_v15 }
 0x320   : > { %v5107_v57 = vrot.slane %v5105_v24, 4  ;;  %v2465_v26 = vshrl.u32 %v2120_v61, 16  ;;  %v2468_v3 = vshll.u32 %v2120_v61, 16  ;;  %2940 = vst.msk [vmem:[#allocation3 + $0x100] sm:$0xf] %vm2907_vm15, %v2828_v30  ;;  %v13510_v18 = vrot.slane %v4109_v31, 7  ;;  %v7480_v61 = vpop.f32.mrf.mxu1 }
 0x321   : > { %6328 = vst.msk [vmem:[#allocation3 + $0xf8] sm:$0xf] %vm6296_vm7, %v6215_v60  ;;  %v4112_v11 = vshll.u32 %v13471_v46, 16  ;;  %v5111_v35 = vshll.u32 %v4693_v0, 16  ;;  %v5115_v47 = vshrl.u32 %v4693_v0, 16  ;;  %v13515_v55 = vrot.slane %v6828_v53, 4  ;;  %2845 = vrot.lane.b32.xlu1 %v2708_v37, %s9125_s13 }
 0x322   : > { %v13513_v43 = vld [vmem:[#allocation2 + $0xbc] sm:$0xf]  ;;  %3572 = vrot.lane.b32.xlu0 %v3421_v48, %s9128_s17  ;;  %v2463_v36 = vrot.slane %v13408_v39, 4  ;;  %v2467_v5 = vrot.slane %v2465_v26, 7  ;;  %v2474_v45 = vshrl.u32 %v2121_v38, 16  ;;  %v4106_v29 = vsel %vm9473_vm14, %v4098_v28, %v4105_v54  ;;  %v3557_v24 = vpop.permute.xlu0 %3556  ;;  %v2830_v8 = vpop.permute.xlu1 %2829 }
 0x323   : > { %v3431_v46 = vsel %vm9662_vm6, %v3426_v62, %v13503_v21  ;;  %v4107_v58 = vrot.slane %v13474_v4, 4  ;;  %v2477_v63 = vshll.u32 %v2121_v38, 16  ;;  %v5108_v13 = vor.u32 %v5107_v57, %v13388_v33  ;;  %v13528_v42 = vld [vmem:[#allocation2 + $0xc0] sm:$0xf]  ;;  %3669 = vst.msk [vmem:[#allocation3 + $0x100] sm:$0xf] %vm3636_vm5, %v3557_v24  ;;  %v7482_v48 = vpop.f32.mrf.mxu1 }
 0x324   : > { %v5793_v16 = vshrl.u32 %v13513_v43, 16  ;;  %v2470_v39 = vor.u32 %v2468_v3, %v2467_v5  ;;  %v13530_v50 = vrot.slane %v2474_v45, 7  ;;  %v13532_v31 = vld [vmem:[#allocation2 + $0xc0] sm:$0xf]  ;;  %2941 = vst.msk [vmem:[#allocation3 + $0x108] sm:$0xf] %vm2907_vm15, %v2830_v8  ;;  %v4114_v4 = vor.u32 %v4112_v11, %v13510_v18 }
 0x325   : > { %v13537_v15 = vrot.slane %v5111_v35, 5  ;;  %v13539_v53 = vrot.slane %v5115_v47, 4  ;;  %v2472_v33 = vrot.slane %v2467_v5, 4  ;;  %v6781_v0 = vor.u32 %v13494_v2, %v13492_v9  ;;  %3574 = vrot.lane.b32.xlu1 %v3431_v46, %s9128_s17  ;;  %v13548_v62 = vld [vmem:[#allocation2 + $0xb8] sm:$0xf]  ;;  %v7483_v46 = vpop.f32.mrf.mxu1 }
 0x326   : > { %v6831_v28 = vor.u32 %v13515_v55, %v13496_v22  ;;  %v6808_v54 = vshrl.u32 %v13532_v31, 16  ;;  %4250 = vrot.lane.b32.xlu0 %v4106_v29, %s9131_s20  ;;  %v2471_v38 = vsel %vm9473_vm14, %v2463_v36, %v2470_v39  ;;  %v13552_v30 = vld [vmem:[#allocation2 + $0xc4] sm:$0xf]  ;;  %v3432_v60 = vshrl.u32 %v13442_v41, 16  ;;  %v13562_v3 = vld [vmem:[%s14363_s4] ss:$0 sm:$0xff]  ;;  %v4235_v35 = vpop.permute.xlu0 %4234  ;;  %v3559_v47 = vpop.permute.xlu1 %3558 }
 0x327   : > { %v5796_v37 = vshll.u32 %v13513_v43, 16  ;;  %v5802_v57 = vshrl.u32 %v13528_v42, 16  ;;  %2655 = vst.msk [vmem:[#allocation3 + $0x120] sm:$0xf] %vm1834_vm2, %v2471_v38  ;;  %v2479_v26 = vor.u32 %v2477_v63, %v13530_v50  ;;  %v7481_v11 = vadd.f32 %v13562_v3, %v7480_v61  ;;  %v7004_v36 = vld [vmem:[#allocation3 + $0xf0] sm:$0xff] }
 0x328   : > { %v7005_v41 = vld [vmem:[#allocation3 + $0xf8] sm:$0xff]  ;;  %v5109_v45 = vrot.slane %v5108_v13, 4  ;;  %v13565_v43 = vrot.slane %v5793_v16, 7  ;;  %v6747_v29 = vsel %vm9662_vm6, %v13466_v52, %v13076_v7  ;;  %4347 = vst.msk [vmem:[#allocation3 + $0x100] sm:$0xf] %vm14596_vm9, %v4235_v35  ;;  %v4115_v24 = vsel %vm9473_vm14, %v4107_v58, %v4114_v4  ;;  %vm14601_vm9 = vmmov %vm14595_vm1 }
 0x329   : > { %v9085_v5 = vld [vmem:[#allocation3 + $0xf4] ss:$8 sps:$4 sm:$0xff]   ;;  %3670 = vst.msk [vmem:[#allocation3 + $0x108] sm:$0xf] %vm3636_vm5, %v3559_v47  ;;  %v4403_v63 = vld [vmem:[#allocation2 + $0xb0] sm:$0xf]  ;;  %v8493_v8 = vcombine.low %v7004_v36, %v7005_v41  ;;  %v5118_v13 = vor.u32 %v13539_v53, %v13537_v15  ;;  %v2480_v16 = vsel %vm9473_vm14, %v2472_v33, %v2479_v26  ;;  %v7484_v52 = vadd.f32 %v13562_v3, %v7483_v46 }
 0x32a   : > { %6960 = vst.msk [vmem:[#allocation3 + $0x114] sm:$0xf] %vm1834_vm2, %v6747_v29  ;;  %v6804_v7 = vshll.u32 %v13532_v31, 16  ;;  %4539 = vrot.lane.b32.xlu0 %v4403_v63, %s9127_s16  ;;  %4252 = vrot.lane.b32.xlu1 %v4115_v24, %s9131_s20  ;;  %v5121_v39 = vshll.u32 %v13548_v62, 16  ;;  %2656 = vst.msk [vmem:[#allocation3 + $0x128] sm:$0xf] %vm1834_vm2, %v2480_v16  ;;  %v6757_v58 = vsel %vm9662_vm6, %v13316_v6, %v13179_v44  ;;  %v7485_v31 = vpop.f32.mrf.mxu1  ;;  %v4524_v35 = vpop.permute.xlu0 %4523 }
 0x32b   : > { %v6814_v61 = vshll.u32 %v13552_v30, 16  ;;  %v6818_v4 = vshrl.u32 %v13552_v30, 16  ;;  %8535 = vmatprep.mubr.msk.bf16.mxu1 %vm7317_vm8, %v9085_v5  ;;  %v13593_v53 = vrot.slane %v5802_v57, 7  ;;  %v5805_v33 = vshll.u32 %v13528_v42, 16  ;;  %6961 = vst.msk [vmem:[#allocation3 + $0x11c] sm:$0xf] %vm1834_vm2, %v6757_v58  ;;  %v4237_v47 = vpop.permute.xlu1 %4236 }
 0x32c   : > { %v13597_v38 = vrot.slane %v6808_v54, 4  ;;  %v7629_v48 = vmax.f32 %v7481_v11, 0.0  ;;  %v7630_v26 = vmax.f32 %v7484_v52, 0.0  ;;  %7543 = vmatmul.mubr.bf16.gmra.mxu1 %v8493_v8  ;;  %v2999_v44 = vld [vmem:[#allocation2 + $0xb0] sm:$0xf]  ;;  %v3434_v6 = vrot.slane %v3432_v60, 4 }
 0x32d   : > { %4636 = vst.msk [vmem:[#allocation3 + $0x100] sm:$0xf] %vm4603_vm13, %v4524_v35  ;;  %v5114_v30 = vsel %vm9662_vm6, %v5109_v45, %v13537_v15  ;;  %v4404_v42 = vld [vmem:[#allocation2 + $0xb4] sm:$0xf]  ;;  %v5791_v57 = vrot.slane %v13392_v25, 4  ;;  %v5798_v54 = vor.u32 %v5796_v37, %v13565_v43  ;;  %v5119_v11 = vrot.slane %v5118_v13, 4 }
 0x32e   : > { %4348 = vst.msk [vmem:[#allocation3 + $0x108] sm:$0xf] %vm14597_vm10, %v4237_v47  ;;  %v13606_v36 = vrot.slane %v6804_v7, 5  ;;  %v13608_v41 = vpack.c.bf16 %v7630_v26, %v7629_v48  ;;  %5265 = vrot.lane.b32.xlu0 %v5114_v30, %s9130_s19  ;;  %4541 = vrot.lane.b32.xlu1 %v4404_v42, %s9127_s16  ;;  %v13612_v60 = vrot.slane %v5121_v39, 5  ;;  %v5800_v5 = vrot.slane %v13565_v43, 4  ;;  %v5250_v13 = vpop.permute.xlu0 %5249  ;;  %vm14602_vm10 = vmmov %vm14595_vm1 }
 0x32f   : > { %v13615_v29 = vld [vmem:[#allocation2 + $0xb8] sm:$0xf]  ;;  %v13617_v15 = vrot.slane %v6814_v61, 5  ;;  %v13619_v25 = vrot.slane %v6818_v4, 4  ;;  %v5807_v37 = vor.u32 %v5805_v33, %v13593_v53  ;;  %v3438_v45 = vshll.u32 %v2999_v44, 16  ;;  %v4526_v16 = vpop.permute.xlu1 %4525 }
 0x330   : > { %v2122_v46 = vld [vmem:[#allocation2 + $0x9c] sm:$0xf]  ;;  %v13625_v63 = vrot.slane %v6801_v10, 4  ;;  %v13630_v24 = vrot.slane %v6781_v0, 4  ;;  %v13635_v43 = vrot.slane %v6831_v28, 4  ;;  %v3435_v7 = vor.u32 %v3434_v6, %v13503_v21 }
 0x331   : > { %v13637_v8 = vld [vmem:[#allocation2 + $0xcc] sm:$0xf]  ;;  %v6811_v14 = vor.u32 %v13597_v38, %v13606_v36  ;;  %5362 = vst.msk [vmem:[#allocation3 + $0x100] sm:$0xf] %vm5329_vm0, %v5250_v13  ;;  %v5799_v10 = vsel %vm9473_vm14, %v5791_v57, %v5798_v54  ;;  %v5124_v2 = vsel %vm9662_vm6, %v5119_v11, %v13612_v60  ;;  %v3442_v55 = vshrl.u32 %v2999_v44, 16  ;;  %v7488_v42 = vpop.f32.mrf.mxu1 }
 0x332   : > { %4637 = vst.msk [vmem:[#allocation3 + $0x108] sm:$0xf] %vm4603_vm13, %v4526_v16  ;;  %v2123_v0 = vld [vmem:[#allocation2 + $0xa0] sm:$0xf]  ;;  %5943 = vrot.lane.b32.xlu0 %v5799_v10, %s9132_s11  ;;  %v5125_v21 = vshrl.u32 %v13548_v62, 16  ;;  %5267 = vrot.lane.b32.xlu1 %v5124_v2, %s9130_s19  ;;  %v4118_v28 = vshrl.u32 %v13615_v29, 16  ;;  %v6821_v4 = vor.u32 %v13619_v25, %v13617_v15  ;;  %v5808_v33 = vsel %vm9473_vm14, %v5800_v5, %v5807_v37  ;;  %v5928_v62 = vpop.permute.xlu0 %5927 }
 0x333   : > { %v13653_v52 = vld [vmem:[#allocation2 + $0xbc] sm:$0xf]  ;;  %v2483_v39 = vshrl.u32 %v2122_v46, 16  ;;  %v2486_v58 = vshll.u32 %v2122_v46, 16  ;;  %v6834_v61 = vshll.u32 %v13637_v8, 16  ;;  %v13660_v48 = vrot.slane %v3438_v45, 5  ;;  %v5252_v26 = vpop.permute.xlu1 %5251 }
 0x334   : > { %v6096_v31 = vld [vmem:[#allocation2 + $0xbc] sm:$0xf]  ;;  %v13662_v35 = vrot.slane %v3435_v7, 4  ;;  %v2481_v44 = vrot.slane %v13530_v50, 4  ;;  %v2492_v30 = vshrl.u32 %v2123_v0, 16  ;;  %v4116_v57 = vrot.slane %v13510_v18, 4  ;;  %v7490_v7 = vpop.f32.mrf.mxu1 }
 0x335   : > { %v4695_v47 = vld [vmem:[#allocation2 + $0xbc] sm:$0xf]  ;;  %v2485_v6 = vrot.slane %v2483_v39, 7  ;;  %6040 = vst.msk [vmem:[#allocation3 + $0x100] sm:$0xf] %vm6007_vm4, %v5928_v62  ;;  %v3444_v11 = vrot.slane %v3442_v55, 4 }
 0x336   : > { %5363 = vst.msk [vmem:[#allocation3 + $0x108] sm:$0xf] %vm5329_vm0, %v5252_v26  ;;  %v13668_v54 = vld [vmem:[#allocation2 + $0xb4] sm:$0xf]  ;;  %v4127_v5 = vshrl.u32 %v13653_v52, 16  ;;  %v2495_v37 = vshll.u32 %v2123_v0, 16  ;;  %6232 = vrot.lane.b32.xlu0 %v6096_v31, %s9129_s18  ;;  %5945 = vrot.lane.b32.xlu1 %v5808_v33, %s9132_s11  ;;  %v7489_v0 = vadd.f32 %v13562_v3, %v7488_v42  ;;  %v6217_v62 = vpop.permute.xlu0 %6216 }
 0x337   : > { %v13673_v50 = vrot.slane %v4118_v28, 7  ;;  %v4121_v45 = vshll.u32 %v13615_v29, 16  ;;  %v5127_v46 = vrot.slane %v5125_v21, 4  ;;  %v13676_v13 = vld [vmem:[#allocation2 + $0xc4] sm:$0xf]  ;;  %v2488_v16 = vor.u32 %v2486_v58, %v2485_v6  ;;  %v5930_v31 = vpop.permute.xlu1 %5929  ;;  %v7491_v58 = vpop.f32.mrf.mxu1 }
 0x338   : > { %v5131_v10 = vshll.u32 %v4695_v47, 16  ;;  %v5135_v2 = vshrl.u32 %v4695_v47, 16  ;;  %v2490_v39 = vrot.slane %v2485_v6, 4  ;;  %v13678_v55 = vrot.slane %v2492_v30, 7  ;;  %6329 = vst.msk [vmem:[#allocation3 + $0x100] sm:$0xf] %vm6296_vm7, %v6217_v62 }
 0x339   : > { %v3441_v28 = vsel %vm9662_vm6, %v13662_v35, %v13660_v48  ;;  %v3448_v29 = vshll.u32 %v13668_v54, 16  ;;  %v2489_v21 = vsel %vm9473_vm14, %v2481_v44, %v2488_v16  ;;  %6041 = vst.msk [vmem:[#allocation3 + $0x108] sm:$0xf] %vm6007_vm4, %v5930_v31  ;;  %v2709_v33 = vld [vmem:[#allocation2 + $0xac] sm:$0xf]  ;;  %v3445_v47 = vor.u32 %v3444_v11, %v13660_v48  ;;  %v7493_v11 = vpop.f32.mrf.mxu1 }
 0x33a   : > { %v6097_v26 = vld [vmem:[#allocation2 + $0xc0] sm:$0xf]  ;;  %v13691_v6 = vrot.slane %v4127_v5, 7  ;;  %v5811_v30 = vshrl.u32 %v13676_v13, 16  ;;  %2657 = vst.msk [vmem:[#allocation3 + $0x130] sm:$0xf] %vm1834_vm2, %v2489_v21  ;;  %v2497_v35 = vor.u32 %v2495_v37, %v13678_v55  ;;  %v7492_v42 = vadd.f32 %v13562_v3, %v7491_v58  ;;  %2847 = vrot.lane.b32.xlu0 %v2709_v33, %s9125_s13  ;;  %v2832_v21 = vpop.permute.xlu0 %2831 }
 0x33b   : > { %6234 = vrot.lane.b32.xlu1 %v6097_v26, %s9129_s18  ;;  %v4130_v44 = vshll.u32 %v13653_v52, 16  ;;  %v5128_v16 = vor.u32 %v5127_v46, %v13612_v60  ;;  %v13701_v7 = vld [vmem:[#allocation2 + $0xc8] sm:$0xf]  ;;  %v6767_v48 = vsel %vm9662_vm6, %v13346_v23, %v13421_v20  ;;  %v4123_v5 = vor.u32 %v4121_v45, %v13673_v50  ;;  %v13710_v62 = vld [vmem:[#allocation2 + $0xc0] sm:$0xf]  ;;  %v6219_v58 = vpop.permute.xlu1 %6218 }
 0x33c   : > { %v13708_v37 = vrot.slane %v5131_v10, 5  ;;  %v5137_v31 = vrot.slane %v5135_v2, 4  ;;  %v2498_v52 = vsel %vm9473_vm14, %v2490_v39, %v2497_v35  ;;  %6962 = vst.msk [vmem:[#allocation3 + $0x124] sm:$0xf] %vm1834_vm2, %v6767_v48  ;;  %v7631_v60 = vmax.f32 %v7489_v0, 0.0 }
 0x33d   : > { %v7632_v46 = vmax.f32 %v7492_v42, 0.0  ;;  %v4125_v33 = vrot.slane %v13673_v50, 4  ;;  %2658 = vst.msk [vmem:[#allocation3 + $0x138] sm:$0xf] %vm1834_vm2, %v2498_v52  ;;  %v6777_v23 = vsel %vm9662_vm6, %v13482_v34, %v13492_v9  ;;  %v2710_v20 = vld [vmem:[#allocation2 + $0xb0] sm:$0xf]  ;;  %v4132_v34 = vor.u32 %v4130_v44, %v13691_v6 }
 0x33e   : > { %2942 = vst.msk [vmem:[#allocation3 + $0x110] sm:$0xf] %vm2907_vm15, %v2832_v21  ;;  %v3446_v45 = vrot.slane %v3445_v47, 4  ;;  %v13723_v10 = vrot.slane %v5811_v30, 7  ;;  %v5814_v2 = vshll.u32 %v13676_v13, 16  ;;  %v5820_v39 = vshrl.u32 %v13701_v7, 16  ;;  %3576 = vrot.lane.b32.xlu0 %v3441_v28, %s9128_s17  ;;  %v3561_v44 = vpop.permute.xlu0 %3560 }
 0x33f   : > { %6330 = vst.msk [vmem:[#allocation3 + $0x108] sm:$0xf] %vm6296_vm7, %v6219_v58  ;;  %v13728_v50 = vpack.c.bf16 %v7632_v46, %v7631_v60  ;;  %2849 = vrot.lane.b32.xlu1 %v2710_v20, %s9125_s13  ;;  %v13733_v9 = vrot.slane %v5128_v16, 4  ;;  %v5141_v0 = vshll.u32 %v13710_v62, 16  ;;  %v13739_v13 = vrot.slane %v6811_v14, 4  ;;  %v2834_v38 = vpop.permute.xlu1 %2833 }
 0x340   : > { %6963 = vst.msk [vmem:[#allocation3 + $0x12c] sm:$0xf] %vm1834_vm2, %v6777_v23  ;;  %v13741_v26 = vrot.slane %v3448_v29, 5  ;;  %v3452_v47 = vshrl.u32 %v13668_v54, 16  ;;  %v5138_v30 = vor.u32 %v5137_v31, %v13708_v37  ;;  %v2124_v28 = vld [vmem:[#allocation2 + $0xa4] sm:$0xf]  ;;  %v4124_v14 = vsel %vm9473_vm14, %v4116_v57, %v4123_v5 }
 0x341   : > { %v13747_v35 = vrot.slane %v6834_v61, 5  ;;  %v13752_v42 = vrot.slane %v6821_v4, 4  ;;  %v5809_v54 = vrot.slane %v13593_v53, 4  ;;  %3671 = vst.msk [vmem:[#allocation3 + $0x110] sm:$0xf] %vm3636_vm5, %v3561_v44  ;;  %v7496_v61 = vpop.f32.mrf.mxu1  ;;  %v5816_v4 = vor.u32 %v5814_v2, %v13723_v10  ;;  %v7006_v31 = vld [vmem:[#allocation3 + $0x100] sm:$0xff] }
 0x342   : > { %2943 = vst.msk [vmem:[#allocation3 + $0x118] sm:$0xf] %vm2907_vm15, %v2834_v38  ;;  %v3451_v25 = vsel %vm9662_vm6, %v3446_v45, %v13741_v26  ;;  %v13765_v29 = vrot.slane %v5820_v39, 7  ;;  %v5823_v18 = vshll.u32 %v13701_v7, 16  ;;  %4254 = vrot.lane.b32.xlu0 %v4124_v14, %s9131_s20  ;;  %v4133_v53 = vsel %vm9473_vm14, %v4125_v33, %v4132_v34  ;;  %v13778_v48 = vld [vmem:[#allocation2 + $0xb8] sm:$0xf]  ;;  %v4239_v58 = vpop.permute.xlu0 %4238 }
 0x343   : > { %3578 = vrot.lane.b32.xlu1 %v3451_v25, %s9128_s17  ;;  %v5134_v57 = vsel %vm9662_vm6, %v13733_v9, %v13708_v37  ;;  %v13776_v16 = vrot.slane %v5141_v0, 5  ;;  %v2501_v11 = vshrl.u32 %v2124_v28, 16  ;;  %v7497_v5 = vadd.f32 %v13562_v3, %v7496_v61  ;;  %v7498_v7 = vpop.f32.mrf.mxu1  ;;  %v2125_v21 = vld [vmem:[#allocation2 + $0xa8] sm:$0xf]  ;;  %v3563_v33 = vpop.permute.xlu1 %3562  ;;  %v9087_v37 = vld [vmem:[#allocation3 + $0x104] ss:$8 sps:$4 sm:$0xff]  }
 0x344   : > { %v13781_v52 = vrot.slane %v5138_v30, 4  ;;  %v5818_v60 = vrot.slane %v13723_v10, 4  ;;  %v13784_v46 = vrot.slane %v3452_v47, 4  ;;  %v2499_v20 = vrot.slane %v13678_v55, 4  ;;  %4349 = vst.msk [vmem:[#allocation3 + $0x110] sm:$0xf] %vm14598_vm11, %v4239_v58  ;;  %8536 = vmatprep.mubr.msk.bf16.mxu1 %vm7317_vm8, %v9087_v37  ;;  %vm14605_vm11 = vmmov %vm14595_vm1 }
 0x345   : > { %v13787_v45 = vrot.slane %v2501_v11, 7  ;;  %v2504_v2 = vshll.u32 %v2124_v28, 16  ;;  %v6787_v39 = vsel %vm9662_vm6, %v13630_v24, %v13357_v49  ;;  %3672 = vst.msk [vmem:[#allocation3 + $0x118] sm:$0xf] %vm3636_vm5, %v3563_v33  ;;  %v7499_v34 = vpop.f32.mrf.mxu1  ;;  %v4405_v9 = vld [vmem:[#allocation2 + $0xb8] sm:$0xf]  ;;  %v13797_v47 = vsel %vm9473_vm14, %v5809_v54, %v5816_v4 }
 0x346   : > { %v7007_v23 = vld [vmem:[#allocation3 + $0x108] sm:$0xff]  ;;  %v13800_v55 = vor.u32 %v5823_v18, %v13765_v29  ;;  %v3458_v30 = vshll.u32 %v13778_v48, 16  ;;  %6964 = vst.msk [vmem:[#allocation3 + $0x134] sm:$0xf] %vm1834_vm2, %v6787_v39  ;;  %v7500_v49 = vadd.f32 %v13562_v3, %v7499_v34  ;;  %4543 = vrot.lane.b32.xlu0 %v4405_v9, %s9127_s16  ;;  %v3462_v24 = vshrl.u32 %v13778_v48, 16 }
 0x347   : > { %v8495_v0 = vcombine.low %v7006_v31, %v7007_v23  ;;  %v2126_v28 = vld [vmem:[#allocation2 + $0xac] sm:$0xf]  ;;  %4256 = vrot.lane.b32.xlu1 %v4133_v53, %s9131_s20  ;;  %v2506_v44 = vor.u32 %v2504_v2, %v13787_v45  ;;  %v2510_v38 = vshrl.u32 %v2125_v21, 16  ;;  %v2127_v14 = vld [vmem:[#allocation2 + $0xb0] sm:$0xf]  ;;  %v7633_v54 = vmax.f32 %v7497_v5, 0.0  ;;  %v7501_v61 = vpop.f32.mrf.mxu1  ;;  %v4528_v53 = vpop.permute.xlu0 %4527 }
 0x348   : > { %v2508_v25 = vrot.slane %v13787_v45, 4  ;;  %v2513_v4 = vshll.u32 %v2125_v21, 16  ;;  %v6797_v18 = vsel %vm9662_vm6, %v13480_v56, %v13452_v1  ;;  %v7634_v11 = vmax.f32 %v7500_v49, 0.0  ;;  %v4241_v7 = vpop.permute.xlu1 %4240  ;;  %v2128_v33 = vld [vmem:[#allocation2 + $0xb4] sm:$0xf] }
 0x349   : > { %7551 = vmatmul.mubr.bf16.gmra.mxu1 %v8495_v0  ;;  %v2507_v31 = vsel %vm9473_vm14, %v2499_v20, %v2506_v44  ;;  %v2512_v58 = vrot.slane %v2510_v38, 7  ;;  %6965 = vst.msk [vmem:[#allocation3 + $0x13c] sm:$0xf] %vm1834_vm2, %v6797_v18  ;;  %v2519_v5 = vshrl.u32 %v2126_v28, 16  ;;  %v7504_v21 = vpop.f32.mrf.mxu1  ;;  %v4406_v23 = vld [vmem:[#allocation2 + $0xbc] sm:$0xf]  ;;  %v6807_v20 = vsel %vm9662_vm6, %v13625_v63, %v13606_v36 }
 0x34a   : > { %4638 = vst.msk [vmem:[#allocation3 + $0x110] sm:$0xf] %vm4603_vm13, %v4528_v53  ;;  %v2522_v1 = vshll.u32 %v2126_v28, 16  ;;  %v2528_v56 = vshrl.u32 %v2127_v14, 16  ;;  %v2531_v37 = vshll.u32 %v2127_v14, 16  ;;  %v13825_v45 = vpack.c.bf16 %v7634_v11, %v7633_v54  ;;  %5269 = vrot.lane.b32.xlu0 %v5134_v57, %s9130_s19 }
 0x34b   : > { %4350 = vst.msk [vmem:[#allocation3 + $0x118] sm:$0xf] %vm14599_vm3, %v4241_v7  ;;  %v7505_v2 = vadd.f32 %v13562_v3, %v7504_v21  ;;  %4545 = vrot.lane.b32.xlu1 %v4406_v23, %s9127_s16  ;;  %v2515_v39 = vor.u32 %v2513_v4, %v2512_v58  ;;  %v2517_v34 = vrot.slane %v2512_v58, 4  ;;  %v7506_v9 = vpop.f32.mrf.mxu1  ;;  %v2521_v0 = vrot.slane %v2519_v5, 7  ;;  %v5254_v49 = vpop.permute.xlu0 %5253  ;;  %v13841_v14 = vld [vmem:[#allocation2 + $0xc0] sm:$0xf]  ;;  %vm14606_vm3 = vmmov %vm14595_vm1 }
 0x34c   : > { %2659 = vst.msk [vmem:[#allocation3 + $0x140] sm:$0xf] %vm1834_vm2, %v2507_v31  ;;  %6966 = vst.msk [vmem:[#allocation3 + $0x144] sm:$0xf] %vm1834_vm2, %v6807_v20  ;;  %v2530_v28 = vrot.slane %v2528_v56, 7  ;;  %v6817_v36 = vsel %vm9662_vm6, %v13739_v13, %v13617_v15  ;;  %v2537_v63 = vshrl.u32 %v2128_v33, 16  ;;  %v4530_v44 = vpop.permute.xlu1 %4529  ;;  %v5144_v57 = vsel %vm9662_vm6, %v13781_v52, %v13776_v16 }
 0x34d   : > { %v3455_v38 = vor.u32 %v13784_v46, %v13741_v26  ;;  %v2516_v54 = vsel %vm9473_vm14, %v2508_v25, %v2515_v39  ;;  %6967 = vst.msk [vmem:[#allocation3 + $0x14c] sm:$0xf] %vm1834_vm2, %v6817_v36  ;;  %v2540_v61 = vshll.u32 %v2128_v33, 16  ;;  %v7507_v15 = vpop.f32.mrf.mxu1  ;;  %v2524_v13 = vor.u32 %v2522_v1, %v2521_v0  ;;  %v2129_v26 = vld [vmem:[#allocation2 + $0xb8] sm:$0xf] }
 0x34e   : > { %5364 = vst.msk [vmem:[#allocation3 + $0x110] sm:$0xf] %vm5329_vm0, %v5254_v49  ;;  %v2526_v52 = vrot.slane %v2521_v0, 4  ;;  %v2533_v4 = vor.u32 %v2531_v37, %v2530_v28  ;;  %v2535_v18 = vrot.slane %v2530_v28, 4  ;;  %v7508_v46 = vadd.f32 %v13562_v3, %v7507_v15  ;;  %5947 = vrot.lane.b32.xlu0 %v13797_v47, %s9132_s11  ;;  %v6098_v20 = vld [vmem:[#allocation2 + $0xc4] sm:$0xf] }
 0x34f   : > { %4639 = vst.msk [vmem:[#allocation3 + $0x118] sm:$0xf] %vm4603_vm13, %v4530_v44  ;;  %5271 = vrot.lane.b32.xlu1 %v5144_v57, %s9130_s19  ;;  %v2539_v25 = vrot.slane %v2537_v63, 7  ;;  %v2546_v11 = vshrl.u32 %v2129_v26, 16  ;;  %v2549_v53 = vshll.u32 %v2129_v26, 16  ;;  %v7635_v7 = vmax.f32 %v7505_v2, 0.0  ;;  %v7509_v31 = vpop.f32.mrf.mxu1  ;;  %v5932_v23 = vpop.permute.xlu0 %5931 }
 0x350   : > { %2660 = vst.msk [vmem:[#allocation3 + $0x148] sm:$0xf] %vm1834_vm2, %v2516_v54  ;;  %v4136_v58 = vshrl.u32 %v13841_v14, 16  ;;  %v2525_v5 = vsel %vm9473_vm14, %v2517_v34, %v2524_v13  ;;  %v2534_v33 = vsel %vm9473_vm14, %v2526_v52, %v2533_v4  ;;  %v7636_v21 = vmax.f32 %v7508_v46, 0.0  ;;  %v5256_v1 = vpop.permute.xlu1 %5255  ;;  %v13871_v34 = vld [vmem:[#allocation2 + $0xbc] sm:$0xf] }
 0x351   : > { %2661 = vst.msk [vmem:[#allocation3 + $0x150] sm:$0xf] %vm1834_vm2, %v2525_v5  ;;  %2662 = vst.msk [vmem:[#allocation3 + $0x158] sm:$0xf] %vm1834_vm2, %v2534_v33  ;;  %v2542_v47 = vor.u32 %v2540_v61, %v2539_v25  ;;  %v2544_v56 = vrot.slane %v2539_v25, 4  ;;  %v13860_v37 = vrot.slane %v2546_v11, 7  ;;  %v5826_v2 = vsel %vm9473_vm14, %v5818_v60, %v13800_v55 }
 0x352   : > { %6042 = vst.msk [vmem:[#allocation3 + $0x110] sm:$0xf] %vm6007_vm4, %v5932_v23  ;;  %v3460_v39 = vrot.slane %v3458_v30, 5  ;;  %v3464_v9 = vrot.slane %v3462_v24, 4  ;;  %v13875_v0 = vpack.c.bf16 %v7636_v21, %v7635_v7  ;;  %6236 = vrot.lane.b32.xlu0 %v6098_v20, %s9129_s18  ;;  %v3731_v28 = vld [vmem:[#allocation2 + $0xc4] sm:$0xf]  ;;  %v6827_v48 = vsel %vm9662_vm6, %v13752_v42, %v13496_v22 }
 0x353   : > { %5365 = vst.msk [vmem:[#allocation3 + $0x118] sm:$0xf] %vm5329_vm0, %v5256_v1  ;;  %5949 = vrot.lane.b32.xlu1 %v5826_v2, %s9132_s11  ;;  %v2543_v10 = vsel %vm9473_vm14, %v2535_v18, %v2542_v47  ;;  %v2551_v60 = vor.u32 %v2549_v53, %v13860_v37  ;;  %v5145_v55 = vshrl.u32 %v13710_v62, 16  ;;  %v3456_v30 = vrot.slane %v3455_v38, 4  ;;  %v6221_v36 = vpop.permute.xlu0 %6220  ;;  %v2711_v22 = vld [vmem:[#allocation2 + $0xb4] sm:$0xf] }
 0x354   : > { %2663 = vst.msk [vmem:[#allocation3 + $0x160] sm:$0xf] %vm1834_vm2, %v2543_v10  ;;  %v6837_v24 = vsel %vm9662_vm6, %v13635_v43, %v13747_v35  ;;  %v5934_v63 = vpop.permute.xlu1 %5933  ;;  %v13892_v49 = vrot.slane %v4136_v58, 7  ;;  %v4139_v44 = vshll.u32 %v13841_v14, 16  ;;  %v3468_v62 = vshll.u32 %v13871_v34, 16 }
 0x355   : > { %v2552_v57 = vsel %vm9473_vm14, %v2544_v56, %v2551_v60  ;;  %6968 = vst.msk [vmem:[#allocation3 + $0x154] sm:$0xf] %vm1834_vm2, %v6827_v48  ;;  %6969 = vst.msk [vmem:[#allocation3 + $0x15c] sm:$0xf] %vm1834_vm2, %v6837_v24  ;;  %v6099_v43 = vld [vmem:[#allocation2 + $0xc8] sm:$0xf]  ;;  %v3465_v42 = vor.u32 %v3464_v9, %v3460_v39  ;;  %v3461_v54 = vsel %vm9662_vm6, %v3456_v30, %v3460_v39 }
 0x356   : > { %6331 = vst.msk [vmem:[#allocation3 + $0x110] sm:$0xf] %vm6296_vm7, %v6221_v36  ;;  %v4145_v38 = vshrl.u32 %v3731_v28, 16  ;;  %2851 = vrot.lane.b32.xlu0 %v2711_v22, %s9125_s13  ;;  %v4697_v14 = vld [vmem:[#allocation2 + $0xc4] sm:$0xf]  ;;  %v4134_v61 = vrot.slane %v13691_v6, 4  ;;  %v4141_v4 = vor.u32 %v4139_v44, %v13892_v49 }
 0x357   : > { %6043 = vst.msk [vmem:[#allocation3 + $0x118] sm:$0xf] %vm6007_vm4, %v5934_v63  ;;  %6238 = vrot.lane.b32.xlu1 %v6099_v43, %s9129_s18  ;;  %v2836_v15 = vpop.permute.xlu0 %2835  ;;  %v2712_v52 = vld [vmem:[#allocation2 + $0xb8] sm:$0xf]  ;;  %v13909_v18 = vrot.slane %v3468_v62, 5  ;;  %v4148_v26 = vshll.u32 %v3731_v28, 16 }
 0x358   : > { %2664 = vst.msk [vmem:[#allocation3 + $0x168] sm:$0xf] %vm1834_vm2, %v2552_v57  ;;  %v6223_v13 = vpop.permute.xlu1 %6222  ;;  %v5147_v46 = vrot.slane %v5145_v55, 4  ;;  %v3466_v25 = vrot.slane %v3465_v42, 4  ;;  %v13913_v11 = vrot.slane %v4145_v38, 7  ;;  %v5151_v53 = vshll.u32 %v4697_v14, 16 }
 0x359   : > { %2944 = vst.msk [vmem:[#allocation3 + $0x120] sm:$0xf] %vm2907_vm15, %v2836_v15  ;;  %v5155_v7 = vshrl.u32 %v4697_v14, 16  ;;  %v5423_v31 = vld [vmem:[#allocation2 + $0xcc] sm:$0xf]  ;;  %v4142_v5 = vsel %vm9473_vm14, %v4134_v61, %v4141_v4  ;;  %v4143_v33 = vrot.slane %v13892_v49, 4 }
 0x35a   : > { %6332 = vst.msk [vmem:[#allocation3 + $0x118] sm:$0xf] %vm6296_vm7, %v6223_v13  ;;  %3580 = vrot.lane.b32.xlu0 %v3461_v54, %s9128_s17  ;;  %v5148_v21 = vor.u32 %v5147_v46, %v13776_v16  ;;  %v5829_v23 = vshrl.u32 %v5423_v31, 16  ;;  %v3471_v1 = vsel %vm9662_vm6, %v3466_v25, %v13909_v18  ;;  %v4150_v47 = vor.u32 %v4148_v26, %v13913_v11  ;;  %v5424_v2 = vld [vmem:[#allocation2 + $0xd0] sm:$0xf] }
 0x35b   : > { %2853 = vrot.lane.b32.xlu1 %v2712_v52, %s9125_s13  ;;  %v3565_v6 = vpop.permute.xlu0 %3564  ;;  %v5153_v56 = vrot.slane %v5151_v53, 5  ;;  %v5157_v20 = vrot.slane %v5155_v7, 4  ;;  %v6838_v16 = vshrl.u32 %v13637_v8, 16  ;;  %v5832_v39 = vshll.u32 %v5423_v31, 16  ;;  %v13930_v9 = vld [vmem:[#allocation2 + $0xc8] sm:$0xf] }
 0x35c   : > { %v2838_v58 = vpop.permute.xlu1 %2837  ;;  %3673 = vst.msk [vmem:[#allocation3 + $0x120] sm:$0xf] %vm3636_vm5, %v3565_v6  ;;  %v9089_v30 = vld [vmem:[#allocation3 + $0x114] ss:$8 sps:$4 sm:$0xff]   ;;  %v5149_v48 = vrot.slane %v5148_v21, 4  ;;  %v13932_v24 = vrot.slane %v5829_v23, 7  ;;  %v4151_v63 = vsel %vm9473_vm14, %v4143_v33, %v4150_v47 }
 0x35d   : > { %2945 = vst.msk [vmem:[#allocation3 + $0x128] sm:$0xf] %vm2907_vm15, %v2838_v58  ;;  %v7008_v60 = vld [vmem:[#allocation3 + $0x110] sm:$0xff]  ;;  %v4407_v36 = vld [vmem:[#allocation2 + $0xc0] sm:$0xf]  ;;  %v5158_v49 = vor.u32 %v5157_v20, %v5153_v56  ;;  %v5838_v44 = vshrl.u32 %v5424_v2, 16  ;;  %8537 = vmatprep.mubr.msk.bf16.mxu1 %vm7317_vm8, %v9089_v30 }
 0x35e   : > { %4258 = vrot.lane.b32.xlu0 %v4142_v5, %s9131_s20  ;;  %v3472_v62 = vshrl.u32 %v13871_v34, 16  ;;  %v2130_v57 = vld [vmem:[#allocation2 + $0xbc] sm:$0xf]  ;;  %v6840_v22 = vrot.slane %v6838_v16, 4  ;;  %v5161_v43 = vshll.u32 %v13930_v9, 16  ;;  %v5154_v61 = vsel %vm9662_vm6, %v5149_v48, %v5153_v56 }
 0x35f   : > { %3582 = vrot.lane.b32.xlu1 %v3471_v1, %s9128_s17  ;;  %v4243_v28 = vpop.permute.xlu0 %4242  ;;  %v2555_v42 = vshrl.u32 %v2130_v57, 16  ;;  %v2558_v38 = vshll.u32 %v2130_v57, 16  ;;  %v5827_v34 = vrot.slane %v13765_v29, 4  ;;  %v5834_v15 = vor.u32 %v5832_v39, %v13932_v24  ;;  %v4408_v4 = vld [vmem:[#allocation2 + $0xc4] sm:$0xf] }
 0x360   : > { %v3567_v10 = vpop.permute.xlu1 %3566  ;;  %4351 = vst.msk [vmem:[#allocation3 + $0x120] sm:$0xf] %vm14600_vm12, %v4243_v28  ;;  %v5841_v13 = vshll.u32 %v5424_v2, 16  ;;  %v5159_v26 = vrot.slane %v5158_v49, 4  ;;  %v13949_v46 = vrot.slane %v5838_v44, 7  ;;  %v2553_v25 = vrot.slane %v13860_v37, 4  ;;  %vm14607_vm12 = vmmov %vm14595_vm1 }
 0x361   : > { %v7009_v55 = vld [vmem:[#allocation3 + $0x118] sm:$0xff]  ;;  %3674 = vst.msk [vmem:[#allocation3 + $0x128] sm:$0xf] %vm3636_vm5, %v3567_v10  ;;  %v7512_v52 = vpop.f32.mrf.mxu1  ;;  %v13952_v53 = vrot.slane %v2555_v42, 7  ;;  %v3003_v29 = vld [vmem:[#allocation2 + $0xc0] sm:$0xf]  ;;  %v6841_v33 = vor.u32 %v6840_v22, %v13747_v35  ;;  %v5835_v1 = vsel %vm9473_vm14, %v5827_v34, %v5834_v15 }
 0x362   : > { %v8497_v8 = vcombine.low %v7008_v60, %v7009_v55  ;;  %4547 = vrot.lane.b32.xlu0 %v4407_v36, %s9127_s16  ;;  %v3474_v7 = vrot.slane %v3472_v62, 4  ;;  %v13956_v6 = vrot.slane %v5161_v43, 5  ;;  %v3482_v58 = vshrl.u32 %v3003_v29, 16  ;;  %v13964_v56 = vld [vmem:[#allocation2 + $0xc8] sm:$0xf] }
 0x363   : > { %4260 = vrot.lane.b32.xlu1 %v4151_v63, %s9131_s20  ;;  %v4532_v14 = vpop.permute.xlu0 %4531  ;;  %v7514_v31 = vpop.f32.mrf.mxu1  ;;  %v2560_v5 = vor.u32 %v2558_v38, %v13952_v53  ;;  %v7513_v21 = vadd.f32 %v13562_v3, %v7512_v52  ;;  %v5836_v47 = vrot.slane %v13932_v24, 4  ;;  %v5843_v2 = vor.u32 %v5841_v13, %v13949_v46  ;;  %v2131_v28 = vld [vmem:[#allocation2 + $0xc0] sm:$0xf]  ;;  %v3004_v62 = vld [vmem:[#allocation2 + $0xc4] sm:$0x1] }
 0x364   : > { %v4245_v54 = vpop.permute.xlu1 %4244  ;;  %7559 = vmatmul.mubr.bf16.gmra.mxu1 %v8497_v8  ;;  %4640 = vst.msk [vmem:[#allocation3 + $0x120] sm:$0xf] %vm4603_vm13, %v4532_v14  ;;  %v5164_v35 = vsel %vm9662_vm6, %v5159_v26, %v13956_v6  ;;  %v3478_v16 = vshll.u32 %v3003_v29, 16  ;;  %v3475_v60 = vor.u32 %v3474_v7, %v13909_v18  ;;  %v2564_v55 = vshrl.u32 %v2131_v28, 16  ;;  %v6100_v18 = vld [vmem:[#allocation2 + $0xcc] sm:$0xf] }
 0x365   : > { %4352 = vst.msk [vmem:[#allocation3 + $0x128] sm:$0xf] %vm14595_vm1, %v4245_v54  ;;  %v7515_v20 = vpop.f32.mrf.mxu1  ;;  %v2561_v39 = vsel %vm9473_vm14, %v2553_v25, %v2560_v5  ;;  %v2567_v30 = vshll.u32 %v2131_v28, 16  ;;  %v4154_v24 = vshrl.u32 %v13964_v56, 16  ;;  %v3484_v36 = vrot.slane %v3482_v58, 4 }
 0x366   : > { %5273 = vrot.lane.b32.xlu0 %v5154_v61, %s9130_s19  ;;  %v7516_v10 = vadd.f32 %v13562_v3, %v7515_v20  ;;  %2665 = vst.msk [vmem:[#allocation3 + $0x170] sm:$0xf] %vm1834_vm2, %v2561_v39  ;;  %v7637_v63 = vmax.f32 %v7513_v21, 0.0  ;;  %v2562_v3 = vrot.slane %v13952_v53, 4  ;;  %v2566_v57 = vrot.slane %v2564_v55, 7 }
 0x367   : > { %4549 = vrot.lane.b32.xlu1 %v4408_v4, %s9127_s16  ;;  %v5258_v23 = vpop.permute.xlu0 %5257  ;;  %v7517_v48 = vpop.f32.mrf.mxu1  ;;  %v6842_v22 = vrot.slane %v6841_v33, 4  ;;  %v5844_v43 = vsel %vm9473_vm14, %v5836_v47, %v5843_v2  ;;  %v3480_v42 = vrot.slane %v3478_v16, 5  ;;  %v6101_v14 = vld [vmem:[#allocation2 + $0xd0] sm:$0xf]  ;;  %v3476_v54 = vrot.slane %v3475_v60, 4 }
 0x368   : > { %v4534_v37 = vpop.permute.xlu1 %4533  ;;  %5366 = vst.msk [vmem:[#allocation3 + $0x120] sm:$0xf] %vm5329_vm0, %v5258_v23  ;;  %v7638_v8 = vmax.f32 %v7516_v10, 0.0  ;;  %v4157_v61 = vshll.u32 %v13964_v56, 16  ;;  %v3733_v34 = vld [vmem:[#allocation2 + $0xcc] sm:$0xf]  ;;  %v2569_v15 = vor.u32 %v2567_v30, %v2566_v57 }
 0x369   : > { %4641 = vst.msk [vmem:[#allocation3 + $0x128] sm:$0xf] %vm4603_vm13, %v4534_v37  ;;  %v13990_v13 = vrot.slane %v4154_v24, 7  ;;  %v3485_v52 = vor.u32 %v3484_v36, %v3480_v42  ;;  %v3488_v4 = vshll.u32 %v3004_v62, 16  ;;  %v6390_v26 = vld [vmem:[#allocation2 + $0xd0] sm:$0xf] }
 0x36a   : > { %5951 = vrot.lane.b32.xlu0 %v5835_v1, %s9132_s11  ;;  %v13985_v38 = vpack.c.bf16 %v7638_v8, %v7637_v63  ;;  %v13992_v25 = vld [vmem:[#allocation2 + $0xd4] sm:$0xf]  ;;  %v2570_v7 = vsel %vm9473_vm14, %v2562_v3, %v2569_v15  ;;  %v6844_v31 = vshll.u32 %v6390_v26, 16  ;;  %v6848_v58 = vshrl.u32 %v6390_v26, 16  ;;  %v2713_v21 = vld [vmem:[#allocation2 + $0xbc] sm:$0xf] }
 0x36b   : > { %5275 = vrot.lane.b32.xlu1 %v5164_v35, %s9130_s19  ;;  %v5936_v49 = vpop.permute.xlu0 %5935  ;;  %v6854_v5 = vshll.u32 %v13992_v25, 16  ;;  %v5165_v33 = vshrl.u32 %v13930_v9, 16  ;;  %v4163_v23 = vshrl.u32 %v3733_v34, 16  ;;  %2666 = vst.msk [vmem:[#allocation3 + $0x178] sm:$0xf] %vm1834_vm2, %v2570_v7  ;;  %v4152_v37 = vrot.slane %v13913_v11, 4 }
 0x36c   : > { %v5260_v44 = vpop.permute.xlu1 %5259  ;;  %6044 = vst.msk [vmem:[#allocation3 + $0x120] sm:$0xf] %vm6007_vm4, %v5936_v49  ;;  %v4699_v1 = vld [vmem:[#allocation2 + $0xcc] sm:$0xf]  ;;  %v6846_v47 = vrot.slane %v6844_v31, 5  ;;  %v6850_v56 = vrot.slane %v6848_v58, 4  ;;  %v3481_v9 = vsel %vm9662_vm6, %v3476_v54, %v3480_v42  ;;  %v4159_v20 = vor.u32 %v4157_v61, %v13990_v13 }
 0x36d   : > { %5367 = vst.msk [vmem:[#allocation3 + $0x128] sm:$0xf] %vm5329_vm0, %v5260_v44  ;;  %v3490_v35 = vrot.slane %v3488_v4, 5  ;;  %v4166_v2 = vshll.u32 %v3733_v34, 16  ;;  %v3486_v28 = vrot.slane %v3485_v52, 4  ;;  %v14009_v30 = vrot.slane %v6854_v5, 5 }
 0x36e   : > { %6240 = vrot.lane.b32.xlu0 %v6100_v18, %s9129_s18  ;;  %v5425_v10 = vld [vmem:[#allocation2 + $0xd4] sm:$0xf]  ;;  %v6847_v60 = vsel %vm9662_vm6, %v6842_v22, %v6846_v47  ;;  %v6851_v55 = vor.u32 %v6850_v56, %v6846_v47  ;;  %v2714_v11 = vld [vmem:[#allocation2 + $0xc0] sm:$0xf]  ;;  %v4165_v48 = vrot.slane %v4163_v23, 7  ;;  %v5167_v24 = vrot.slane %v5165_v33, 4 }
 0x36f   : > { %5953 = vrot.lane.b32.xlu1 %v5844_v43, %s9132_s11  ;;  %v6225_v53 = vpop.permute.xlu0 %6224  ;;  %v5171_v36 = vshll.u32 %v4699_v1, 16  ;;  %v5175_v63 = vshrl.u32 %v4699_v1, 16  ;;  %6970 = vst.msk [vmem:[#allocation3 + $0x164] sm:$0xf] %vm1834_vm2, %v6847_v60  ;;  %v5847_v49 = vshrl.u32 %v5425_v10, 16  ;;  %v4160_v3 = vsel %vm9473_vm14, %v4152_v37, %v4159_v20 }
 0x370   : > { %v5938_v29 = vpop.permute.xlu1 %5937  ;;  %6333 = vst.msk [vmem:[#allocation3 + $0x120] sm:$0xf] %vm6296_vm7, %v6225_v53  ;;  %v6852_v8 = vrot.slane %v6851_v55, 4  ;;  %v3491_v57 = vsel %vm9662_vm6, %v3486_v28, %v3490_v35  ;;  %v4161_v22 = vrot.slane %v13990_v13, 4  ;;  %v5426_v18 = vld [vmem:[#allocation2 + $0xd8] sm:$0xf]  ;;  %v4168_v42 = vor.u32 %v4166_v2, %v4165_v48 }
 0x371   : > { %6045 = vst.msk [vmem:[#allocation3 + $0x128] sm:$0xf] %vm6007_vm4, %v5938_v29  ;;  %v5173_v54 = vrot.slane %v5171_v36, 5  ;;  %v4700_v61 = vld [vmem:[#allocation2 + $0xd0] sm:$0x1]  ;;  %v5177_v34 = vrot.slane %v5175_v63, 4 }
 0x372   : > { %2855 = vrot.lane.b32.xlu0 %v2713_v21, %s9125_s13  ;;  %v6857_v43 = vsel %vm9662_vm6, %v6852_v8, %v14009_v30  ;;  %v5849_v15 = vrot.slane %v5847_v49, 7  ;;  %v5850_v13 = vshll.u32 %v5425_v10, 16  ;;  %v5856_v52 = vshrl.u32 %v5426_v18, 16  ;;  %v9091_v7 = vld [vmem:[#allocation3 + $0x124] ss:$8 sps:$4 sm:$0xff]  }
 0x373   : > { %6242 = vrot.lane.b32.xlu1 %v6101_v14, %s9129_s18  ;;  %v2840_v16 = vpop.permute.xlu0 %2839  ;;  %v5168_v14 = vor.u32 %v5167_v24, %v13956_v6  ;;  %6971 = vst.msk [vmem:[#allocation3 + $0x16c] sm:$0xf] %vm1834_vm2, %v6857_v43  ;;  %v5181_v31 = vshll.u32 %v4700_v61, 16  ;;  %v4409_v6 = vld [vmem:[#allocation2 + $0xc8] sm:$0xf]  ;;  %v4169_v58 = vsel %vm9473_vm14, %v4161_v22, %v4168_v42  ;;  %v5178_v21 = vor.u32 %v5177_v34, %v5173_v54 }
 0x374   : > { %v6227_v39 = vpop.permute.xlu1 %6226  ;;  %2946 = vst.msk [vmem:[#allocation3 + $0x130] sm:$0xf] %vm2907_vm15, %v2840_v16  ;;  %8538 = vmatprep.mubr.msk.bf16.mxu1 %vm7317_vm8, %v9091_v7  ;;  %v5845_v23 = vrot.slane %v13949_v46, 4  ;;  %v5852_v37 = vor.u32 %v5850_v13, %v5849_v15  ;;  %v5858_v1 = vrot.slane %v5856_v52, 7  ;;  %v5859_v47 = vshll.u32 %v5426_v18, 16 }
 0x375   : > { %6334 = vst.msk [vmem:[#allocation3 + $0x128] sm:$0xf] %vm6296_vm7, %v6227_v39  ;;  %v5169_v33 = vrot.slane %v5168_v14, 4  ;;  %v4410_v35 = vld [vmem:[#allocation2 + $0xcc] sm:$0xf]  ;;  %v5179_v2 = vrot.slane %v5178_v21, 4 }
 0x376   : > { %3584 = vrot.lane.b32.xlu0 %v3481_v9, %s9128_s17  ;;  %v5183_v16 = vrot.slane %v5181_v31, 5  ;;  %v5853_v46 = vsel %vm9473_vm14, %v5845_v23, %v5852_v37  ;;  %v5854_v39 = vrot.slane %v5849_v15, 4  ;;  %v5861_v28 = vor.u32 %v5859_v47, %v5858_v1  ;;  %v6102_v48 = vld [vmem:[#allocation2 + $0xd4] sm:$0xf]  ;;  %v6103_v8 = vld [vmem:[#allocation2 + $0xd8] sm:$0xf] }
 0x377   : > { %2857 = vrot.lane.b32.xlu1 %v2714_v11, %s9125_s13  ;;  %v3569_v44 = vpop.permute.xlu0 %3568  ;;  %v7010_v53 = vld [vmem:[#allocation3 + $0x120] sm:$0xff]  ;;  %v5174_v20 = vsel %vm9662_vm6, %v5169_v33, %v5173_v54  ;;  %v6858_v24 = vshrl.u32 %v13992_v25, 16  ;;  %v6392_v49 = vld [vmem:[#allocation2 + $0xd8] sm:$0xf]  ;;  %v9094_v33 = vld [vmem:[#allocation3 + $0x134] ss:$8 sps:$4 sm:$0xff]  }
 0x378   : > { %v2842_v62 = vpop.permute.xlu1 %2841  ;;  %3675 = vst.msk [vmem:[#allocation3 + $0x130] sm:$0xf] %vm3636_vm5, %v3569_v44  ;;  %v5184_v55 = vsel %vm9662_vm6, %v5179_v2, %v5183_v16  ;;  %v5862_v11 = vsel %vm9473_vm14, %v5854_v39, %v5861_v28  ;;  %v6393_v44 = vld [vmem:[#allocation2 + $0xdc] sm:$0x1]  ;;  %v6868_v22 = vshrl.u32 %v6392_v49, 16  ;;  %vm14603_vm14 = vmmov %vm14595_vm1 }
 0x379   : > { %2947 = vst.msk [vmem:[#allocation3 + $0x138] sm:$0xf] %vm2907_vm15, %v2842_v62  ;;  %v6860_v62 = vrot.slane %v6858_v24, 4  ;;  %v6874_v18 = vshll.u32 %v6393_v44, 16  ;;  %v14076_v7 = vld [vmem:[%s14363_s4] ss:$0 sm:$0xff] }
 0x37a   : > { %4262 = vrot.lane.b32.xlu0 %v4160_v3, %s9131_s20  ;;  %v6870_v42 = vrot.slane %v6868_v22, 4  ;;  %v9097_v44 = vld [vmem:[#allocation3 + $0x144] ss:$8 sps:$4 sm:$0xff]  }
 0x37b   : > { %3586 = vrot.lane.b32.xlu1 %v3491_v57, %s9128_s17  ;;  %v4247_v4 = vpop.permute.xlu0 %4246  ;;  %v6864_v57 = vshll.u32 %v6392_v49, 16  ;;  %v6861_v25 = vor.u32 %v6860_v62, %v14009_v30  ;;  %v6876_v15 = vrot.slane %v6874_v18, 5 }
 0x37c   : > { %v3571_v26 = vpop.permute.xlu1 %3570  ;;  %v7011_v29 = vld [vmem:[#allocation3 + $0x128] sm:$0xff]  ;;  %4353 = vst.msk [vmem:[#allocation3 + $0x130] sm:$0xf] %vm14601_vm9, %v4247_v4  ;;  %vm14608_vm9 = vmmov %vm14595_vm1 }
 0x37d   : > { %3676 = vst.msk [vmem:[#allocation3 + $0x138] sm:$0xf] %vm3636_vm5, %v3571_v26  ;;  %v8499_v5 = vcombine.low %v7010_v53, %v7011_v29  ;;  %v6866_v43 = vrot.slane %v6864_v57, 5  ;;  %v6862_v14 = vrot.slane %v6861_v25, 4 }
 0x37e   : > { %4551 = vrot.lane.b32.xlu0 %v4409_v6, %s9127_s16 }
 0x37f   : > { %4264 = vrot.lane.b32.xlu1 %v4169_v58, %s9131_s20  ;;  %7567 = vmatmul.mubr.bf16.gmra.mxu1 %v8499_v5  ;;  %v6871_v34 = vor.u32 %v6870_v42, %v6866_v43  ;;  %v6867_v13 = vsel %vm9662_vm6, %v6862_v14, %v6866_v43 }
 0x380   : > { %v4536_v56 = vpop.permute.xlu0 %4535  ;;  %v4249_v9 = vpop.permute.xlu1 %4248  ;;  %6972 = vst.msk [vmem:[#allocation3 + $0x174] sm:$0xf] %vm1834_vm2, %v6867_v13  ;;  %8539 = vmatprep.mubr.msk.bf16.mxu1 %vm7317_vm8, %v9094_v33 }
 0x381   : > { %4642 = vst.msk [vmem:[#allocation3 + $0x130] sm:$0xf] %vm4603_vm13, %v4536_v56  ;;  %v6872_v52 = vrot.slane %v6871_v34, 4 }
 0x382   : > { %4354 = vst.msk [vmem:[#allocation3 + $0x138] sm:$0xf] %vm14602_vm10, %v4249_v9  ;;  %5277 = vrot.lane.b32.xlu0 %v5174_v20, %s9130_s19 }
 0x383   : > { %4553 = vrot.lane.b32.xlu1 %v4410_v35, %s9127_s16  ;;  %v6877_v26 = vsel %vm9662_vm6, %v6872_v52, %v6876_v15  ;;  %vm14604_vm6 = vmmov %vm14595_vm1 }
 0x384   : > { %v5262_v10 = vpop.permute.xlu0 %5261  ;;  %v4538_v60 = vpop.permute.xlu1 %4537  ;;  %6973 = vst.msk [vmem:[#allocation3 + $0x17c] sm:$0xf] %vm1834_vm2, %v6877_v26  ;;  %vm7710_vm2 = vcmask 261120  }
 0x385   : > { %5368 = vst.msk [vmem:[#allocation3 + $0x130] sm:$0xf] %vm5329_vm0, %v5262_v10 }
 0x386   : > { %4643 = vst.msk [vmem:[#allocation3 + $0x138] sm:$0xf] %vm4603_vm13, %v4538_v60  ;;  %5955 = vrot.lane.b32.xlu0 %v5853_v46, %s9132_s11 }
 0x387   : > { %5279 = vrot.lane.b32.xlu1 %v5184_v55, %s9130_s19 }
 0x388   : > { %v5940_v36 = vpop.permute.xlu0 %5939  ;;  %v5264_v63 = vpop.permute.xlu1 %5263 }
 0x389   : > { %6046 = vst.msk [vmem:[#allocation3 + $0x130] sm:$0xf] %vm6007_vm4, %v5940_v36 }
 0x38a   : > { %5369 = vst.msk [vmem:[#allocation3 + $0x138] sm:$0xf] %vm5329_vm0, %v5264_v63  ;;  %6244 = vrot.lane.b32.xlu0 %v6102_v48, %s9129_s18 }
 0x38b   : > { %5957 = vrot.lane.b32.xlu1 %v5862_v11, %s9132_s11  ;;  %s14198_s11 = scalar_lea.vmem %s14366_s7, %s8895_s9 }
 0x38c   : > { %v6229_v3 = vpop.permute.xlu0 %6228  ;;  %v5942_v32 = vpop.permute.xlu1 %5941 }
 0x38d   : > { %6335 = vst.msk [vmem:[#allocation3 + $0x130] sm:$0xf] %vm6296_vm7, %v6229_v3 }
 0x38e   : > { %6047 = vst.msk [vmem:[#allocation3 + $0x138] sm:$0xf] %vm6007_vm4, %v5942_v32 }
 0x38f   : > { %6246 = vrot.lane.b32.xlu1 %v6103_v8, %s9129_s18 }
 0x390   : > { %v2844_v54 = vpop.permute.xlu0 %2843  ;;  %v6231_v61 = vpop.permute.xlu1 %6230 }
 0x391   : > { %2948 = vst.msk [vmem:[#allocation3 + $0x140] sm:$0xf] %vm2907_vm15, %v2844_v54  ;;  %v7424_v4 = vpop.f32.mrf.mxu0 }
 0x392   : > { %6336 = vst.msk [vmem:[#allocation3 + $0x138] sm:$0xf] %vm6296_vm7, %v6231_v61  ;;  %v7425_v31 = vadd.f32 %v14076_v7, %v7424_v4 }
 0x393   : > { %v7426_v29 = vpop.f32.mrf.mxu0 }
 0x394   : > { %v3573_v30 = vpop.permute.xlu0 %3572  ;;  %v2846_v53 = vpop.permute.xlu1 %2845  ;;  %v7012_v5 = vld [vmem:[#allocation3 + $0x130] sm:$0xff]  ;;  %v7615_v56 = vmax.f32 %v7425_v31, 0.0 }
 0x395   : > { %3677 = vst.msk [vmem:[#allocation3 + $0x140] sm:$0xf] %vm3636_vm5, %v3573_v30  ;;  %v7427_v58 = vpop.f32.mrf.mxu0 }
 0x396   : > { %2949 = vst.msk [vmem:[#allocation3 + $0x148] sm:$0xf] %vm2907_vm15, %v2846_v53  ;;  %v7428_v21 = vadd.f32 %v14076_v7, %v7427_v58  ;;  %v14081_v37 = vpop.f32.mrf.mxu1 }
 0x397   : > { %v7429_v47 = vpop.f32.mrf.mxu0 }
 0x398   : > { %v4251_v6 = vpop.permute.xlu0 %4250  ;;  %v3575_v23 = vpop.permute.xlu1 %3574  ;;  %v7616_v9 = vmax.f32 %v7428_v21, 0.0 }
 0x399   : > { %v7013_v19 = vld [vmem:[#allocation3 + $0x138] sm:$0xff]  ;;  %4355 = vst.msk [vmem:[#allocation3 + $0x140] sm:$0xf] %vm14603_vm14, %v4251_v6  ;;  %v7522_v20 = vpop.f32.mrf.mxu1 }
 0x39a   : > { %v8501_v1 = vcombine.low %v7012_v5, %v7013_v19  ;;  %3678 = vst.msk [vmem:[#allocation3 + $0x148] sm:$0xf] %vm3636_vm5, %v3575_v23  ;;  %v7663_v2 = vpack.c.bf16 %v7616_v9, %v7615_v56  ;;  %v9099_v5 = vld [vmem:[#allocation3 + $0x154] ss:$8 sps:$4 sm:$0xff]  }
 0x39b   : > { %v7523_v46 = vpop.f32.mrf.mxu1 }
 0x39c   : > { %7575 = vmatmul.mubr.bf16.gmra.mxu1 %v8501_v1  ;;  %v4540_v35 = vpop.permute.xlu0 %4539  ;;  %v4253_v16 = vpop.permute.xlu1 %4252  ;;  %8828 = vmatprep.mubr.msk.bf16.mxu0 %vm7710_vm2, %v7663_v2  ;;  %v7524_v25 = vadd.f32 %v14076_v7, %v7523_v46 }
 0x39d   : > { %4644 = vst.msk [vmem:[#allocation3 + $0x140] sm:$0xf] %vm4603_vm13, %v4540_v35  ;;  %v7525_v39 = vpop.f32.mrf.mxu1  ;;  %8829 = vmatmul.mubr.msk.bf16.vlgmr.msra.gmra.mxu0 %vm7710_vm2, %v12597_v40  ;;  %8540 = vmatprep.mubr.msk.bf16.mxu1 %vm7317_vm8, %v9097_v44 }
 0x39e   : > { %4356 = vst.msk [vmem:[#allocation3 + $0x148] sm:$0xf] %vm14604_vm6, %v4253_v16  ;;  %8832 = vmatprep.mubr.msk.bf16.mxu0 %vm7710_vm2, %v12726_v51  ;;  %v7640_v42 = vmax.f32 %v7524_v25, 0.0 }
 0x3a0   : > { %v5266_v28 = vpop.permute.xlu0 %5265  ;;  %v4542_v10 = vpop.permute.xlu1 %4541 }
 0x3a1   : > { %5370 = vst.msk [vmem:[#allocation3 + $0x140] sm:$0xf] %vm5329_vm0, %v5266_v28 }
 0x3a2   : > { %4645 = vst.msk [vmem:[#allocation3 + $0x148] sm:$0xf] %vm4603_vm13, %v4542_v10 }
 0x3a4   : > { %v5944_v60 = vpop.permute.xlu0 %5943  ;;  %v5268_v55 = vpop.permute.xlu1 %5267 }
 0x3a5   : > { %6048 = vst.msk [vmem:[#allocation3 + $0x140] sm:$0xf] %vm6007_vm4, %v5944_v60  ;;  %8833 = vmatmul.mubr.msk.bf16.gmra.mxu0 %vm7710_vm2, %v12955_v27 }
 0x3a6   : > { %5371 = vst.msk [vmem:[#allocation3 + $0x148] sm:$0xf] %vm5329_vm0, %v5268_v55  ;;  %8836 = vmatprep.mubr.msk.bf16.mxu0 %vm7710_vm2, %v13088_v59 }
 0x3a8   : > { %v6233_v11 = vpop.permute.xlu0 %6232  ;;  %v5946_v40 = vpop.permute.xlu1 %5945 }
 0x3a9   : > { %6337 = vst.msk [vmem:[#allocation3 + $0x140] sm:$0xf] %vm6296_vm7, %v6233_v11 }
 0x3aa   : > { %6049 = vst.msk [vmem:[#allocation3 + $0x148] sm:$0xf] %vm6007_vm4, %v5946_v40 }
 0x3ac   : > { %v2848_v51 = vpop.permute.xlu0 %2847 }
 0x3ad   : > { %2950 = vst.msk [vmem:[#allocation3 + $0x150] sm:$0xf] %vm2907_vm15, %v2848_v51  ;;  %v6235_v48 = vpop.permute.xlu1 %6234  ;;  %8837 = vmatmul.mubr.msk.bf16.gmra.mxu0 %vm7710_vm2, %v13282_v12 }
 0x3ae   : > { %6338 = vst.msk [vmem:[#allocation3 + $0x148] sm:$0xf] %vm6296_vm7, %v6235_v48  ;;  %8840 = vmatprep.mubr.msk.bf16.mxu0 %vm7710_vm2, %v13423_v17 }
 0x3b0   : > { %v3577_v24 = vpop.permute.xlu0 %3576  ;;  %v7014_v8 = vld [vmem:[#allocation3 + $0x140] sm:$0xff] }
 0x3b1   : > { %3679 = vst.msk [vmem:[#allocation3 + $0x150] sm:$0xf] %vm3636_vm5, %v3577_v24  ;;  %v2850_v27 = vpop.permute.xlu1 %2849 }
 0x3b2   : > { %2951 = vst.msk [vmem:[#allocation3 + $0x158] sm:$0xf] %vm2907_vm15, %v2850_v27 }
 0x3b3   : > { %v7528_v36 = vpop.f32.mrf.mxu1 }
 0x3b4   : > { %v4255_v59 = vpop.permute.xlu0 %4254  ;;  %v7529_v15 = vadd.f32 %v14076_v7, %v7528_v36  ;;  %v9101_v36 = vld [vmem:[#allocation3 + $0x164] ss:$8 sps:$4 sm:$0xff]  }
 0x3b5   : > { %4357 = vst.msk [vmem:[#allocation3 + $0x150] sm:$0xf] %vm14605_vm11, %v4255_v59  ;;  %v3579_v63 = vpop.permute.xlu1 %3578  ;;  %v7015_v49 = vld [vmem:[#allocation3 + $0x148] sm:$0xff]  ;;  %v7530_v62 = vpop.f32.mrf.mxu1  ;;  %8841 = vmatmul.mubr.msk.bf16.gmra.mxu0 %vm7710_vm2, %v13608_v41  ;;  %v7521_v41 = vadd.f32 %v14076_v7, %v14081_v37 }
 0x3b6   : > { %3680 = vst.msk [vmem:[#allocation3 + $0x158] sm:$0xf] %vm3636_vm5, %v3579_v63  ;;  %v8503_v12 = vcombine.low %v7014_v8, %v7015_v49  ;;  %8844 = vmatprep.mubr.msk.bf16.mxu0 %vm7710_vm2, %v13728_v50  ;;  %v7641_v30 = vmax.f32 %v7529_v15, 0.0 }
 0x3b7   : > { %v7531_v32 = vpop.f32.mrf.mxu1  ;;  %v7639_v54 = vmax.f32 %v7521_v41, 0.0 }
 0x3b8   : > { %v4544_v3 = vpop.permute.xlu0 %4543  ;;  %7583 = vmatmul.mubr.bf16.gmra.mxu1 %v8503_v12  ;;  %v7532_v34 = vadd.f32 %v14076_v7, %v7531_v32 }
 0x3b9   : > { %4646 = vst.msk [vmem:[#allocation3 + $0x150] sm:$0xf] %vm4603_vm13, %v4544_v3  ;;  %v4257_v17 = vpop.permute.xlu1 %4256  ;;  %v7533_v57 = vpop.f32.mrf.mxu1  ;;  %8541 = vmatprep.mubr.msk.bf16.mxu1 %vm7317_vm8, %v9099_v5 }
 0x3ba   : > { %4358 = vst.msk [vmem:[#allocation3 + $0x158] sm:$0xf] %vm14606_vm3, %v4257_v17  ;;  %v7642_v52 = vmax.f32 %v7532_v34, 0.0 }
 0x3bc   : > { %v5270_v22 = vpop.permute.xlu0 %5269  ;;  %v7676_v53 = vpack.c.bf16 %v7642_v52, %v7641_v30 }
 0x3bd   : > { %5372 = vst.msk [vmem:[#allocation3 + $0x150] sm:$0xf] %vm5329_vm0, %v5270_v22  ;;  %v4546_v18 = vpop.permute.xlu1 %4545  ;;  %8845 = vmatmul.mubr.msk.bf16.gmra.mxu0 %vm7710_vm2, %v13825_v45  ;;  %v7675_v45 = vpack.c.bf16 %v7640_v42, %v7639_v54 }
 0x3be   : > { %4647 = vst.msk [vmem:[#allocation3 + $0x158] sm:$0xf] %vm4603_vm13, %v4546_v18  ;;  %8848 = vmatprep.mubr.msk.bf16.mxu0 %vm7710_vm2, %v13875_v0 }
 0x3c0   : > { %v5948_v43 = vpop.permute.xlu0 %5947 }
 0x3c1   : > { %6050 = vst.msk [vmem:[#allocation3 + $0x150] sm:$0xf] %vm6007_vm4, %v5948_v43  ;;  %v5272_v50 = vpop.permute.xlu1 %5271 }
 0x3c2   : > { %5373 = vst.msk [vmem:[#allocation3 + $0x158] sm:$0xf] %vm5329_vm0, %v5272_v50 }
 0x3c4   : > { %v6237_v14 = vpop.permute.xlu0 %6236 }
 0x3c5   : > { %6339 = vst.msk [vmem:[#allocation3 + $0x150] sm:$0xf] %vm6296_vm7, %v6237_v14  ;;  %v5950_v61 = vpop.permute.xlu1 %5949  ;;  %8849 = vmatmul.mubr.msk.bf16.gmra.mxu0 %vm7710_vm2, %v13985_v38 }
 0x3c6   : > { %6051 = vst.msk [vmem:[#allocation3 + $0x158] sm:$0xf] %vm6007_vm4, %v5950_v61  ;;  %8852 = vmatprep.mubr.msk.bf16.mxu0 %vm7710_vm2, %v7675_v45  ;;  %v9103_v61 = vld [vmem:[#allocation3 + $0x174] ss:$8 sps:$4 sm:$0xff]  }
 0x3c8   : > { %v2852_v13 = vpop.permute.xlu0 %2851 }
 0x3c9   : > { %2952 = vst.msk [vmem:[#allocation3 + $0x160] sm:$0xf] %vm2907_vm15, %v2852_v13  ;;  %v6239_v0 = vpop.permute.xlu1 %6238 }
 0x3ca   : > { %6340 = vst.msk [vmem:[#allocation3 + $0x158] sm:$0xf] %vm6296_vm7, %v6239_v0 }
 0x3cc   : > { %v3581_v4 = vpop.permute.xlu0 %3580  ;;  %v7016_v6 = vld [vmem:[#allocation3 + $0x150] sm:$0xff] }
 0x3cd   : > { %3681 = vst.msk [vmem:[#allocation3 + $0x160] sm:$0xf] %vm3636_vm5, %v3581_v4  ;;  %v2854_v26 = vpop.permute.xlu1 %2853  ;;  %8853 = vmatmul.mubr.msk.bf16.gmra.mxu0 %vm7710_vm2, %v7676_v53 }
 0x3ce   : > { %2953 = vst.msk [vmem:[#allocation3 + $0x168] sm:$0xf] %vm2907_vm15, %v2854_v26 }
 0x3cf   : > { %v7536_v31 = vpop.f32.mrf.mxu1 }
 0x3d0   : > { %v4259_v29 = vpop.permute.xlu0 %4258  ;;  %v7537_v21 = vadd.f32 %v14076_v7, %v7536_v31 }
 0x3d1   : > { %4359 = vst.msk [vmem:[#allocation3 + $0x160] sm:$0xf] %vm14607_vm12, %v4259_v29  ;;  %v3583_v38 = vpop.permute.xlu1 %3582  ;;  %v7017_v58 = vld [vmem:[#allocation3 + $0x158] sm:$0xff]  ;;  %v7538_v19 = vpop.f32.mrf.mxu1 }
 0x3d2   : > { %3682 = vst.msk [vmem:[#allocation3 + $0x168] sm:$0xf] %vm3636_vm5, %v3583_v38  ;;  %v8505_v33 = vcombine.low %v7016_v6, %v7017_v58  ;;  %v7643_v9 = vmax.f32 %v7537_v21, 0.0 }
 0x3d3   : > { %v7539_v37 = vpop.f32.mrf.mxu1 }
 0x3d4   : > { %v4548_v23 = vpop.permute.xlu0 %4547  ;;  %7591 = vmatmul.mubr.bf16.gmra.mxu1 %v8505_v33  ;;  %v7540_v47 = vadd.f32 %v14076_v7, %v7539_v37 }
 0x3d5   : > { %4648 = vst.msk [vmem:[#allocation3 + $0x160] sm:$0xf] %vm4603_vm13, %v4548_v23  ;;  %v4261_v1 = vpop.permute.xlu1 %4260  ;;  %v7541_v56 = vpop.f32.mrf.mxu1  ;;  %8542 = vmatprep.mubr.msk.bf16.mxu1 %vm7317_vm8, %v9101_v36 }
 0x3d6   : > { %4360 = vst.msk [vmem:[#allocation3 + $0x168] sm:$0xf] %vm14595_vm1, %v4261_v1  ;;  %v7644_v20 = vmax.f32 %v7540_v47, 0.0 }
 0x3d8   : > { %v5274_v35 = vpop.permute.xlu0 %5273  ;;  %v7677_v2 = vpack.c.bf16 %v7644_v20, %v7643_v9 }
 0x3d9   : > { %5374 = vst.msk [vmem:[#allocation3 + $0x160] sm:$0xf] %vm5329_vm0, %v5274_v35  ;;  %v4550_v16 = vpop.permute.xlu1 %4549 }
 0x3da   : > { %4649 = vst.msk [vmem:[#allocation3 + $0x168] sm:$0xf] %vm4603_vm13, %v4550_v16  ;;  %8856 = vmatprep.mubr.msk.bf16.mxu0 %vm7710_vm2, %v7677_v2 }
 0x3dc   : > { %v5952_v46 = vpop.permute.xlu0 %5951 }
 0x3dd   : > { %6052 = vst.msk [vmem:[#allocation3 + $0x160] sm:$0xf] %vm6007_vm4, %v5952_v46  ;;  %v5276_v39 = vpop.permute.xlu1 %5275 }
 0x3de   : > { %5375 = vst.msk [vmem:[#allocation3 + $0x168] sm:$0xf] %vm5329_vm0, %v5276_v39  ;;  %v14189_v39 = vld [vmem:[%s14365_s6] ss:$0 sm:$0xff] }
 0x3e0   : > { %v6241_v28 = vpop.permute.xlu0 %6240 }
 0x3e1   : > { %6341 = vst.msk [vmem:[#allocation3 + $0x160] sm:$0xf] %vm6296_vm7, %v6241_v28  ;;  %v5954_v10 = vpop.permute.xlu1 %5953 }
 0x3e2   : > { %6053 = vst.msk [vmem:[#allocation3 + $0x168] sm:$0xf] %vm6007_vm4, %v5954_v10 }
 0x3e4   : > { %v2856_v60 = vpop.permute.xlu0 %2855 }
 0x3e5   : > { %2954 = vst.msk [vmem:[#allocation3 + $0x170] sm:$0xf] %vm2907_vm15, %v2856_v60  ;;  %v6243_v55 = vpop.permute.xlu1 %6242 }
 0x3e6   : > { %6342 = vst.msk [vmem:[#allocation3 + $0x168] sm:$0xf] %vm6296_vm7, %v6243_v55 }
 0x3e8   : > { %v3585_v11 = vpop.permute.xlu0 %3584  ;;  %v7018_v27 = vld [vmem:[#allocation3 + $0x160] sm:$0xff] }
 0x3e9   : > { %3683 = vst.msk [vmem:[#allocation3 + $0x170] sm:$0xf] %vm3636_vm5, %v3585_v11  ;;  %v2858_v40 = vpop.permute.xlu1 %2857 }
 0x3ea   : > { %2955 = vst.msk [vmem:[#allocation3 + $0x178] sm:$0xf] %vm2907_vm15, %v2858_v40  ;;  %vm14609_vm15 = vmmov %vm14595_vm1 }
 0x3ec   : > { %v4263_v51 = vpop.permute.xlu0 %4262  ;;  %v7544_v48 = vpop.f32.mrf.mxu1 }
 0x3ed   : > { %4361 = vst.msk [vmem:[#allocation3 + $0x170] sm:$0xf] %vm14608_vm9, %v4263_v51  ;;  %v3587_v24 = vpop.permute.xlu1 %3586  ;;  %v7019_v59 = vld [vmem:[#allocation3 + $0x168] sm:$0xff]  ;;  %v7545_v49 = vadd.f32 %v14076_v7, %v7544_v48 }
 0x3ee   : > { %3684 = vst.msk [vmem:[#allocation3 + $0x178] sm:$0xf] %vm3636_vm5, %v3587_v24  ;;  %v7546_v63 = vpop.f32.mrf.mxu1  ;;  %v8507_v8 = vcombine.low %v7018_v27, %v7019_v59  ;;  %vm8200_vm5 = vcmask 60416  }
 0x3ef   : > { %v7645_v17 = vmax.f32 %v7545_v49, 0.0 }
 0x3f0   : > { %v4552_v44 = vpop.permute.xlu0 %4551  ;;  %v7547_v62 = vpop.f32.mrf.mxu1  ;;  %7599 = vmatmul.mubr.bf16.gmra.mxu1 %v8507_v8 }
 0x3f1   : > { %4650 = vst.msk [vmem:[#allocation3 + $0x170] sm:$0xf] %vm4603_vm13, %v4552_v44  ;;  %v4265_v12 = vpop.permute.xlu1 %4264  ;;  %v7548_v3 = vadd.f32 %v14076_v7, %v7547_v62  ;;  %8543 = vmatprep.mubr.msk.bf16.mxu1 %vm7317_vm8, %v9103_v61 }
 0x3f2   : > { %4362 = vst.msk [vmem:[#allocation3 + $0x178] sm:$0xf] %vm14609_vm15, %v4265_v12  ;;  %v7549_v32 = vpop.f32.mrf.mxu1 }
 0x3f3   : > { %v7646_v57 = vmax.f32 %v7548_v3, 0.0 }
 0x3f4   : > { %v5278_v22 = vpop.permute.xlu0 %5277 }
 0x3f5   : > { %v7678_v18 = vpack.c.bf16 %v7646_v57, %v7645_v17  ;;  %5376 = vst.msk [vmem:[#allocation3 + $0x170] sm:$0xf] %vm5329_vm0, %v5278_v22  ;;  %v4554_v25 = vpop.permute.xlu1 %4553 }
 0x3f6   : > { %4651 = vst.msk [vmem:[#allocation3 + $0x178] sm:$0xf] %vm4603_vm13, %v4554_v25 }
 0x3f7   : > { %8857 = vmatmul.mubr.msk.bf16.gmra.mxu0 %vm7710_vm2, %v7678_v18 }
 0x3f8   : > { %v5956_v43 = vpop.permute.xlu0 %5955 }
 0x3f9   : > { %v5280_v41 = vpop.permute.xlu1 %5279  ;;  %6054 = vst.msk [vmem:[#allocation3 + $0x170] sm:$0xf] %vm6007_vm4, %v5956_v43 }
 0x3fa   : > { %5377 = vst.msk [vmem:[#allocation3 + $0x178] sm:$0xf] %vm5329_vm0, %v5280_v41 }
 0x3fc   : > { %v6245_v50 = vpop.permute.xlu0 %6244 }
 0x3fd   : > { %v5958_v42 = vpop.permute.xlu1 %5957  ;;  %6343 = vst.msk [vmem:[#allocation3 + $0x170] sm:$0xf] %vm6296_vm7, %v6245_v50 }
 0x3fe   : > { %6055 = vst.msk [vmem:[#allocation3 + $0x178] sm:$0xf] %vm6007_vm4, %v5958_v42 }
 0x401   : > { %v6247_v14 = vpop.permute.xlu1 %6246 }
 0x402   : > { %6344 = vst.msk [vmem:[#allocation3 + $0x178] sm:$0xf] %vm6296_vm7, %v6247_v14 }
 0x409   : > { %v7552_v54 = vpop.f32.mrf.mxu1  ;;  %v9105_v34 = vld [vmem:[#allocation3 + $0x170] ss:$8 sps:$4 sm:$0xff]  }
 0x40a   : > { %v7553_v15 = vadd.f32 %v14076_v7, %v7552_v54  ;;  %7607 = vmatmul.mubr.bf16.gmra.mxu1 %v9105_v34 }
 0x40b   : > { %v7554_v45 = vpop.f32.mrf.mxu1 }
 0x40c   : > { %v7647_v30 = vmax.f32 %v7553_v15, 0.0 }
 0x40d   : > { %v7555_v13 = vpop.f32.mrf.mxu1 }
 0x40e   : > { %v7556_v0 = vadd.f32 %v14076_v7, %v7555_v13 }
 0x40f   : > { %v7557_v52 = vpop.f32.mrf.mxu1 }
 0x410   : > { %v7648_v4 = vmax.f32 %v7556_v0, 0.0 }
 0x412   : > { %v7679_v26 = vpack.c.bf16 %v7648_v4, %v7647_v30 }
 0x414   : > { %8860 = vmatprep.mubr.msk.bf16.mxu0 %vm7710_vm2, %v7679_v26 }
 0x424   : > { %v7560_v53 = vpop.f32.mrf.mxu1 }
 0x425   : > { %v7561_v31 = vadd.f32 %v14076_v7, %v7560_v53 }
 0x426   : > { %v7562_v29 = vpop.f32.mrf.mxu1 }
 0x427   : > { %v7649_v5 = vmax.f32 %v7561_v31, 0.0 }
 0x428   : > { %v7563_v38 = vpop.f32.mrf.mxu1 }
 0x429   : > { %v7564_v6 = vadd.f32 %v14076_v7, %v7563_v38 }
 0x42a   : > { %v7565_v58 = vpop.f32.mrf.mxu1 }
 0x42b   : > { %v7650_v19 = vmax.f32 %v7564_v6, 0.0 }
 0x42d   : > { %v7680_v33 = vpack.c.bf16 %v7650_v19, %v7649_v5 }
 0x42f   : > { %8861 = vmatmul.mubr.msk.bf16.gmra.mxu0 %vm7710_vm2, %v7680_v33 }
 0x43f   : > { %v7568_v21 = vpop.f32.mrf.mxu1 }
 0x440   : > { %v7569_v37 = vadd.f32 %v14076_v7, %v7568_v21 }
 0x441   : > { %v7570_v23 = vpop.f32.mrf.mxu1 }
 0x442   : > { %v7651_v9 = vmax.f32 %v7569_v37, 0.0 }
 0x443   : > { %v7571_v1 = vpop.f32.mrf.mxu1 }
 0x444   : > { %v7572_v47 = vadd.f32 %v14076_v7, %v7571_v1 }
 0x445   : > { %v7573_v56 = vpop.f32.mrf.mxu1 }
 0x446   : > { %v7652_v20 = vmax.f32 %v7572_v47, 0.0 }
 0x448   : > { %v7681_v35 = vpack.c.bf16 %v7652_v20, %v7651_v9 }
 0x44a   : > { %8864 = vmatprep.mubr.msk.bf16.mxu0 %vm7710_vm2, %v7681_v35 }
 0x45c   : > { %v7576_v2 = vpop.f32.mrf.mxu1 }
 0x45d   : > { %v7577_v46 = vadd.f32 %v14076_v7, %v7576_v2  ;;  %v8830_v60 = vpop.f32.mrf.mxu0 }
 0x45e   : > { %v7578_v16 = vpop.f32.mrf.mxu1  ;;  %v7826_v55 = vadd.f32 %v8830_v60, %v14189_v39 }
 0x45f   : > { %v7653_v40 = vmax.f32 %v7577_v46, 0.0  ;;  %v7817_v48 = vpop.f32.mrf.mxu0 }
 0x460   : > { %v7579_v28 = vpop.f32.mrf.mxu1  ;;  %v8671_v24 = vpack.c.bf16 %v7826_v55, %v7826_v55  ;;  %v7818_v27 = vadd.f32 %v14189_v39, %v7817_v48 }
 0x461   : > { %v7580_v10 = vadd.f32 %v14076_v7, %v7579_v28  ;;  %v8831_v36 = vpop.f32.mrf.mxu0 }
 0x462   : > { %v7581_v11 = vpop.f32.mrf.mxu1  ;;  %8203 = vst.msk [vmem:[%s14198_s11 + $0x8] sm:$0xf] %vm8200_vm5, %v8671_v24  ;;  %v8669_v63 = vpack.c.bf16 %v7818_v27, %v7818_v27  ;;  %v7829_v8 = vadd.f32 %v8831_v36, %v14189_v39 }
 0x463   : > { %v7654_v51 = vmax.f32 %v7580_v10, 0.0  ;;  %v7820_v49 = vpop.f32.mrf.mxu0 }
 0x464   : > { %8201 = vst.msk [vmem:[%s14198_s11] sm:$0xf] %vm8200_vm5, %v8669_v63  ;;  %v8672_v44 = vpack.c.bf16 %v7829_v8, %v7829_v8  ;;  %v7821_v62 = vadd.f32 %v14189_v39, %v7820_v49 }
 0x465   : > { %v7682_v59 = vpack.c.bf16 %v7654_v51, %v7653_v40  ;;  %v8834_v12 = vpop.f32.mrf.mxu0 }
 0x466   : > { %8204 = vst.msk [vmem:[%s14198_s11 + $0xc] sm:$0xf] %vm8200_vm5, %v8672_v44  ;;  %v8670_v3 = vpack.c.bf16 %v7821_v62, %v7821_v62  ;;  %v7842_v32 = vadd.f32 %v8834_v12, %v14189_v39 }
 0x467   : > { %8865 = vmatmul.mubr.msk.bf16.gmra.mxu0 %vm7710_vm2, %v7682_v59  ;;  %v7833_v17 = vpop.f32.mrf.mxu0 }
 0x468   : > { %8202 = vst.msk [vmem:[%s14198_s11 + $0x4] sm:$0xf] %vm8200_vm5, %v8670_v3  ;;  %v8675_v57 = vpack.c.bf16 %v7842_v32, %v7842_v32  ;;  %v7834_v22 = vadd.f32 %v14189_v39, %v7833_v17 }
 0x469   : > { %v8835_v18 = vpop.f32.mrf.mxu0 }
 0x46a   : > { %8207 = vst.msk [vmem:[%s14198_s11 + $0x18] sm:$0xf] %vm8200_vm5, %v8675_v57  ;;  %v8673_v25 = vpack.c.bf16 %v7834_v22, %v7834_v22  ;;  %v7845_v43 = vadd.f32 %v8835_v18, %v14189_v39 }
 0x46b   : > { %v7836_v41 = vpop.f32.mrf.mxu0 }
 0x46c   : > { %8205 = vst.msk [vmem:[%s14198_s11 + $0x10] sm:$0xf] %vm8200_vm5, %v8673_v25  ;;  %v8676_v50 = vpack.c.bf16 %v7845_v43, %v7845_v43  ;;  %v7837_v42 = vadd.f32 %v14189_v39, %v7836_v41 }
 0x46d   : > { %v8838_v14 = vpop.f32.mrf.mxu0 }
 0x46e   : > { %8208 = vst.msk [vmem:[%s14198_s11 + $0x1c] sm:$0xf] %vm8200_vm5, %v8676_v50  ;;  %v8674_v54 = vpack.c.bf16 %v7837_v42, %v7837_v42  ;;  %v7858_v61 = vadd.f32 %v8838_v14, %v14189_v39 }
 0x46f   : > { %v7849_v34 = vpop.f32.mrf.mxu0 }
 0x470   : > { %8206 = vst.msk [vmem:[%s14198_s11 + $0x14] sm:$0xf] %vm8200_vm5, %v8674_v54  ;;  %v8679_v45 = vpack.c.bf16 %v7858_v61, %v7858_v61  ;;  %v7850_v15 = vadd.f32 %v14189_v39, %v7849_v34 }
 0x471   : > { %v8839_v13 = vpop.f32.mrf.mxu0 }
 0x472   : > { %8211 = vst.msk [vmem:[%s14198_s11 + $0x28] sm:$0xf] %vm8200_vm5, %v8679_v45  ;;  %v8677_v0 = vpack.c.bf16 %v7850_v15, %v7850_v15  ;;  %v7861_v52 = vadd.f32 %v8839_v13, %v14189_v39 }
 0x473   : > { %v7852_v30 = vpop.f32.mrf.mxu0 }
 0x474   : > { %8209 = vst.msk [vmem:[%s14198_s11 + $0x20] sm:$0xf] %vm8200_vm5, %v8677_v0  ;;  %v8680_v4 = vpack.c.bf16 %v7861_v52, %v7861_v52  ;;  %v7853_v26 = vadd.f32 %v14189_v39, %v7852_v30 }
 0x475   : > { %v8842_v29 = vpop.f32.mrf.mxu0 }
 0x476   : > { %8212 = vst.msk [vmem:[%s14198_s11 + $0x2c] sm:$0xf] %vm8200_vm5, %v8680_v4  ;;  %v8678_v31 = vpack.c.bf16 %v7853_v26, %v7853_v26  ;;  %v7874_v38 = vadd.f32 %v8842_v29, %v14189_v39 }
 0x477   : > { %v7865_v58 = vpop.f32.mrf.mxu0 }
 0x478   : > { %v7584_v53 = vpop.f32.mrf.mxu1  ;;  %8210 = vst.msk [vmem:[%s14198_s11 + $0x24] sm:$0xf] %vm8200_vm5, %v8678_v31  ;;  %v8683_v19 = vpack.c.bf16 %v7874_v38, %v7874_v38  ;;  %v7866_v33 = vadd.f32 %v14189_v39, %v7865_v58 }
 0x479   : > { %v7585_v5 = vadd.f32 %v14076_v7, %v7584_v53  ;;  %v8843_v23 = vpop.f32.mrf.mxu0 }
 0x47a   : > { %v7586_v6 = vpop.f32.mrf.mxu1  ;;  %8215 = vst.msk [vmem:[%s14198_s11 + $0x38] sm:$0xf] %vm8200_vm5, %v8683_v19  ;;  %v8681_v37 = vpack.c.bf16 %v7866_v33, %v7866_v33  ;;  %v7877_v47 = vadd.f32 %v8843_v23, %v14189_v39 }
 0x47b   : > { %v7868_v9 = vpop.f32.mrf.mxu0  ;;  %v7655_v20 = vmax.f32 %v7585_v5, 0.0 }
 0x47c   : > { %v7587_v21 = vpop.f32.mrf.mxu1  ;;  %8213 = vst.msk [vmem:[%s14198_s11 + $0x30] sm:$0xf] %vm8200_vm5, %v8681_v37  ;;  %v8684_v2 = vpack.c.bf16 %v7877_v47, %v7877_v47  ;;  %v7869_v16 = vadd.f32 %v14189_v39, %v7868_v9 }
 0x47d   : > { %v7588_v1 = vadd.f32 %v14076_v7, %v7587_v21  ;;  %v8846_v46 = vpop.f32.mrf.mxu0 }
 0x47e   : > { %v7589_v56 = vpop.f32.mrf.mxu1  ;;  %8216 = vst.msk [vmem:[%s14198_s11 + $0x3c] sm:$0xf] %vm8200_vm5, %v8684_v2  ;;  %v8682_v10 = vpack.c.bf16 %v7869_v16, %v7869_v16  ;;  %v7890_v60 = vadd.f32 %v8846_v46, %v14189_v39 }
 0x47f   : > { %v7656_v35 = vmax.f32 %v7588_v1, 0.0  ;;  %v7881_v55 = vpop.f32.mrf.mxu0 }
 0x480   : > { %8214 = vst.msk [vmem:[%s14198_s11 + $0x34] sm:$0xf] %vm8200_vm5, %v8682_v10  ;;  %v8687_v11 = vpack.c.bf16 %v7890_v60, %v7890_v60  ;;  %v7882_v40 = vadd.f32 %v14189_v39, %v7881_v55 }
 0x481   : > { %v7683_v28 = vpack.c.bf16 %v7656_v35, %v7655_v20  ;;  %v8847_v51 = vpop.f32.mrf.mxu0 }
 0x482   : > { %8219 = vst.msk [vmem:[%s14198_s11 + $0x48] sm:$0xf] %vm8200_vm5, %v8687_v11  ;;  %v8685_v48 = vpack.c.bf16 %v7882_v40, %v7882_v40  ;;  %v7893_v24 = vadd.f32 %v8847_v51, %v14189_v39 }
 0x483   : > { %8868 = vmatprep.mubr.msk.bf16.mxu0 %vm7710_vm2, %v7683_v28  ;;  %v7884_v27 = vpop.f32.mrf.mxu0 }
 0x484   : > { %8217 = vst.msk [vmem:[%s14198_s11 + $0x40] sm:$0xf] %vm8200_vm5, %v8685_v48  ;;  %v8688_v59 = vpack.c.bf16 %v7893_v24, %v7893_v24  ;;  %v7885_v36 = vadd.f32 %v14189_v39, %v7884_v27 }
 0x485   : > { %v8850_v63 = vpop.f32.mrf.mxu0 }
 0x486   : > { %8220 = vst.msk [vmem:[%s14198_s11 + $0x4c] sm:$0xf] %vm8200_vm5, %v8688_v59  ;;  %v8686_v8 = vpack.c.bf16 %v7885_v36, %v7885_v36  ;;  %v7906_v49 = vadd.f32 %v8850_v63, %v14189_v39 }
 0x487   : > { %v7897_v44 = vpop.f32.mrf.mxu0 }
 0x488   : > { %8218 = vst.msk [vmem:[%s14198_s11 + $0x44] sm:$0xf] %vm8200_vm5, %v8686_v8  ;;  %v8691_v62 = vpack.c.bf16 %v7906_v49, %v7906_v49  ;;  %v7898_v12 = vadd.f32 %v14189_v39, %v7897_v44 }
 0x489   : > { %v8851_v3 = vpop.f32.mrf.mxu0 }
 0x48a   : > { %8223 = vst.msk [vmem:[%s14198_s11 + $0x58] sm:$0xf] %vm8200_vm5, %v8691_v62  ;;  %v8689_v32 = vpack.c.bf16 %v7898_v12, %v7898_v12  ;;  %v7909_v17 = vadd.f32 %v8851_v3, %v14189_v39 }
 0x48b   : > { %v7900_v57 = vpop.f32.mrf.mxu0 }
 0x48c   : > { %8221 = vst.msk [vmem:[%s14198_s11 + $0x50] sm:$0xf] %vm8200_vm5, %v8689_v32  ;;  %v8692_v22 = vpack.c.bf16 %v7909_v17, %v7909_v17  ;;  %v7901_v18 = vadd.f32 %v14189_v39, %v7900_v57 }
 0x48d   : > { %v8854_v25 = vpop.f32.mrf.mxu0 }
 0x48e   : > { %8224 = vst.msk [vmem:[%s14198_s11 + $0x5c] sm:$0xf] %vm8200_vm5, %v8692_v22  ;;  %v8690_v43 = vpack.c.bf16 %v7901_v18, %v7901_v18  ;;  %v7922_v41 = vadd.f32 %v8854_v25, %v14189_v39 }
 0x48f   : > { %v7913_v50 = vpop.f32.mrf.mxu0 }
 0x490   : > { %8222 = vst.msk [vmem:[%s14198_s11 + $0x54] sm:$0xf] %vm8200_vm5, %v8690_v43  ;;  %v8695_v42 = vpack.c.bf16 %v7922_v41, %v7922_v41  ;;  %v7914_v14 = vadd.f32 %v14189_v39, %v7913_v50 }
 0x491   : > { %v8855_v61 = vpop.f32.mrf.mxu0 }
 0x492   : > { %8227 = vst.msk [vmem:[%s14198_s11 + $0x68] sm:$0xf] %vm8200_vm5, %v8695_v42  ;;  %v8693_v34 = vpack.c.bf16 %v7914_v14, %v7914_v14  ;;  %v7925_v45 = vadd.f32 %v8855_v61, %v14189_v39 }
 0x493   : > { %v7916_v13 = vpop.f32.mrf.mxu0 }
 0x494   : > { %v7592_v54 = vpop.f32.mrf.mxu1  ;;  %8225 = vst.msk [vmem:[%s14198_s11 + $0x60] sm:$0xf] %vm8200_vm5, %v8693_v34  ;;  %v8696_v52 = vpack.c.bf16 %v7925_v45, %v7925_v45  ;;  %v7917_v30 = vadd.f32 %v14189_v39, %v7916_v13 }
 0x495   : > { %v7593_v0 = vadd.f32 %v14076_v7, %v7592_v54 }
 0x496   : > { %v7594_v15 = vpop.f32.mrf.mxu1  ;;  %8228 = vst.msk [vmem:[%s14198_s11 + $0x6c] sm:$0xf] %vm8200_vm5, %v8696_v52  ;;  %v8694_v26 = vpack.c.bf16 %v7917_v30, %v7917_v30 }
 0x497   : > { %v7657_v31 = vmax.f32 %v7593_v0, 0.0 }
 0x498   : > { %v7595_v4 = vpop.f32.mrf.mxu1  ;;  %8226 = vst.msk [vmem:[%s14198_s11 + $0x64] sm:$0xf] %vm8200_vm5, %v8694_v26 }
 0x499   : > { %v7596_v53 = vadd.f32 %v14076_v7, %v7595_v4 }
 0x49a   : > { %v7597_v29 = vpop.f32.mrf.mxu1 }
 0x49b   : > { %v7658_v38 = vmax.f32 %v7596_v53, 0.0 }
 0x49d   : > { %v7684_v6 = vpack.c.bf16 %v7658_v38, %v7657_v31 }
 0x49f   : > { %8869 = vmatmul.mubr.msk.bf16.gmra.mxu0 %vm7710_vm2, %v7684_v6 }
 0x4b0   : > { %v7600_v58 = vpop.f32.mrf.mxu1 }
 0x4b1   : > { %v7601_v19 = vadd.f32 %v14076_v7, %v7600_v58 }
 0x4b2   : > { %v7602_v5 = vpop.f32.mrf.mxu1 }
 0x4b3   : > { %v7659_v37 = vmax.f32 %v7601_v19, 0.0 }
 0x4b4   : > { %v7603_v33 = vpop.f32.mrf.mxu1 }
 0x4b5   : > { %v7604_v21 = vadd.f32 %v14076_v7, %v7603_v33 }
 0x4b6   : > { %v7605_v23 = vpop.f32.mrf.mxu1 }
 0x4b7   : > { %v7660_v1 = vmax.f32 %v7604_v21, 0.0  ;;  %v8858_v47 = vpop.f32.mrf.mxu0 }
 0x4b8   : > { %v7938_v56 = vadd.f32 %v8858_v47, %v14189_v39 }
 0x4b9   : > { %v7685_v9 = vpack.c.bf16 %v7660_v1, %v7659_v37  ;;  %v7929_v20 = vpop.f32.mrf.mxu0 }
 0x4ba   : > { %v8699_v35 = vpack.c.bf16 %v7938_v56, %v7938_v56  ;;  %v7930_v2 = vadd.f32 %v14189_v39, %v7929_v20 }
 0x4bb   : > { %v8859_v16 = vpop.f32.mrf.mxu0  ;;  %8872 = vmatprep.mubr.msk.bf16.mxu0 %vm7710_vm2, %v7685_v9 }
 0x4bc   : > { %8231 = vst.msk [vmem:[%s14198_s11 + $0x78] sm:$0xf] %vm8200_vm5, %v8699_v35  ;;  %v8697_v46 = vpack.c.bf16 %v7930_v2, %v7930_v2  ;;  %v7941_v28 = vadd.f32 %v8859_v16, %v14189_v39 }
 0x4bd   : > { %v7932_v10 = vpop.f32.mrf.mxu0 }
 0x4be   : > { %8229 = vst.msk [vmem:[%s14198_s11 + $0x70] sm:$0xf] %vm8200_vm5, %v8697_v46  ;;  %v8700_v60 = vpack.c.bf16 %v7941_v28, %v7941_v28  ;;  %v7933_v55 = vadd.f32 %v14189_v39, %v7932_v10 }
 0x4c0   : > { %8232 = vst.msk [vmem:[%s14198_s11 + $0x7c] sm:$0xf] %vm8200_vm5, %v8700_v60  ;;  %v8698_v11 = vpack.c.bf16 %v7933_v55, %v7933_v55 }
 0x4c2   : > { %8230 = vst.msk [vmem:[%s14198_s11 + $0x74] sm:$0xf] %vm8200_vm5, %v8698_v11 }
 0x4ca   : > { %v7608_v40 = vpop.f32.mrf.mxu1 }
 0x4cb   : > { %v7609_v48 = vadd.f32 %v14076_v7, %v7608_v40 }
 0x4cc   : > { %v7610_v51 = vpop.f32.mrf.mxu1 }
 0x4cd   : > { %v7661_v36 = vmax.f32 %v7609_v48, 0.0 }
 0x4ce   : > { %v7611_v24 = vpop.f32.mrf.mxu1 }
 0x4cf   : > { %v7612_v27 = vadd.f32 %v14076_v7, %v7611_v24 }
 0x4d0   : > { %v7613_v59 = vpop.f32.mrf.mxu1 }
 0x4d1   : > { %v7662_v63 = vmax.f32 %v7612_v27, 0.0 }
 0x4d3   : > { %v7686_v8 = vpack.c.bf16 %v7662_v63, %v7661_v36 }
 0x4d5   : > { %8873 = vmatmul.mubr.msk.bf16.gmra.mxu0 %vm7710_vm2, %v7686_v8 }
 0x4ef   : > { %v8862_v49 = vpop.f32.mrf.mxu0 }
 0x4f0   : > { %v7954_v44 = vadd.f32 %v8862_v49, %v14189_v39 }
 0x4f1   : > { %v7945_v62 = vpop.f32.mrf.mxu0 }
 0x4f2   : > { %v8703_v12 = vpack.c.bf16 %v7954_v44, %v7954_v44  ;;  %v7946_v3 = vadd.f32 %v14189_v39, %v7945_v62 }
 0x4f3   : > { %v8863_v32 = vpop.f32.mrf.mxu0 }
 0x4f4   : > { %8235 = vst.msk [vmem:[%s14198_s11 + $0x88] sm:$0xf] %vm8200_vm5, %v8703_v12  ;;  %v8701_v7 = vpack.c.bf16 %v7946_v3, %v7946_v3  ;;  %v7957_v17 = vadd.f32 %v8863_v32, %v14189_v39 }
 0x4f5   : > { %v7948_v57 = vpop.f32.mrf.mxu0 }
 0x4f6   : > { %8233 = vst.msk [vmem:[%s14198_s11 + $0x80] sm:$0xf] %vm8200_vm5, %v8701_v7  ;;  %v8704_v22 = vpack.c.bf16 %v7957_v17, %v7957_v17  ;;  %v7949_v18 = vadd.f32 %v14189_v39, %v7948_v57 }
 0x4f8   : > { %8236 = vst.msk [vmem:[%s14198_s11 + $0x8c] sm:$0xf] %vm8200_vm5, %v8704_v22  ;;  %v8702_v25 = vpack.c.bf16 %v7949_v18, %v7949_v18 }
 0x4fa   : > { %8234 = vst.msk [vmem:[%s14198_s11 + $0x84] sm:$0xf] %vm8200_vm5, %v8702_v25 }
 0x527   : > { %v8866_v43 = vpop.f32.mrf.mxu0 }
 0x528   : > { %v7970_v41 = vadd.f32 %v8866_v43, %v14189_v39 }
 0x529   : > { %v7961_v50 = vpop.f32.mrf.mxu0 }
 0x52a   : > { %v8707_v42 = vpack.c.bf16 %v7970_v41, %v7970_v41  ;;  %v7962_v14 = vadd.f32 %v14189_v39, %v7961_v50 }
 0x52b   : > { %v8867_v54 = vpop.f32.mrf.mxu0 }
 0x52c   : > { %8239 = vst.msk [vmem:[%s14198_s11 + $0x98] sm:$0xf] %vm8200_vm5, %v8707_v42  ;;  %v8705_v61 = vpack.c.bf16 %v7962_v14, %v7962_v14  ;;  %v7973_v34 = vadd.f32 %v8867_v54, %v14189_v39 }
 0x52d   : > { %v7964_v45 = vpop.f32.mrf.mxu0 }
 0x52e   : > { %8237 = vst.msk [vmem:[%s14198_s11 + $0x90] sm:$0xf] %vm8200_vm5, %v8705_v61  ;;  %v8708_v15 = vpack.c.bf16 %v7973_v34, %v7973_v34  ;;  %v7965_v13 = vadd.f32 %v14189_v39, %v7964_v45 }
 0x530   : > { %8240 = vst.msk [vmem:[%s14198_s11 + $0x9c] sm:$0xf] %vm8200_vm5, %v8708_v15  ;;  %v8706_v0 = vpack.c.bf16 %v7965_v13, %v7965_v13 }
 0x532   : > { %8238 = vst.msk [vmem:[%s14198_s11 + $0x94] sm:$0xf] %vm8200_vm5, %v8706_v0 }
 0x55f   : > { %v8870_v52 = vpop.f32.mrf.mxu0 }
 0x560   : > { %v7986_v30 = vadd.f32 %v8870_v52, %v14189_v39 }
 0x561   : > { %v7977_v4 = vpop.f32.mrf.mxu0 }
 0x562   : > { %v8711_v26 = vpack.c.bf16 %v7986_v30, %v7986_v30  ;;  %v7978_v53 = vadd.f32 %v14189_v39, %v7977_v4 }
 0x563   : > { %v8871_v29 = vpop.f32.mrf.mxu0 }
 0x564   : > { %8243 = vst.msk [vmem:[%s14198_s11 + $0xa8] sm:$0xf] %vm8200_vm5, %v8711_v26  ;;  %v8709_v31 = vpack.c.bf16 %v7978_v53, %v7978_v53  ;;  %v7989_v38 = vadd.f32 %v8871_v29, %v14189_v39 }
 0x565   : > { %v7980_v6 = vpop.f32.mrf.mxu0 }
 0x566   : > { %8241 = vst.msk [vmem:[%s14198_s11 + $0xa0] sm:$0xf] %vm8200_vm5, %v8709_v31  ;;  %v8712_v58 = vpack.c.bf16 %v7989_v38, %v7989_v38  ;;  %v7981_v5 = vadd.f32 %v14189_v39, %v7980_v6 }
 0x568   : > { %8244 = vst.msk [vmem:[%s14198_s11 + $0xac] sm:$0xf] %vm8200_vm5, %v8712_v58  ;;  %v8710_v19 = vpack.c.bf16 %v7981_v5, %v7981_v5 }
 0x56a   : > { %8242 = vst.msk [vmem:[%s14198_s11 + $0xa4] sm:$0xf] %vm8200_vm5, %v8710_v19 }
 0x595   : > { %v8874_v33 = vpop.f32.mrf.mxu0 }
 0x596   : > { %v8002_v21 = vadd.f32 %v8874_v33, %v14189_v39 }
 0x597   : > { %v7993_v23 = vpop.f32.mrf.mxu0 }
 0x598   : > { %v8715_v37 = vpack.c.bf16 %v8002_v21, %v8002_v21  ;;  %v7994_v1 = vadd.f32 %v14189_v39, %v7993_v23 }
 0x599   : > { %v8875_v47 = vpop.f32.mrf.mxu0 }
 0x59a   : > { %8247 = vst.msk [vmem:[%s14198_s11 + $0xb8] sm:$0xf] %vm8200_vm5, %v8715_v37  ;;  %v8713_v56 = vpack.c.bf16 %v7994_v1, %v7994_v1  ;;  %v8005_v9 = vadd.f32 %v8875_v47, %v14189_v39 }
 0x59b   : > { %v7996_v20 = vpop.f32.mrf.mxu0 }
 0x59c   : > { %8245 = vst.msk [vmem:[%s14198_s11 + $0xb0] sm:$0xf] %vm8200_vm5, %v8713_v56  ;;  %v8716_v35 = vpack.c.bf16 %v8005_v9, %v8005_v9  ;;  %v7997_v2 = vadd.f32 %v14189_v39, %v7996_v20 }
 0x59e   : > { %8248 = vst.msk [vmem:[%s14198_s11 + $0xbc] sm:$0xf] %vm8200_vm5, %v8716_v35  ;;  %v8714_v16 = vpack.c.bf16 %v7997_v2, %v7997_v2 }
 0x5a0   : > { %8246 = vst.msk [vmem:[%s14198_s11 + $0xb4] sm:$0xf] %vm8200_vm5, %v8714_v16 }
 0x5a1 PF: > { %s17_s24 = sadd.s32 1, %s9122_s24  }
 0x5a2   : > { %p14_p4 = scmp.ge.s32.totalorder %s17_s24, 4  }
 0x5a4   :  { %16 = sbr.rel (!%p14_p4) target bundleno = 1 (0x1), region = 78 }

</bundles_post_ra>
